<compile_context>
chip_gen: v5e
topology: v5e:2x2
jax: 0.10.0
libtpu: 0.0.40
codegen_flags: <defaults>
</compile_context>

<pallas_src>
import functools
import math

import jax
import jax.numpy as jnp
from jax.experimental import pallas as pl
from jax.experimental.pallas import tpu as pltpu

# ----------------------------- configuration ------------------------------
B = 2              # batch
C_LAT = 4          # latent channels (UNet in/out channels)
H = W = 16         # latent spatial size
C = 32             # model / cross-attention width
SEQ_TXT = 8        # text tokens
CLIP_DIM = 32      # image-embedding dim
NUM_IP_TOKENS = 4  # ip tokens produced by image_proj_model
IP_SCALE = 1.0
HW = H * W
SEQ_ALL = SEQ_TXT + NUM_IP_TOKENS

assert W & (W - 1) == 0, "W must be a power of two (lane/sublane index tricks)"
W_LOG2 = W.bit_length() - 1

# --------------------- packed-constant layout (3 slabs) ---------------------
# (a) bf16 weight slab `w_a`, shape (C, W_A_LANES): all projection weights,
#     stored transposed so every use is an A @ B^T (NT) dot_general.
_W_A_CHUNKS = (
    ("proj", NUM_IP_TOKENS * CLIP_DIM),   # image_proj Linear (block-diag form)^T
    ("wkv", 2 * C),                       # to_k | to_v           (text)
    ("wkv_ip", 2 * C),                    # to_k_ip | to_v_ip     (adapter)
    ("t_w1", C), ("t_w2", C),             # time-embedding MLP
    ("wq", C), ("wo", C),                 # attention q / out proj
    ("cin", 9 * C_LAT),                   # conv_in (im2col weights)^T
)
W_A_OFF = {}
_o = 0
for _name, _width in _W_A_CHUNKS:
  W_A_OFF[_name] = _o
  _o += _width
W_A_LANES = _o                            # 420

# (b) bf16 conv_out slab, shape (C_LAT, 9*C + 1); last column = conv_out bias.
W_COUT_LANES = 9 * C + 1                  # 289

# (c) f32 bias / LayerNorm slab, one vector per row, padded to 128 lanes.
ROW_PROJ_B = 0                            # rows 0 .. NUM_IP_TOKENS-1
ROW_PLN_G = NUM_IP_TOKENS
ROW_PLN_B = ROW_PLN_G + 1
ROW_CIN_B = ROW_PLN_B + 1
ROW_T_B1 = ROW_CIN_B + 1
ROW_T_B2 = ROW_T_B1 + 1
ROW_ALN_G = ROW_T_B2 + 1
ROW_ALN_B = ROW_ALN_G + 1
ROW_BO = ROW_ALN_B + 1
BIAS_ROWS = ROW_BO + 1                    # 12
BIAS_LANES = 128

# Per-batch aux slab rows: [text tokens | sinusoidal t-emb | block-diag img emb]
AUX_W = NUM_IP_TOKENS * CLIP_DIM          # 128
AUX_ROWS = SEQ_TXT + 1 + NUM_IP_TOKENS    # 13
assert AUX_W >= C


# ------------------------------ fused kernel -------------------------------
def _fused_ip_adapter_kernel(patch_ref, aux_ref, wa_ref, wcout_ref, bias_ref,
                             out_ref, *, scale, ip_scale):
  f32, bf16 = jnp.float32, jnp.bfloat16
  dn_nt = (((1,), (1,)), ((), ()))        # contract last dims of both (A @ B^T)

  def _ln(x, g, b):
    m = jnp.mean(x, axis=-1, keepdims=True)
    v = jnp.mean(jnp.square(x - m), axis=-1, keepdims=True)
    return (x - m) * jax.lax.rsqrt(v + 1e-5) * g + b

  def _dot(a, w):                         # (M,K)x(K,N), bf16 MXU, f32 acc
    return jnp.dot(a.astype(bf16), w.astype(bf16), preferred_element_type=f32)

  def _dot_nt(a, w):                      # (M,K)x(N,K) -> (M,N)
    return jax.lax.dot_general(a.astype(bf16), w.astype(bf16), dn_nt,
                               preferred_element_type=f32)

  def wchunk(name):                       # static lane slice of the weight slab
    return wa_ref[:, pl.ds(W_A_OFF[name], dict(_W_A_CHUNKS)[name])]

  def brow(r):                            # one (1, C) bias / LN row
    return bias_ref[pl.ds(r, 1), pl.ds(0, C)]

  # ---- image_proj_model: one block-diag matmul -> (Nip, C) ip tokens + LN
  big_img = aux_ref[0, pl.ds(SEQ_TXT + 1, NUM_IP_TOKENS), :]     # (Nip, Nip*CLIP)
  ip = _dot_nt(big_img, wchunk("proj"))                          # (Nip, C)
  ip = ip + bias_ref[pl.ds(ROW_PROJ_B, NUM_IP_TOKENS), pl.ds(0, C)]
  ip = _ln(ip, brow(ROW_PLN_G), brow(ROW_PLN_B))

  # ---- time-embedding MLP (sinusoidal table precomputed in wrapper)
  t0 = aux_ref[0, pl.ds(SEQ_TXT, 1), pl.ds(0, C)]                # (1, C)
  h1 = _dot(t0, wchunk("t_w1")) + brow(ROW_T_B1)
  h1 = h1 * jax.nn.sigmoid(h1)                                   # SiLU
  temb = _dot(h1, wchunk("t_w2")) + brow(ROW_T_B2)               # (1, C)

  # ---- conv_in: single K=36 matmul over the wrapper-built im2col patches
  x2d = _dot_nt(patch_ref[0], wchunk("cin"))                     # (HW, C)
  x2d = x2d + brow(ROW_CIN_B) + temb

  # ---- decoupled (text + ip) cross-attention, fused score / output matmuls
  xn = _ln(x2d, brow(ROW_ALN_G), brow(ROW_ALN_B))
  q = _dot(xn, wchunk("wq"))                                     # (HW, C)
  txt = aux_ref[0, pl.ds(0, SEQ_TXT), pl.ds(0, C)]               # (S, C)
  kv_txt = _dot(txt, wchunk("wkv"))                              # (S, 2C)
  kv_ip = _dot(ip, wchunk("wkv_ip"))                             # (Nip, 2C)
  kv = jnp.concatenate([kv_txt, kv_ip], axis=0)                  # (S+Nip, 2C)
  k_all, v_all = kv[:, :C], kv[:, C:]

  s = _dot_nt(q, k_all) * scale                                  # (HW, S+Nip)
  col = jax.lax.broadcasted_iota(jnp.int32, (1, SEQ_ALL), 1)
  is_txt = col < SEQ_TXT
  m_txt = jnp.max(jnp.where(is_txt, s, -jnp.inf), axis=-1, keepdims=True)
  m_ip = jnp.max(jnp.where(is_txt, -jnp.inf, s), axis=-1, keepdims=True)
  p = jnp.exp(s - jnp.where(is_txt, m_txt, m_ip))
  d_txt = jnp.sum(jnp.where(is_txt, p, 0.0), axis=-1, keepdims=True)
  d_ip = jnp.sum(jnp.where(is_txt, 0.0, p), axis=-1, keepdims=True)
  p = p * pl.reciprocal(jnp.where(is_txt, d_txt, d_ip), approx=True)
  p = p * jnp.where(is_txt, 1.0, ip_scale)                       # ip_scale fold
  attn = _dot(p, v_all)                                          # (HW, C)
  x2d = x2d + _dot(attn, wchunk("wo")) + brow(ROW_BO)            # residual

  # ---- conv_out: sublane rolls + edge masks -> one K=(9C+1) NT matmul
  row_i = jax.lax.broadcasted_iota(jnp.int32, (HW, 1), 0)        # flat index
  yy = row_i >> W_LOG2
  xx = row_i & (W - 1)
  taps = []
  for idx in range(9):
    dy, dx = idx // 3 - 1, idx % 3 - 1
    off = dy * W + dx
    if off == 0:
      taps.append(x2d.astype(bf16))
      continue
    shifted = pltpu.roll(x2d, shift=(-off) % HW, axis=0)         # XLU, free-ish
    conds = []
    if dy < 0:
      conds.append(yy >= -dy)
    if dy > 0:
      conds.append(yy < H - dy)
    if dx < 0:
      conds.append(xx >= -dx)
    if dx > 0:
      conds.append(xx < W - dx)
    valid = functools.reduce(lambda a, b: a & b, conds)
    taps.append(jnp.where(valid, shifted, 0.0).astype(bf16))
  taps.append(jnp.ones((HW, 1), bf16))      # ones column -> conv_out bias fold
  slab = jnp.concatenate(taps, axis=1)                           # (HW, 9C+1)
  out = jax.lax.dot_general(wcout_ref[...], slab, dn_nt,
                            preferred_element_type=f32)          # (C_LAT, HW)
  out_ref[0] = out.astype(out_ref.dtype)                         # lane-dense


# ------------------------------ JAX glue -----------------------------------
def timestep_embedding(t, dim):
  half = dim // 2
  freqs = jnp.exp(-math.log(10000.0) * jnp.arange(half, dtype=jnp.float32) / half)
  args = t.astype(jnp.float32)[:, None] * freqs[None, :]
  return jnp.concatenate([jnp.sin(args), jnp.cos(args)], axis=-1)


# --------------------------- parameter init --------------------------------
def init_params(key):
  def nrm(k, shape):
    return 0.02 * jax.random.normal(k, shape, dtype=jnp.float32)

  ks = jax.random.split(key, 11)
  bf = jnp.bfloat16

  # --- raw (PyTorch-equivalent) weights -------------------------------------
  proj_w = nrm(ks[0], (CLIP_DIM, NUM_IP_TOKENS * C))     # image_proj Linear
  proj_b = jnp.zeros((NUM_IP_TOKENS * C,), jnp.float32)
  proj_ln_g = jnp.ones((C,), jnp.float32)
  proj_ln_b = jnp.zeros((C,), jnp.float32)
  conv_in_w = nrm(ks[1], (3, 3, C_LAT, C))               # HWIO
  conv_in_b = jnp.zeros((C,), jnp.float32)
  conv_out_w = nrm(ks[2], (3, 3, C, C_LAT))              # HWIO
  conv_out_b = jnp.zeros((C_LAT,), jnp.float32)
  t_w1 = nrm(ks[3], (C, C)); t_b1 = jnp.zeros((C,), jnp.float32)
  t_w2 = nrm(ks[4], (C, C)); t_b2 = jnp.zeros((C,), jnp.float32)
  attn_ln_g = jnp.ones((C,), jnp.float32)
  attn_ln_b = jnp.zeros((C,), jnp.float32)
  wq = nrm(ks[5], (C, C))
  wk = nrm(ks[6], (C, C)); wv = nrm(ks[7], (C, C))
  wk_ip = nrm(ks[8], (C, C)); wv_ip = nrm(ks[9], (C, C))
  wo = nrm(ks[10], (C, C)); bo = jnp.zeros((C,), jnp.float32)

  # --- (a) bf16 projection slab (all weights transposed; NT matmuls) --------
  # image_proj in block-diagonal form: rows = c_out, cols = (token, clip_dim)
  proj_wT = (proj_w.reshape(CLIP_DIM, NUM_IP_TOKENS, C)
             .transpose(2, 1, 0).reshape(C, NUM_IP_TOKENS * CLIP_DIM))
  chunks = {
      "proj": proj_wT,
      "wkv": jnp.concatenate([wk, wv], axis=1).T.T,              # (C, 2C)
      "wkv_ip": jnp.concatenate([wk_ip, wv_ip], axis=1),
      "t_w1": t_w1, "t_w2": t_w2, "wq": wq, "wo": wo,
      "cin": conv_in_w.reshape(9 * C_LAT, C).T,                  # (C, 9*C_LAT)
  }
  w_a = jnp.concatenate([chunks[n] for n, _ in _W_A_CHUNKS], axis=1).astype(bf)
  assert w_a.shape == (C, W_A_LANES)

  # --- (b) bf16 conv_out slab (+bias folded as trailing column) -------------
  w_cout = jnp.concatenate(
      [conv_out_w.reshape(9 * C, C_LAT).T, conv_out_b[:, None]],
      axis=1).astype(bf)
  assert w_cout.shape == (C_LAT, W_COUT_LANES)

  # --- (c) f32 bias / LayerNorm slab -----------------------------------------
  def pad_rows(a):
    return jnp.pad(a, ((0, 0), (0, BIAS_LANES - a.shape[-1])))

  bias = jnp.concatenate([
      pad_rows(proj_b.reshape(NUM_IP_TOKENS, C)),                # rows 0..3
      pad_rows(jnp.stack([proj_ln_g, proj_ln_b, conv_in_b, t_b1, t_b2,
                          attn_ln_g, attn_ln_b, bo], axis=0)),   # rows 4..11
  ], axis=0)
  assert bias.shape == (BIAS_ROWS, BIAS_LANES)

  return {"w_a": w_a, "w_cout": w_cout, "bias": bias}


# ------------------------------ model forward ------------------------------
def ip_adapter_forward(params, noisy_latents_nchw, timesteps,
                       encoder_hidden_states, image_embeds):
  """Mirrors IPAdapterModule.forward, fused into a single Pallas kernel."""
  bsz = noisy_latents_nchw.shape[0]

  # conv_in im2col (tap-major, channel fastest) -- ~36 KB per image.
  lat = jnp.transpose(noisy_latents_nchw, (0, 2, 3, 1))          # NHWC
  lat_pad = jnp.pad(lat, ((0, 0), (1, 1), (1, 1), (0, 0)))
  patches = jnp.concatenate(
      [lat_pad[:, dy:dy + H, dx:dx + W, :] for dy in range(3) for dx in range(3)],
      axis=-1).reshape(bsz, HW, 9 * C_LAT)

  # per-batch aux slab: [text tokens | sinusoidal t-emb | block-diag image emb]
  pad_w = AUX_W - C
  txt_rows = jnp.pad(encoder_hidden_states, ((0, 0), (0, 0), (0, pad_w)))
  temb_rows = jnp.pad(timestep_embedding(timesteps, C)[:, None, :],
                      ((0, 0), (0, 0), (0, pad_w)))
  img_rows = (jnp.eye(NUM_IP_TOKENS, dtype=jnp.float32)[None, :, :, None]
              * image_embeds[:, None, None, :]).reshape(bsz, NUM_IP_TOKENS, AUX_W)
  aux = jnp.concatenate([txt_rows, temb_rows, img_rows], axis=1)  # (B, 13, 128)

  kernel = functools.partial(_fused_ip_adapter_kernel,
                             scale=1.0 / math.sqrt(C), ip_scale=IP_SCALE)

  const = lambda b: (0, 0)   # whole-array weight blocks, fetched once
  out = pl.pallas_call(
      kernel,
      out_shape=jax.ShapeDtypeStruct((bsz, C_LAT, HW), jnp.float32),
      grid=(bsz,),
      in_specs=[
          pl.BlockSpec((1, HW, 9 * C_LAT), lambda b: (b, 0, 0)),
          pl.BlockSpec((1, AUX_ROWS, AUX_W), lambda b: (b, 0, 0)),
          pl.BlockSpec((C, W_A_LANES), const),
          pl.BlockSpec((C_LAT, W_COUT_LANES), const),
          pl.BlockSpec((BIAS_ROWS, BIAS_LANES), const),
      ],
      out_specs=pl.BlockSpec((1, C_LAT, HW), lambda b: (b, 0, 0)),
      compiler_params=pltpu.CompilerParams(dimension_semantics=("parallel",)),
  )(patches, aux, params["w_a"], params["w_cout"], params["bias"])

  # Kernel emits lane-dense (B, C_LAT, H*W): NCHW is a free reshape.
  return out.reshape(bsz, C_LAT, H, W)


# --------------------------------- main -------------------------------------
if __name__ == "__main__":
  key = jax.random.PRNGKey(0)
  k0, k1, k2, k3, k4 = jax.random.split(key, 5)

  noisy_latents = jax.random.normal(k0, (B, C_LAT, H, W), dtype=jnp.float32)
  timesteps = jax.random.randint(k1, (B,), 0, 1000).astype(jnp.float32)
  encoder_hidden_states = jax.random.normal(k2, (B, SEQ_TXT, C), dtype=jnp.float32)
  image_embeds = jax.random.normal(k3, (B, CLIP_DIM), dtype=jnp.float32)
  params = init_params(k4)

  fwd = jax.jit(ip_adapter_forward)
  noise_pred = fwd(params, noisy_latents, timesteps,
                   encoder_hidden_states, image_embeds)
  jax.block_until_ready(noise_pred)

  assert noise_pred.shape == (B, C_LAT, H, W), noise_pred.shape
  assert bool(jnp.all(jnp.isfinite(noise_pred)))
  print("KERNEL_OK")
</pallas_src>

<mosaic_0001>
module attributes {stable_mosaic.version = 11 : i64} {
  func.func @_fused_ip_adapter_kernel(%arg0: i32, %arg1: memref<1x256x36xf32, #tpu.memory_space<vmem>>, %arg2: memref<1x13x128xf32, #tpu.memory_space<vmem>>, %arg3: memref<32x420xbf16, #tpu.memory_space<vmem>>, %arg4: memref<4x289xbf16, #tpu.memory_space<vmem>>, %arg5: memref<12x128xf32, #tpu.memory_space<vmem>>, %arg6: memref<1x4x256xf32, #tpu.memory_space<vmem>>) attributes {dimension_semantics = [#tpu.dimension_semantics<parallel>], iteration_bounds = array<i64: 2>, scalar_prefetch = 0 : i64, scratch_operands = 0 : i64, tpu.core_type = #tpu.core_type<tc>, window_params = [{transform_indices = @transform_0, window_bounds = array<i64: 1, 256, 36>}, {transform_indices = @transform_1, window_bounds = array<i64: 1, 13, 128>}, {pipeline_mode = #tpu.pipeline_mode<synchronous>, transform_indices = @transform_2, window_bounds = array<i64: 32, 420>}, {pipeline_mode = #tpu.pipeline_mode<synchronous>, transform_indices = @transform_3, window_bounds = array<i64: 4, 289>}, {pipeline_mode = #tpu.pipeline_mode<synchronous>, transform_indices = @transform_4, window_bounds = array<i64: 12, 128>}, {transform_indices = @transform_5, window_bounds = array<i64: 1, 4, 256>}]} {
    %c0 = arith.constant 0 : index
    %c9 = arith.constant 9 : index
    %c0_0 = arith.constant 0 : index
    %0 = vector.load %arg2[%c0, %c9, %c0_0] : memref<1x13x128xf32, #tpu.memory_space<vmem>>, vector<1x4x128xf32>
    %1 = vector.shape_cast %0 : vector<1x4x128xf32> to vector<4x128xf32>
    %c0_1 = arith.constant 0 : index
    %c0_2 = arith.constant 0 : index
    %2 = vector.load %arg3[%c0_1, %c0_2] : memref<32x420xbf16, #tpu.memory_space<vmem>>, vector<32x128xbf16>
    %3 = arith.truncf %1 : vector<4x128xf32> to vector<4x128xbf16>
    %cst = arith.constant dense<0.000000e+00> : vector<4x32xf32>
    %4 = tpu.matmul %3, %2, %cst {dimension_numbers = #tpu.dot_dimension_numbers<[1], [1], [0], [0], [0, 0, 1, 0], [], []>} : vector<4x128xbf16>, vector<32x128xbf16>, vector<4x32xf32> -> vector<4x32xf32>
    %c0_3 = arith.constant 0 : index
    %c0_4 = arith.constant 0 : index
    %5 = vector.load %arg5[%c0_3, %c0_4] : memref<12x128xf32, #tpu.memory_space<vmem>>, vector<4x32xf32>
    %6 = arith.addf %4, %5 : vector<4x32xf32>
    %c4 = arith.constant 4 : index
    %c0_5 = arith.constant 0 : index
    %7 = vector.load %arg5[%c4, %c0_5] : memref<12x128xf32, #tpu.memory_space<vmem>>, vector<1x32xf32>
    %c5 = arith.constant 5 : index
    %c0_6 = arith.constant 0 : index
    %8 = vector.load %arg5[%c5, %c0_6] : memref<12x128xf32, #tpu.memory_space<vmem>>, vector<1x32xf32>
    %cst_7 = arith.constant dense<0.000000e+00> : vector<4xf32>
    %9 = vector.multi_reduction <add>, %6, %cst_7 [1] : vector<4x32xf32> to vector<4xf32>
    %10 = vector.shape_cast %9 : vector<4xf32> to vector<4x1xf32>
    %cst_8 = arith.constant 3.200000e+01 : f32
    %11 = vector.broadcast %cst_8 : f32 to vector<4x1xf32>
    %12 = arith.divf %10, %11 : vector<4x1xf32>
    %13 = vector.broadcast %12 : vector<4x1xf32> to vector<4x32xf32>
    %14 = arith.subf %6, %13 : vector<4x32xf32>
    %15 = arith.mulf %14, %14 : vector<4x32xf32>
    %cst_9 = arith.constant dense<0.000000e+00> : vector<4xf32>
    %16 = vector.multi_reduction <add>, %15, %cst_9 [1] : vector<4x32xf32> to vector<4xf32>
    %17 = vector.shape_cast %16 : vector<4xf32> to vector<4x1xf32>
    %cst_10 = arith.constant 3.200000e+01 : f32
    %18 = vector.broadcast %cst_10 : f32 to vector<4x1xf32>
    %19 = arith.divf %17, %18 : vector<4x1xf32>
    %20 = vector.broadcast %12 : vector<4x1xf32> to vector<4x32xf32>
    %21 = arith.subf %6, %20 : vector<4x32xf32>
    %cst_11 = arith.constant 9.99999974E-6 : f32
    %22 = vector.broadcast %cst_11 : f32 to vector<4x1xf32>
    %23 = arith.addf %19, %22 : vector<4x1xf32>
    %24 = math.rsqrt %23 : vector<4x1xf32>
    %25 = vector.broadcast %24 : vector<4x1xf32> to vector<4x32xf32>
    %26 = arith.mulf %21, %25 : vector<4x32xf32>
    %27 = vector.broadcast %7 : vector<1x32xf32> to vector<4x32xf32>
    %28 = arith.mulf %26, %27 : vector<4x32xf32>
    %29 = vector.broadcast %8 : vector<1x32xf32> to vector<4x32xf32>
    %30 = arith.addf %28, %29 : vector<4x32xf32>
    %c0_12 = arith.constant 0 : index
    %c8 = arith.constant 8 : index
    %c0_13 = arith.constant 0 : index
    %31 = vector.load %arg2[%c0_12, %c8, %c0_13] : memref<1x13x128xf32, #tpu.memory_space<vmem>>, vector<1x1x32xf32>
    %32 = vector.shape_cast %31 : vector<1x1x32xf32> to vector<1x32xf32>
    %c0_14 = arith.constant 0 : index
    %c256 = arith.constant 256 : index
    %33 = vector.load %arg3[%c0_14, %c256] : memref<32x420xbf16, #tpu.memory_space<vmem>>, vector<32x32xbf16>
    %34 = arith.truncf %32 : vector<1x32xf32> to vector<1x32xbf16>
    %cst_15 = arith.constant dense<0.000000e+00> : vector<1x32xf32>
    %35 = tpu.matmul %34, %33, %cst_15 {dimension_numbers = #tpu.dot_dimension_numbers<[1], [0], [0], [1], [0, 0, 1, 1], [], []>} : vector<1x32xbf16>, vector<32x32xbf16>, vector<1x32xf32> -> vector<1x32xf32>
    %c7 = arith.constant 7 : index
    %c0_16 = arith.constant 0 : index
    %36 = vector.load %arg5[%c7, %c0_16] : memref<12x128xf32, #tpu.memory_space<vmem>>, vector<1x32xf32>
    %37 = arith.addf %35, %36 : vector<1x32xf32>
    %38 = arith.negf %37 : vector<1x32xf32>
    %39 = math.exp %38 : vector<1x32xf32>
    %cst_17 = arith.constant 1.000000e+00 : f32
    %40 = vector.broadcast %cst_17 : f32 to vector<1x32xf32>
    %41 = arith.addf %40, %39 : vector<1x32xf32>
    %42 = arith.divf %40, %41 : vector<1x32xf32>
    %43 = arith.mulf %37, %42 : vector<1x32xf32>
    %c0_18 = arith.constant 0 : index
    %c288 = arith.constant 288 : index
    %44 = vector.load %arg3[%c0_18, %c288] : memref<32x420xbf16, #tpu.memory_space<vmem>>, vector<32x32xbf16>
    %45 = arith.truncf %43 : vector<1x32xf32> to vector<1x32xbf16>
    %cst_19 = arith.constant dense<0.000000e+00> : vector<1x32xf32>
    %46 = tpu.matmul %45, %44, %cst_19 {dimension_numbers = #tpu.dot_dimension_numbers<[1], [0], [0], [1], [0, 0, 1, 1], [], []>} : vector<1x32xbf16>, vector<32x32xbf16>, vector<1x32xf32> -> vector<1x32xf32>
    %c8_20 = arith.constant 8 : index
    %c0_21 = arith.constant 0 : index
    %47 = vector.load %arg5[%c8_20, %c0_21] : memref<12x128xf32, #tpu.memory_space<vmem>>, vector<1x32xf32>
    %48 = arith.addf %46, %47 : vector<1x32xf32>
    %c0_22 = arith.constant 0 : index
    %c0_23 = arith.constant 0 : index
    %c0_24 = arith.constant 0 : index
    %49 = vector.load %arg1[%c0_22, %c0_23, %c0_24] : memref<1x256x36xf32, #tpu.memory_space<vmem>>, vector<1x256x36xf32>
    %50 = vector.shape_cast %49 : vector<1x256x36xf32> to vector<256x36xf32>
    %c0_25 = arith.constant 0 : index
    %c384 = arith.constant 384 : index
    %51 = vector.load %arg3[%c0_25, %c384] : memref<32x420xbf16, #tpu.memory_space<vmem>>, vector<32x36xbf16>
    %52 = arith.truncf %50 : vector<256x36xf32> to vector<256x36xbf16>
    %cst_26 = arith.constant dense<0.000000e+00> : vector<256x32xf32>
    %53 = tpu.matmul %52, %51, %cst_26 {dimension_numbers = #tpu.dot_dimension_numbers<[1], [1], [0], [0], [0, 0, 1, 0], [], []>} : vector<256x36xbf16>, vector<32x36xbf16>, vector<256x32xf32> -> vector<256x32xf32>
    %c6 = arith.constant 6 : index
    %c0_27 = arith.constant 0 : index
    %54 = vector.load %arg5[%c6, %c0_27] : memref<12x128xf32, #tpu.memory_space<vmem>>, vector<1x32xf32>
    %55 = vector.broadcast %54 : vector<1x32xf32> to vector<256x32xf32>
    %56 = arith.addf %53, %55 : vector<256x32xf32>
    %57 = vector.broadcast %48 : vector<1x32xf32> to vector<256x32xf32>
    %58 = arith.addf %56, %57 : vector<256x32xf32>
    %c9_28 = arith.constant 9 : index
    %c0_29 = arith.constant 0 : index
    %59 = vector.load %arg5[%c9_28, %c0_29] : memref<12x128xf32, #tpu.memory_space<vmem>>, vector<1x32xf32>
    %c10 = arith.constant 10 : index
    %c0_30 = arith.constant 0 : index
    %60 = vector.load %arg5[%c10, %c0_30] : memref<12x128xf32, #tpu.memory_space<vmem>>, vector<1x32xf32>
    %cst_31 = arith.constant dense<0.000000e+00> : vector<256xf32>
    %61 = vector.multi_reduction <add>, %58, %cst_31 [1] : vector<256x32xf32> to vector<256xf32>
    %62 = vector.shape_cast %61 : vector<256xf32> to vector<256x1xf32>
    %cst_32 = arith.constant 3.200000e+01 : f32
    %63 = vector.broadcast %cst_32 : f32 to vector<256x1xf32>
    %64 = arith.divf %62, %63 : vector<256x1xf32>
    %65 = vector.broadcast %64 : vector<256x1xf32> to vector<256x32xf32>
    %66 = arith.subf %58, %65 : vector<256x32xf32>
    %67 = arith.mulf %66, %66 : vector<256x32xf32>
    %cst_33 = arith.constant dense<0.000000e+00> : vector<256xf32>
    %68 = vector.multi_reduction <add>, %67, %cst_33 [1] : vector<256x32xf32> to vector<256xf32>
    %69 = vector.shape_cast %68 : vector<256xf32> to vector<256x1xf32>
    %cst_34 = arith.constant 3.200000e+01 : f32
    %70 = vector.broadcast %cst_34 : f32 to vector<256x1xf32>
    %71 = arith.divf %69, %70 : vector<256x1xf32>
    %72 = vector.broadcast %64 : vector<256x1xf32> to vector<256x32xf32>
    %73 = arith.subf %58, %72 : vector<256x32xf32>
    %cst_35 = arith.constant 9.99999974E-6 : f32
    %74 = vector.broadcast %cst_35 : f32 to vector<256x1xf32>
    %75 = arith.addf %71, %74 : vector<256x1xf32>
    %76 = math.rsqrt %75 : vector<256x1xf32>
    %77 = vector.broadcast %76 : vector<256x1xf32> to vector<256x32xf32>
    %78 = arith.mulf %73, %77 : vector<256x32xf32>
    %79 = vector.broadcast %59 : vector<1x32xf32> to vector<256x32xf32>
    %80 = arith.mulf %78, %79 : vector<256x32xf32>
    %81 = vector.broadcast %60 : vector<1x32xf32> to vector<256x32xf32>
    %82 = arith.addf %80, %81 : vector<256x32xf32>
    %c0_36 = arith.constant 0 : index
    %c320 = arith.constant 320 : index
    %83 = vector.load %arg3[%c0_36, %c320] : memref<32x420xbf16, #tpu.memory_space<vmem>>, vector<32x32xbf16>
    %84 = arith.truncf %82 : vector<256x32xf32> to vector<256x32xbf16>
    %cst_37 = arith.constant dense<0.000000e+00> : vector<256x32xf32>
    %85 = tpu.matmul %84, %83, %cst_37 {dimension_numbers = #tpu.dot_dimension_numbers<[1], [0], [0], [1], [0, 0, 1, 1], [], []>} : vector<256x32xbf16>, vector<32x32xbf16>, vector<256x32xf32> -> vector<256x32xf32>
    %c0_38 = arith.constant 0 : index
    %c0_39 = arith.constant 0 : index
    %c0_40 = arith.constant 0 : index
    %86 = vector.load %arg2[%c0_38, %c0_39, %c0_40] : memref<1x13x128xf32, #tpu.memory_space<vmem>>, vector<1x8x32xf32>
    %87 = vector.shape_cast %86 : vector<1x8x32xf32> to vector<8x32xf32>
    %c0_41 = arith.constant 0 : index
    %c128 = arith.constant 128 : index
    %88 = vector.load %arg3[%c0_41, %c128] : memref<32x420xbf16, #tpu.memory_space<vmem>>, vector<32x64xbf16>
    %89 = arith.truncf %87 : vector<8x32xf32> to vector<8x32xbf16>
    %cst_42 = arith.constant dense<0.000000e+00> : vector<8x64xf32>
    %90 = tpu.matmul %89, %88, %cst_42 {dimension_numbers = #tpu.dot_dimension_numbers<[1], [0], [0], [1], [0, 0, 1, 1], [], []>} : vector<8x32xbf16>, vector<32x64xbf16>, vector<8x64xf32> -> vector<8x64xf32>
    %c0_43 = arith.constant 0 : index
    %c192 = arith.constant 192 : index
    %91 = vector.load %arg3[%c0_43, %c192] : memref<32x420xbf16, #tpu.memory_space<vmem>>, vector<32x64xbf16>
    %92 = arith.truncf %30 : vector<4x32xf32> to vector<4x32xbf16>
    %cst_44 = arith.constant dense<0.000000e+00> : vector<4x64xf32>
    %93 = tpu.matmul %92, %91, %cst_44 {dimension_numbers = #tpu.dot_dimension_numbers<[1], [0], [0], [1], [0, 0, 1, 1], [], []>} : vector<4x32xbf16>, vector<32x64xbf16>, vector<4x64xf32> -> vector<4x64xf32>
    %94 = tpu.concatenate %90, %93 in 0 : vector<8x64xf32>, vector<4x64xf32> -> vector<12x64xf32>
    %95 = vector.extract_strided_slice %94 {offsets = [0, 0], sizes = [12, 32], strides = [1, 1]} : vector<12x64xf32> to vector<12x32xf32>
    %96 = vector.extract_strided_slice %94 {offsets = [0, 32], sizes = [12, 32], strides = [1, 1]} : vector<12x64xf32> to vector<12x32xf32>
    %97 = arith.truncf %85 : vector<256x32xf32> to vector<256x32xbf16>
    %98 = arith.truncf %95 : vector<12x32xf32> to vector<12x32xbf16>
    %cst_45 = arith.constant dense<0.000000e+00> : vector<256x12xf32>
    %99 = tpu.matmul %97, %98, %cst_45 {dimension_numbers = #tpu.dot_dimension_numbers<[1], [1], [0], [0], [0, 0, 1, 0], [], []>} : vector<256x32xbf16>, vector<12x32xbf16>, vector<256x12xf32> -> vector<256x12xf32>
    %cst_46 = arith.constant 0.176776692 : f32
    %100 = vector.broadcast %cst_46 : f32 to vector<256x12xf32>
    %101 = arith.mulf %99, %100 : vector<256x12xf32>
    %102 = tpu.iota {dimensions = array<i32: 1>} : vector<1x12xi32>
    %c8_i32 = arith.constant 8 : i32
    %103 = vector.broadcast %c8_i32 : i32 to vector<1x12xi32>
    %104 = arith.cmpi slt, %102, %103 : vector<1x12xi32>
    %cst_47 = arith.constant 0xFF800000 : f32
    %105 = vector.shape_cast %104 : vector<1x12xi1> to vector<1x12xi1>
    %106 = vector.broadcast %105 : vector<1x12xi1> to vector<256x12xi1>
    %107 = vector.broadcast %cst_47 : f32 to vector<256x12xf32>
    %108 = arith.select %106, %101, %107 : vector<256x12xi1>, vector<256x12xf32>
    %cst_48 = arith.constant dense<0xFF800000> : vector<256xf32>
    %109 = vector.multi_reduction <maximumf>, %108, %cst_48 [1] : vector<256x12xf32> to vector<256xf32>
    %110 = vector.shape_cast %109 : vector<256xf32> to vector<256x1xf32>
    %cst_49 = arith.constant 0xFF800000 : f32
    %111 = vector.shape_cast %104 : vector<1x12xi1> to vector<1x12xi1>
    %112 = vector.broadcast %111 : vector<1x12xi1> to vector<256x12xi1>
    %113 = vector.broadcast %cst_49 : f32 to vector<256x12xf32>
    %114 = arith.select %112, %113, %101 : vector<256x12xi1>, vector<256x12xf32>
    %cst_50 = arith.constant dense<0xFF800000> : vector<256xf32>
    %115 = vector.multi_reduction <maximumf>, %114, %cst_50 [1] : vector<256x12xf32> to vector<256xf32>
    %116 = vector.shape_cast %115 : vector<256xf32> to vector<256x1xf32>
    %117 = vector.shape_cast %104 : vector<1x12xi1> to vector<1x12xi1>
    %118 = vector.broadcast %117 : vector<1x12xi1> to vector<256x12xi1>
    %119 = vector.shape_cast %110 : vector<256x1xf32> to vector<256x1xf32>
    %120 = vector.broadcast %119 : vector<256x1xf32> to vector<256x12xf32>
    %121 = vector.shape_cast %116 : vector<256x1xf32> to vector<256x1xf32>
    %122 = vector.broadcast %121 : vector<256x1xf32> to vector<256x12xf32>
    %123 = arith.select %118, %120, %122 : vector<256x12xi1>, vector<256x12xf32>
    %124 = arith.subf %101, %123 : vector<256x12xf32>
    %125 = math.exp %124 : vector<256x12xf32>
    %cst_51 = arith.constant 0.000000e+00 : f32
    %126 = vector.shape_cast %104 : vector<1x12xi1> to vector<1x12xi1>
    %127 = vector.broadcast %126 : vector<1x12xi1> to vector<256x12xi1>
    %128 = vector.broadcast %cst_51 : f32 to vector<256x12xf32>
    %129 = arith.select %127, %125, %128 : vector<256x12xi1>, vector<256x12xf32>
    %cst_52 = arith.constant dense<0.000000e+00> : vector<256xf32>
    %130 = vector.multi_reduction <add>, %129, %cst_52 [1] : vector<256x12xf32> to vector<256xf32>
    %131 = vector.shape_cast %130 : vector<256xf32> to vector<256x1xf32>
    %cst_53 = arith.constant 0.000000e+00 : f32
    %132 = vector.shape_cast %104 : vector<1x12xi1> to vector<1x12xi1>
    %133 = vector.broadcast %132 : vector<1x12xi1> to vector<256x12xi1>
    %134 = vector.broadcast %cst_53 : f32 to vector<256x12xf32>
    %135 = arith.select %133, %134, %125 : vector<256x12xi1>, vector<256x12xf32>
    %cst_54 = arith.constant dense<0.000000e+00> : vector<256xf32>
    %136 = vector.multi_reduction <add>, %135, %cst_54 [1] : vector<256x12xf32> to vector<256xf32>
    %137 = vector.shape_cast %136 : vector<256xf32> to vector<256x1xf32>
    %138 = vector.shape_cast %104 : vector<1x12xi1> to vector<1x12xi1>
    %139 = vector.broadcast %138 : vector<1x12xi1> to vector<256x12xi1>
    %140 = vector.shape_cast %131 : vector<256x1xf32> to vector<256x1xf32>
    %141 = vector.broadcast %140 : vector<256x1xf32> to vector<256x12xf32>
    %142 = vector.shape_cast %137 : vector<256x1xf32> to vector<256x1xf32>
    %143 = vector.broadcast %142 : vector<256x1xf32> to vector<256x12xf32>
    %144 = arith.select %139, %141, %143 : vector<256x12xi1>, vector<256x12xf32>
    %145 = tpu.reciprocal %144 {approx = true} : vector<256x12xf32> -> vector<256x12xf32>
    %146 = arith.mulf %125, %145 : vector<256x12xf32>
    %cst_55 = arith.constant 1.000000e+00 : f32
    %cst_56 = arith.constant 1.000000e+00 : f32
    %147 = vector.broadcast %cst_55 : f32 to vector<1x12xf32>
    %148 = vector.broadcast %cst_56 : f32 to vector<1x12xf32>
    %149 = arith.select %104, %147, %148 : vector<1x12xi1>, vector<1x12xf32>
    %150 = vector.broadcast %149 : vector<1x12xf32> to vector<256x12xf32>
    %151 = arith.mulf %146, %150 : vector<256x12xf32>
    %152 = arith.truncf %151 : vector<256x12xf32> to vector<256x12xbf16>
    %153 = arith.truncf %96 : vector<12x32xf32> to vector<12x32xbf16>
    %cst_57 = arith.constant dense<0.000000e+00> : vector<256x32xf32>
    %154 = tpu.matmul %152, %153, %cst_57 {dimension_numbers = #tpu.dot_dimension_numbers<[1], [0], [0], [1], [0, 0, 1, 1], [], []>} : vector<256x12xbf16>, vector<12x32xbf16>, vector<256x32xf32> -> vector<256x32xf32>
    %c0_58 = arith.constant 0 : index
    %c352 = arith.constant 352 : index
    %155 = vector.load %arg3[%c0_58, %c352] : memref<32x420xbf16, #tpu.memory_space<vmem>>, vector<32x32xbf16>
    %156 = arith.truncf %154 : vector<256x32xf32> to vector<256x32xbf16>
    %cst_59 = arith.constant dense<0.000000e+00> : vector<256x32xf32>
    %157 = tpu.matmul %156, %155, %cst_59 {dimension_numbers = #tpu.dot_dimension_numbers<[1], [0], [0], [1], [0, 0, 1, 1], [], []>} : vector<256x32xbf16>, vector<32x32xbf16>, vector<256x32xf32> -> vector<256x32xf32>
    %158 = arith.addf %58, %157 : vector<256x32xf32>
    %c11 = arith.constant 11 : index
    %c0_60 = arith.constant 0 : index
    %159 = vector.load %arg5[%c11, %c0_60] : memref<12x128xf32, #tpu.memory_space<vmem>>, vector<1x32xf32>
    %160 = vector.broadcast %159 : vector<1x32xf32> to vector<256x32xf32>
    %161 = arith.addf %158, %160 : vector<256x32xf32>
    %162 = tpu.iota {dimensions = array<i32: 0>} : vector<256x1xi32>
    %c4_i32 = arith.constant 4 : i32
    %163 = vector.broadcast %c4_i32 : i32 to vector<256x1xi32>
    %164 = arith.shrsi %162, %163 : vector<256x1xi32>
    %c15_i32 = arith.constant 15 : i32
    %165 = vector.broadcast %c15_i32 : i32 to vector<256x1xi32>
    %166 = arith.andi %162, %165 : vector<256x1xi32>
    %c17_i32 = arith.constant 17 : i32
    %167 = tpu.dynamic_rotate %161 by %c17_i32 dim 0 : vector<256x32xf32>, i32 -> vector<256x32xf32>
    %c1_i32 = arith.constant 1 : i32
    %168 = vector.broadcast %c1_i32 : i32 to vector<256x1xi32>
    %169 = arith.cmpi sge, %164, %168 : vector<256x1xi32>
    %c1_i32_61 = arith.constant 1 : i32
    %170 = vector.broadcast %c1_i32_61 : i32 to vector<256x1xi32>
    %171 = arith.cmpi sge, %166, %170 : vector<256x1xi32>
    %172 = arith.andi %169, %171 : vector<256x1xi1>
    %cst_62 = arith.constant 0.000000e+00 : f32
    %173 = vector.shape_cast %172 : vector<256x1xi1> to vector<256x1xi1>
    %174 = vector.broadcast %173 : vector<256x1xi1> to vector<256x32xi1>
    %175 = vector.broadcast %cst_62 : f32 to vector<256x32xf32>
    %176 = arith.select %174, %167, %175 : vector<256x32xi1>, vector<256x32xf32>
    %177 = arith.truncf %176 : vector<256x32xf32> to vector<256x32xbf16>
    %c16_i32 = arith.constant 16 : i32
    %178 = tpu.dynamic_rotate %161 by %c16_i32 dim 0 : vector<256x32xf32>, i32 -> vector<256x32xf32>
    %c1_i32_63 = arith.constant 1 : i32
    %179 = vector.broadcast %c1_i32_63 : i32 to vector<256x1xi32>
    %180 = arith.cmpi sge, %164, %179 : vector<256x1xi32>
    %cst_64 = arith.constant 0.000000e+00 : f32
    %181 = vector.shape_cast %180 : vector<256x1xi1> to vector<256x1xi1>
    %182 = vector.broadcast %181 : vector<256x1xi1> to vector<256x32xi1>
    %183 = vector.broadcast %cst_64 : f32 to vector<256x32xf32>
    %184 = arith.select %182, %178, %183 : vector<256x32xi1>, vector<256x32xf32>
    %185 = arith.truncf %184 : vector<256x32xf32> to vector<256x32xbf16>
    %c15_i32_65 = arith.constant 15 : i32
    %186 = tpu.dynamic_rotate %161 by %c15_i32_65 dim 0 : vector<256x32xf32>, i32 -> vector<256x32xf32>
    %c1_i32_66 = arith.constant 1 : i32
    %187 = vector.broadcast %c1_i32_66 : i32 to vector<256x1xi32>
    %188 = arith.cmpi sge, %164, %187 : vector<256x1xi32>
    %c15_i32_67 = arith.constant 15 : i32
    %189 = vector.broadcast %c15_i32_67 : i32 to vector<256x1xi32>
    %190 = arith.cmpi slt, %166, %189 : vector<256x1xi32>
    %191 = arith.andi %188, %190 : vector<256x1xi1>
    %cst_68 = arith.constant 0.000000e+00 : f32
    %192 = vector.shape_cast %191 : vector<256x1xi1> to vector<256x1xi1>
    %193 = vector.broadcast %192 : vector<256x1xi1> to vector<256x32xi1>
    %194 = vector.broadcast %cst_68 : f32 to vector<256x32xf32>
    %195 = arith.select %193, %186, %194 : vector<256x32xi1>, vector<256x32xf32>
    %196 = arith.truncf %195 : vector<256x32xf32> to vector<256x32xbf16>
    %c1_i32_69 = arith.constant 1 : i32
    %197 = tpu.dynamic_rotate %161 by %c1_i32_69 dim 0 : vector<256x32xf32>, i32 -> vector<256x32xf32>
    %c1_i32_70 = arith.constant 1 : i32
    %198 = vector.broadcast %c1_i32_70 : i32 to vector<256x1xi32>
    %199 = arith.cmpi sge, %166, %198 : vector<256x1xi32>
    %cst_71 = arith.constant 0.000000e+00 : f32
    %200 = vector.shape_cast %199 : vector<256x1xi1> to vector<256x1xi1>
    %201 = vector.broadcast %200 : vector<256x1xi1> to vector<256x32xi1>
    %202 = vector.broadcast %cst_71 : f32 to vector<256x32xf32>
    %203 = arith.select %201, %197, %202 : vector<256x32xi1>, vector<256x32xf32>
    %204 = arith.truncf %203 : vector<256x32xf32> to vector<256x32xbf16>
    %205 = arith.truncf %161 : vector<256x32xf32> to vector<256x32xbf16>
    %c255_i32 = arith.constant 255 : i32
    %206 = tpu.dynamic_rotate %161 by %c255_i32 dim 0 : vector<256x32xf32>, i32 -> vector<256x32xf32>
    %c15_i32_72 = arith.constant 15 : i32
    %207 = vector.broadcast %c15_i32_72 : i32 to vector<256x1xi32>
    %208 = arith.cmpi slt, %166, %207 : vector<256x1xi32>
    %cst_73 = arith.constant 0.000000e+00 : f32
    %209 = vector.shape_cast %208 : vector<256x1xi1> to vector<256x1xi1>
    %210 = vector.broadcast %209 : vector<256x1xi1> to vector<256x32xi1>
    %211 = vector.broadcast %cst_73 : f32 to vector<256x32xf32>
    %212 = arith.select %210, %206, %211 : vector<256x32xi1>, vector<256x32xf32>
    %213 = arith.truncf %212 : vector<256x32xf32> to vector<256x32xbf16>
    %c241_i32 = arith.constant 241 : i32
    %214 = tpu.dynamic_rotate %161 by %c241_i32 dim 0 : vector<256x32xf32>, i32 -> vector<256x32xf32>
    %c15_i32_74 = arith.constant 15 : i32
    %215 = vector.broadcast %c15_i32_74 : i32 to vector<256x1xi32>
    %216 = arith.cmpi slt, %164, %215 : vector<256x1xi32>
    %c1_i32_75 = arith.constant 1 : i32
    %217 = vector.broadcast %c1_i32_75 : i32 to vector<256x1xi32>
    %218 = arith.cmpi sge, %166, %217 : vector<256x1xi32>
    %219 = arith.andi %216, %218 : vector<256x1xi1>
    %cst_76 = arith.constant 0.000000e+00 : f32
    %220 = vector.shape_cast %219 : vector<256x1xi1> to vector<256x1xi1>
    %221 = vector.broadcast %220 : vector<256x1xi1> to vector<256x32xi1>
    %222 = vector.broadcast %cst_76 : f32 to vector<256x32xf32>
    %223 = arith.select %221, %214, %222 : vector<256x32xi1>, vector<256x32xf32>
    %224 = arith.truncf %223 : vector<256x32xf32> to vector<256x32xbf16>
    %c240_i32 = arith.constant 240 : i32
    %225 = tpu.dynamic_rotate %161 by %c240_i32 dim 0 : vector<256x32xf32>, i32 -> vector<256x32xf32>
    %c15_i32_77 = arith.constant 15 : i32
    %226 = vector.broadcast %c15_i32_77 : i32 to vector<256x1xi32>
    %227 = arith.cmpi slt, %164, %226 : vector<256x1xi32>
    %cst_78 = arith.constant 0.000000e+00 : f32
    %228 = vector.shape_cast %227 : vector<256x1xi1> to vector<256x1xi1>
    %229 = vector.broadcast %228 : vector<256x1xi1> to vector<256x32xi1>
    %230 = vector.broadcast %cst_78 : f32 to vector<256x32xf32>
    %231 = arith.select %229, %225, %230 : vector<256x32xi1>, vector<256x32xf32>
    %232 = arith.truncf %231 : vector<256x32xf32> to vector<256x32xbf16>
    %c239_i32 = arith.constant 239 : i32
    %233 = tpu.dynamic_rotate %161 by %c239_i32 dim 0 : vector<256x32xf32>, i32 -> vector<256x32xf32>
    %c15_i32_79 = arith.constant 15 : i32
    %234 = vector.broadcast %c15_i32_79 : i32 to vector<256x1xi32>
    %235 = arith.cmpi slt, %164, %234 : vector<256x1xi32>
    %c15_i32_80 = arith.constant 15 : i32
    %236 = vector.broadcast %c15_i32_80 : i32 to vector<256x1xi32>
    %237 = arith.cmpi slt, %166, %236 : vector<256x1xi32>
    %238 = arith.andi %235, %237 : vector<256x1xi1>
    %cst_81 = arith.constant 0.000000e+00 : f32
    %239 = vector.shape_cast %238 : vector<256x1xi1> to vector<256x1xi1>
    %240 = vector.broadcast %239 : vector<256x1xi1> to vector<256x32xi1>
    %241 = vector.broadcast %cst_81 : f32 to vector<256x32xf32>
    %242 = arith.select %240, %233, %241 : vector<256x32xi1>, vector<256x32xf32>
    %243 = arith.truncf %242 : vector<256x32xf32> to vector<256x32xbf16>
    %cst_82 = arith.constant 1.000000e+00 : bf16
    %244 = vector.broadcast %cst_82 : bf16 to vector<256x1xbf16>
    %245 = tpu.concatenate %177, %185, %196, %204, %205, %213, %224, %232, %243, %244 in 1 : vector<256x32xbf16>, vector<256x32xbf16>, vector<256x32xbf16>, vector<256x32xbf16>, vector<256x32xbf16>, vector<256x32xbf16>, vector<256x32xbf16>, vector<256x32xbf16>, vector<256x32xbf16>, vector<256x1xbf16> -> vector<256x289xbf16>
    %c0_83 = arith.constant 0 : index
    %c0_84 = arith.constant 0 : index
    %246 = vector.load %arg4[%c0_83, %c0_84] : memref<4x289xbf16, #tpu.memory_space<vmem>>, vector<4x289xbf16>
    %cst_85 = arith.constant dense<0.000000e+00> : vector<4x256xf32>
    %247 = tpu.matmul %246, %245, %cst_85 {dimension_numbers = #tpu.dot_dimension_numbers<[1], [1], [0], [0], [0, 0, 1, 0], [], []>} : vector<4x289xbf16>, vector<256x289xbf16>, vector<4x256xf32> -> vector<4x256xf32>
    %c0_86 = arith.constant 0 : index
    %c0_87 = arith.constant 0 : index
    %c0_88 = arith.constant 0 : index
    %248 = vector.load %arg6[%c0_86, %c0_87, %c0_88] : memref<1x4x256xf32, #tpu.memory_space<vmem>>, vector<1x4x256xf32>
    %249 = vector.shape_cast %248 : vector<1x4x256xf32> to vector<4x256xf32>
    %250 = vector.shape_cast %247 : vector<4x256xf32> to vector<1x4x256xf32>
    tpu.vector_store %arg6[%c0_86, %c0_87, %c0_88], %250 {strides = array<i32>} : memref<1x4x256xf32, #tpu.memory_space<vmem>>, vector<1x4x256xf32>,
    return
  }
  func.func @transform_0(%arg0: i32) -> (i32, i32, i32) {
    %c0_i32 = arith.constant 0 : i32
    %c0_i32_0 = arith.constant 0 : i32
    %c0_i32_1 = arith.constant 0 : i32
    return %arg0, %c0_i32, %c0_i32_0 : i32, i32, i32
  }
  func.func @transform_1(%arg0: i32) -> (i32, i32, i32) {
    %c0_i32 = arith.constant 0 : i32
    %c0_i32_0 = arith.constant 0 : i32
    %c0_i32_1 = arith.constant 0 : i32
    return %arg0, %c0_i32, %c0_i32_0 : i32, i32, i32
  }
  func.func @transform_2(%arg0: i32) -> (i32, i32) {
    %c0_i32 = arith.constant 0 : i32
    %c0_i32_0 = arith.constant 0 : i32
    %c0_i32_1 = arith.constant 0 : i32
    return %c0_i32, %c0_i32_0 : i32, i32
  }
  func.func @transform_3(%arg0: i32) -> (i32, i32) {
    %c0_i32 = arith.constant 0 : i32
    %c0_i32_0 = arith.constant 0 : i32
    %c0_i32_1 = arith.constant 0 : i32
    return %c0_i32, %c0_i32_0 : i32, i32
  }
  func.func @transform_4(%arg0: i32) -> (i32, i32) {
    %c0_i32 = arith.constant 0 : i32
    %c0_i32_0 = arith.constant 0 : i32
    %c0_i32_1 = arith.constant 0 : i32
    return %c0_i32, %c0_i32_0 : i32, i32
  }
  func.func @transform_5(%arg0: i32) -> (i32, i32, i32) {
    %c0_i32 = arith.constant 0 : i32
    %c0_i32_0 = arith.constant 0 : i32
    %c0_i32_1 = arith.constant 0 : i32
    return %arg0, %c0_i32, %c0_i32_0 : i32, i32, i32
  }
}

</mosaic_0001>

<bundles_post_ra>
// kernel: ip_adapter_forward.1
= control target key start
LH: loop header
LB: loop body
LE: loop exit
PB: predicated region body
PF: predicated region fallthrough
CT: control target
= control target key end

     0   :  { %s6289_s18 = smov 0   ;;  %s11092_s0 = inlined_call_operand.vmem [shape: f32[2,256,36], index: 0, kind: input, shape index: {}]   ;;  %s11093_s1 = inlined_call_operand.vmem [shape: f32[2,13,128], index: 1, kind: input, shape index: {}]   ;;  %s11094_s2 = inlined_call_operand.vmem [shape: bf16[32,420], index: 2, kind: input, shape index: {}]   ;;  %s11095_s3 = inlined_call_operand.vmem [shape: bf16[4,289], index: 3, kind: input, shape index: {}]   ;;  %s11096_s4 = inlined_call_operand.vmem [shape: f32[12,128], index: 4, kind: input, shape index: {}]   ;;  %s11097_s5 = inlined_call_operand.vmem [shape: f32[2,4,256], index: 5, kind: output, shape index: {}]  }
   0x1 LB: > { %s5877_s19 = sadd.s32 4294967295, %s6253_s18   ;;  %p5881_p0 = scmp.ge.s32.totalorder %s6253_s18, 1  ;;  %s6253_s18 = sphi %s6289_s18, %s15_s18  }
   0x2   : > { %p197_p1 = scmp.lt.s32.totalorder %s6253_s18, 3 }
   0x4   : > { %p198_p2 = pnand %p5881_p0, %p197_p1 }
   0x6   : > { %201 = sbr.rel (%p198_p2) target bundleno = 2453 (0x995), region = 40 }
   0xb   : > { %v5894_v0 = vld [vmem:[%s11094_s2 + $0x20] sm:$0xf]  ;;  %v6013_v1 = vld [vmem:[%s11094_s2 + $0x2c] sm:$0xf0]  ;;  %p230_p3 = scmp.lt.s32.totalorder %s5877_s19, 1  ;;  %vm459_vm0 = vcmask 293888  }
   0xc   : > { %v5895_v2 = vor.u32 %v6013_v1, %v5894_v0  ;;  %v5902_v3 = vld [vmem:[%s11094_s2 + $0x28] sm:$0xf]  ;;  %v5890_v4 = vld [vmem:[%s11094_s2] sm:$0xf]  ;;  %v6012_v5 = vld [vmem:[%s11094_s2 + $0xc] sm:$0xf0] }
   0xd   : > { %v6015_v6 = vld [vmem:[%s11094_s2 + $0x34] sm:$0xf0]  ;;  %s12125_s19 = smov (!%p230_p3, %s5877_s19), 1  ;;  %v5913_v8 = vld [vmem:[%s11094_s2 + $0x2c] sm:$0xf]  ;;  %s6255_s16 = smov 96   ;;  %v5891_v14 = vor.u32 %v6012_v5, %v5890_v4 }
   0xe   : > { %272 = vmatpush.bf16.xpose.msra.mxu0 %v5895_v2  ;;  %v6317_v7 = vor.u32 %v6015_v6, %v5902_v3  ;;  %v6017_v9 = vld [vmem:[%s11094_s2 + $0x38] sm:$0xf0]  ;;  %v5909_v11 = vld [vmem:[%s11094_s2 + $0xc] sm:$0xf]  ;;  %s6010_s15 = sshll.u32 %s12125_s19, 4  ;;  %s6009_s26 = sshll.u32 %s12125_s19, 8 }
   0xf   : > { %v5914_v10 = vor.u32 %v6017_v9, %v5913_v8  ;;  %v6016_v12 = vld [vmem:[%s11094_s2 + $0x18] sm:$0xf0]  ;;  %s6338_s21 = scalar_lea.vmem %s11093_s1, %s6010_s15  ;;  %v5898_v15 = vld [vmem:[%s11094_s2 + $0x8] sm:$0xf]  ;;  %v6014_v16 = vld [vmem:[%s11094_s2 + $0x14] sm:$0xf0]  ;;  %s6353_s29 = scalar_lea.vmem %s11092_s0, %s6009_s26 }
  0x10   : > { %375 = vrot.lane.b32.xlu0 %v6317_v7, %s6255_s16  ;;  %v5910_v17 = vor.u32 %v6016_v12, %v5909_v11  ;;  %v247_v18 = vld [vmem:[%s6338_s21 + $0x9] sm:$0xf]  ;;  %v6348_v19 = vor.u32 %v6014_v16, %v5898_v15  ;;  %v409_v22 = vld [vmem:[%s6353_s29 + $0x70] sm:$0xff]  ;;  %v410_v23 = vld [vmem:[%s6353_s29 + $0x78] sm:$0xff]  ;;  %vm11126_vm1 = vcmask 261120   ;;  %vm281_vm2 = vcmask 257024  }
  0x11   : > { %v512_v13 = vsel %vm459_vm0, %v5914_v10, 0  ;;  %v252_v21 = vpack.c.bf16 %v247_v18, %v247_v18  ;;  %v438_v24 = vpack.c.bf16 %v410_v23, %v409_v22  ;;  %v315_v25 = vld [vmem:[%s6338_s21 + $0x8] sm:$0x1]  ;;  %v411_v27 = vld [vmem:[%s6353_s29 + $0x80] sm:$0xff]  ;;  %v413_v30 = vld [vmem:[%s6353_s29 + $0x90] sm:$0xff]  ;;  %s6258_s14 = smov 32  }
  0x12   : > { %6021 = vmatpush.bf16.xpose.msra.mxu3 %v512_v13  ;;  %520 = vmatpush.bf16.xpose.msra.mxu1 %v512_v13  ;;  %v509_v20 = vsel %vm459_vm0, %v5910_v17, 0  ;;  %v320_v26 = vpack.c.bf16 %v315_v25, %v315_v25  ;;  %v412_v28 = vld [vmem:[%s6353_s29 + $0x88] sm:$0xff]  ;;  %v414_v31 = vld [vmem:[%s6353_s29 + $0x98] sm:$0xff]  ;;  %v415_v33 = vld [vmem:[%s6353_s29 + $0xa0] sm:$0xff]  ;;  %s6011_s25 = sshll.u32 %s12125_s19, 3 }
  0x13   : > { %6020 = vmatpush.bf16.xpose.msra.mxu2 %v512_v13  ;;  %v439_v29 = vpack.c.bf16 %v412_v28, %v411_v27  ;;  %v440_v32 = vpack.c.bf16 %v414_v31, %v413_v30  ;;  %v416_v34 = vld [vmem:[%s6353_s29 + $0xa8] sm:$0xff]  ;;  %v395_v36 = vld [vmem:[%s6353_s29] sm:$0xff]  ;;  %v417_v39 = vld [vmem:[%s6353_s29 + $0xb0] sm:$0xff]  ;;  %s244_s28 = scalar_lea.vmem %s11097_s5, %s6011_s25 }
  0x14   : > { %v441_v35 = vpack.c.bf16 %v416_v34, %v415_v33  ;;  %v396_v37 = vld [vmem:[%s6353_s29 + $0x8] sm:$0xff]  ;;  %v418_v40 = vld [vmem:[%s6353_s29 + $0xb8] sm:$0xff]  ;;  %v419_v42 = vld [vmem:[%s6353_s29 + $0xc0] sm:$0xff] }
  0x15   : > { %v431_v38 = vpack.c.bf16 %v396_v37, %v395_v36  ;;  %v442_v41 = vpack.c.bf16 %v418_v40, %v417_v39  ;;  %v420_v43 = vld [vmem:[%s6353_s29 + $0xc8] sm:$0xff]  ;;  %v403_v45 = vld [vmem:[%s6353_s29 + $0x40] sm:$0xff]  ;;  %v421_v47 = vld [vmem:[%s6353_s29 + $0xd0] sm:$0xff] }
  0x16   : > { %273 = vmatpush.bf16.xpose.msra.mxu0 %v5891_v14  ;;  %v443_v44 = vpack.c.bf16 %v420_v43, %v419_v42  ;;  %v404_v46 = vld [vmem:[%s6353_s29 + $0x48] sm:$0xff]  ;;  %v422_v49 = vld [vmem:[%s6353_s29 + $0xd8] sm:$0xff]  ;;  %v397_v51 = vld [vmem:[%s6353_s29 + $0x10] sm:$0xff]  ;;  %v6256_v42 = vmov 32.0  }
  0x17   : > { %v435_v48 = vpack.c.bf16 %v404_v46, %v403_v45  ;;  %v444_v50 = vpack.c.bf16 %v422_v49, %v421_v47  ;;  %v398_v52 = vld [vmem:[%s6353_s29 + $0x18] sm:$0xff]  ;;  %v405_v54 = vld [vmem:[%s6353_s29 + $0x50] sm:$0xff]  ;;  %v423_v56 = vld [vmem:[%s6353_s29 + $0xe0] sm:$0xff] }
  0x18   : > { %373 = vrot.lane.b32.xlu0 %v6348_v19, %s6255_s16  ;;  %v432_v53 = vpack.c.bf16 %v398_v52, %v397_v51  ;;  %v406_v55 = vld [vmem:[%s6353_s29 + $0x58] sm:$0xff]  ;;  %v424_v58 = vld [vmem:[%s6353_s29 + $0xe8] sm:$0xff]  ;;  %v399_v60 = vld [vmem:[%s6353_s29 + $0x20] sm:$0xff] }
  0x19   : > { %v436_v57 = vpack.c.bf16 %v406_v55, %v405_v54  ;;  %v445_v59 = vpack.c.bf16 %v424_v58, %v423_v56  ;;  %v400_v61 = vld [vmem:[%s6353_s29 + $0x28] sm:$0xff]  ;;  %v253_v63 = vld [vmem:[%s11096_s4] sm:$0xf]  ;;  %v425_v5 = vld [vmem:[%s6353_s29 + $0xf0] sm:$0xff] }
  0x1a   : > { %6023 = vmatpush.bf16.xpose.msra.mxu3 %v509_v20  ;;  %521 = vmatpush.bf16.xpose.msra.mxu1 %v509_v20  ;;  %v433_v62 = vpack.c.bf16 %v400_v61, %v399_v60  ;;  %v407_v3 = vld [vmem:[%s6353_s29 + $0x60] sm:$0xff]  ;;  %v408_v4 = vld [vmem:[%s6353_s29 + $0x68] sm:$0xff]  ;;  %v426_v8 = vld [vmem:[%s6353_s29 + $0xf8] sm:$0xff] }
  0x1b   : > { %6022 = vmatpush.bf16.xpose.msra.mxu2 %v509_v20  ;;  %v437_v6 = vpack.c.bf16 %v408_v4, %v407_v3  ;;  %v446_v9 = vpack.c.bf16 %v426_v8, %v425_v5  ;;  %v401_v12 = vld [vmem:[%s6353_s29 + $0x30] sm:$0xff]  ;;  %v402_v13 = vld [vmem:[%s6353_s29 + $0x38] sm:$0xff]  ;;  %v321_v15 = vld [vmem:[%s11096_s4 + $0x7] sm:$0x1] }
  0x1c   : > { %v434_v14 = vpack.c.bf16 %v402_v13, %v401_v12  ;;  %v372_v5 = vld [vmem:[%s11096_s4 + $0x8] sm:$0x1]  ;;  %v5953_v8 = vld [vmem:[%s11094_s2 + $0x24] sm:$0xf] }
  0x1d   : > { %274 = vmatmul.bf16.vlgmr.msra.gmra.mxu0 %v252_v21  ;;  %v6466_v12 = vld [vmem:[%s11096_s4 + $0x6] ss:$0 sm:$0xff] }
  0x1e   : > { %344 = vmatpush.bf16.msrb.mxu0 %v6317_v7 }
  0x21   : > { %5922 = vmatmul.msk.bf16.vlgmr.msra.gmra.mxu3 %vm459_vm0, %v438_v24  ;;  %5915 = vmatmul.msk.bf16.vlgmr.msra.gmra.mxu1 %vm459_vm0, %v431_v38 }
  0x22   : > { %345 = vmatpush.bf16.msrb.mxu0 %v6348_v19  ;;  %5919 = vmatmul.msk.bf16.vlgmr.msra.gmra.mxu2 %vm459_vm0, %v435_v48 }
  0x2d   : > { %5904 = vmatmul.msk.bf16.vlgmr.msrb.gmra.mxu0 %vm11126_vm1, %v320_v26 }
  0x31   : > { %5923 = vmatmul.msk.bf16.gmra.mxu3 %vm459_vm0, %v439_v29  ;;  %5916 = vmatmul.msk.bf16.gmra.mxu1 %vm459_vm0, %v432_v53 }
  0x32   : > { %5920 = vmatmul.msk.bf16.gmra.mxu2 %vm459_vm0, %v436_v57 }
  0x41   : > { %5924 = vmatmul.msk.bf16.gmra.mxu3 %vm459_vm0, %v440_v32  ;;  %5917 = vmatmul.msk.bf16.gmra.mxu1 %vm459_vm0, %v433_v62 }
  0x42   : > { %5921 = vmatmul.msk.bf16.gmra.mxu2 %vm459_vm0, %v437_v6 }
  0x51   : > { %5925 = vmatmul.msk.bf16.gmra.mxu3 %vm459_vm0, %v441_v35  ;;  %5918 = vmatmul.msk.bf16.gmra.mxu1 %vm459_vm0, %v434_v14 }
  0x61   : > { %5926 = vmatmul.msk.bf16.gmra.mxu3 %vm459_vm0, %v442_v41 }
  0x71   : > { %5927 = vmatmul.msk.bf16.gmra.mxu3 %vm459_vm0, %v443_v44 }
  0x81   : > { %5928 = vmatmul.msk.bf16.gmra.mxu3 %vm459_vm0, %v444_v50 }
  0x82   : > { %v376_v10 = vpop.permute.xlu0 %375 }
  0x83   : > { %388 = vmatpush.bf16.msra.mxu0 %v376_v10 }
  0x8a   : > { %v374_v16 = vpop.permute.xlu0 %373 }
  0x8b   : > { %389 = vmatpush.bf16.msra.mxu0 %v374_v16 }
  0x91   : > { %5929 = vmatmul.msk.bf16.gmra.mxu3 %vm459_vm0, %v445_v59 }
  0x9a   : > { %v275_v0 = vpop.f32.mrf.mxu0 }
  0x9b   : > { %v6404_v1 = vadd.f32 %v275_v0, %v253_v63 }
  0x9d   : > { %v282_v2 = vsel %vm281_vm2, %v6404_v1, 0.0 }
  0x9e   : > { %283 = vadd.xlane.f32.xlu1 %v282_v2  ;;  %v523_v56 = vpop.f32.mrf.mxu1 }
  0xa1   : > { %5930 = vmatmul.msk.bf16.gmra.mxu3 %vm459_vm0, %v446_v9  ;;  %v6019_v9 = vld [vmem:[%s11094_s2 + $0x30] sm:$0xf0] }
  0xa2   : > { %v277_v11 = vpop.f32.mrf.mxu0 }
  0xa3   : > { %v5954_v11 = vor.u32 %v6019_v9, %v5953_v8 }
  0xa4   : > { %v6420_v30 = vpop.f32.mrf.mxu3 }
  0xa5   : > { %v6450_v0 = vpop.f32.mrf.mxu2  ;;  %1594 = vmatpush.bf16.msrb.mxu2 %v5954_v11 }
  0xa6   : > { %v525_v59 = vpop.f32.mrf.mxu1 }
  0xaa   : > { %v347_v17 = vpop.f32.mrf.mxu0 }
  0xab   : > { %v348_v18 = vadd.f32 %v347_v17, %v321_v15 }
  0xac   : > { %v6423_v37 = vpop.f32.mrf.mxu3 }
  0xad   : > { %v5905_v20 = vmul.f32 -1.442695, %v348_v18  ;;  %v545_v3 = vpop.f32.mrf.mxu2 }
  0xae   : > { %v528_v61 = vpop.f32.mrf.mxu1  ;;  %v546_v9 = vadd.f32 %v6466_v12, %v545_v3 }
  0xaf   : > { %6042 = vpow2.f32 %v5905_v20 }
  0xb2   : > { %v349_v21 = vpop.f32.mrf.mxu0 }
  0xb3   : > { %v524_v21 = vadd.f32 %v6466_v12, %v523_v56 }
  0xb4   : > { %v6425_v38 = vpop.f32.mrf.mxu3 }
  0xb5   : > { %v6043_v22 = vpop.eup %6042  ;;  %v548_v14 = vpop.f32.mrf.mxu2 }
  0xb6   : > { %v354_v23 = vadd.f32 1.0, %v6043_v22  ;;  %v530_v63 = vpop.f32.mrf.mxu1  ;;  %v549_v15 = vadd.f32 %v6466_v12, %v548_v14 }
  0xb7   : > { %v531_v20 = vadd.f32 %v6466_v12, %v530_v63 }
  0xb8   : > { %6044 = vrcp.f32 %v354_v23  ;;  %v366_v27 = vand.u32 2147483648, %v354_v23  ;;  %v364_v29 = vand.u32 2147483647, %v354_v23  ;;  %vm360_vm4 = vweird.f32 %v354_v23 }
  0xb9   : > { %6046 = vrcp.f32 %v6256_v42  ;;  %v6018_v42 = vld [vmem:[%s11094_s2 + $0x10] sm:$0xf0] }
  0xba   : > { %v367_v32 = vor.u32 1.1754944e-38, %v366_v27  ;;  %vm365_vm6 = vcmp.eq.f32.partialorder %v364_v29, 8.507059e+37 }
  0xbc   : > { %v6427_v39 = vpop.f32.mrf.mxu3 }
  0xbe   : > { %v6045_v24 = vpop.eup %6044  ;;  %v533_v2 = vpop.f32.mrf.mxu1 }
  0xbf   : > { %v356_v25 = vmul.f32 %v6045_v24, %v354_v23  ;;  %vm361_vm3 = vweird.f32 %v6045_v24  ;;  %v6047_v43 = vpop.eup %6046  ;;  %v526_v23 = vadd.f32 %v6466_v12, %v525_v59 }
  0xc0   : > { %vm362_vm5 = vmor %vm360_vm4, %vm361_vm3  ;;  %v286_v44 = vmul.f32 32.0, %v6047_v43  ;;  %vm290_vm7 = vweird.f32 %v6047_v43 }
  0xc1   : > { %v357_v26 = vsub.f32 1.0, %v356_v25 }
  0xc2   : > { %v287_v46 = vsub.f32 1.0, %v286_v44  ;;  %v529_v44 = vadd.f32 %v6466_v12, %v528_v61 }
  0xc3   : > { %v358_v28 = vmul.f32 %v6045_v24, %v357_v26 }
  0xc4   : > { %v568_v40 = vpop.f32.mrf.mxu3  ;;  %v288_v47 = vmul.f32 %v6047_v43, %v287_v46 }
  0xc5   : > { %v359_v31 = vadd.f32 %v6045_v24, %v358_v28  ;;  %v569_v17 = vadd.f32 %v6466_v12, %v568_v40  ;;  %v5949_v40 = vld [vmem:[%s11094_s2 + $0x4] sm:$0xf] }
  0xc6   : > { %v289_v49 = vadd.f32 %v6047_v43, %v288_v47  ;;  %v535_v6 = vpop.f32.mrf.mxu1 }
  0xc7   : > { %v363_v33 = vsel %vm362_vm5, %v6045_v24, %v359_v31  ;;  %v536_v59 = vadd.f32 %v6466_v12, %v535_v6 }
  0xc8   : > { %v368_v34 = vsel %vm365_vm6, %v367_v32, %v363_v33  ;;  %v6433_v50 = vsel %vm290_vm7, %v6047_v43, %v289_v49  ;;  %v1567_v43 = vld [vmem:[%s6338_s21] sm:$0xff]  ;;  %v534_v49 = vadd.f32 %v6466_v12, %v533_v2  ;;  %s6257_s21 = smov 64  }
  0xc9   : > { %v370_v35 = vmul.f32 %v368_v34, %v348_v18 }
  0xcb   : > { %v371_v36 = vpack.c.bf16 %v370_v35, %v370_v35 }
  0xcc   : > { %v6429_v41 = vpop.f32.mrf.mxu3 }
  0xcd   : > { %5906 = vmatmul.msk.bf16.vlgmr.msra.gmra.mxu0 %vm11126_vm1, %v371_v36 }
  0xce   : > { %v538_v29 = vpop.f32.mrf.mxu1 }
  0xcf   : > { %v539_v8 = vadd.f32 %v6466_v12, %v538_v29 }
  0xd4   : > { %v573_v45 = vpop.f32.mrf.mxu3 }
  0xd5   : > { %v574_v18 = vadd.f32 %v6466_v12, %v573_v45 }
  0xdc   : > { %v6431_v48 = vpop.f32.mrf.mxu3 }
  0xe4   : > { %v6436_v53 = vpop.f32.mrf.mxu3 }
  0xec   : > { %v6444_v58 = vpop.f32.mrf.mxu3 }
  0xf4   : > { %v6446_v60 = vpop.f32.mrf.mxu3 }
  0xfc   : > { %v6448_v62 = vpop.f32.mrf.mxu3 }
 0x111   : > { %v284_v51 = vpop.xlane.xlu1 %283 }
 0x112   : > { %v292_v52 = vmul.f32 %v6433_v50, %v284_v51  ;;  %v5950_v51 = vor.u32 %v6018_v42, %v5949_v40 }
 0x114   : > { %v6439_v54 = vsub.f32 %v6404_v1, %v292_v52  ;;  %v588_v1 = vpop.f32.mrf.mxu3  ;;  %v1572_v52 = vpack.c.bf16 %v1567_v43, %v1567_v43  ;;  %1595 = vmatpush.bf16.msrb.mxu2 %v5950_v51 }
 0x115   : > { %v589_v24 = vadd.f32 %v6466_v12, %v588_v1 }
 0x116   : > { %v294_v55 = vmul.f32 %v6439_v54, %v6439_v54 }
 0x117   : > { %5955 = vmatmul.msk.bf16.vlgmr.msrb.gmra.mxu2 %vm11126_vm1, %v1572_v52 }
 0x118   : > { %v295_v57 = vsel %vm281_vm2, %v294_v55, 0.0 }
 0x119   : > { %296 = vadd.xlane.f32.xlu1 %v295_v57  ;;  %v540_v57 = vpop.f32.mrf.mxu1 }
 0x11a   : > { %v541_v63 = vadd.f32 %v6466_v12, %v540_v57 }
 0x11c   : > { %v6452_v4 = vpop.f32.mrf.mxu3 }
 0x124   : > { %v593_v22 = vpop.f32.mrf.mxu3 }
 0x125   : > { %v594_v25 = vadd.f32 %v6466_v12, %v593_v22 }
 0x14a   : > { %v391_v10 = vpop.f32.mrf.mxu0 }
 0x14b   : > { %v392_v13 = vadd.f32 %v391_v10, %v372_v5 }
 0x14d   : > { %v6469_v16 = vperm.slane %v392_v13, 0 }
 0x14f   : > { %v6479_v26 = vadd.f32 %v6469_v16, %v549_v15  ;;  %v6482_v27 = vadd.f32 %v6469_v16, %v524_v21  ;;  %v6485_v31 = vadd.f32 %v6469_v16, %v526_v23  ;;  %v6488_v32 = vadd.f32 %v6469_v16, %v531_v20 }
 0x150   : > { %v6491_v33 = vadd.f32 %v6469_v16, %v569_v17  ;;  %v6494_v34 = vadd.f32 %v6469_v16, %v574_v18  ;;  %v6497_v35 = vadd.f32 %v6469_v16, %v589_v24  ;;  %v6500_v36 = vadd.f32 %v6469_v16, %v594_v25 }
 0x151   : > { %11340 = vst [vmem:[#allocation2_spill] sm:$0xff] %v6479_v26  ;;  %v647_v45 = vsel %vm11126_vm1, %v6488_v32, 0.0  ;;  %v641_v46 = vsel %vm11126_vm1, %v6485_v31, 0.0  ;;  %v638_v47 = vsel %vm11126_vm1, %v6482_v27, 0.0  ;;  %v6518_v55 = vadd.f32 %v6469_v16, %v529_v44 }
 0x152   : > { %v393_v28 = vpop.f32.mrf.mxu0  ;;  %11341 = vst [vmem:[#allocation3_spill] sm:$0xff] %v6491_v33  ;;  %648 = vadd.xlane.f32.xlu0 %v647_v45  ;;  %642 = vadd.xlane.f32.xlu2 %v641_v46  ;;  %v6521_v56 = vadd.f32 %v6469_v16, %v534_v49  ;;  %v6531_v2 = vadd.f32 %v6469_v16, %v536_v59  ;;  %v550_v59 = vpop.f32.mrf.mxu2 }
 0x153   : > { %11342 = vst [vmem:[#allocation4_spill] sm:$0xff] %v6494_v34  ;;  %639 = vadd.xlane.f32.xlu1 %v638_v47  ;;  %v644_v61 = vsel %vm11126_vm1, %v6518_v55, 0.0  ;;  %v6534_v5 = vadd.f32 %v6469_v16, %v541_v63  ;;  %v6543_v13 = vadd.f32 %v6469_v16, %v539_v8  ;;  %v6546_v14 = vadd.f32 %v6469_v16, %v546_v9 }
 0x154   : > { %11343 = vst [vmem:[#allocation5_spill] sm:$0xff] %v6497_v35  ;;  %v650_v1 = vsel %vm11126_vm1, %v6521_v56, 0.0  ;;  %v653_v6 = vsel %vm11126_vm1, %v6531_v2, 0.0  ;;  %v544_v15 = vadd.f32 %v6466_v12, %v6450_v0 }
 0x155   : > { %11344 = vst [vmem:[#allocation6_spill] sm:$0xff] %v6500_v36  ;;  %v659_v10 = vsel %vm11126_vm1, %v6534_v5, 0.0  ;;  %v656_v3 = vsel %vm11126_vm1, %v6543_v13, 0.0  ;;  %v665_v17 = vsel %vm11126_vm1, %v6546_v14, 0.0 }
 0x156   : > { %11345 = vst [vmem:[#allocation7_spill] sm:$0xff] %v6534_v5  ;;  %v6556_v18 = vadd.f32 %v6469_v16, %v544_v15 }
 0x157   : > { %11346 = vst [vmem:[#allocation8_spill] sm:$0xff] %v6543_v13 }
 0x158   : > { %11347 = vst [vmem:[#allocation9_spill] sm:$0xff] %v6546_v14  ;;  %v662_v20 = vsel %vm11126_vm1, %v6556_v18, 0.0 }
 0x159   : > { %11348 = vst [vmem:[#allocation10_spill] sm:$0xff] %v6556_v18 }
 0x15a   : > { %645 = vadd.xlane.f32.xlu2 %v644_v61 }
 0x15b   : > { %651 = vadd.xlane.f32.xlu1 %v650_v1 }
 0x162   : > { %654 = vadd.xlane.f32.xlu2 %v653_v6 }
 0x163   : > { %660 = vadd.xlane.f32.xlu1 %v659_v10 }
 0x166   : > { %1604 = vrot.lane.b32.xlu0 %v5954_v11, %s6257_s21 }
 0x16a   : > { %657 = vadd.xlane.f32.xlu2 %v656_v3 }
 0x16b   : > { %666 = vadd.xlane.f32.xlu1 %v665_v17 }
 0x16e   : > { %1602 = vrot.lane.b32.xlu0 %v5950_v51, %s6257_s21 }
 0x172   : > { %663 = vadd.xlane.f32.xlu2 %v662_v20 }
 0x18c   : > { %v297_v11 = vpop.xlane.xlu1 %296 }
 0x18d   : > { %v298_v0 = vmul.f32 %v297_v11, %v6433_v50  ;;  %v6037_v11 = vld [vmem:[%s11096_s4 + $0x4] ss:$0 sm:$0xff] }
 0x18f   : > { %v299_v21 = vadd.f32 1e-05, %v298_v0 }
 0x191   : > { %6048 = vrsqrt.f32 %v299_v21  ;;  %vm306_vm9 = vweird.f32 %v299_v21 }
 0x197   : > { %v6049_v22 = vpop.eup %6048 }
 0x198   : > { %v301_v23 = vmul.f32 %v6049_v22, %v299_v21  ;;  %vm307_vm8 = vweird.f32 %v6049_v22  ;;  %v553_v21 = vpop.f32.mrf.mxu2 }
 0x199   : > { %vm308_vm10 = vmor %vm306_vm9, %vm307_vm8 }
 0x19a   : > { %v302_v24 = vmul.f32 %v6049_v22, %v301_v23 }
 0x19c   : > { %v303_v42 = vmul.f32 0.5, %v302_v24 }
 0x19e   : > { %v304_v49 = vsub.f32 1.5, %v303_v42 }
 0x1a0   : > { %v305_v8 = vmul.f32 %v6049_v22, %v304_v49  ;;  %v555_v49 = vpop.f32.mrf.mxu2 }
 0x1a2   : > { %v309_v15 = vsel %vm308_vm10, %v6049_v22, %v305_v8  ;;  %v559_v8 = vadd.f32 %v6466_v12, %v6420_v30 }
 0x1a3   : > { %v310_v0 = vmul.f32 %v309_v15, %v6439_v54 }
 0x1c5   : > { %v649_v25 = vpop.xlane.xlu0 %648  ;;  %v643_v28 = vpop.xlane.xlu2 %642 }
 0x1c6   : > { %v735_v29 = vmul.f32 %v643_v28, %v6433_v50  ;;  %v640_v40 = vpop.xlane.xlu1 %639  ;;  %v737_v44 = vmul.f32 %v649_v25, %v6433_v50  ;;  %v312_v25 = vmul.f32 %v6037_v11, %v310_v0  ;;  %v551_v0 = vadd.f32 %v6466_v12, %v550_v59 }
 0x1c7   : > { %v734_v43 = vmul.f32 %v640_v40, %v6433_v50 }
 0x1c8   : > { %v6566_v45 = vsub.f32 %v6485_v31, %v735_v29  ;;  %v6576_v52 = vsub.f32 %v6488_v32, %v737_v44  ;;  %v6038_v29 = vld [vmem:[%s11096_s4 + $0x5] ss:$0 sm:$0xff] }
 0x1c9   : > { %v6569_v46 = vsub.f32 %v6482_v27, %v734_v43  ;;  %v314_v43 = vadd.f32 %v6038_v29, %v312_v25  ;;  %v668_v25 = vsel %vm11126_vm1, %v6479_v26, 0.0  ;;  %v6641_v29 = vadd.f32 %v6469_v16, %v551_v0 }
 0x1ca   : > { %v799_v47 = vmul.f32 %v6566_v45, %v6566_v45  ;;  %v801_v9 = vmul.f32 %v6576_v52, %v6576_v52 }
 0x1cb   : > { %v798_v51 = vmul.f32 %v6569_v46, %v6569_v46  ;;  %11351 = vst [vmem:[#allocation13_spill] sm:$0xff] %v6641_v29 }
 0x1cc   : > { %v833_v57 = vsel %vm11126_vm1, %v799_v47, 0.0  ;;  %v839_v3 = vsel %vm11126_vm1, %v801_v9, 0.0 }
 0x1cd   : > { %v646_v61 = vpop.xlane.xlu2 %645  ;;  %834 = vadd.xlane.f32.xlu1 %v833_v57  ;;  %v830_v63 = vsel %vm11126_vm1, %v798_v51, 0.0  ;;  %v1601_v51 = vpack.c.bf16 %v314_v43, %v314_v43 }
 0x1ce   : > { %v736_v1 = vmul.f32 %v646_v61, %v6433_v50  ;;  %831 = vadd.xlane.f32.xlu2 %v830_v63  ;;  %v556_v61 = vadd.f32 %v6466_v12, %v555_v49 }
 0x1d0   : > { %v6582_v6 = vsub.f32 %v6518_v55, %v736_v1  ;;  %v6614_v1 = vadd.f32 %v6469_v16, %v556_v61 }
 0x1d2   : > { %v800_v10 = vmul.f32 %v6582_v6, %v6582_v6  ;;  %11349 = vst [vmem:[#allocation11_spill] sm:$0xff] %v6614_v1  ;;  %v677_v9 = vsel %vm11126_vm1, %v6614_v1, 0.0 }
 0x1d4   : > { %v836_v17 = vsel %vm11126_vm1, %v800_v10, 0.0  ;;  %v6625_v10 = vadd.f32 %v6469_v16, %v559_v8 }
 0x1d5   : > { %v655_v20 = vpop.xlane.xlu2 %654  ;;  %840 = vadd.xlane.f32.xlu1 %v839_v3  ;;  %v652_v3 = vpop.xlane.xlu1 %651 }
 0x1d6   : > { %v739_v23 = vmul.f32 %v655_v20, %v6433_v50  ;;  %837 = vadd.xlane.f32.xlu2 %v836_v17  ;;  %11350 = vst [vmem:[#allocation12_spill] sm:$0xff] %v6625_v10  ;;  %v680_v15 = vsel %vm11126_vm1, %v6625_v10, 0.0  ;;  %v738_v30 = vmul.f32 %v652_v3, %v6433_v50  ;;  %v561_v3 = vadd.f32 %v6466_v12, %v6423_v37 }
 0x1d8   : > { %v6596_v24 = vsub.f32 %v6531_v2, %v739_v23  ;;  %v1605_v22 = vpop.permute.xlu0 %1604  ;;  %v6631_v17 = vsub.f32 %v6521_v56, %v738_v30 }
 0x1d9   : > { %1617 = vmatpush.bf16.msrb.mxu0 %v1605_v22  ;;  %v554_v22 = vadd.f32 %v6466_v12, %v553_v21  ;;  %v671_v21 = vsel %vm11126_vm1, %v6641_v29, 0.0 }
 0x1da   : > { %v803_v28 = vmul.f32 %v6596_v24, %v6596_v24  ;;  %v802_v11 = vmul.f32 %v6631_v17, %v6631_v17 }
 0x1dc   : > { %v845_v40 = vsel %vm11126_vm1, %v803_v28, 0.0  ;;  %v842_v23 = vsel %vm11126_vm1, %v802_v11, 0.0  ;;  %v564_v11 = vadd.f32 %v6466_v12, %v6425_v38  ;;  %v6687_v38 = vpop.f32.mrf.mxu2 }
 0x1dd   : > { %846 = vadd.xlane.f32.xlu0 %v845_v40  ;;  %v658_v54 = vpop.xlane.xlu2 %657  ;;  %v661_v20 = vpop.xlane.xlu1 %660 }
 0x1de   : > { %v740_v42 = vmul.f32 %v658_v54, %v6433_v50  ;;  %v741_v40 = vmul.f32 %v661_v20, %v6433_v50  ;;  %v6645_v54 = vadd.f32 %v6469_v16, %v554_v22  ;;  %v6674_v20 = vadd.f32 %v6469_v16, %v561_v3 }
 0x1e0   : > { %v6606_v44 = vsub.f32 %v6543_v13, %v740_v42  ;;  %v1603_v47 = vpop.permute.xlu0 %1602  ;;  %11352 = vst [vmem:[#allocation14_spill] sm:$0xff] %v6645_v54  ;;  %v6649_v42 = vsub.f32 %v6534_v5, %v741_v40  ;;  %v674_v49 = vsel %vm11126_vm1, %v6645_v54, 0.0  ;;  %v683_v0 = vsel %vm11126_vm1, %v6674_v20, 0.0 }
 0x1e1   : > { %1618 = vmatpush.bf16.msrb.mxu0 %v1603_v47  ;;  %11353 = vst [vmem:[#allocation15_spill] sm:$0xff] %v6674_v20 }
 0x1e2   : > { %v804_v57 = vmul.f32 %v6606_v44, %v6606_v44 }
 0x1e4   : > { %5956 = vmatmul.msk.bf16.vlgmr.msrb.gmra.mxu0 %vm11126_vm1, %v1601_v51  ;;  %v848_v63 = vsel %vm11126_vm1, %v804_v57, 0.0  ;;  %v805_v57 = vmul.f32 %v6649_v42, %v6649_v42 }
 0x1e5   : > { %849 = vadd.xlane.f32.xlu0 %v848_v63  ;;  %v667_v28 = vpop.xlane.xlu1 %666  ;;  %v664_v47 = vpop.xlane.xlu2 %663 }
 0x1e6   : > { %v743_v59 = vmul.f32 %v667_v28, %v6433_v50  ;;  %v742_v51 = vmul.f32 %v664_v47, %v6433_v50  ;;  %v851_v8 = vsel %vm11126_vm1, %v805_v57, 0.0 }
 0x1e8   : > { %v6654_v43 = vsub.f32 %v6546_v14, %v743_v59  ;;  %v6664_v63 = vsub.f32 %v6556_v18, %v742_v51 }
 0x1ea   : > { %v807_v61 = vmul.f32 %v6654_v43, %v6654_v43 }
 0x1ed   : > { %678 = vadd.xlane.f32.xlu0 %v677_v9  ;;  %v857_v9 = vsel %vm11126_vm1, %v807_v61, 0.0 }
 0x1ee   : > { %1426 = vrot.lane.b32.xlu2 %v6317_v7, %s6257_s21  ;;  %1424 = vrot.lane.b32.xlu1 %v6348_v19, %s6257_s21 }
 0x1f5   : > { %681 = vadd.xlane.f32.xlu0 %v680_v15  ;;  %v806_v15 = vmul.f32 %v6664_v63, %v6664_v63 }
 0x1f7   : > { %v854_v30 = vsel %vm11126_vm1, %v806_v15, 0.0 }
 0x217   : > { %843 = vadd.xlane.f32.xlu2 %v842_v23  ;;  %v6681_v23 = vadd.f32 %v6469_v16, %v564_v11  ;;  %v1599_v11 = vpop.f32.mrf.mxu2 }
 0x218   : > { %669 = vadd.xlane.f32.xlu1 %v668_v25 }
 0x219   : > { %11354 = vst [vmem:[#allocation16_spill] sm:$0xff] %v6681_v23  ;;  %v686_v22 = vsel %vm11126_vm1, %v6681_v23, 0.0 }
 0x21f   : > { %672 = vadd.xlane.f32.xlu2 %v671_v21 }
 0x220   : > { %675 = vadd.xlane.f32.xlu1 %v674_v49 }
 0x227   : > { %852 = vadd.xlane.f32.xlu2 %v851_v8 }
 0x228   : > { %858 = vadd.xlane.f32.xlu1 %v857_v9 }
 0x22f   : > { %855 = vadd.xlane.f32.xlu2 %v854_v30 }
 0x237   : > { %684 = vadd.xlane.f32.xlu2 %v683_v0 }
 0x23f   : > { %687 = vadd.xlane.f32.xlu2 %v686_v22 }
 0x240   : > { %v835_v37 = vpop.xlane.xlu1 %834 }
 0x241   : > { %v832_v25 = vpop.xlane.xlu2 %831  ;;  %v927_v28 = vmul.f32 %v835_v37, %v6433_v50 }
 0x242   : > { %v926_v40 = vmul.f32 %v832_v25, %v6433_v50 }
 0x243   : > { %v959_v59 = vadd.f32 1e-05, %v927_v28 }
 0x244   : > { %v958_v21 = vadd.f32 1e-05, %v926_v40 }
 0x245   : > { %6050 = vrsqrt.f32 %v959_v59  ;;  %vm1006_vm13 = vweird.f32 %v959_v59 }
 0x246   : > { %6052 = vrsqrt.f32 %v958_v21  ;;  %vm996_vm14 = vweird.f32 %v958_v21 }
 0x248   : > { %v841_v47 = vpop.xlane.xlu1 %840 }
 0x249   : > { %v838_v49 = vpop.xlane.xlu2 %837  ;;  %v929_v51 = vmul.f32 %v841_v47, %v6433_v50 }
 0x24a   : > { %v928_v57 = vmul.f32 %v838_v49, %v6433_v50 }
 0x24b   : > { %v6051_v61 = vpop.eup %6050  ;;  %v961_v8 = vadd.f32 1e-05, %v929_v51 }
 0x24c   : > { %v6053_v9 = vpop.eup %6052  ;;  %v1001_v15 = vmul.f32 %v6051_v61, %v959_v59  ;;  %v960_v3 = vadd.f32 1e-05, %v928_v57  ;;  %vm1007_vm11 = vweird.f32 %v6051_v61 }
 0x24d   : > { %v991_v30 = vmul.f32 %v6053_v9, %v958_v21  ;;  %6054 = vrsqrt.f32 %v961_v8  ;;  %vm997_vm12 = vweird.f32 %v6053_v9  ;;  %vm1008_vm15 = vmor %vm1006_vm13, %vm1007_vm11  ;;  %vm1026_vm4 = vweird.f32 %v961_v8 }
 0x24e   : > { %v1002_v0 = vmul.f32 %v6051_v61, %v1001_v15  ;;  %6056 = vrsqrt.f32 %v960_v3  ;;  %vm998_vm0 = vmor %vm996_vm14, %vm997_vm12  ;;  %vm1016_vm5 = vweird.f32 %v960_v3 }
 0x24f   : > { %v992_v22 = vmul.f32 %v6053_v9, %v991_v30 }
 0x250   : > { %v1003_v37 = vmul.f32 0.5, %v1002_v0  ;;  %v6691_v25 = vpop.xlane.xlu0 %846  ;;  %v6696_v0 = vld [vmem:[%s11096_s4 + $0x9] ss:$0 sm:$0xff] }
 0x251   : > { %v993_v28 = vmul.f32 0.5, %v992_v22  ;;  %v1427_v40 = vpop.permute.xlu2 %1426 }
 0x252   : > { %v1004_v14 = vsub.f32 1.5, %v1003_v37  ;;  %1484 = vmatpush.bf16.msrb.mxu1 %v1427_v40 }
 0x253   : > { %v6055_v47 = vpop.eup %6054  ;;  %v994_v49 = vsub.f32 1.5, %v993_v28 }
 0x254   : > { %v6057_v51 = vpop.eup %6056  ;;  %v1005_v18 = vmul.f32 %v6051_v61, %v1004_v14  ;;  %v1021_v57 = vmul.f32 %v6055_v47, %v961_v8  ;;  %vm1027_vm2 = vweird.f32 %v6055_v47 }
 0x255   : > { %v995_v5 = vmul.f32 %v6053_v9, %v994_v49  ;;  %v1011_v15 = vmul.f32 %v6057_v51, %v960_v3  ;;  %vm1017_vm3 = vweird.f32 %v6057_v51  ;;  %vm1028_vm6 = vmor %vm1026_vm4, %vm1027_vm2 }
 0x256   : > { %v1009_v30 = vsel %vm1008_vm15, %v6051_v61, %v1005_v18  ;;  %v1022_v11 = vmul.f32 %v6055_v47, %v1021_v57  ;;  %v6705_v18 = vld [vmem:[%s11096_s4 + $0xa] ss:$0 sm:$0xff]  ;;  %vm1018_vm7 = vmor %vm1016_vm5, %vm1017_vm3 }
 0x257   : > { %v999_v22 = vsel %vm998_vm0, %v6053_v9, %v995_v5  ;;  %v1311_v37 = vmul.f32 %v1009_v30, %v6566_v45  ;;  %v1012_v28 = vmul.f32 %v6057_v51, %v1011_v15 }
 0x258   : > { %v1310_v14 = vmul.f32 %v999_v22, %v6569_v46  ;;  %v1023_v59 = vmul.f32 0.5, %v1022_v11  ;;  %v850_v40 = vpop.xlane.xlu0 %849 }
 0x259   : > { %v1013_v49 = vmul.f32 0.5, %v1012_v28  ;;  %v1344_v13 = vmul.f32 %v6696_v0, %v1311_v37 }
 0x25a   : > { %v1343_v21 = vmul.f32 %v6696_v0, %v1310_v14  ;;  %v1024_v57 = vsub.f32 1.5, %v1023_v59 }
 0x25b   : > { %v1014_v61 = vsub.f32 1.5, %v1013_v49  ;;  %v1377_v45 = vadd.f32 %v6705_v18, %v1344_v13 }
 0x25c   : > { %v1376_v5 = vadd.f32 %v6705_v18, %v1343_v21  ;;  %v1025_v9 = vmul.f32 %v6055_v47, %v1024_v57 }
 0x25d   : > { %v1015_v46 = vmul.f32 %v6057_v51, %v1014_v61 }
 0x25e   : > { %v1408_v28 = vpack.c.bf16 %v1377_v45, %v1376_v5  ;;  %v1029_v59 = vsel %vm1028_vm6, %v6055_v47, %v1025_v9  ;;  %v576_v9 = vadd.f32 %v6466_v12, %v6431_v48 }
 0x25f   : > { %v1019_v14 = vsel %vm1018_vm7, %v6057_v51, %v1015_v46 }
 0x260   : > { %v679_v15 = vpop.xlane.xlu0 %678  ;;  %v1425_v30 = vpop.permute.xlu1 %1424  ;;  %v1312_v49 = vmul.f32 %v1019_v14, %v6582_v6 }
 0x261   : > { %v747_v11 = vmul.f32 %v679_v15, %v6433_v50  ;;  %1485 = vmatpush.bf16.msrb.mxu1 %v1425_v30  ;;  %v1620_v22 = vpop.f32.mrf.mxu0 }
 0x262   : > { %v6711_v37 = vpack.c.bf16 %v1620_v22, %v6687_v38  ;;  %v1313_v38 = vmul.f32 %v1029_v59, %v6576_v52  ;;  %v1345_v57 = vmul.f32 %v6696_v0, %v1312_v49  ;;  %v931_v22 = vmul.f32 %v6691_v25, %v6433_v50 }
 0x263   : > { %v6714_v13 = vsub.f32 %v6614_v1, %v747_v11  ;;  %v6738_v11 = vadd.f32 %v6469_v16, %v576_v9  ;;  %v932_v49 = vmul.f32 %v850_v40, %v6433_v50 }
 0x264   : > { %v1690_v8 = vsel %vm11126_vm1, %v6711_v37, 0  ;;  %5931 = vmatmul.msk.bf16.vlgmr.msrb.gmra.mxu1 %vm11126_vm1, %v1408_v28  ;;  %v1346_v5 = vmul.f32 %v6696_v0, %v1313_v38  ;;  %v1378_v6 = vadd.f32 %v6705_v18, %v1345_v57  ;;  %v579_v28 = vadd.f32 %v6466_v12, %v6436_v53 }
 0x265   : > { %1699 = vmatpush.bf16.xpose.msra.mxu2 %v1690_v8  ;;  %v811_v3 = vmul.f32 %v6714_v13, %v6714_v13  ;;  %11355 = vst [vmem:[#allocation17_spill] sm:$0xff] %v6738_v11  ;;  %v701_v14 = vsel %vm11126_vm1, %v6738_v11, 0.0  ;;  %v963_v48 = vadd.f32 1e-05, %v931_v22  ;;  %v6753_v38 = vadd.f32 1e-05, %v932_v49 }
 0x266   : > { %v1379_v52 = vadd.f32 %v6705_v18, %v1346_v5  ;;  %v6748_v59 = vadd.f32 %v6469_v16, %v579_v28 }
 0x267   : > { %v869_v21 = vsel %vm11126_vm1, %v811_v3, 0.0  ;;  %6058 = vrsqrt.f32 %v963_v48  ;;  %vm1046_vm9 = vweird.f32 %v963_v48  ;;  %vm1056_vm15 = vweird.f32 %v6753_v38 }
 0x268   : > { %v682_v51 = vpop.xlane.xlu0 %681  ;;  %870 = vadd.xlane.f32.xlu2 %v869_v21  ;;  %v1409_v30 = vpack.c.bf16 %v1379_v52, %v1378_v6  ;;  %11356 = vst [vmem:[#allocation18_spill] sm:$0xff] %v6748_v59  ;;  %v704_v8 = vsel %vm11126_vm1, %v6748_v59, 0.0  ;;  %6060 = vrsqrt.f32 %v6753_v38  ;;  %v566_v6 = vadd.f32 %v6466_v12, %v6427_v39 }
 0x269   : > { %v748_v47 = vmul.f32 %v682_v51, %v6433_v50  ;;  %v1622_v61 = vpop.f32.mrf.mxu0 }
 0x26b   : > { %v6728_v45 = vsub.f32 %v6625_v10, %v748_v47 }
 0x26d   : > { %v812_v46 = vmul.f32 %v6728_v45, %v6728_v45  ;;  %v6059_v3 = vpop.eup %6058 }
 0x26e   : > { %v1041_v25 = vmul.f32 %v6059_v3, %v963_v48  ;;  %vm1047_vm8 = vweird.f32 %v6059_v3 }
 0x26f   : > { %v872_v15 = vsel %vm11126_vm1, %v812_v46, 0.0  ;;  %vm6780_vm10 = vmor %vm1046_vm9, %vm1047_vm8 }
 0x270   : > { %873 = vadd.xlane.f32.xlu2 %v872_v15  ;;  %v1042_v53 = vmul.f32 %v6059_v3, %v1041_v25 }
 0x272   : > { %v1043_v5 = vmul.f32 0.5, %v1042_v53 }
 0x274   : > { %5932 = vmatmul.msk.bf16.gmra.mxu1 %vm11126_vm1, %v1409_v30  ;;  %v1044_v52 = vsub.f32 1.5, %v1043_v5  ;;  %v6766_v30 = vpop.eup %6060 }
 0x275   : > { %v1051_v53 = vmul.f32 %v6766_v30, %v6753_v38  ;;  %vm1057_vm14 = vweird.f32 %v6766_v30 }
 0x276   : > { %v1045_v39 = vmul.f32 %v6059_v3, %v1044_v52  ;;  %vm1058_vm0 = vmor %vm1056_vm15, %vm1057_vm14 }
 0x277   : > { %v1052_v52 = vmul.f32 %v6766_v30, %v1051_v53 }
 0x278   : > { %702 = vadd.xlane.f32.xlu2 %v701_v14 }
 0x279   : > { %v1053_v53 = vmul.f32 0.5, %v1052_v52 }
 0x280   : > { %705 = vadd.xlane.f32.xlu2 %v704_v8  ;;  %v6770_v8 = vadd.f32 %v6469_v16, %v566_v6  ;;  %v1049_v6 = vsel %vm6780_vm10, %v6059_v3, %v1045_v39 }
 0x281   : > { %v1315_v39 = vmul.f32 %v1049_v6, %v6596_v24  ;;  %v692_v24 = vsel %vm11126_vm1, %v6491_v33, 0.0 }
 0x282   : > { %11357 = vst [vmem:[#allocation19_spill] sm:$0xff] %v6770_v8  ;;  %v689_v48 = vsel %vm11126_vm1, %v6770_v8, 0.0 }
 0x28a   : > { %v844_v21 = vpop.xlane.xlu2 %843 }
 0x28b   : > { %v930_v51 = vmul.f32 %v844_v21, %v6433_v50  ;;  %v670_v47 = vpop.xlane.xlu1 %669 }
 0x28c   : > { %v744_v61 = vmul.f32 %v670_v47, %v6433_v50 }
 0x28d   : > { %v962_v57 = vadd.f32 1e-05, %v930_v51 }
 0x28e   : > { %v6759_v46 = vsub.f32 %v6479_v26, %v744_v61 }
 0x28f   : > { %6062 = vrsqrt.f32 %v962_v57  ;;  %vm1036_vm12 = vweird.f32 %v962_v57 }
 0x290   : > { %v808_v40 = vmul.f32 %v6759_v46, %v6759_v46 }
 0x292   : > { %v673_v9 = vpop.xlane.xlu2 %672  ;;  %v860_v15 = vsel %vm11126_vm1, %v808_v40, 0.0 }
 0x293   : > { %v745_v22 = vmul.f32 %v673_v9, %v6433_v50  ;;  %861 = vadd.xlane.f32.xlu1 %v860_v15  ;;  %v676_v28 = vpop.xlane.xlu1 %675 }
 0x294   : > { %v746_v25 = vmul.f32 %v676_v28, %v6433_v50 }
 0x295   : > { %v6063_v14 = vpop.eup %6062  ;;  %v6773_v49 = vsub.f32 %v6641_v29, %v745_v22 }
 0x296   : > { %v1031_v21 = vmul.f32 %v6063_v14, %v962_v57  ;;  %v6785_v5 = vsub.f32 %v6645_v54, %v746_v25  ;;  %vm1037_vm11 = vweird.f32 %v6063_v14  ;;  %v1348_v57 = vmul.f32 %v6696_v0, %v1315_v39 }
 0x297   : > { %v809_v51 = vmul.f32 %v6773_v49, %v6773_v49  ;;  %vm1038_vm13 = vmor %vm1036_vm12, %vm1037_vm11 }
 0x298   : > { %v1032_v47 = vmul.f32 %v6063_v14, %v1031_v21  ;;  %v810_v3 = vmul.f32 %v6785_v5, %v6785_v5  ;;  %v1381_v39 = vadd.f32 %v6705_v18, %v1348_v57 }
 0x299   : > { %v863_v40 = vsel %vm11126_vm1, %v809_v51, 0.0 }
 0x29a   : > { %v1033_v9 = vmul.f32 0.5, %v1032_v47  ;;  %864 = vadd.xlane.f32.xlu0 %v863_v40  ;;  %v853_v15 = vpop.xlane.xlu2 %852 }
 0x29b   : > { %v933_v22 = vmul.f32 %v853_v15, %v6433_v50  ;;  %690 = vadd.xlane.f32.xlu1 %v689_v48  ;;  %v859_v28 = vpop.xlane.xlu1 %858  ;;  %v866_v15 = vsel %vm11126_vm1, %v810_v3, 0.0 }
 0x29c   : > { %v1034_v21 = vsub.f32 1.5, %v1033_v9  ;;  %v935_v25 = vmul.f32 %v859_v28, %v6433_v50  ;;  %v571_v9 = vadd.f32 %v6466_v12, %v6429_v41 }
 0x29d   : > { %v965_v51 = vadd.f32 1e-05, %v933_v22  ;;  %v1054_v22 = vsub.f32 1.5, %v1053_v53 }
 0x29e   : > { %v1035_v47 = vmul.f32 %v6063_v14, %v1034_v21  ;;  %v6798_v61 = vadd.f32 1e-05, %v935_v25  ;;  %v6811_v41 = vadd.f32 %v6469_v16, %v571_v9 }
 0x29f   : > { %6064 = vrsqrt.f32 %v965_v51  ;;  %v1055_v3 = vmul.f32 %v6766_v30, %v1054_v22  ;;  %vm1066_vm3 = vweird.f32 %v965_v51 }
 0x2a0   : > { %v1039_v40 = vsel %vm1038_vm13, %v6063_v14, %v1035_v47  ;;  %6066 = vrsqrt.f32 %v6798_v61  ;;  %11360 = vst [vmem:[#allocation20_spill] sm:$0xff] %v6811_v41  ;;  %vm1086_vm9 = vweird.f32 %v6798_v61 }
 0x2a1   : > { %v1314_v48 = vmul.f32 %v1039_v40, %v6631_v17 }
 0x2a2   : > { %v856_v28 = vpop.xlane.xlu2 %855  ;;  %867 = vadd.xlane.f32.xlu0 %v866_v15  ;;  %v695_v15 = vsel %vm11126_vm1, %v6811_v41, 0.0 }
 0x2a3   : > { %v934_v6 = vmul.f32 %v856_v28, %v6433_v50  ;;  %693 = vadd.xlane.f32.xlu1 %v692_v24  ;;  %v1347_v14 = vmul.f32 %v6696_v0, %v1314_v48  ;;  %v1059_v48 = vsel %vm1058_vm0, %v6766_v30, %v1055_v3 }
 0x2a5   : > { %v6065_v52 = vpop.eup %6064  ;;  %v966_v21 = vadd.f32 1e-05, %v934_v6  ;;  %v1380_v17 = vadd.f32 %v6705_v18, %v1347_v14 }
 0x2a6   : > { %v6814_v25 = vpop.eup %6066  ;;  %v1061_v53 = vmul.f32 %v6065_v52, %v965_v51  ;;  %vm1067_vm2 = vweird.f32 %v6065_v52 }
 0x2a7   : > { %v1081_v47 = vmul.f32 %v6814_v25, %v6798_v61  ;;  %6068 = vrsqrt.f32 %v966_v21  ;;  %v1410_v9 = vpack.c.bf16 %v1381_v39, %v1380_v17  ;;  %v1316_v17 = vmul.f32 %v1059_v48, %v6606_v44  ;;  %vm1068_vm4 = vmor %vm1066_vm3, %vm1067_vm2 }
 0x2a8   : > { %v1062_v40 = vmul.f32 %v6065_v52, %v1061_v53  ;;  %vm1087_vm6 = vweird.f32 %v6814_v25  ;;  %vm1076_vm7 = vweird.f32 %v966_v21  ;;  %v584_v61 = vadd.f32 %v6466_v12, %v6446_v60 }
 0x2a9   : > { %5933 = vmatmul.msk.bf16.gmra.mxu1 %vm11126_vm1, %v1410_v9  ;;  %v1082_v24 = vmul.f32 %v6814_v25, %v1081_v47  ;;  %vm1088_vm10 = vmor %vm1086_vm9, %vm1087_vm6 }
 0x2aa   : > { %v1063_v22 = vmul.f32 0.5, %v1062_v40  ;;  %v685_v28 = vpop.xlane.xlu2 %684  ;;  %696 = vadd.xlane.f32.xlu0 %v695_v15  ;;  %v698_v15 = vsel %vm11126_vm1, %v6494_v34, 0.0 }
 0x2ab   : > { %v749_v57 = vmul.f32 %v685_v28, %v6433_v50  ;;  %v1083_v3 = vmul.f32 0.5, %v1082_v24  ;;  %v1349_v28 = vmul.f32 %v6696_v0, %v1316_v17 }
 0x2ac   : > { %v1064_v6 = vsub.f32 1.5, %v1063_v22 }
 0x2ad   : > { %v6069_v38 = vpop.eup %6068  ;;  %v6829_v14 = vsub.f32 %v6674_v20, %v749_v57  ;;  %v1084_v51 = vsub.f32 1.5, %v1083_v3 }
 0x2ae   : > { %v1065_v53 = vmul.f32 %v6065_v52, %v1064_v6  ;;  %v1071_v30 = vmul.f32 %v6069_v38, %v966_v21  ;;  %vm1077_vm5 = vweird.f32 %v6069_v38 }
 0x2af   : > { %v813_v39 = vmul.f32 %v6829_v14, %v6829_v14  ;;  %vm1078_vm8 = vmor %vm1076_vm7, %vm1077_vm5 }
 0x2b0   : > { %v1069_v40 = vsel %vm1068_vm4, %v6065_v52, %v1065_v53  ;;  %v1072_v47 = vmul.f32 %v6069_v38, %v1071_v30  ;;  %v1382_v53 = vadd.f32 %v6705_v18, %v1349_v28  ;;  %v1085_v30 = vmul.f32 %v6814_v25, %v1084_v51 }
 0x2b1   : > { %v875_v9 = vsel %vm11126_vm1, %v813_v39, 0.0  ;;  %v1317_v22 = vmul.f32 %v1069_v40, %v6649_v42  ;;  %v581_v40 = vadd.f32 %v6466_v12, %v6444_v58 }
 0x2b2   : > { %v1073_v44 = vmul.f32 0.5, %v1072_v47  ;;  %v688_v48 = vpop.xlane.xlu2 %687  ;;  %876 = vadd.xlane.f32.xlu1 %v875_v9  ;;  %699 = vadd.xlane.f32.xlu0 %v698_v15  ;;  %v1089_v15 = vsel %vm1088_vm10, %v6814_v25, %v1085_v30 }
 0x2b3   : > { %v750_v24 = vmul.f32 %v688_v48, %v6433_v50  ;;  %v1350_v57 = vmul.f32 %v6696_v0, %v1317_v22  ;;  %v6858_v22 = vadd.f32 %v6469_v16, %v581_v40  ;;  %v1319_v28 = vmul.f32 %v1089_v15, %v6654_v43 }
 0x2b4   : > { %v1074_v52 = vsub.f32 1.5, %v1073_v44 }
 0x2b5   : > { %v6842_v6 = vsub.f32 %v6681_v23, %v750_v24  ;;  %v1383_v42 = vadd.f32 %v6705_v18, %v1350_v57  ;;  %11361 = vst [vmem:[#allocation21_spill] sm:$0xff] %v6858_v22  ;;  %v1352_v44 = vmul.f32 %v6696_v0, %v1319_v28 }
 0x2b6   : > { %v1075_v17 = vmul.f32 %v6069_v38, %v1074_v52 }
 0x2b7   : > { %v1411_v3 = vpack.c.bf16 %v1383_v42, %v1382_v53  ;;  %v814_v39 = vmul.f32 %v6842_v6, %v6842_v6  ;;  %v1385_v48 = vadd.f32 %v6705_v18, %v1352_v44 }
 0x2b8   : > { %v1079_v47 = vsel %vm1078_vm8, %v6069_v38, %v1075_v17  ;;  %v707_v38 = vsel %vm11126_vm1, %v6858_v22, 0.0 }
 0x2b9   : > { %v878_v9 = vsel %vm11126_vm1, %v814_v39, 0.0  ;;  %5934 = vmatmul.msk.bf16.gmra.mxu1 %vm11126_vm1, %v1411_v3  ;;  %v1318_v21 = vmul.f32 %v1079_v47, %v6664_v63  ;;  %v6869_v63 = vadd.f32 %v6469_v16, %v584_v61 }
 0x2ba   : > { %879 = vadd.xlane.f32.xlu1 %v878_v9 }
 0x2bb   : > { %v1351_v58 = vmul.f32 %v6696_v0, %v1318_v21  ;;  %11362 = vst [vmem:[#allocation22_spill] sm:$0xff] %v6869_v63  ;;  %v710_v43 = vsel %vm11126_vm1, %v6869_v63, 0.0  ;;  %v595_v21 = vpop.f32.mrf.mxu3 }
 0x2bc   : > { %v596_v61 = vadd.f32 %v6466_v12, %v595_v21 }
 0x2bd   : > { %v1384_v25 = vadd.f32 %v6705_v18, %v1351_v58 }
 0x2bf   : > { %v1412_v51 = vpack.c.bf16 %v1385_v48, %v1384_v25  ;;  %v6893_v25 = vadd.f32 %v6469_v16, %v596_v61 }
 0x2c1   : > { %11363 = vst [vmem:[#allocation23_spill] sm:$0xff] %v6893_v25 }
 0x2c2   : > { %708 = vadd.xlane.f32.xlu1 %v707_v38 }
 0x2c3   : > { %v598_v48 = vpop.f32.mrf.mxu3 }
 0x2c9   : > { %5935 = vmatmul.msk.bf16.gmra.mxu1 %vm11126_vm1, %v1412_v51  ;;  %v599_v51 = vadd.f32 %v6466_v12, %v598_v48 }
 0x2ca   : > { %711 = vadd.xlane.f32.xlu1 %v710_v43  ;;  %v725_v43 = vsel %vm11126_vm1, %v6893_v25, 0.0 }
 0x2db   : > { %v871_v60 = vpop.xlane.xlu2 %870 }
 0x2e1   : > { %v1487_v24 = vpop.f32.mrf.mxu1 }
 0x2e3   : > { %v874_v57 = vpop.xlane.xlu2 %873 }
 0x2e9   : > { %v1489_v52 = vpop.f32.mrf.mxu1 }
 0x2ea   : > { %v1624_v53 = vpack.c.bf16 %v1489_v52, %v1487_v24  ;;  %v6899_v24 = vadd.f32 %v6469_v16, %v599_v51 }
 0x2eb   : > { %v703_v42 = vpop.xlane.xlu2 %702 }
 0x2ec   : > { %v755_v17 = vmul.f32 %v703_v42, %v6433_v50  ;;  %5957 = vmatmul.msk.bf16.vlgmr.msra.gmra.mxu2 %vm11126_vm1, %v1624_v53  ;;  %11364 = vst [vmem:[#allocation24_spill] sm:$0xff] %v6899_v24  ;;  %v939_v42 = vmul.f32 %v871_v60, %v6433_v50 }
 0x2ee   : > { %v6878_v30 = vsub.f32 %v6738_v11, %v755_v17 }
 0x2f0   : > { %v819_v3 = vmul.f32 %v6878_v30, %v6878_v30 }
 0x2f1   : > { %v1492_v39 = vpop.f32.mrf.mxu1 }
 0x2f2   : > { %v893_v40 = vsel %vm11126_vm1, %v819_v3, 0.0  ;;  %v728_v3 = vsel %vm11126_vm1, %v6899_v24, 0.0 }
 0x2f3   : > { %v706_v47 = vpop.xlane.xlu2 %705  ;;  %894 = vadd.xlane.f32.xlu1 %v893_v40 }
 0x2f4   : > { %v756_v9 = vmul.f32 %v706_v47, %v6433_v50 }
 0x2f6   : > { %v6885_v15 = vsub.f32 %v6748_v59, %v756_v9 }
 0x2f8   : > { %v820_v28 = vmul.f32 %v6885_v15, %v6885_v15 }
 0x2f9   : > { %v1494_v58 = vpop.f32.mrf.mxu1 }
 0x2fa   : > { %v1625_v38 = vpack.c.bf16 %v1494_v58, %v1492_v39  ;;  %v896_v44 = vsel %vm11126_vm1, %v820_v28, 0.0  ;;  %v6905_v39 = vadd.f32 1e-05, %v939_v42 }
 0x2fb   : > { %897 = vadd.xlane.f32.xlu1 %v896_v44 }
 0x2fc   : > { %5958 = vmatmul.msk.bf16.gmra.mxu2 %vm11126_vm1, %v1625_v38  ;;  %vm1126_vm6 = vweird.f32 %v6905_v39 }
 0x303   : > { %726 = vadd.xlane.f32.xlu1 %v725_v43 }
 0x306   : > { %v862_v52 = vpop.xlane.xlu1 %861 }
 0x307   : > { %v936_v53 = vmul.f32 %v862_v52, %v6433_v50 }
 0x309   : > { %v968_v17 = vadd.f32 1e-05, %v936_v53 }
 0x30b   : > { %6070 = vrsqrt.f32 %v968_v17  ;;  %729 = vadd.xlane.f32.xlu1 %v728_v3  ;;  %vm1096_vm12 = vweird.f32 %v968_v17 }
 0x30c   : > { %6072 = vrsqrt.f32 %v6905_v39 }
 0x30d   : > { %v865_v12 = vpop.xlane.xlu0 %864 }
 0x30e   : > { %v937_v40 = vmul.f32 %v865_v12, %v6433_v50  ;;  %v691_v47 = vpop.xlane.xlu1 %690  ;;  %v940_v12 = vmul.f32 %v874_v57, %v6433_v50  ;;  %v6931_v57 = vld [vmem:[%s11096_s4 + $0x6] ss:$0 sm:$0xff] }
 0x30f   : > { %v751_v9 = vmul.f32 %v691_v47, %v6433_v50 }
 0x310   : > { %v969_v21 = vadd.f32 1e-05, %v937_v40 }
 0x311   : > { %v6071_v28 = vpop.eup %6070  ;;  %v6911_v60 = vsub.f32 %v6770_v8, %v751_v9 }
 0x312   : > { %v1091_v58 = vmul.f32 %v6071_v28, %v968_v17  ;;  %6074 = vrsqrt.f32 %v969_v21  ;;  %v6916_v51 = vpop.eup %6072  ;;  %vm1097_vm11 = vweird.f32 %v6071_v28  ;;  %vm1106_vm15 = vweird.f32 %v969_v21 }
 0x313   : > { %v815_v61 = vmul.f32 %v6911_v60, %v6911_v60  ;;  %v1121_v9 = vmul.f32 %v6916_v51, %v6905_v39  ;;  %vm1098_vm13 = vmor %vm1096_vm12, %vm1097_vm11  ;;  %vm1127_vm2 = vweird.f32 %v6916_v51 }
 0x314   : > { %v1092_v38 = vmul.f32 %v6071_v28, %v1091_v58  ;;  %vm1128_vm7 = vmor %vm1126_vm6, %vm1127_vm2 }
 0x315   : > { %v868_v44 = vpop.xlane.xlu0 %867  ;;  %v881_v48 = vsel %vm11126_vm1, %v815_v61, 0.0 }
 0x316   : > { %v1093_v43 = vmul.f32 0.5, %v1092_v38  ;;  %v938_v52 = vmul.f32 %v868_v44, %v6433_v50  ;;  %882 = vadd.xlane.f32.xlu0 %v881_v48  ;;  %v694_v53 = vpop.xlane.xlu1 %693 }
 0x317   : > { %v752_v42 = vmul.f32 %v694_v53, %v6433_v50  ;;  %v1122_v53 = vmul.f32 %v6916_v51, %v1121_v9 }
 0x318   : > { %v6075_v3 = vpop.eup %6074  ;;  %v1094_v40 = vsub.f32 1.5, %v1093_v43  ;;  %v970_v47 = vadd.f32 1e-05, %v938_v52  ;;  %v586_v43 = vadd.f32 %v6931_v57, %v6448_v62  ;;  %v6935_v52 = vadd.f32 1e-05, %v940_v12 }
 0x319   : > { %v1101_v58 = vmul.f32 %v6075_v3, %v969_v21  ;;  %v6924_v61 = vsub.f32 %v6491_v33, %v752_v42  ;;  %vm1107_vm14 = vweird.f32 %v6075_v3  ;;  %v1123_v12 = vmul.f32 0.5, %v1122_v53 }
 0x31a   : > { %v1095_v38 = vmul.f32 %v6071_v28, %v1094_v40  ;;  %6076 = vrsqrt.f32 %v970_v47  ;;  %v6941_v8 = vadd.f32 %v6469_v16, %v586_v43  ;;  %vm1108_vm0 = vmor %vm1106_vm15, %vm1107_vm14  ;;  %vm1116_vm4 = vweird.f32 %v970_v47 }
 0x31b   : > { %v1102_v44 = vmul.f32 %v6075_v3, %v1101_v58  ;;  %v816_v48 = vmul.f32 %v6924_v61, %v6924_v61  ;;  %6078 = vrsqrt.f32 %v6935_v52  ;;  %vm1136_vm12 = vweird.f32 %v6935_v52 }
 0x31c   : > { %v1099_v42 = vsel %vm1098_vm13, %v6071_v28, %v1095_v38  ;;  %11365 = vst [vmem:[#allocation25_spill] sm:$0xff] %v6941_v8 }
 0x31d   : > { %v1103_v40 = vmul.f32 0.5, %v1102_v44  ;;  %v697_v17 = vpop.xlane.xlu0 %696  ;;  %v884_v58 = vsel %vm11126_vm1, %v816_v48, 0.0  ;;  %v1320_v28 = vmul.f32 %v1099_v42, %v6759_v46 }
 0x31e   : > { %v753_v59 = vmul.f32 %v697_v17, %v6433_v50  ;;  %885 = vadd.xlane.f32.xlu0 %v884_v58 }
 0x31f   : > { %v1104_v11 = vsub.f32 1.5, %v1103_v40  ;;  %v1353_v58 = vmul.f32 %v6696_v0, %v1320_v28 }
 0x320   : > { %v6077_v33 = vpop.eup %6076  ;;  %v6945_v62 = vsub.f32 %v6811_v41, %v753_v59  ;;  %v1124_v59 = vsub.f32 1.5, %v1123_v12 }
 0x321   : > { %v1105_v9 = vmul.f32 %v6075_v3, %v1104_v11  ;;  %v1111_v38 = vmul.f32 %v6077_v33, %v970_v47  ;;  %v713_v11 = vsel %vm11126_vm1, %v6941_v8, 0.0  ;;  %v6955_v21 = vpop.eup %6078  ;;  %vm1117_vm3 = vweird.f32 %v6077_v33 }
 0x322   : > { %v817_v44 = vmul.f32 %v6945_v62, %v6945_v62  ;;  %vm6969_vm5 = vmor %vm1116_vm4, %vm1117_vm3  ;;  %vm1137_vm9 = vweird.f32 %v6955_v21 }
 0x323   : > { %v1109_v48 = vsel %vm1108_vm0, %v6075_v3, %v1105_v9  ;;  %v1112_v40 = vmul.f32 %v6077_v33, %v1111_v38  ;;  %vm1138_vm13 = vmor %vm1136_vm12, %vm1137_vm9 }
 0x324   : > { %v887_v43 = vsel %vm11126_vm1, %v817_v44, 0.0  ;;  %v1321_v17 = vmul.f32 %v1109_v48, %v6773_v49  ;;  %v1386_v44 = vadd.f32 %v6705_v18, %v1353_v58 }
 0x325   : > { %v1113_v41 = vmul.f32 0.5, %v1112_v40  ;;  %888 = vadd.xlane.f32.xlu2 %v887_v43  ;;  %v700_v46 = vpop.xlane.xlu0 %699  ;;  %v877_v53 = vpop.xlane.xlu1 %876  ;;  %v1125_v40 = vmul.f32 %v6916_v51, %v1124_v59  ;;  %v1131_v43 = vmul.f32 %v6955_v21, %v6935_v52  ;;  %v591_v59 = vadd.f32 %v6931_v57, %v6452_v4 }
 0x326   : > { %v754_v42 = vmul.f32 %v700_v46, %v6433_v50  ;;  %v941_v3 = vmul.f32 %v877_v53, %v6433_v50  ;;  %714 = vadd.xlane.f32.xlu0 %v713_v11  ;;  %v1354_v9 = vmul.f32 %v6696_v0, %v1321_v17  ;;  %v1497_v28 = vpop.f32.mrf.mxu1 }
 0x327   : > { %v1114_v49 = vsub.f32 1.5, %v1113_v41  ;;  %v1129_v11 = vsel %vm1128_vm7, %v6916_v51, %v1125_v40 }
 0x328   : > { %v6962_v12 = vsub.f32 %v6494_v34, %v754_v42  ;;  %v973_v38 = vadd.f32 1e-05, %v941_v3  ;;  %v1387_v48 = vadd.f32 %v6705_v18, %v1354_v9  ;;  %v1132_v42 = vmul.f32 %v6955_v21, %v1131_v43 }
 0x329   : > { %v1115_v46 = vmul.f32 %v6077_v33, %v1114_v49  ;;  %v6992_v49 = vadd.f32 %v6469_v16, %v591_v59 }
 0x32a   : > { %6080 = vrsqrt.f32 %v973_v38  ;;  %v1413_v41 = vpack.c.bf16 %v1387_v48, %v1386_v44  ;;  %v818_v53 = vmul.f32 %v6962_v12, %v6962_v12  ;;  %v1323_v48 = vmul.f32 %v1129_v11, %v6714_v13 }
 0x32b   : > { %v1119_v58 = vsel %vm6969_vm5, %v6077_v33, %v1115_v46  ;;  %v716_v33 = vsel %vm11126_vm1, %v6497_v35, 0.0  ;;  %11368 = vst [vmem:[#allocation26_spill] sm:$0xff] %v6992_v49  ;;  %v1133_v51 = vmul.f32 0.5, %v1132_v42  ;;  %v719_v17 = vsel %vm11126_vm1, %v6992_v49, 0.0 }
 0x32c   : > { %5936 = vmatmul.msk.bf16.gmra.mxu1 %vm11126_vm1, %v1413_v41  ;;  %v890_v47 = vsel %vm11126_vm1, %v818_v53, 0.0  ;;  %v1322_v4 = vmul.f32 %v1119_v58, %v6785_v5  ;;  %v1356_v5 = vmul.f32 %v6696_v0, %v1323_v48  ;;  %vm1146_vm10 = vweird.f32 %v973_v38 }
 0x32d   : > { %891 = vadd.xlane.f32.xlu2 %v890_v47  ;;  %v6986_v3 = vpop.xlane.xlu1 %879  ;;  %v1134_v41 = vsub.f32 1.5, %v1133_v51  ;;  %v722_v51 = vsel %vm11126_vm1, %v6500_v36, 0.0 }
 0x32e   : > { %717 = vadd.xlane.f32.xlu0 %v716_v33  ;;  %v1499_v39 = vpop.f32.mrf.mxu1  ;;  %v1355_v43 = vmul.f32 %v6696_v0, %v1322_v4  ;;  %v1389_v42 = vadd.f32 %v6705_v18, %v1356_v5 }
 0x32f   : > { %v1626_v44 = vpack.c.bf16 %v1499_v39, %v1497_v28  ;;  %v1135_v33 = vmul.f32 %v6955_v21, %v1134_v41 }
 0x330   : > { %v6081_v9 = vpop.eup %6080  ;;  %v1388_v13 = vadd.f32 %v6705_v18, %v1355_v43 }
 0x331   : > { %v1141_v40 = vmul.f32 %v6081_v9, %v973_v38  ;;  %5959 = vmatmul.msk.bf16.gmra.mxu2 %vm11126_vm1, %v1626_v44  ;;  %vm1147_vm8 = vweird.f32 %v6081_v9  ;;  %v1139_v43 = vsel %vm1138_vm13, %v6955_v21, %v1135_v33  ;;  %vm11125_vm13 = vcmask 97280  }
 0x332   : > { %vm1148_vm11 = vmor %vm1146_vm10, %vm1147_vm8  ;;  %v1414_v39 = vpack.c.bf16 %v1389_v42, %v1388_v13  ;;  %v1324_v41 = vmul.f32 %v1139_v43, %v6728_v45 }
 0x333   : > { %v1142_v46 = vmul.f32 %v6081_v9, %v1141_v40 }
 0x335   : > { %v1143_v53 = vmul.f32 0.5, %v1142_v46  ;;  %720 = vadd.xlane.f32.xlu2 %v719_v17  ;;  %v709_v58 = vpop.xlane.xlu1 %708 }
 0x336   : > { %v757_v28 = vmul.f32 %v709_v58, %v6433_v50  ;;  %v1502_v47 = vpop.f32.mrf.mxu1 }
 0x337   : > { %v1144_v59 = vsub.f32 1.5, %v1143_v53  ;;  %v600_v53 = vpop.f32.mrf.mxu3 }
 0x338   : > { %v7003_v11 = vsub.f32 %v6858_v22, %v757_v28  ;;  %v601_v28 = vadd.f32 %v6931_v57, %v600_v53 }
 0x339   : > { %v1145_v4 = vmul.f32 %v6081_v9, %v1144_v59 }
 0x33a   : > { %v821_v44 = vmul.f32 %v7003_v11, %v7003_v11  ;;  %v7031_v45 = vadd.f32 %v6469_v16, %v601_v28 }
 0x33b   : > { %v1149_v48 = vsel %vm1148_vm11, %v6081_v9, %v1145_v4 }
 0x33c   : > { %5937 = vmatmul.msk.bf16.gmra.mxu1 %vm11126_vm1, %v1414_v39  ;;  %v899_v40 = vsel %vm11126_vm1, %v821_v44, 0.0  ;;  %v1325_v17 = vmul.f32 %v1149_v48, %v6829_v14  ;;  %v1357_v14 = vmul.f32 %v6696_v0, %v1324_v41  ;;  %11369 = vst [vmem:[#allocation27_spill] sm:$0xff] %v7031_v45  ;;  %v731_v4 = vsel %vm11126_vm1, %v7031_v45, 0.0 }
 0x33d   : > { %723 = vadd.xlane.f32.xlu2 %v722_v51  ;;  %900 = vadd.xlane.f32.xlu0 %v899_v40  ;;  %v712_v38 = vpop.xlane.xlu1 %711  ;;  %v942_v44 = vmul.f32 %v6986_v3, %v6433_v50 }
 0x33e   : > { %v758_v46 = vmul.f32 %v712_v38, %v6433_v50  ;;  %v1504_v5 = vpop.f32.mrf.mxu1  ;;  %v1358_v58 = vmul.f32 %v6696_v0, %v1325_v17  ;;  %v1390_v42 = vadd.f32 %v6705_v18, %v1357_v14 }
 0x33f   : > { %v1627_v9 = vpack.c.bf16 %v1504_v5, %v1502_v47  ;;  %v974_v48 = vadd.f32 1e-05, %v942_v44 }
 0x340   : > { %v7019_v52 = vsub.f32 %v6869_v63, %v758_v46  ;;  %v1391_v59 = vadd.f32 %v6705_v18, %v1358_v58 }
 0x341   : > { %5960 = vmatmul.msk.bf16.gmra.mxu2 %vm11126_vm1, %v1627_v9  ;;  %6082 = vrsqrt.f32 %v974_v48  ;;  %vm1156_vm15 = vweird.f32 %v974_v48 }
 0x342   : > { %v822_v21 = vmul.f32 %v7019_v52, %v7019_v52  ;;  %v1415_v33 = vpack.c.bf16 %v1391_v59, %v1390_v42 }
 0x344   : > { %v902_v13 = vsel %vm11126_vm1, %v822_v21, 0.0 }
 0x345   : > { %903 = vadd.xlane.f32.xlu0 %v902_v13 }
 0x346   : > { %v1507_v47 = vpop.f32.mrf.mxu1 }
 0x347   : > { %v6083_v16 = vpop.eup %6082 }
 0x348   : > { %v1151_v51 = vmul.f32 %v6083_v16, %v974_v48  ;;  %vm1157_vm14 = vweird.f32 %v6083_v16 }
 0x349   : > { %vm1158_vm0 = vmor %vm1156_vm15, %vm1157_vm14 }
 0x34a   : > { %v1152_v40 = vmul.f32 %v6083_v16, %v1151_v51 }
 0x34c   : > { %5938 = vmatmul.msk.bf16.gmra.mxu1 %vm11126_vm1, %v1415_v33  ;;  %v1153_v17 = vmul.f32 0.5, %v1152_v40 }
 0x34d   : > { %732 = vadd.xlane.f32.xlu0 %v731_v4 }
 0x34e   : > { %v1509_v57 = vpop.f32.mrf.mxu1  ;;  %v1154_v41 = vsub.f32 1.5, %v1153_v17 }
 0x34f   : > { %v1628_v39 = vpack.c.bf16 %v1509_v57, %v1507_v47 }
 0x350   : > { %v1155_v3 = vmul.f32 %v6083_v16, %v1154_v41 }
 0x351   : > { %5961 = vmatmul.msk.bf16.gmra.mxu2 %vm11126_vm1, %v1628_v39 }
 0x352   : > { %v1159_v42 = vsel %vm1158_vm0, %v6083_v16, %v1155_v3 }
 0x366   : > { %v895_v38 = vpop.xlane.xlu1 %894 }
 0x367   : > { %v947_v28 = vmul.f32 %v895_v38, %v6433_v50 }
 0x369   : > { %v7048_v33 = vadd.f32 1e-05, %v947_v28 }
 0x36e   : > { %v898_v13 = vpop.xlane.xlu1 %897 }
 0x36f   : > { %v7041_v9 = vpop.f32.mrf.mxu2 }
 0x377   : > { %v7050_v57 = vpop.f32.mrf.mxu2 }
 0x389   : > { %v883_v43 = vpop.xlane.xlu0 %882 }
 0x38a   : > { %v943_v46 = vmul.f32 %v883_v43, %v6433_v50  ;;  %v1326_v43 = vmul.f32 %v1159_v42, %v6842_v6 }
 0x38c   : > { %v975_v5 = vadd.f32 1e-05, %v943_v46  ;;  %v1359_v28 = vmul.f32 %v6696_v0, %v1326_v43 }
 0x38e   : > { %6084 = vrsqrt.f32 %v975_v5  ;;  %vm1166_vm3 = vweird.f32 %v975_v5 }
 0x391   : > { %v886_v53 = vpop.xlane.xlu0 %885 }
 0x392   : > { %v944_v21 = vmul.f32 %v886_v53, %v6433_v50  ;;  %v727_v53 = vpop.xlane.xlu1 %726 }
 0x394   : > { %v6085_v58 = vpop.eup %6084  ;;  %v7045_v14 = vadd.f32 1e-05, %v944_v21 }
 0x395   : > { %v1161_v59 = vmul.f32 %v6085_v58, %v975_v5  ;;  %vm1167_vm2 = vweird.f32 %v6085_v58 }
 0x396   : > { %6086 = vrsqrt.f32 %v7045_v14  ;;  %vm1168_vm4 = vmor %vm1166_vm3, %vm1167_vm2  ;;  %vm1176_vm6 = vweird.f32 %v7045_v14  ;;  %vm1206_vm2 = vweird.f32 %v7048_v33 }
 0x397   : > { %v1162_v47 = vmul.f32 %v6085_v58, %v1161_v59  ;;  %6088 = vrsqrt.f32 %v7048_v33 }
 0x398   : > { %v889_v4 = vpop.xlane.xlu2 %888 }
 0x399   : > { %v1163_v39 = vmul.f32 0.5, %v1162_v47  ;;  %v945_v44 = vmul.f32 %v889_v4, %v6433_v50  ;;  %v715_v51 = vpop.xlane.xlu0 %714 }
 0x39a   : > { %v759_v40 = vmul.f32 %v715_v51, %v6433_v50 }
 0x39b   : > { %v1164_v38 = vsub.f32 1.5, %v1163_v39  ;;  %v7055_v48 = vadd.f32 1e-05, %v945_v44 }
 0x39c   : > { %v7057_v46 = vpop.eup %6086  ;;  %v7061_v16 = vsub.f32 %v6941_v8, %v759_v40 }
 0x39d   : > { %v1165_v17 = vmul.f32 %v6085_v58, %v1164_v38  ;;  %v1171_v41 = vmul.f32 %v7057_v46, %v7045_v14  ;;  %6090 = vrsqrt.f32 %v7055_v48  ;;  %v7073_v44 = vpop.eup %6088  ;;  %v7077_v38 = vpop.f32.mrf.mxu2  ;;  %vm1177_vm5 = vweird.f32 %v7057_v46 }
 0x39e   : > { %v823_v6 = vmul.f32 %v7061_v16, %v7061_v16  ;;  %vm7104_vm7 = vmor %vm1176_vm6, %vm1177_vm5  ;;  %vm1186_vm9 = vweird.f32 %v7055_v48  ;;  %vm1207_vm14 = vweird.f32 %v7073_v44 }
 0x39f   : > { %v1169_v21 = vsel %vm1168_vm4, %v6085_v58, %v1165_v17  ;;  %v1172_v3 = vmul.f32 %v7057_v46, %v1171_v41  ;;  %v763_v41 = vmul.f32 %v727_v53, %v6433_v50  ;;  %vm1208_vm3 = vmor %vm1206_vm2, %vm1207_vm14 }
 0x3a0   : > { %v1327_v59 = vmul.f32 %v1169_v21, %v6911_v60  ;;  %v892_v47 = vpop.xlane.xlu2 %891  ;;  %v905_v5 = vsel %vm11126_vm1, %v823_v6, 0.0  ;;  %v1392_v60 = vadd.f32 %v6705_v18, %v1359_v28 }
 0x3a1   : > { %v1173_v42 = vmul.f32 0.5, %v1172_v3  ;;  %v946_v4 = vmul.f32 %v892_v47, %v6433_v50  ;;  %906 = vadd.xlane.f32.xlu2 %v905_v5  ;;  %v718_v39 = vpop.xlane.xlu0 %717 }
 0x3a2   : > { %v760_v51 = vmul.f32 %v718_v39, %v6433_v50  ;;  %v1360_v58 = vmul.f32 %v6696_v0, %v1327_v59  ;;  %v1201_v0 = vmul.f32 %v7073_v44, %v7048_v33  ;;  %v948_v59 = vmul.f32 %v898_v13, %v6433_v50 }
 0x3a3   : > { %v6091_v40 = vpop.eup %6090  ;;  %v1174_v43 = vsub.f32 1.5, %v1173_v42  ;;  %v7079_v17 = vadd.f32 1e-05, %v946_v4  ;;  %v7097_v42 = vsub.f32 %v6893_v25, %v763_v41  ;;  %v11109_v41 = vlaneseq }
 0x3a4   : > { %v1181_v6 = vmul.f32 %v6091_v40, %v7055_v48  ;;  %v7085_v21 = vsub.f32 %v6497_v35, %v760_v51  ;;  %v1393_v3 = vadd.f32 %v6705_v18, %v1360_v58  ;;  %v730_v18 = vpop.xlane.xlu1 %729  ;;  %v7102_v51 = vadd.f32 1e-05, %v948_v59 }
 0x3a5   : > { %6092 = vrsqrt.f32 %v7079_v17  ;;  %v1175_v28 = vmul.f32 %v7057_v46, %v1174_v43  ;;  %vm1187_vm8 = vweird.f32 %v6091_v40  ;;  %v764_v59 = vmul.f32 %v730_v18, %v6433_v50 }
 0x3a6   : > { %v1182_v47 = vmul.f32 %v6091_v40, %v1181_v6  ;;  %v1416_v53 = vpack.c.bf16 %v1393_v3, %v1392_v60  ;;  %v824_v5 = vmul.f32 %v7085_v21, %v7085_v21  ;;  %v1202_v6 = vmul.f32 %v7073_v44, %v1201_v0  ;;  %vm1188_vm10 = vmor %vm1186_vm9, %vm1187_vm8 }
 0x3a7   : > { %v1179_v14 = vsel %vm7104_vm7, %v7057_v46, %v1175_v28  ;;  %v827_v0 = vmul.f32 %v7097_v42, %v7097_v42  ;;  %6094 = vrsqrt.f32 %v7102_v51  ;;  %v7125_v46 = vpop.f32.mrf.mxu2  ;;  %v7132_v58 = vand.u32 127, %v11109_v41 }
 0x3a8   : > { %v1183_v4 = vmul.f32 0.5, %v1182_v47  ;;  %v721_v39 = vpop.xlane.xlu2 %720  ;;  %5939 = vmatmul.msk.bf16.gmra.mxu1 %vm11126_vm1, %v1416_v53  ;;  %v908_v13 = vsel %vm11126_vm1, %v824_v5, 0.0  ;;  %v1328_v28 = vmul.f32 %v1179_v14, %v6924_v61  ;;  %v7140_v61 = vmul.f32 0.17677669, %v7041_v9 }
 0x3a9   : > { %v761_v43 = vmul.f32 %v721_v39, %v6433_v50  ;;  %v1512_v60 = vpop.f32.mrf.mxu1  ;;  %909 = vadd.xlane.f32.xlu2 %v908_v13  ;;  %vm11133_vm11 = vcmp.lt.s32.totalorder %v7132_v58, 8  ;;  %vm1196_vm15 = vweird.f32 %v7079_v17  ;;  %vm1216_vm8 = vweird.f32 %v7102_v51 }
 0x3aa   : > { %v1184_v3 = vsub.f32 1.5, %v1183_v4  ;;  %v1203_v4 = vmul.f32 0.5, %v1202_v6 }
 0x3ab   : > { %v7113_v47 = vpop.eup %6092  ;;  %v7117_v53 = vsub.f32 %v6992_v49, %v761_v43  ;;  %v7135_v43 = vsub.f32 %v6899_v24, %v764_v59 }
 0x3ac   : > { %v1185_v5 = vmul.f32 %v6091_v40, %v1184_v3  ;;  %v1191_v39 = vmul.f32 %v7113_v47, %v7079_v17  ;;  %vm1197_vm12 = vweird.f32 %v7113_v47 }
 0x3ad   : > { %v825_v18 = vmul.f32 %v7117_v53, %v7117_v53  ;;  %vm7185_vm0 = vmor %vm1196_vm15, %vm1197_vm12 }
 0x3ae   : > { %v1189_v13 = vsel %vm1188_vm10, %v6091_v40, %v1185_v5  ;;  %v1192_v48 = vmul.f32 %v7113_v47, %v1191_v39  ;;  %v917_v40 = vsel %vm11126_vm1, %v827_v0, 0.0  ;;  %v7153_v0 = vpop.eup %6094 }
 0x3af   : > { %v1329_v3 = vmul.f32 %v1189_v13, %v6945_v62  ;;  %v911_v25 = vsel %vm11126_vm1, %v825_v18, 0.0  ;;  %v7148_v62 = vld [vmem:[%s11096_s4 + $0x9] ss:$0 sm:$0xff]  ;;  %vm1217_vm5 = vweird.f32 %v7153_v0 }
 0x3b0   : > { %v1193_v14 = vmul.f32 0.5, %v1192_v48  ;;  %912 = vadd.xlane.f32.xlu1 %v911_v25  ;;  %v724_v49 = vpop.xlane.xlu2 %723  ;;  %v901_v6 = vpop.xlane.xlu0 %900  ;;  %v1361_v9 = vmul.f32 %v7148_v62, %v1328_v28  ;;  %v1204_v25 = vsub.f32 1.5, %v1203_v4  ;;  %v7165_v28 = vld [vmem:[%s11096_s4 + $0xa] ss:$0 sm:$0xff]  ;;  %vm1218_vm9 = vmor %vm1216_vm8, %vm1217_vm5 }
 0x3b1   : > { %v762_v5 = vmul.f32 %v724_v49, %v6433_v50  ;;  %v949_v39 = vmul.f32 %v901_v6, %v6433_v50  ;;  %v1514_v41 = vpop.f32.mrf.mxu1  ;;  %918 = vadd.xlane.f32.xlu2 %v917_v40  ;;  %v1362_v59 = vmul.f32 %v7148_v62, %v1329_v3  ;;  %v828_v6 = vmul.f32 %v7135_v43, %v7135_v43 }
 0x3b2   : > { %v1194_v18 = vsub.f32 1.5, %v1193_v14  ;;  %v1629_v13 = vpack.c.bf16 %v1514_v41, %v1512_v60  ;;  %v1394_v14 = vadd.f32 %v7165_v28, %v1361_v9  ;;  %v1818_v40 = vsel %vm11133_vm11, %v7140_v61, -inf }
 0x3b3   : > { %v7156_v49 = vsub.f32 %v6500_v36, %v762_v5  ;;  %v7158_v48 = vadd.f32 1e-05, %v949_v39  ;;  %v1395_v4 = vadd.f32 %v7165_v28, %v1362_v59  ;;  %v1205_v5 = vmul.f32 %v7073_v44, %v1204_v25 }
 0x3b4   : > { %v1195_v60 = vmul.f32 %v7113_v47, %v1194_v18  ;;  %5962 = vmatmul.msk.bf16.gmra.mxu2 %vm11126_vm1, %v1629_v13  ;;  %v7172_v41 = vpop.f32.mrf.mxu2  ;;  %v1211_v39 = vmul.f32 %v7153_v0, %v7102_v51  ;;  %v920_v9 = vsel %vm11126_vm1, %v828_v6, 0.0  ;;  %v7193_v25 = vmul.f32 0.17677669, %v7050_v57 }
 0x3b5   : > { %6096 = vrsqrt.f32 %v7158_v48  ;;  %v826_v3 = vmul.f32 %v7156_v49, %v7156_v49  ;;  %v1417_v13 = vpack.c.bf16 %v1395_v4, %v1394_v14  ;;  %v1851_v36 = vsel %vm11125_vm13, %v1818_v40, -inf }
 0x3b6   : > { %v1199_v24 = vsel %vm7185_vm0, %v7113_v47, %v1195_v60  ;;  %v1209_v33 = vsel %vm1208_vm3, %v7073_v44, %v1205_v5  ;;  %v1212_v57 = vmul.f32 %v7153_v0, %v1211_v39  ;;  %v1819_v60 = vsel %vm11133_vm11, %v7193_v25, -inf }
 0x3b7   : > { %v914_v18 = vsel %vm11126_vm1, %v826_v3, 0.0  ;;  %v1330_v4 = vmul.f32 %v1199_v24, %v6962_v12  ;;  %v1331_v14 = vmul.f32 %v1209_v33, %v6878_v30  ;;  %v1854_v5 = vsel %vm11125_vm13, %v1819_v60, -inf }
 0x3b8   : > { %915 = vadd.xlane.f32.xlu0 %v914_v18  ;;  %v7198_v17 = vpop.xlane.xlu0 %903  ;;  %921 = vadd.xlane.f32.xlu1 %v920_v9  ;;  %v1213_v59 = vmul.f32 0.5, %v1212_v57  ;;  %v7216_v24 = vmul.f32 0.17677669, %v7077_v38  ;;  %vm1226_vm6 = vweird.f32 %v7158_v48 }
 0x3b9   : > { %v1517_v3 = vpop.f32.mrf.mxu1  ;;  %5940 = vmatmul.msk.bf16.gmra.mxu1 %vm11126_vm1, %v1417_v13  ;;  %1852 = vmax.xlane.f32.xlu2 %v1851_v36  ;;  %v1948_v36 = vsel %vm11133_vm11, -inf, %v7193_v25  ;;  %v1363_v39 = vmul.f32 %v7148_v62, %v1330_v4  ;;  %v1364_v33 = vmul.f32 %v7148_v62, %v1331_v14 }
 0x3ba   : > { %v1982_v9 = vsel %vm11125_vm13, %v1948_v36, -inf  ;;  %v1214_v57 = vsub.f32 1.5, %v1213_v59  ;;  %v1820_v36 = vsel %vm11133_vm11, %v7216_v24, -inf }
 0x3bb   : > { %v6097_v6 = vpop.eup %6096  ;;  %v1396_v38 = vadd.f32 %v7165_v28, %v1363_v39  ;;  %v1397_v59 = vadd.f32 %v7165_v28, %v1364_v33 }
 0x3bc   : > { %v1221_v47 = vmul.f32 %v6097_v6, %v7158_v48  ;;  %v1713_v40 = vpop.f32.mrf.mxu2  ;;  %vm1227_vm4 = vweird.f32 %v6097_v6 }
 0x3bd   : > { %vm7238_vm7 = vmor %vm1226_vm6, %vm1227_vm4 }
 0x3be   : > { %v1222_v44 = vmul.f32 %v6097_v6, %v1221_v47 }
 0x3c0   : > { %v1223_v12 = vmul.f32 0.5, %v1222_v44  ;;  %v733_v18 = vpop.xlane.xlu0 %732  ;;  %1855 = vmax.xlane.f32.xlu1 %v1854_v5  ;;  %v1215_v5 = vmul.f32 %v7153_v0, %v1214_v57 }
 0x3c1   : > { %v765_v30 = vmul.f32 %v733_v18, %v6433_v50  ;;  %v1519_v13 = vpop.f32.mrf.mxu1  ;;  %1983 = vmax.xlane.f32.xlu2 %v1982_v9  ;;  %v1418_v18 = vpack.c.bf16 %v1397_v59, %v1396_v38  ;;  %v7246_v9 = vmul.f32 0.17677669, %v7125_v46 }
 0x3c2   : > { %v1224_v47 = vsub.f32 1.5, %v1223_v12  ;;  %v1630_v35 = vpack.c.bf16 %v1519_v13, %v1517_v3  ;;  %v1949_v3 = vsel %vm11133_vm11, -inf, %v7216_v24  ;;  %v1857_v12 = vsel %vm11125_vm13, %v1820_v36, -inf }
 0x3c3   : > { %v7222_v60 = vsub.f32 %v7031_v45, %v765_v30  ;;  %v1985_v48 = vsel %vm11125_vm13, %v1949_v3, -inf  ;;  %v7251_v13 = vmul.f32 0.17677669, %v1713_v40  ;;  %v1219_v57 = vsel %vm1218_vm9, %v7153_v0, %v1215_v5 }
 0x3c4   : > { %v1225_v4 = vmul.f32 %v6097_v6, %v1224_v47  ;;  %5963 = vmatmul.msk.bf16.gmra.mxu2 %vm11126_vm1, %v1630_v35  ;;  %v1716_v44 = vpop.f32.mrf.mxu2  ;;  %v1950_v46 = vsel %vm11133_vm11, -inf, %v7246_v9  ;;  %v7266_v36 = vmul.f32 0.17677669, %v7172_v41 }
 0x3c5   : > { %v829_v14 = vmul.f32 %v7222_v60, %v7222_v60  ;;  %v1823_v40 = vsel %vm11133_vm11, %v7251_v13, -inf  ;;  %v1988_v38 = vsel %vm11125_vm13, %v1950_v46, -inf  ;;  %v7269_v0 = vmul.f32 0.17677669, %v1716_v44 }
 0x3c6   : > { %v1229_v30 = vsel %vm7238_vm7, %v6097_v6, %v1225_v4  ;;  %v1332_v6 = vmul.f32 %v1219_v57, %v6885_v15  ;;  %v1951_v5 = vsel %vm11133_vm11, -inf, %v7266_v36 }
 0x3c7   : > { %v923_v39 = vsel %vm11126_vm1, %v829_v14, 0.0  ;;  %v1333_v51 = vmul.f32 %v1229_v30, %v7003_v11  ;;  %v1866_v11 = vsel %vm11125_vm13, %v1823_v40, -inf  ;;  %v1824_v44 = vsel %vm11133_vm11, %v7269_v0, -inf }
 0x3c8   : > { %924 = vadd.xlane.f32.xlu0 %v923_v39  ;;  %1858 = vmax.xlane.f32.xlu1 %v1857_v12  ;;  %v1365_v15 = vmul.f32 %v7148_v62, %v1332_v6  ;;  %v1991_v39 = vsel %vm11125_vm13, %v1951_v5, -inf  ;;  %v1869_v30 = vsel %vm11125_vm13, %v1824_v44, -inf  ;;  %v1947_v5 = vsel %vm11133_vm11, -inf, %v7140_v61 }
 0x3c9   : > { %v1522_v33 = vpop.f32.mrf.mxu1  ;;  %5941 = vmatmul.msk.bf16.gmra.mxu1 %vm11126_vm1, %v1418_v18  ;;  %1986 = vmax.xlane.f32.xlu2 %v1985_v48  ;;  %v1366_v4 = vmul.f32 %v7148_v62, %v1333_v51  ;;  %v1821_v44 = vsel %vm11133_vm11, %v7246_v9, -inf }
 0x3ca   : > { %v1398_v35 = vadd.f32 %v7165_v28, %v1365_v15 }
 0x3cb   : > { %v1399_v3 = vadd.f32 %v7165_v28, %v1366_v4 }
 0x3cc   : > { %v1718_v47 = vpop.f32.mrf.mxu2 }
 0x3cd   : > { %v1419_v12 = vpack.c.bf16 %v1399_v3, %v1398_v35  ;;  %v7282_v18 = vmul.f32 0.17677669, %v1718_v47  ;;  %v950_v3 = vmul.f32 %v7198_v17, %v6433_v50  ;;  %v1979_v35 = vsel %vm11125_vm13, %v1947_v5, -inf }
 0x3ce   : > { %v1822_v17 = vsel %vm11133_vm11, %v7266_v36, -inf }
 0x3cf   : > { %v1825_v48 = vsel %vm11133_vm11, %v7282_v18, -inf  ;;  %v1954_v57 = vsel %vm11133_vm11, -inf, %v7282_v18 }
 0x3d0   : > { %1989 = vmax.xlane.f32.xlu1 %v1988_v38  ;;  %v1872_v51 = vsel %vm11125_vm13, %v1825_v48, -inf  ;;  %v2000_v6 = vsel %vm11125_vm13, %v1954_v57, -inf }
 0x3d1   : > { %v1524_v14 = vpop.f32.mrf.mxu1  ;;  %1867 = vmax.xlane.f32.xlu2 %v1866_v11 }
 0x3d2   : > { %v1631_v59 = vpack.c.bf16 %v1524_v14, %v1522_v33 }
 0x3d4   : > { %5964 = vmatmul.msk.bf16.gmra.mxu2 %vm11126_vm1, %v1631_v59  ;;  %v1721_v41 = vpop.f32.mrf.mxu2 }
 0x3d5   : > { %v7298_v47 = vmul.f32 0.17677669, %v1721_v41  ;;  %v982_v41 = vadd.f32 1e-05, %v950_v3 }
 0x3d7   : > { %v1826_v40 = vsel %vm11133_vm11, %v7298_v47, -inf  ;;  %v1955_v14 = vsel %vm11133_vm11, -inf, %v7298_v47  ;;  %6098 = vrsqrt.f32 %v982_v41  ;;  %vm1236_vm12 = vweird.f32 %v982_v41 }
 0x3d8   : > { %1992 = vmax.xlane.f32.xlu1 %v1991_v39  ;;  %v1875_v4 = vsel %vm11125_vm13, %v1826_v40, -inf  ;;  %v2003_v59 = vsel %vm11125_vm13, %v1955_v14, -inf  ;;  %v1952_v40 = vsel %vm11133_vm11, -inf, %v7251_v13 }
 0x3d9   : > { %5942 = vmatmul.msk.bf16.gmra.mxu1 %vm11126_vm1, %v1419_v12  ;;  %1870 = vmax.xlane.f32.xlu2 %v1869_v30  ;;  %v1860_v12 = vsel %vm11125_vm13, %v1821_v44, -inf  ;;  %v1994_v14 = vsel %vm11125_vm13, %v1952_v40, -inf  ;;  %v1953_v44 = vsel %vm11133_vm11, -inf, %v7269_v0 }
 0x3dc   : > { %2572 = vrot.lane.b32.xlu0 %v6711_v37, %s6255_s16  ;;  %v1723_v33 = vpop.f32.mrf.mxu2 }
 0x3dd   : > { %v7295_v46 = vmul.f32 0.17677669, %v1723_v33  ;;  %v6099_v39 = vpop.eup %6098 }
 0x3de   : > { %v1231_v30 = vmul.f32 %v6099_v39, %v982_v41  ;;  %vm1237_vm10 = vweird.f32 %v6099_v39 }
 0x3df   : > { %v1827_v37 = vsel %vm11133_vm11, %v7295_v46, -inf  ;;  %v1956_v11 = vsel %vm11133_vm11, -inf, %v7295_v46  ;;  %vm1238_vm14 = vmor %vm1236_vm12, %vm1237_vm10 }
 0x3e0   : > { %1873 = vmax.xlane.f32.xlu1 %v1872_v51  ;;  %v1878_v38 = vsel %vm11125_vm13, %v1827_v37, -inf  ;;  %v2006_v15 = vsel %vm11125_vm13, %v1956_v11, -inf  ;;  %v1232_v48 = vmul.f32 %v6099_v39, %v1231_v30  ;;  %v1863_v51 = vsel %vm11125_vm13, %v1822_v17, -inf }
 0x3e1   : > { %2001 = vmax.xlane.f32.xlu2 %v2000_v6 }
 0x3e2   : > { %v1233_v37 = vmul.f32 0.5, %v1232_v48 }
 0x3e8   : > { %1879 = vmax.xlane.f32.xlu1 %v1878_v38  ;;  %v1234_v38 = vsub.f32 1.5, %v1233_v37  ;;  %v1997_v37 = vsel %vm11125_vm13, %v1953_v44, -inf }
 0x3e9   : > { %1876 = vmax.xlane.f32.xlu2 %v1875_v4 }
 0x3ea   : > { %v1235_v3 = vmul.f32 %v6099_v39, %v1234_v38 }
 0x3ec   : > { %v1239_v30 = vsel %vm1238_vm14, %v6099_v39, %v1235_v3 }
 0x3f0   : > { %2007 = vmax.xlane.f32.xlu1 %v2006_v15 }
 0x3f1   : > { %2004 = vmax.xlane.f32.xlu2 %v2003_v59 }
 0x406   : > { %1980 = vmax.xlane.f32.xlu0 %v1979_v35 }
 0x40e   : > { %1861 = vmax.xlane.f32.xlu0 %v1860_v12 }
 0x414   : > { %v907_v33 = vpop.xlane.xlu2 %906 }
 0x415   : > { %v951_v57 = vmul.f32 %v907_v33, %v6433_v50 }
 0x416   : > { %1864 = vmax.xlane.f32.xlu0 %v1863_v51 }
 0x417   : > { %v983_v6 = vadd.f32 1e-05, %v951_v57 }
 0x419   : > { %6100 = vrsqrt.f32 %v983_v6  ;;  %vm1246_vm0 = vweird.f32 %v983_v6 }
 0x41c   : > { %v910_v4 = vpop.xlane.xlu2 %909 }
 0x41d   : > { %v952_v11 = vmul.f32 %v910_v4, %v6433_v50  ;;  %v1334_v4 = vmul.f32 %v1239_v30, %v7019_v52 }
 0x41e   : > { %1995 = vmax.xlane.f32.xlu0 %v1994_v14 }
 0x41f   : > { %v6101_v15 = vpop.eup %6100  ;;  %v984_v59 = vadd.f32 1e-05, %v952_v11 }
 0x420   : > { %v1241_v5 = vmul.f32 %v6101_v15, %v983_v6  ;;  %vm1247_vm15 = vweird.f32 %v6101_v15 }
 0x421   : > { %6102 = vrsqrt.f32 %v984_v59  ;;  %vm1248_vm2 = vmor %vm1246_vm0, %vm1247_vm15  ;;  %vm1256_vm4 = vweird.f32 %v984_v59 }
 0x422   : > { %v1242_v35 = vmul.f32 %v6101_v15, %v1241_v5 }
 0x423   : > { %v913_v12 = vpop.xlane.xlu1 %912 }
 0x424   : > { %v1243_v17 = vmul.f32 0.5, %v1242_v35  ;;  %v953_v48 = vmul.f32 %v913_v12, %v6433_v50  ;;  %v919_v33 = vpop.xlane.xlu2 %918 }
 0x425   : > { %v955_v57 = vmul.f32 %v919_v33, %v6433_v50  ;;  %v1527_v51 = vpop.f32.mrf.mxu1 }
 0x426   : > { %v1244_v40 = vsub.f32 1.5, %v1243_v17  ;;  %v985_v41 = vadd.f32 1e-05, %v953_v48  ;;  %1998 = vmax.xlane.f32.xlu0 %v1997_v37  ;;  %v1367_v48 = vmul.f32 %v7148_v62, %v1334_v4 }
 0x427   : > { %v6103_v38 = vpop.eup %6102  ;;  %v7343_v11 = vadd.f32 1e-05, %v955_v57 }
 0x428   : > { %v1245_v14 = vmul.f32 %v6101_v15, %v1244_v40  ;;  %v1251_v39 = vmul.f32 %v6103_v38, %v984_v59  ;;  %6104 = vrsqrt.f32 %v985_v41  ;;  %v1400_v4 = vadd.f32 %v7165_v28, %v1367_v48 }
 0x429   : > { %6106 = vrsqrt.f32 %v7343_v11  ;;  %vm1257_vm3 = vweird.f32 %v6103_v38  ;;  %vm1266_vm7 = vweird.f32 %v985_v41  ;;  %vm1286_vm15 = vweird.f32 %v7343_v11 }
 0x42a   : > { %v1249_v3 = vsel %vm1248_vm2, %v6101_v15, %v1245_v14  ;;  %v1252_v5 = vmul.f32 %v6103_v38, %v1251_v39  ;;  %vm1258_vm5 = vmor %vm1256_vm4, %vm1257_vm3  ;;  %vm2622_vm2 = vcmask 1045504  }
 0x42b   : > { %v1335_v35 = vmul.f32 %v1249_v3, %v7061_v16  ;;  %v916_v44 = vpop.xlane.xlu0 %915  ;;  %v922_v52 = vpop.xlane.xlu1 %921 }
 0x42c   : > { %v1253_v12 = vmul.f32 0.5, %v1252_v5  ;;  %v954_v17 = vmul.f32 %v916_v44, %v6433_v50  ;;  %v956_v14 = vmul.f32 %v922_v52, %v6433_v50 }
 0x42d   : > { %v1529_v30 = vpop.f32.mrf.mxu1  ;;  %v1368_v33 = vmul.f32 %v7148_v62, %v1335_v35 }
 0x42e   : > { %v6105_v6 = vpop.eup %6104  ;;  %v1254_v57 = vsub.f32 1.5, %v1253_v12  ;;  %v7350_v37 = vadd.f32 1e-05, %v954_v17  ;;  %v1632_v40 = vpack.c.bf16 %v1529_v30, %v1527_v51  ;;  %v7361_v44 = vadd.f32 1e-05, %v956_v14 }
 0x42f   : > { %v7352_v45 = vpop.eup %6106  ;;  %v1261_v15 = vmul.f32 %v6105_v6, %v985_v41  ;;  %v1401_v16 = vadd.f32 %v7165_v28, %v1368_v33  ;;  %vm1267_vm6 = vweird.f32 %v6105_v6 }
 0x430   : > { %6108 = vrsqrt.f32 %v7350_v37  ;;  %5965 = vmatmul.msk.bf16.gmra.mxu2 %vm11126_vm1, %v1632_v40  ;;  %v1255_v39 = vmul.f32 %v6103_v38, %v1254_v57  ;;  %v1281_v5 = vmul.f32 %v7352_v45, %v7343_v11  ;;  %vm1268_vm8 = vmor %vm1266_vm7, %vm1267_vm6  ;;  %vm1287_vm10 = vweird.f32 %v7352_v45 }
 0x431   : > { %v1262_v3 = vmul.f32 %v6105_v6, %v1261_v15  ;;  %v1420_v51 = vpack.c.bf16 %v1401_v16, %v1400_v4  ;;  %6110 = vrsqrt.f32 %v7361_v44  ;;  %vm1276_vm12 = vweird.f32 %v7350_v37  ;;  %vm1288_vm0 = vmor %vm1286_vm15, %vm1287_vm10 }
 0x432   : > { %v1259_v12 = vsel %vm1258_vm5, %v6103_v38, %v1255_v39  ;;  %v1282_v52 = vmul.f32 %v7352_v45, %v1281_v5  ;;  %vm1296_vm7 = vweird.f32 %v7361_v44 }
 0x433   : > { %v1263_v35 = vmul.f32 0.5, %v1262_v3  ;;  %5943 = vmatmul.msk.bf16.gmra.mxu1 %vm11126_vm1, %v1420_v51  ;;  %v1336_v59 = vmul.f32 %v1259_v12, %v7085_v21 }
 0x434   : > { %v1283_v16 = vmul.f32 0.5, %v1282_v52 }
 0x435   : > { %v1264_v17 = vsub.f32 1.5, %v1263_v35  ;;  %v1369_v51 = vmul.f32 %v7148_v62, %v1336_v59 }
 0x436   : > { %v6109_v48 = vpop.eup %6108  ;;  %v1532_v30 = vpop.f32.mrf.mxu1  ;;  %v1284_v35 = vsub.f32 1.5, %v1283_v16 }
 0x437   : > { %v1265_v33 = vmul.f32 %v6105_v6, %v1264_v17  ;;  %v1271_v57 = vmul.f32 %v6109_v48, %v7350_v37  ;;  %v1726_v40 = vpop.f32.mrf.mxu2  ;;  %v7378_v17 = vpop.eup %6110  ;;  %vm1277_vm9 = vweird.f32 %v6109_v48  ;;  %v1402_v59 = vadd.f32 %v7165_v28, %v1369_v51 }
 0x438   : > { %v7368_v38 = vmul.f32 0.17677669, %v1726_v40  ;;  %v1291_v16 = vmul.f32 %v7378_v17, %v7361_v44  ;;  %vm1278_vm14 = vmor %vm1276_vm12, %vm1277_vm9  ;;  %vm1297_vm4 = vweird.f32 %v7378_v17 }
 0x439   : > { %v1269_v15 = vsel %vm1268_vm8, %v6105_v6, %v1265_v33  ;;  %v1272_v14 = vmul.f32 %v6109_v48, %v1271_v57  ;;  %vm1298_vm8 = vmor %vm1296_vm7, %vm1297_vm4 }
 0x43a   : > { %v1337_v4 = vmul.f32 %v1269_v15, %v7117_v53  ;;  %v1828_v41 = vsel %vm11133_vm11, %v7368_v38, -inf  ;;  %v1285_v15 = vmul.f32 %v7352_v45, %v1284_v35 }
 0x43b   : > { %v1273_v39 = vmul.f32 0.5, %v1272_v14  ;;  %v925_v3 = vpop.xlane.xlu0 %924  ;;  %v1881_v21 = vsel %vm11125_vm13, %v1828_v41, -inf }
 0x43c   : > { %v957_v5 = vmul.f32 %v925_v3, %v6433_v50  ;;  %1882 = vmax.xlane.f32.xlu1 %v1881_v21  ;;  %v1370_v12 = vmul.f32 %v7148_v62, %v1337_v4  ;;  %v1292_v21 = vmul.f32 %v7378_v17, %v1291_v16 }
 0x43d   : > { %v1274_v6 = vsub.f32 1.5, %v1273_v39 }
 0x43e   : > { %v7380_v53 = vadd.f32 1e-05, %v957_v5  ;;  %v1534_v52 = vpop.f32.mrf.mxu1  ;;  %v1403_v50 = vadd.f32 %v7165_v28, %v1370_v12  ;;  %v1289_v5 = vsel %vm1288_vm0, %v7352_v45, %v1285_v15 }
 0x43f   : > { %v1275_v33 = vmul.f32 %v6109_v48, %v1274_v6  ;;  %v1633_v57 = vpack.c.bf16 %v1534_v52, %v1532_v30  ;;  %v1728_v40 = vpop.f32.mrf.mxu2  ;;  %v1957_v30 = vsel %vm11133_vm11, -inf, %v7368_v38  ;;  %v1339_v12 = vmul.f32 %v1289_v5, %v7097_v42 }
 0x440   : > { %6112 = vrsqrt.f32 %v7380_v53  ;;  %v7390_v14 = vmul.f32 0.17677669, %v1728_v40  ;;  %v1421_v4 = vpack.c.bf16 %v1403_v50, %v1402_v59  ;;  %v2009_v41 = vsel %vm11125_vm13, %v1957_v30, -inf }
 0x441   : > { %5966 = vmatmul.msk.bf16.gmra.mxu2 %vm11126_vm1, %v1633_v57  ;;  %v1279_v37 = vsel %vm1278_vm14, %v6109_v48, %v1275_v33  ;;  %v1293_v33 = vmul.f32 0.5, %v1292_v21  ;;  %v1372_v42 = vmul.f32 %v7148_v62, %v1339_v12  ;;  %vm1306_vm5 = vweird.f32 %v7380_v53 }
 0x442   : > { %v1829_v39 = vsel %vm11133_vm11, %v7390_v14, -inf  ;;  %v1338_v11 = vmul.f32 %v1279_v37, %v7156_v49  ;;  %v1958_v45 = vsel %vm11133_vm11, -inf, %v7390_v14 }
 0x443   : > { %v1884_v3 = vsel %vm11125_vm13, %v1829_v39, -inf  ;;  %5944 = vmatmul.msk.bf16.gmra.mxu1 %vm11126_vm1, %v1421_v4  ;;  %v2012_v15 = vsel %vm11125_vm13, %v1958_v45, -inf  ;;  %v1294_v16 = vsub.f32 1.5, %v1293_v33 }
 0x444   : > { %1885 = vmax.xlane.f32.xlu2 %v1884_v3  ;;  %2010 = vmax.xlane.f32.xlu1 %v2009_v41  ;;  %v1371_v49 = vmul.f32 %v7148_v62, %v1338_v11 }
 0x446   : > { %v6113_v51 = vpop.eup %6112  ;;  %v1537_v48 = vpop.f32.mrf.mxu1  ;;  %v1404_v39 = vadd.f32 %v7165_v28, %v1371_v49 }
 0x447   : > { %v1301_v35 = vmul.f32 %v6113_v51, %v7380_v53  ;;  %v1731_v6 = vpop.f32.mrf.mxu2  ;;  %vm1307_vm3 = vweird.f32 %v6113_v51 }
 0x448   : > { %v7408_v52 = vmul.f32 0.17677669, %v1731_v6  ;;  %v1295_v6 = vmul.f32 %v7378_v17, %v1294_v16  ;;  %vm1308_vm6 = vmor %vm1306_vm5, %vm1307_vm3 }
 0x449   : > { %v1302_v57 = vmul.f32 %v6113_v51, %v1301_v35  ;;  %v1405_v35 = vadd.f32 %v7165_v28, %v1372_v42 }
 0x44a   : > { %v1830_v40 = vsel %vm11133_vm11, %v7408_v52, -inf  ;;  %v1959_v12 = vsel %vm11133_vm11, -inf, %v7408_v52 }
 0x44b   : > { %v1303_v50 = vmul.f32 0.5, %v1302_v57  ;;  %v1887_v59 = vsel %vm11125_vm13, %v1830_v40, -inf  ;;  %v1422_v57 = vpack.c.bf16 %v1405_v35, %v1404_v39  ;;  %v2015_v49 = vsel %vm11125_vm13, %v1959_v12, -inf }
 0x44c   : > { %2013 = vmax.xlane.f32.xlu2 %v2012_v15  ;;  %1888 = vmax.xlane.f32.xlu1 %v1887_v59 }
 0x44d   : > { %v1304_v30 = vsub.f32 1.5, %v1303_v50  ;;  %v1299_v50 = vsel %vm1298_vm8, %v7378_v17, %v1295_v6 }
 0x44e   : > { %v2573_v4 = vpop.permute.xlu0 %2572  ;;  %v1539_v37 = vpop.f32.mrf.mxu1  ;;  %v1340_v44 = vmul.f32 %v1299_v50, %v7135_v43 }
 0x44f   : > { %v1305_v3 = vmul.f32 %v6113_v51, %v1304_v30  ;;  %v2624_v41 = vsel %vm2622_vm2, %v2573_v4, 0  ;;  %v1634_v5 = vpack.c.bf16 %v1539_v37, %v1537_v48  ;;  %v1733_v21 = vpop.f32.mrf.mxu2 }
 0x450   : > { %v7421_v11 = vmul.f32 0.17677669, %v1733_v21  ;;  %2633 = vmatpush.bf16.msra.mxu0 %v2624_v41  ;;  %v1373_v37 = vmul.f32 %v7148_v62, %v1340_v44 }
 0x451   : > { %5967 = vmatmul.msk.bf16.gmra.mxu2 %vm11126_vm1, %v1634_v5  ;;  %v1309_v45 = vsel %vm1308_vm6, %v6113_v51, %v1305_v3 }
 0x452   : > { %v1831_v48 = vsel %vm11133_vm11, %v7421_v11, -inf  ;;  %v1960_v33 = vsel %vm11133_vm11, -inf, %v7421_v11  ;;  %v1341_v59 = vmul.f32 %v1309_v45, %v7222_v60  ;;  %v1406_v21 = vadd.f32 %v7165_v28, %v1373_v37 }
 0x453   : > { %v1890_v53 = vsel %vm11125_vm13, %v1831_v48, -inf  ;;  %v2018_v40 = vsel %vm11125_vm13, %v1960_v33, -inf  ;;  %5945 = vmatmul.msk.bf16.gmra.mxu1 %vm11126_vm1, %v1422_v57 }
 0x454   : > { %1891 = vmax.xlane.f32.xlu0 %v1890_v53  ;;  %2016 = vmax.xlane.f32.xlu2 %v2015_v49  ;;  %v1374_v17 = vmul.f32 %v7148_v62, %v1341_v59 }
 0x455   : > { %2019 = vmax.xlane.f32.xlu1 %v2018_v40 }
 0x456   : > { %v1542_v15 = vpop.f32.mrf.mxu1  ;;  %v1407_v39 = vadd.f32 %v7165_v28, %v1374_v17  ;;  %v1853_v28 = vpop.xlane.xlu2 %1852 }
 0x457   : > { %v1736_v42 = vpop.f32.mrf.mxu2 }
 0x458   : > { %v7445_v51 = vmul.f32 0.17677669, %v1736_v42  ;;  %v1423_v6 = vpack.c.bf16 %v1407_v39, %v1406_v21 }
 0x45a   : > { %v1961_v16 = vsel %vm11133_vm11, -inf, %v7445_v51  ;;  %v1832_v30 = vsel %vm11133_vm11, %v7445_v51, -inf }
 0x45b   : > { %v2021_v4 = vsel %vm11125_vm13, %v1961_v16, -inf  ;;  %v1893_v60 = vsel %vm11125_vm13, %v1832_v30, -inf }
 0x45c   : > { %2022 = vmax.xlane.f32.xlu0 %v2021_v4  ;;  %1894 = vmax.xlane.f32.xlu2 %v1893_v60 }
 0x45e   : > { %v1544_v43 = vpop.f32.mrf.mxu1  ;;  %v1984_v59 = vpop.xlane.xlu2 %1983 }
 0x45f   : > { %v1635_v3 = vpack.c.bf16 %v1544_v43, %v1542_v15  ;;  %v1738_v41 = vpop.f32.mrf.mxu2  ;;  %v1856_v15 = vpop.xlane.xlu1 %1855 }
 0x460   : > { %v7458_v5 = vmul.f32 0.17677669, %v1738_v41  ;;  %v2076_v42 = vsel %vm11133_vm11, %v1856_v15, %v1984_v59 }
 0x461   : > { %5968 = vmatmul.msk.bf16.gmra.mxu2 %vm11126_vm1, %v1635_v3  ;;  %v2108_v16 = vsub.f32 %v7193_v25, %v2076_v42 }
 0x462   : > { %v1962_v35 = vsel %vm11133_vm11, -inf, %v7458_v5  ;;  %v1833_v62 = vsel %vm11133_vm11, %v7458_v5, -inf }
 0x463   : > { %v2024_v12 = vsel %vm11125_vm13, %v1962_v35, -inf  ;;  %v1896_v48 = vsel %vm11125_vm13, %v1833_v62, -inf  ;;  %5946 = vmatmul.msk.bf16.gmra.mxu1 %vm11126_vm1, %v1423_v6  ;;  %v2141_v43 = vmul.f32 1.442695, %v2108_v16 }
 0x464   : > { %1897 = vmax.xlane.f32.xlu1 %v1896_v48  ;;  %2025 = vmax.xlane.f32.xlu2 %v2024_v12 }
 0x466   : > { %v1987_v17 = vpop.xlane.xlu2 %1986 }
 0x467   : > { %v1859_v4 = vpop.xlane.xlu1 %1858 }
 0x468   : > { %v2077_v25 = vsel %vm11133_vm11, %v1859_v4, %v1987_v17 }
 0x469   : > { %v2109_v62 = vsub.f32 %v7216_v24, %v2077_v25 }
 0x479   : > { %v1981_v33 = vpop.xlane.xlu0 %1980 }
 0x47a   : > { %v2075_v57 = vsel %vm11133_vm11, %v1853_v28, %v1981_v33 }
 0x47b   : > { %v2107_v45 = vsub.f32 %v7140_v61, %v2075_v57  ;;  %v2143_v57 = vmul.f32 1.442695, %v2109_v62 }
 0x47d   : > { %v2139_v53 = vmul.f32 1.442695, %v2107_v45 }
 0x47f   : > { %6114 = vpow2.f32 %v2139_v53  ;;  %v1990_v53 = vpop.xlane.xlu1 %1989 }
 0x480   : > { %6116 = vpow2.f32 %v2141_v43 }
 0x481   : > { %v1862_v41 = vpop.xlane.xlu0 %1861  ;;  %6118 = vpow2.f32 %v2143_v57 }
 0x482   : > { %v2078_v59 = vsel %vm11133_vm11, %v1862_v41, %v1990_v53  ;;  %v1868_v41 = vpop.xlane.xlu2 %1867 }
 0x485   : > { %v7474_v40 = vpop.eup %6114 }
 0x486   : > { %v2331_v49 = vsel %vm11133_vm11, 0.0, %v7474_v40  ;;  %v2203_v48 = vsel %vm11133_vm11, %v7474_v40, 0.0 }
 0x487   : > { %v2363_v50 = vsel %vm11125_vm13, %v2331_v49, 0.0  ;;  %v2235_v49 = vsel %vm11125_vm13, %v2203_v48, 0.0  ;;  %v1993_v53 = vpop.xlane.xlu1 %1992 }
 0x488   : > { %2364 = vadd.xlane.f32.xlu2 %v2363_v50  ;;  %v7511_v50 = vpop.eup %6116 }
 0x489   : > { %v1865_v42 = vpop.xlane.xlu0 %1864  ;;  %v2332_v4 = vsel %vm11133_vm11, 0.0, %v7511_v50 }
 0x4b0   : > { %v1547_v44 = vpop.f32.mrf.mxu1 }
 0x4b3   : > { %v1741_v61 = vpop.f32.mrf.mxu2 }
 0x4b4   : > { %v7483_v30 = vmul.f32 0.17677669, %v1741_v61  ;;  %v2204_v61 = vsel %vm11133_vm11, %v7511_v50, 0.0 }
 0x4b6   : > { %v1834_v60 = vsel %vm11133_vm11, %v7483_v30, -inf  ;;  %v1963_v37 = vsel %vm11133_vm11, -inf, %v7483_v30 }
 0x4b7   : > { %v1899_v39 = vsel %vm11125_vm13, %v1834_v60, -inf  ;;  %v2027_v3 = vsel %vm11125_vm13, %v1963_v37, -inf  ;;  %v2238_v37 = vsel %vm11125_vm13, %v2204_v61, 0.0 }
 0x4b8   : > { %1900 = vmax.xlane.f32.xlu0 %v1899_v39  ;;  %2028 = vmax.xlane.f32.xlu1 %v2027_v3  ;;  %v1549_v21 = vpop.f32.mrf.mxu1  ;;  %v2366_v39 = vsel %vm11125_vm13, %v2332_v4, 0.0  ;;  %v7530_v3 = vpop.eup %6118 }
 0x4b9   : > { %v1636_v35 = vpack.c.bf16 %v1549_v21, %v1547_v44  ;;  %v2110_v44 = vsub.f32 %v7246_v9, %v2078_v59 }
 0x4bb   : > { %v1743_v6 = vpop.f32.mrf.mxu2  ;;  %5969 = vmatmul.msk.bf16.gmra.mxu2 %vm11126_vm1, %v1636_v35  ;;  %v2145_v43 = vmul.f32 1.442695, %v2110_v44  ;;  %v1996_v35 = vpop.xlane.xlu0 %1995 }
 0x4bc   : > { %v7496_v12 = vmul.f32 0.17677669, %v1743_v6  ;;  %v2333_v6 = vsel %vm11133_vm11, 0.0, %v7530_v3  ;;  %v1871_v44 = vpop.xlane.xlu2 %1870 }
 0x4bd   : > { %6120 = vpow2.f32 %v2145_v43 }
 0x4be   : > { %v1964_v28 = vsel %vm11133_vm11, -inf, %v7496_v12  ;;  %v1835_v33 = vsel %vm11133_vm11, %v7496_v12, -inf }
 0x4bf   : > { %v2030_v24 = vsel %vm11125_vm13, %v1964_v28, -inf  ;;  %v1902_v45 = vsel %vm11125_vm13, %v1835_v33, -inf  ;;  %v2205_v28 = vsel %vm11133_vm11, %v7530_v3, 0.0  ;;  %v2369_v33 = vsel %vm11125_vm13, %v2333_v6, 0.0 }
 0x4c0   : > { %2031 = vmax.xlane.f32.xlu0 %v2030_v24  ;;  %1903 = vmax.xlane.f32.xlu2 %v1902_v45  ;;  %v1552_v15 = vpop.f32.mrf.mxu1  ;;  %v2241_v45 = vsel %vm11125_vm13, %v2205_v28, 0.0 }
 0x4c1   : > { %2236 = vadd.xlane.f32.xlu1 %v2235_v49 }
 0x4c3   : > { %v7547_v59 = vpop.eup %6120  ;;  %v1999_v43 = vpop.xlane.xlu0 %1998 }
 0x4c4   : > { %v1746_v16 = vpop.f32.mrf.mxu2 }
 0x4c5   : > { %v7519_v17 = vmul.f32 0.17677669, %v1746_v16 }
 0x4c7   : > { %v1965_v60 = vsel %vm11133_vm11, -inf, %v7519_v17  ;;  %v1836_v48 = vsel %vm11133_vm11, %v7519_v17, -inf }
 0x4c8   : > { %v2033_v9 = vsel %vm11125_vm13, %v1965_v60, -inf  ;;  %2239 = vadd.xlane.f32.xlu0 %v2238_v37  ;;  %v1554_v25 = vpop.f32.mrf.mxu1  ;;  %v1905_v24 = vsel %vm11125_vm13, %v1836_v48, -inf  ;;  %v2334_v37 = vsel %vm11133_vm11, 0.0, %v7547_v59 }
 0x4c9   : > { %2034 = vmax.xlane.f32.xlu2 %v2033_v9  ;;  %2367 = vadd.xlane.f32.xlu1 %v2366_v39  ;;  %v1637_v21 = vpack.c.bf16 %v1554_v25, %v1552_v15  ;;  %v2079_v15 = vsel %vm11133_vm11, %v1865_v42, %v1993_v53  ;;  %v2080_v42 = vsel %vm11133_vm11, %v1868_v41, %v1996_v35  ;;  %v2002_v53 = vpop.xlane.xlu2 %2001 }
 0x4ca   : > { %v2111_v4 = vsub.f32 %v7266_v36, %v2079_v15  ;;  %v2372_v36 = vsel %vm11125_vm13, %v2334_v37, 0.0  ;;  %v2112_v28 = vsub.f32 %v7251_v13, %v2080_v42 }
 0x4cb   : > { %5970 = vmatmul.msk.bf16.gmra.mxu2 %vm11126_vm1, %v1637_v21 }
 0x4cc   : > { %v1748_v62 = vpop.f32.mrf.mxu2  ;;  %v2147_v21 = vmul.f32 1.442695, %v2111_v4  ;;  %v2149_v13 = vmul.f32 1.442695, %v2112_v28 }
 0x4cd   : > { %v7543_v57 = vmul.f32 0.17677669, %v1748_v62  ;;  %v2081_v62 = vsel %vm11133_vm11, %v1871_v44, %v1999_v43 }
 0x4ce   : > { %6122 = vpow2.f32 %v2147_v21 }
 0x4cf   : > { %v1837_v61 = vsel %vm11133_vm11, %v7543_v57, -inf  ;;  %v1966_v60 = vsel %vm11133_vm11, -inf, %v7543_v57  ;;  %6124 = vpow2.f32 %v2149_v13 }
 0x4d0   : > { %2370 = vadd.xlane.f32.xlu0 %v2369_v33  ;;  %v1557_v49 = vpop.f32.mrf.mxu1  ;;  %v1908_v9 = vsel %vm11125_vm13, %v1837_v61, -inf  ;;  %v2036_v25 = vsel %vm11125_vm13, %v1966_v60, -inf  ;;  %v2113_v33 = vsub.f32 %v7269_v0, %v2081_v62 }
 0x4d1   : > { %1906 = vmax.xlane.f32.xlu1 %v1905_v24  ;;  %2242 = vadd.xlane.f32.xlu2 %v2241_v45  ;;  %v2206_v45 = vsel %vm11133_vm11, %v7547_v59, 0.0 }
 0x4d2   : > { %v2244_v44 = vsel %vm11125_vm13, %v2206_v45, 0.0 }
 0x4d4   : > { %v1751_v16 = vpop.f32.mrf.mxu2  ;;  %v7587_v60 = vpop.eup %6122 }
 0x4d5   : > { %v7564_v39 = vmul.f32 0.17677669, %v1751_v16  ;;  %v1874_v16 = vpop.xlane.xlu1 %1873  ;;  %v2207_v42 = vsel %vm11133_vm11, %v7587_v60, 0.0 }
 0x4d7   : > { %v1967_v35 = vsel %vm11133_vm11, -inf, %v7564_v39  ;;  %v1838_v24 = vsel %vm11133_vm11, %v7564_v39, -inf }
 0x4d8   : > { %1909 = vmax.xlane.f32.xlu0 %v1908_v9  ;;  %v1559_v6 = vpop.f32.mrf.mxu1  ;;  %v2039_v0 = vsel %vm11125_vm13, %v1967_v35, -inf  ;;  %v1911_v15 = vsel %vm11125_vm13, %v1838_v24, -inf }
 0x4d9   : > { %2037 = vmax.xlane.f32.xlu1 %v2036_v25  ;;  %2373 = vadd.xlane.f32.xlu2 %v2372_v36  ;;  %v1638_v48 = vpack.c.bf16 %v1559_v6, %v1557_v49  ;;  %v2151_v49 = vmul.f32 1.442695, %v2113_v33  ;;  %v7600_v36 = vpop.xlane.xlu2 %1876  ;;  %v7604_v6 = vpop.eup %6124  ;;  %v2247_v33 = vsel %vm11125_vm13, %v2207_v42, 0.0 }
 0x4db   : > { %5971 = vmatmul.msk.bf16.gmra.mxu2 %vm11126_vm1, %v1638_v48  ;;  %6126 = vpow2.f32 %v2151_v49  ;;  %v2082_v48 = vsel %vm11133_vm11, %v1874_v16, %v2002_v53  ;;  %v2208_v53 = vsel %vm11133_vm11, %v7604_v6, 0.0  ;;  %v2335_v49 = vsel %vm11133_vm11, 0.0, %v7587_v60 }
 0x4dc   : > { %v1753_v41 = vpop.f32.mrf.mxu2  ;;  %v2114_v45 = vsub.f32 %v7282_v18, %v2082_v48  ;;  %v2250_v18 = vsel %vm11125_vm13, %v2208_v53, 0.0 }
 0x4dd   : > { %v7585_v61 = vmul.f32 0.17677669, %v1753_v41  ;;  %v7611_v24 = vpop.xlane.xlu1 %1879 }
 0x4df   : > { %v1968_v9 = vsel %vm11133_vm11, -inf, %v7585_v61 }
 0x4e0   : > { %2040 = vmax.xlane.f32.xlu0 %v2039_v0  ;;  %v1562_v4 = vpop.f32.mrf.mxu1  ;;  %v2042_v62 = vsel %vm11125_vm13, %v1968_v9, -inf }
 0x4e1   : > { %1912 = vmax.xlane.f32.xlu2 %v1911_v15  ;;  %2245 = vadd.xlane.f32.xlu1 %v2244_v44  ;;  %v7609_v41 = vpop.eup %6126  ;;  %v2153_v15 = vmul.f32 1.442695, %v2114_v45 }
 0x4e2   : > { %v2209_v13 = vsel %vm11133_vm11, %v7609_v41, 0.0 }
 0x4e3   : > { %v2253_v44 = vsel %vm11125_vm13, %v2209_v13, 0.0  ;;  %6128 = vpow2.f32 %v2153_v15 }
 0x4e4   : > { %v1756_v37 = vpop.f32.mrf.mxu2 }
 0x4e5   : > { %v7589_v43 = vmul.f32 0.17677669, %v1756_v37  ;;  %v2005_v37 = vpop.xlane.xlu2 %2004  ;;  %v2008_v9 = vpop.xlane.xlu1 %2007 }
 0x4e6   : > { %v2083_v63 = vsel %vm11133_vm11, %v7600_v36, %v2005_v37  ;;  %v2084_v1 = vsel %vm11133_vm11, %v7611_v24, %v2008_v9 }
 0x4e7   : > { %v1840_v25 = vsel %vm11133_vm11, %v7589_v43, -inf  ;;  %v2115_v34 = vsub.f32 %v7298_v47, %v2083_v63  ;;  %v2116_v63 = vsub.f32 %v7295_v46, %v2084_v1 }
 0x4e8   : > { %v1917_v21 = vsel %vm11125_vm13, %v1840_v25, -inf  ;;  %v1564_v28 = vpop.f32.mrf.mxu1  ;;  %v2336_v25 = vsel %vm11133_vm11, 0.0, %v7604_v6 }
 0x4e9   : > { %1918 = vmax.xlane.f32.xlu0 %v1917_v21  ;;  %2043 = vmax.xlane.f32.xlu2 %v2042_v62  ;;  %v1639_v35 = vpack.c.bf16 %v1564_v28, %v1562_v4  ;;  %v2375_v4 = vsel %vm11125_vm13, %v2335_v49, 0.0  ;;  %v1839_v21 = vsel %vm11133_vm11, %v7585_v61, -inf  ;;  %v2378_v48 = vsel %vm11125_vm13, %v2336_v25, 0.0 }
 0x4ea   : > { %2248 = vadd.xlane.f32.xlu1 %v2247_v33  ;;  %v1914_v28 = vsel %vm11125_vm13, %v1839_v21, -inf  ;;  %v7641_v33 = vpop.eup %6128  ;;  %v2155_v20 = vmul.f32 1.442695, %v2115_v34  ;;  %v2157_v9 = vmul.f32 1.442695, %v2116_v63 }
 0x4eb   : > { %5972 = vmatmul.msk.bf16.gmra.mxu2 %vm11126_vm1, %v1639_v35  ;;  %v2338_v53 = vsel %vm11133_vm11, 0.0, %v7641_v33 }
 0x4ec   : > { %v1758_v0 = vpop.f32.mrf.mxu2  ;;  %v2384_v15 = vsel %vm11125_vm13, %v2338_v53, 0.0  ;;  %v7669_v53 = vpop.xlane.xlu0 %1891 }
 0x4ed   : > { %v7626_v16 = vmul.f32 0.17677669, %v1758_v0  ;;  %v7643_v35 = vpop.xlane.xlu2 %1885  ;;  %v1883_v45 = vpop.xlane.xlu1 %1882  ;;  %v1969_v0 = vsel %vm11133_vm11, -inf, %v7589_v43 }
 0x4ef   : > { %v1970_v42 = vsel %vm11133_vm11, -inf, %v7626_v16  ;;  %v1841_v13 = vsel %vm11133_vm11, %v7626_v16, -inf }
 0x4f0   : > { %v2048_v62 = vsel %vm11125_vm13, %v1970_v42, -inf  ;;  %v1920_v49 = vsel %vm11125_vm13, %v1841_v13, -inf  ;;  %v2337_v42 = vsel %vm11133_vm11, 0.0, %v7609_v41 }
 0x4f1   : > { %2254 = vadd.xlane.f32.xlu0 %v2253_v44  ;;  %2251 = vadd.xlane.f32.xlu2 %v2250_v18  ;;  %v2045_v44 = vsel %vm11125_vm13, %v1969_v0, -inf }
 0x4f2   : > { %2376 = vadd.xlane.f32.xlu1 %v2375_v4  ;;  %v2210_v4 = vsel %vm11133_vm11, %v7641_v33, 0.0 }
 0x4f3   : > { %v2256_v21 = vsel %vm11125_vm13, %v2210_v4, 0.0 }
 0x4f5   : > { %v2014_v18 = vpop.xlane.xlu2 %2013  ;;  %v2011_v25 = vpop.xlane.xlu1 %2010 }
 0x4f6   : > { %v2085_v26 = vsel %vm11133_vm11, %v1883_v45, %v2011_v25  ;;  %v2086_v25 = vsel %vm11133_vm11, %v7643_v35, %v2014_v18 }
 0x4f9   : > { %2049 = vmax.xlane.f32.xlu0 %v2048_v62  ;;  %2379 = vadd.xlane.f32.xlu2 %v2378_v48  ;;  %v2381_v62 = vsel %vm11125_vm13, %v2337_v42, 0.0 }
 0x4fa   : > { %1915 = vmax.xlane.f32.xlu1 %v1914_v28 }
 0x4fd   : > { %v7665_v48 = vpop.xlane.xlu2 %2016  ;;  %v1889_v28 = vpop.xlane.xlu1 %1888 }
 0x501   : > { %1921 = vmax.xlane.f32.xlu2 %v1920_v49  ;;  %2385 = vadd.xlane.f32.xlu0 %v2384_v15  ;;  %v7675_v15 = vpop.xlane.xlu0 %2022 }
 0x502   : > { %2046 = vmax.xlane.f32.xlu1 %v2045_v44 }
 0x505   : > { %v7667_v13 = vpop.xlane.xlu2 %1894  ;;  %v7671_v0 = vpop.xlane.xlu1 %2019 }
 0x509   : > { %2257 = vadd.xlane.f32.xlu2 %v2256_v21 }
 0x50a   : > { %2382 = vadd.xlane.f32.xlu1 %v2381_v62 }
 0x50d   : > { %v7673_v49 = vpop.xlane.xlu2 %2025  ;;  %v7677_v44 = vpop.xlane.xlu1 %1897 }
 0x515   : > { %v2365_v4 = vpop.xlane.xlu2 %2364 }
 0x52b   : > { %v7679_v8 = vpop.xlane.xlu0 %1900  ;;  %v7681_v42 = vpop.xlane.xlu1 %2028 }
 0x533   : > { %v7683_v21 = vpop.xlane.xlu0 %2031  ;;  %v7685_v62 = vpop.xlane.xlu2 %1903 }
 0x534   : > { %v2237_v22 = vpop.xlane.xlu1 %2236 }
 0x535   : > { %v2459_v23 = vsel %vm11133_vm11, %v2237_v22, %v2365_v4  ;;  %v2117_v22 = vsub.f32 %v7368_v38, %v2085_v26 }
 0x536   : > { %6130 = vrcp.f32 %v2459_v23 }
 0x537   : > { %v2159_v46 = vmul.f32 1.442695, %v2117_v22  ;;  %v2118_v22 = vsub.f32 %v7390_v14, %v2086_v25  ;;  %v2088_v25 = vsel %vm11133_vm11, %v7669_v53, %v7671_v0 }
 0x53b   : > { %v2240_v10 = vpop.xlane.xlu0 %2239 }
 0x53c   : > { %v7696_v54 = vpop.xlane.xlu2 %2034  ;;  %v2368_v29 = vpop.xlane.xlu1 %2367 }
 0x53d   : > { %v2460_v36 = vsel %vm11133_vm11, %v2240_v10, %v2368_v29  ;;  %v6131_v24 = vpop.eup %6130 }
 0x53e   : > { %6132 = vrcp.f32 %v2460_v36  ;;  %v1761_v34 = vpop.f32.mrf.mxu2  ;;  %v2523_v4 = vmul.f32 %v6131_v24, %v7474_v40  ;;  %v2161_v24 = vmul.f32 1.442695, %v2118_v22 }
 0x53f   : > { %6134 = vpow2.f32 %v2155_v20  ;;  %v7704_v47 = vmul.f32 0.17677669, %v1761_v34 }
 0x540   : > { %6136 = vpow2.f32 %v2157_v9  ;;  %v2087_v9 = vsel %vm11133_vm11, %v1889_v28, %v7665_v48  ;;  %v2120_v48 = vsub.f32 %v7421_v11, %v2088_v25 }
 0x541   : > { %v1842_v23 = vsel %vm11133_vm11, %v7704_v47, -inf  ;;  %v1971_v37 = vsel %vm11133_vm11, -inf, %v7704_v47  ;;  %6138 = vpow2.f32 %v2159_v46 }
 0x542   : > { %v1923_v29 = vsel %vm11125_vm13, %v1842_v23, -inf  ;;  %v2051_v1 = vsel %vm11125_vm13, %v1971_v37, -inf  ;;  %6140 = vpow2.f32 %v2161_v24 }
 0x543   : > { %v2371_v10 = vpop.xlane.xlu0 %2370  ;;  %1924 = vmax.xlane.f32.xlu1 %v1923_v29  ;;  %2052 = vmax.xlane.f32.xlu2 %v2051_v1 }
 0x544   : > { %v6133_v20 = vpop.eup %6132  ;;  %v2243_v26 = vpop.xlane.xlu2 %2242 }
 0x545   : > { %v7714_v38 = vpop.xlane.xlu1 %1906  ;;  %v7716_v45 = vpop.eup %6134  ;;  %v2524_v36 = vmul.f32 %v6133_v20, %v7511_v50 }
 0x546   : > { %v1763_v34 = vpop.f32.mrf.mxu2  ;;  %v2211_v37 = vsel %vm11133_vm11, %v7716_v45, 0.0  ;;  %v2339_v40 = vsel %vm11133_vm11, 0.0, %v7716_v45  ;;  %v7746_v46 = vpop.eup %6136 }
 0x547   : > { %v2555_v63 = vpack.c.bf16 %v2524_v36, %v2523_v4  ;;  %v7724_v23 = vmul.f32 0.17677669, %v1763_v34  ;;  %v2259_v14 = vsel %vm11125_vm13, %v2211_v37, 0.0  ;;  %v2387_v1 = vsel %vm11125_vm13, %v2339_v40, 0.0  ;;  %v7752_v4 = vpop.eup %6138 }
 0x548   : > { %v2119_v36 = vsub.f32 %v7408_v52, %v2087_v9  ;;  %v2461_v34 = vsel %vm11133_vm11, %v2243_v26, %v2371_v10  ;;  %v2213_v53 = vsel %vm11133_vm11, %v7752_v4, 0.0  ;;  %v2165_v37 = vmul.f32 1.442695, %v2120_v48 }
 0x549   : > { %5973 = vmatmul.msk.bf16.vlgmr.msra.gmra.mxu0 %vm11125_vm13, %v2555_v63  ;;  %v1843_v50 = vsel %vm11133_vm11, %v7724_v23, -inf  ;;  %v1972_v28 = vsel %vm11133_vm11, -inf, %v7724_v23  ;;  %v2212_v63 = vsel %vm11133_vm11, %v7746_v46, 0.0  ;;  %6142 = vrcp.f32 %v2461_v34 }
 0x54a   : > { %v1926_v18 = vsel %vm11125_vm13, %v1843_v50, -inf  ;;  %v2163_v0 = vmul.f32 1.442695, %v2119_v36  ;;  %v2054_v11 = vsel %vm11125_vm13, %v1972_v28, -inf  ;;  %v2262_v22 = vsel %vm11125_vm13, %v2212_v63, 0.0 }
 0x54b   : > { %v7736_v35 = vpop.xlane.xlu0 %1909  ;;  %2260 = vadd.xlane.f32.xlu1 %v2259_v14  ;;  %1927 = vmax.xlane.f32.xlu0 %v1926_v18  ;;  %v2265_v50 = vsel %vm11125_vm13, %v2213_v53, 0.0  ;;  %v2089_v26 = vsel %vm11133_vm11, %v7667_v13, %v7675_v15  ;;  %v7780_v18 = vpop.eup %6140  ;;  %v2340_v9 = vsel %vm11133_vm11, 0.0, %v7746_v46  ;;  %v2091_v53 = vsel %vm11133_vm11, %v7679_v8, %v7681_v42 }
 0x54c   : > { %v2374_v29 = vpop.xlane.xlu2 %2373  ;;  %2388 = vadd.xlane.f32.xlu2 %v2387_v1  ;;  %v2121_v24 = vsub.f32 %v7445_v51, %v2089_v26  ;;  %v2341_v1 = vsel %vm11133_vm11, 0.0, %v7752_v4  ;;  %v2342_v13 = vsel %vm11133_vm11, 0.0, %v7780_v18  ;;  %v2090_v51 = vsel %vm11133_vm11, %v7677_v44, %v7673_v49 }
 0x54d   : > { %v7744_v20 = vpop.xlane.xlu1 %2037  ;;  %v2393_v25 = vsel %vm11125_vm13, %v2341_v1, 0.0  ;;  %v2396_v63 = vsel %vm11125_vm13, %v2342_v13, 0.0  ;;  %v2214_v8 = vsel %vm11133_vm11, %v7780_v18, 0.0 }
 0x54e   : > { %v2167_v48 = vmul.f32 1.442695, %v2121_v24 }
 0x54f   : > { %v6143_v15 = vpop.eup %6142 }
 0x553   : > { %v7767_v52 = vpop.xlane.xlu0 %2040  ;;  %2055 = vmax.xlane.f32.xlu1 %v2054_v11  ;;  %2263 = vadd.xlane.f32.xlu0 %v2262_v22  ;;  %v2525_v11 = vmul.f32 %v6143_v15, %v7530_v3 }
 0x554   : > { %v7771_v40 = vpop.xlane.xlu2 %1912  ;;  %2266 = vadd.xlane.f32.xlu2 %v2265_v50 }
 0x555   : > { %v2246_v10 = vpop.xlane.xlu1 %2245 }
 0x556   : > { %v2462_v14 = vsel %vm11133_vm11, %v2246_v10, %v2374_v29  ;;  %v2390_v29 = vsel %vm11125_vm13, %v2340_v9, 0.0  ;;  %v2123_v10 = vsub.f32 %v7483_v30, %v2091_v53  ;;  %v2092_v9 = vsel %vm11133_vm11, %v7685_v62, %v7683_v21 }
 0x557   : > { %6144 = vrcp.f32 %v2462_v14  ;;  %v2124_v15 = vsub.f32 %v7496_v12, %v2092_v9 }
 0x558   : > { %6146 = vpow2.f32 %v2163_v0  ;;  %v2171_v30 = vmul.f32 1.442695, %v2123_v10 }
 0x559   : > { %6148 = vpow2.f32 %v2165_v37  ;;  %v2122_v37 = vsub.f32 %v7458_v5, %v2090_v51  ;;  %v2268_v5 = vsel %vm11125_vm13, %v2214_v8, 0.0  ;;  %v2173_v51 = vmul.f32 1.442695, %v2124_v15 }
 0x55a   : > { %6150 = vpow2.f32 %v2167_v48 }
 0x55b   : > { %2391 = vadd.xlane.f32.xlu1 %v2390_v29  ;;  %2394 = vadd.xlane.f32.xlu0 %v2393_v25  ;;  %v2169_v42 = vmul.f32 1.442695, %v2122_v37 }
 0x55c   : > { %v7798_v28 = vpop.xlane.xlu2 %2043  ;;  %2397 = vadd.xlane.f32.xlu2 %v2396_v63  ;;  %v7811_v44 = vpop.xlane.xlu0 %1918 }
 0x55d   : > { %v6145_v36 = vpop.eup %6144  ;;  %v2249_v0 = vpop.xlane.xlu1 %2248  ;;  %6152 = vpow2.f32 %v2169_v42 }
 0x55e   : > { %v7801_v34 = vpop.eup %6146  ;;  %v2526_v22 = vmul.f32 %v6145_v36, %v7547_v59  ;;  %6154 = vpow2.f32 %v2171_v30 }
 0x55f   : > { %v7809_v49 = vpop.eup %6148  ;;  %v2215_v3 = vsel %vm11133_vm11, %v7801_v34, 0.0  ;;  %v2343_v25 = vsel %vm11133_vm11, 0.0, %v7801_v34 }
 0x560   : > { %v2556_v50 = vpack.c.bf16 %v2526_v22, %v2525_v11  ;;  %v2216_v59 = vsel %vm11133_vm11, %v7809_v49, 0.0  ;;  %v2271_v26 = vsel %vm11125_vm13, %v2215_v3, 0.0  ;;  %v7832_v13 = vpop.eup %6150  ;;  %v2344_v36 = vsel %vm11133_vm11, 0.0, %v7809_v49 }
 0x561   : > { %v2274_v24 = vsel %vm11125_vm13, %v2216_v59, 0.0  ;;  %v2345_v62 = vsel %vm11133_vm11, 0.0, %v7832_v13  ;;  %v2399_v48 = vsel %vm11125_vm13, %v2343_v25, 0.0  ;;  %v2402_v12 = vsel %vm11125_vm13, %v2344_v36, 0.0  ;;  %v1766_v25 = vpop.f32.mrf.mxu2 }
 0x562   : > { %5974 = vmatmul.msk.bf16.gmra.mxu0 %vm11125_vm13, %v2556_v50  ;;  %v2405_v53 = vsel %vm11125_vm13, %v2345_v62, 0.0  ;;  %v2217_v8 = vsel %vm11133_vm11, %v7832_v13, 0.0 }
 0x563   : > { %2269 = vadd.xlane.f32.xlu1 %v2268_v5  ;;  %2272 = vadd.xlane.f32.xlu0 %v2271_v26  ;;  %v7849_v11 = vpop.eup %6152  ;;  %v2277_v42 = vsel %vm11125_vm13, %v2217_v8, 0.0 }
 0x564   : > { %v2252_v14 = vpop.xlane.xlu2 %2251  ;;  %2275 = vadd.xlane.f32.xlu2 %v2274_v24  ;;  %v2255_v29 = vpop.xlane.xlu0 %2254 }
 0x565   : > { %v2377_v1 = vpop.xlane.xlu1 %2376  ;;  %v7859_v50 = vpop.eup %6154 }
 0x566   : > { %v2463_v21 = vsel %vm11133_vm11, %v2249_v0, %v2377_v1  ;;  %v2093_v0 = vsel %vm11133_vm11, %v7714_v38, %v7696_v54  ;;  %v2218_v54 = vsel %vm11133_vm11, %v7849_v11, 0.0  ;;  %v2219_v38 = vsel %vm11133_vm11, %v7859_v50, 0.0 }
 0x567   : > { %6156 = vrcp.f32 %v2463_v21  ;;  %v2125_v10 = vsub.f32 %v7519_v17, %v2093_v0  ;;  %v2280_v5 = vsel %vm11125_vm13, %v2218_v54, 0.0  ;;  %v2346_v21 = vsel %vm11133_vm11, 0.0, %v7849_v11 }
 0x568   : > { %v2347_v62 = vsel %vm11133_vm11, 0.0, %v7859_v50 }
 0x569   : > { %v2175_v26 = vmul.f32 1.442695, %v2125_v10  ;;  %v1768_v54 = vpop.f32.mrf.mxu2 }
 0x56b   : > { %2400 = vadd.xlane.f32.xlu1 %v2399_v48  ;;  %2403 = vadd.xlane.f32.xlu0 %v2402_v12  ;;  %v2411_v48 = vsel %vm11125_vm13, %v2347_v62, 0.0  ;;  %v7923_v62 = vmul.f32 0.17677669, %v1766_v25 }
 0x56c   : > { %v2380_v63 = vpop.xlane.xlu2 %2379  ;;  %2406 = vadd.xlane.f32.xlu2 %v2405_v53  ;;  %v7871_v59 = vpop.xlane.xlu0 %2049 }
 0x56d   : > { %v2464_v22 = vsel %vm11133_vm11, %v2252_v14, %v2380_v63  ;;  %v7857_v37 = vpop.xlane.xlu1 %1915  ;;  %v6157_v3 = vpop.eup %6156  ;;  %v2283_v14 = vsel %vm11125_vm13, %v2219_v38, 0.0 }
 0x56e   : > { %6158 = vrcp.f32 %v2464_v22  ;;  %v2527_v9 = vmul.f32 %v6157_v3, %v7587_v60 }
 0x56f   : > { %6160 = vpow2.f32 %v2173_v51 }
 0x570   : > { %6162 = vpow2.f32 %v2175_v26 }
 0x573   : > { %2278 = vadd.xlane.f32.xlu1 %v2277_v42  ;;  %2281 = vadd.xlane.f32.xlu0 %v2280_v5  ;;  %v7910_v5 = vmul.f32 0.17677669, %v1768_v54 }
 0x574   : > { %v6159_v17 = vpop.eup %6158  ;;  %v7875_v30 = vpop.xlane.xlu2 %1921  ;;  %2284 = vadd.xlane.f32.xlu2 %v2283_v14 }
 0x575   : > { %v7878_v24 = vpop.xlane.xlu1 %2046  ;;  %v2528_v1 = vmul.f32 %v6159_v17, %v7604_v6  ;;  %v7882_v15 = vpop.eup %6160  ;;  %v2408_v6 = vsel %vm11125_vm13, %v2346_v21, 0.0  ;;  %v1974_v25 = vsel %vm11133_vm11, -inf, %v7910_v5 }
 0x576   : > { %v2348_v60 = vsel %vm11133_vm11, 0.0, %v7882_v15  ;;  %v2386_v12 = vpop.xlane.xlu0 %2385  ;;  %v7899_v22 = vpop.eup %6162  ;;  %v2220_v8 = vsel %vm11133_vm11, %v7882_v15, 0.0 }
 0x577   : > { %v2557_v36 = vpack.c.bf16 %v2528_v1, %v2527_v9  ;;  %v2414_v63 = vsel %vm11125_vm13, %v2348_v60, 0.0  ;;  %v2221_v38 = vsel %vm11133_vm11, %v7899_v22, 0.0  ;;  %v2286_v3 = vsel %vm11125_vm13, %v2220_v8, 0.0 }
 0x578   : > { %v2289_v17 = vsel %vm11125_vm13, %v2221_v38, 0.0  ;;  %v1845_v1 = vsel %vm11133_vm11, %v7910_v5, -inf  ;;  %v1973_v60 = vsel %vm11133_vm11, -inf, %v7923_v62 }
 0x579   : > { %5975 = vmatmul.msk.bf16.gmra.mxu0 %vm11125_vm13, %v2557_v36  ;;  %v2349_v36 = vsel %vm11133_vm11, 0.0, %v7899_v22  ;;  %v1932_v21 = vsel %vm11125_vm13, %v1845_v1, -inf }
 0x57b   : > { %2409 = vadd.xlane.f32.xlu1 %v2408_v6  ;;  %2412 = vadd.xlane.f32.xlu0 %v2411_v48  ;;  %v2057_v6 = vsel %vm11125_vm13, %v1973_v60, -inf }
 0x57c   : > { %v2258_v51 = vpop.xlane.xlu2 %2257  ;;  %2415 = vadd.xlane.f32.xlu2 %v2414_v63 }
 0x57d   : > { %v2466_v53 = vsel %vm11133_vm11, %v2258_v51, %v2386_v12  ;;  %v2383_v0 = vpop.xlane.xlu1 %2382  ;;  %v2060_v12 = vsel %vm11125_vm13, %v1974_v25, -inf  ;;  %v2094_v51 = vsel %vm11133_vm11, %v7736_v35, %v7744_v20 }
 0x57e   : > { %6164 = vrcp.f32 %v2466_v53  ;;  %v2465_v10 = vsel %vm11133_vm11, %v2255_v29, %v2383_v0  ;;  %v2126_v63 = vsub.f32 %v7543_v57, %v2094_v51  ;;  %v2095_v57 = vsel %vm11133_vm11, %v7771_v40, %v7767_v52 }
 0x57f   : > { %6166 = vrcp.f32 %v2465_v10  ;;  %v2127_v54 = vsub.f32 %v7564_v39, %v2095_v57  ;;  %v1844_v52 = vsel %vm11133_vm11, %v7923_v62, -inf }
 0x580   : > { %v2177_v0 = vmul.f32 1.442695, %v2126_v63 }
 0x581   : > { %v2179_v38 = vmul.f32 1.442695, %v2127_v54 }
 0x582   : > { %6168 = vpow2.f32 %v2177_v0 }
 0x583   : > { %2287 = vadd.xlane.f32.xlu1 %v2286_v3  ;;  %6170 = vpow2.f32 %v2179_v38 }
 0x584   : > { %v6165_v42 = vpop.eup %6164  ;;  %2290 = vadd.xlane.f32.xlu2 %v2289_v17 }
 0x585   : > { %v6167_v26 = vpop.eup %6166  ;;  %v2530_v29 = vmul.f32 %v6165_v42, %v7641_v33  ;;  %v2417_v33 = vsel %vm11125_vm13, %v2349_v36, 0.0  ;;  %v2096_v42 = vsel %vm11133_vm11, %v7857_v37, %v7798_v28  ;;  %v2097_v28 = vsel %vm11133_vm11, %v7811_v44, %v7878_v24 }
 0x586   : > { %v2529_v14 = vmul.f32 %v6167_v26, %v7609_v41  ;;  %v1771_v41 = vpop.f32.mrf.mxu2  ;;  %v2128_v39 = vsub.f32 %v7585_v61, %v2096_v42  ;;  %v2129_v1 = vsub.f32 %v7589_v43, %v2097_v28  ;;  %v2098_v43 = vsel %vm11133_vm11, %v7875_v30, %v7871_v59 }
 0x588   : > { %v2558_v9 = vpack.c.bf16 %v2530_v29, %v2529_v14  ;;  %v7957_v8 = vpop.eup %6168  ;;  %v1929_v29 = vsel %vm11125_vm13, %v1844_v52, -inf  ;;  %v7976_v14 = vmul.f32 0.17677669, %v1771_v41  ;;  %v2181_v37 = vmul.f32 1.442695, %v2128_v39 }
 0x589   : > { %v2350_v26 = vsel %vm11133_vm11, 0.0, %v7957_v8  ;;  %v7983_v61 = vpop.eup %6170  ;;  %v2183_v24 = vmul.f32 1.442695, %v2129_v1 }
 0x58a   : > { %5976 = vmatmul.msk.bf16.gmra.mxu0 %vm11125_vm13, %v2558_v9  ;;  %v2420_v9 = vsel %vm11125_vm13, %v2350_v26, 0.0  ;;  %v1846_v36 = vsel %vm11133_vm11, %v7976_v14, -inf  ;;  %6172 = vpow2.f32 %v2181_v37  ;;  %v2351_v44 = vsel %vm11133_vm11, 0.0, %v7983_v61 }
 0x58b   : > { %1933 = vmax.xlane.f32.xlu1 %v1932_v21  ;;  %v1935_v60 = vsel %vm11125_vm13, %v1846_v36, -inf  ;;  %6174 = vpow2.f32 %v2183_v24 }
 0x58c   : > { %2418 = vadd.xlane.f32.xlu2 %v2417_v33 }
 0x58e   : > { %v1773_v48 = vpop.f32.mrf.mxu2 }
 0x58f   : > { %2733 = vrot.lane.b32.xlu0 %v6317_v7, %s6258_s14  ;;  %v7940_v7 = vmul.f32 0.17677669, %v1773_v48  ;;  %v2130_v48 = vsub.f32 %v7626_v16, %v2098_v43  ;;  %v2223_v16 = vsel %vm11133_vm11, %v7983_v61, 0.0 }
 0x590   : > { %v7998_v25 = vpop.eup %6172  ;;  %v2295_v54 = vsel %vm11125_vm13, %v2223_v16, 0.0 }
 0x591   : > { %v1847_v53 = vsel %vm11133_vm11, %v7940_v7, -inf  ;;  %v1976_v35 = vsel %vm11133_vm11, -inf, %v7940_v7  ;;  %v2224_v59 = vsel %vm11133_vm11, %v7998_v25, 0.0  ;;  %v2185_v30 = vmul.f32 1.442695, %v2130_v48 }
 0x592   : > { %v1938_v10 = vsel %vm11125_vm13, %v1847_v53, -inf  ;;  %v2066_v20 = vsel %vm11125_vm13, %v1976_v35, -inf  ;;  %v8011_v35 = vpop.eup %6174  ;;  %v2352_v39 = vsel %vm11133_vm11, 0.0, %v7998_v25 }
 0x593   : > { %2058 = vmax.xlane.f32.xlu1 %v2057_v6  ;;  %v2423_v6 = vsel %vm11125_vm13, %v2351_v44, 0.0  ;;  %6176 = vpow2.f32 %v2185_v30  ;;  %v2225_v38 = vsel %vm11133_vm11, %v8011_v35, 0.0  ;;  %v2426_v36 = vsel %vm11125_vm13, %v2352_v39, 0.0 }
 0x596   : > { %v1776_v51 = vpop.f32.mrf.mxu2 }
 0x599   : > { %v8033_v1 = vpop.eup %6176 }
 0x59b   : > { %2061 = vmax.xlane.f32.xlu1 %v2060_v12  ;;  %v1975_v12 = vsel %vm11133_vm11, -inf, %v7976_v14 }
 0x59e   : > { %v1778_v26 = vpop.f32.mrf.mxu2 }
 0x5a3   : > { %1939 = vmax.xlane.f32.xlu1 %v1938_v10  ;;  %v2063_v10 = vsel %vm11125_vm13, %v1975_v12, -inf }
 0x5a4   : > { %2731 = vrot.lane.b32.xlu2 %v6348_v19, %s6258_s14  ;;  %v2222_v19 = vsel %vm11133_vm11, %v7957_v8, 0.0 }
 0x5a5   : > { %v2292_v3 = vsel %vm11125_vm13, %v2222_v19, 0.0  ;;  %v8017_v19 = vmul.f32 0.17677669, %v1776_v51 }
 0x5ab   : > { %2067 = vmax.xlane.f32.xlu1 %v2066_v20  ;;  %v2298_v20 = vsel %vm11125_vm13, %v2224_v59, 0.0 }
 0x5b3   : > { %2293 = vadd.xlane.f32.xlu1 %v2292_v3 }
 0x5b6   : > { %v2053_v40 = vpop.xlane.xlu2 %2052  ;;  %v1925_v17 = vpop.xlane.xlu1 %1924 }
 0x5b9   : > { %1930 = vmax.xlane.f32.xlu0 %v1929_v29  ;;  %v2301_v29 = vsel %vm11125_vm13, %v2225_v38, 0.0  ;;  %v2353_v38 = vsel %vm11133_vm11, 0.0, %v8011_v35 }
 0x5bb   : > { %2421 = vadd.xlane.f32.xlu1 %v2420_v9  ;;  %v1848_v9 = vsel %vm11133_vm11, %v8017_v19, -inf }
 0x5be   : > { %v1928_v21 = vpop.xlane.xlu0 %1927  ;;  %v2261_v33 = vpop.xlane.xlu1 %2260 }
 0x5bf   : > { %v2389_v41 = vpop.xlane.xlu2 %2388 }
 0x5c0   : > { %v2467_v57 = vsel %vm11133_vm11, %v2261_v33, %v2389_v41  ;;  %v8036_v33 = vmul.f32 0.17677669, %v1778_v26  ;;  %v2099_v41 = vsel %vm11133_vm11, %v1925_v17, %v2053_v40 }
 0x5c1   : > { %1936 = vmax.xlane.f32.xlu0 %v1935_v60  ;;  %6178 = vrcp.f32 %v2467_v57  ;;  %v2354_v60 = vsel %vm11133_vm11, 0.0, %v8033_v1  ;;  %v2131_v43 = vsub.f32 %v7704_v47, %v2099_v41 }
 0x5c2   : > { %v1849_v40 = vsel %vm11133_vm11, %v8036_v33, -inf }
 0x5c3   : > { %2424 = vadd.xlane.f32.xlu1 %v2423_v6  ;;  %v2187_v47 = vmul.f32 1.442695, %v2131_v43  ;;  %v1944_v30 = vsel %vm11125_vm13, %v1849_v40, -inf }
 0x5c6   : > { %v2056_v63 = vpop.xlane.xlu1 %2055  ;;  %v2264_v53 = vpop.xlane.xlu0 %2263 }
 0x5c7   : > { %v2267_v0 = vpop.xlane.xlu2 %2266  ;;  %v2100_v28 = vsel %vm11133_vm11, %v1928_v21, %v2056_v63  ;;  %v1941_v21 = vsel %vm11125_vm13, %v1848_v9, -inf  ;;  %v6179_v24 = vpop.eup %6178 }
 0x5c8   : > { %v2132_v44 = vsub.f32 %v7724_v23, %v2100_v28  ;;  %v2432_v23 = vsel %vm11125_vm13, %v2354_v60, 0.0  ;;  %v2531_v51 = vmul.f32 %v6179_v24, %v7716_v45 }
 0x5c9   : > { %2064 = vmax.xlane.f32.xlu0 %v2063_v10 }
 0x5ca   : > { %v2189_v17 = vmul.f32 1.442695, %v2132_v44 }
 0x5cb   : > { %2299 = vadd.xlane.f32.xlu1 %v2298_v20  ;;  %v1977_v20 = vsel %vm11133_vm11, -inf, %v8017_v19 }
 0x5cd   : > { %2296 = vadd.xlane.f32.xlu2 %v2295_v54 }
 0x5ce   : > { %v2392_v3 = vpop.xlane.xlu1 %2391  ;;  %v2395_v37 = vpop.xlane.xlu0 %2394 }
 0x5cf   : > { %v2398_v42 = vpop.xlane.xlu2 %2397  ;;  %v2468_v52 = vsel %vm11133_vm11, %v2264_v53, %v2392_v3  ;;  %v2226_v53 = vsel %vm11133_vm11, %v8033_v1, 0.0  ;;  %v2469_v45 = vsel %vm11133_vm11, %v2267_v0, %v2395_v37  ;;  %v2069_v0 = vsel %vm11125_vm13, %v1977_v20, -inf }
 0x5d0   : > { %6180 = vrcp.f32 %v2468_v52  ;;  %v1978_v3 = vsel %vm11133_vm11, -inf, %v8036_v33  ;;  %v2429_v52 = vsel %vm11125_vm13, %v2353_v38, 0.0 }
 0x5d1   : > { %2302 = vadd.xlane.f32.xlu0 %v2301_v29  ;;  %6182 = vpow2.f32 %v2189_v17  ;;  %v2072_v29 = vsel %vm11125_vm13, %v1978_v3, -inf }
 0x5d3   : > { %2427 = vadd.xlane.f32.xlu1 %v2426_v36 }
 0x5d5   : > { %1942 = vmax.xlane.f32.xlu2 %v1941_v21 }
 0x5d6   : > { %v2270_v6 = vpop.xlane.xlu1 %2269  ;;  %v6181_v48 = vpop.eup %6180 }
 0x5d7   : > { %v2276_v12 = vpop.xlane.xlu2 %2275  ;;  %v2532_v63 = vmul.f32 %v6181_v48, %v7746_v46  ;;  %v2470_v59 = vsel %vm11133_vm11, %v2270_v6, %v2398_v42  ;;  %v2273_v16 = vpop.xlane.xlu0 %2272  ;;  %v2304_v46 = vsel %vm11125_vm13, %v2226_v53, 0.0 }
 0x5d8   : > { %6184 = vrcp.f32 %v2470_v59  ;;  %v8072_v42 = vpop.eup %6182  ;;  %v2635_v59 = vpop.f32.mrf.mxu0 }
 0x5d9   : > { %2433 = vadd.xlane.f32.xlu0 %v2432_v23  ;;  %v2559_v10 = vpack.c.bf16 %v2532_v63, %v2531_v51  ;;  %6186 = vpow2.f32 %v2187_v47  ;;  %v2228_v9 = vsel %vm11133_vm11, %v8072_v42, 0.0  ;;  %v2356_v51 = vsel %vm11133_vm11, 0.0, %v8072_v42 }
 0x5da   : > { %6188 = vrcp.f32 %v2469_v45  ;;  %v2310_v24 = vsel %vm11125_vm13, %v2228_v9, 0.0  ;;  %v2438_v53 = vsel %vm11125_vm13, %v2356_v51, 0.0 }
 0x5db   : > { %1945 = vmax.xlane.f32.xlu1 %v1944_v30  ;;  %5977 = vmatmul.msk.bf16.gmra.mxu0 %vm11125_vm13, %v2559_v10 }
 0x5dd   : > { %2305 = vadd.xlane.f32.xlu2 %v2304_v46 }
 0x5de   : > { %v2401_v57 = vpop.xlane.xlu1 %2400  ;;  %v6185_v39 = vpop.eup %6184 }
 0x5df   : > { %v2407_v54 = vpop.xlane.xlu2 %2406  ;;  %v8075_v26 = vpop.eup %6186  ;;  %v2534_v41 = vmul.f32 %v6185_v39, %v7780_v18  ;;  %v2471_v18 = vsel %vm11133_vm11, %v2273_v16, %v2401_v57 }
 0x5e0   : > { %v6189_v28 = vpop.eup %6188  ;;  %v2404_v37 = vpop.xlane.xlu0 %2403  ;;  %v2227_v21 = vsel %vm11133_vm11, %v8075_v26, 0.0  ;;  %v2355_v6 = vsel %vm11133_vm11, 0.0, %v8075_v26 }
 0x5e1   : > { %2070 = vmax.xlane.f32.xlu0 %v2069_v0  ;;  %v2533_v60 = vmul.f32 %v6189_v28, %v7752_v4  ;;  %v2472_v43 = vsel %vm11133_vm11, %v2276_v12, %v2404_v37  ;;  %v2307_v48 = vsel %vm11125_vm13, %v2227_v21, 0.0  ;;  %v2435_v4 = vsel %vm11125_vm13, %v2355_v6, 0.0  ;;  %v2637_v0 = vpop.f32.mrf.mxu0 }
 0x5e2   : > { %6190 = vrcp.f32 %v2472_v43 }
 0x5e3   : > { %2430 = vadd.xlane.f32.xlu1 %v2429_v52  ;;  %v2560_v40 = vpack.c.bf16 %v2534_v41, %v2533_v60  ;;  %6192 = vrcp.f32 %v2471_v18 }
 0x5e5   : > { %2073 = vmax.xlane.f32.xlu2 %v2072_v29 }
 0x5e6   : > { %v2279_v36 = vpop.xlane.xlu1 %2278 }
 0x5e7   : > { %v2285_v44 = vpop.xlane.xlu2 %2284  ;;  %v2473_v38 = vsel %vm11133_vm11, %v2279_v36, %v2407_v54  ;;  %v2715_v54 = vpack.c.bf16 %v2637_v0, %v2635_v59 }
 0x5e8   : > { %v2282_v17 = vpop.xlane.xlu0 %2281  ;;  %v6191_v63 = vpop.eup %6190 }
 0x5e9   : > { %2311 = vadd.xlane.f32.xlu0 %v2310_v24  ;;  %v6193_v47 = vpop.eup %6192  ;;  %v2536_v16 = vmul.f32 %v6191_v63, %v7809_v49  ;;  %v2640_v29 = vpop.f32.mrf.mxu0 }
 0x5ea   : > { %v2535_v10 = vmul.f32 %v6193_v47, %v7801_v34 }
 0x5eb   : > { %2308 = vadd.xlane.f32.xlu1 %v2307_v48  ;;  %5978 = vmatmul.msk.bf16.gmra.mxu0 %vm11125_vm13, %v2560_v40 }
 0x5ec   : > { %v2561_v57 = vpack.c.bf16 %v2536_v16, %v2535_v10 }
 0x5ed   : > { %2436 = vadd.xlane.f32.xlu2 %v2435_v4 }
 0x5ee   : > { %v2410_v12 = vpop.xlane.xlu1 %2409 }
 0x5ef   : > { %v2416_v23 = vpop.xlane.xlu2 %2415  ;;  %v2474_v20 = vsel %vm11133_vm11, %v2282_v17, %v2410_v12 }
 0x5f0   : > { %v2413_v46 = vpop.xlane.xlu0 %2412  ;;  %6194 = vrcp.f32 %v2474_v20 }
 0x5f1   : > { %6196 = vrcp.f32 %v2473_v38  ;;  %v2475_v24 = vsel %vm11133_vm11, %v2285_v44, %v2413_v46  ;;  %v2642_v43 = vpop.f32.mrf.mxu0 }
 0x5f2   : > { %v2716_v17 = vpack.c.bf16 %v2642_v43, %v2640_v29 }
 0x5f3   : > { %2439 = vadd.xlane.f32.xlu1 %v2438_v53 }
 0x5f6   : > { %v2288_v30 = vpop.xlane.xlu1 %2287  ;;  %v6195_v34 = vpop.eup %6194 }
 0x5f7   : > { %v2291_v45 = vpop.xlane.xlu2 %2290  ;;  %v6197_v49 = vpop.eup %6196  ;;  %v2538_v37 = vmul.f32 %v6195_v34, %v7849_v11  ;;  %v2476_v36 = vsel %vm11133_vm11, %v2288_v30, %v2416_v23 }
 0x5f8   : > { %v2537_v41 = vmul.f32 %v6197_v49, %v7832_v13  ;;  %6198 = vrcp.f32 %v2476_v36 }
 0x5f9   : > { %6200 = vrcp.f32 %v2475_v24  ;;  %v2645_v12 = vpop.f32.mrf.mxu0 }
 0x5fa   : > { %v2562_v21 = vpack.c.bf16 %v2538_v37, %v2537_v41 }
 0x5fb   : > { %5979 = vmatmul.msk.bf16.gmra.mxu0 %vm11125_vm13, %v2561_v57 }
 0x5fe   : > { %v1934_v3 = vpop.xlane.xlu1 %1933  ;;  %v6199_v18 = vpop.eup %6198 }
 0x5ff   : > { %v2419_v52 = vpop.xlane.xlu2 %2418  ;;  %v6201_v48 = vpop.eup %6200  ;;  %v2540_v40 = vmul.f32 %v6199_v18, %v7882_v15 }
 0x600   : > { %v2539_v44 = vmul.f32 %v6201_v48, %v7859_v50  ;;  %v2477_v59 = vsel %vm11133_vm11, %v2291_v45, %v2419_v52 }
 0x601   : > { %v2734_v39 = vpop.permute.xlu0 %2733  ;;  %v2647_v53 = vpop.f32.mrf.mxu0 }
 0x602   : > { %2791 = vmatpush.bf16.msrb.mxu3 %v2734_v39  ;;  %v2563_v51 = vpack.c.bf16 %v2540_v40, %v2539_v44  ;;  %v2717_v50 = vpack.c.bf16 %v2647_v53, %v2645_v12 }
 0x606   : > { %v2059_v28 = vpop.xlane.xlu1 %2058 }
 0x607   : > { %v2732_v9 = vpop.permute.xlu2 %2731 }
 0x608   : > { %2792 = vmatpush.bf16.msrb.mxu3 %v2732_v9 }
 0x609   : > { %v2650_v10 = vpop.f32.mrf.mxu0 }
 0x60b   : > { %5989 = vmatmul.msk.bf16.vlgmr.msrb.gmra.mxu3 %vm11126_vm1, %v2715_v54  ;;  %5980 = vmatmul.msk.bf16.gmra.mxu0 %vm11125_vm13, %v2562_v21 }
 0x60e   : > { %v2062_v60 = vpop.xlane.xlu1 %2061 }
 0x60f   : > { %v2102_v11 = vsel %vm11133_vm11, %v1934_v3, %v2062_v60 }
 0x610   : > { %v2134_v13 = vsub.f32 %v7910_v5, %v2102_v11 }
 0x611   : > { %v2652_v49 = vpop.f32.mrf.mxu0 }
 0x612   : > { %v2193_v6 = vmul.f32 1.442695, %v2134_v13 }
 0x614   : > { %6202 = vpow2.f32 %v2193_v6 }
 0x615   : > { %6204 = vrcp.f32 %v2477_v59 }
 0x616   : > { %v1940_v4 = vpop.xlane.xlu1 %1939 }
 0x61a   : > { %v8121_v23 = vpop.eup %6202 }
 0x61b   : > { %5990 = vmatmul.msk.bf16.gmra.mxu3 %vm11126_vm1, %v2716_v17  ;;  %v2230_v5 = vsel %vm11133_vm11, %v8121_v23, 0.0  ;;  %5981 = vmatmul.msk.bf16.gmra.mxu0 %vm11125_vm13, %v2563_v51  ;;  %v6205_v52 = vpop.eup %6204  ;;  %v2358_v18 = vsel %vm11133_vm11, 0.0, %v8121_v23 }
 0x61c   : > { %v2316_v63 = vsel %vm11125_vm13, %v2230_v5, 0.0 }
 0x61d   : > { %2317 = vadd.xlane.f32.xlu2 %v2316_v63 }
 0x61e   : > { %v2068_v15 = vpop.xlane.xlu1 %2067 }
 0x61f   : > { %v2104_v30 = vsel %vm11133_vm11, %v1940_v4, %v2068_v15  ;;  %v2444_v4 = vsel %vm11125_vm13, %v2358_v18, 0.0 }
 0x620   : > { %v2136_v20 = vsub.f32 %v7940_v7, %v2104_v30 }
 0x622   : > { %v2197_v3 = vmul.f32 1.442695, %v2136_v20 }
 0x626   : > { %v2294_v47 = vpop.xlane.xlu1 %2293 }
 0x62b   : > { %5991 = vmatmul.msk.bf16.gmra.mxu3 %vm11126_vm1, %v2717_v50 }
 0x62c   : > { %v1931_v16 = vpop.xlane.xlu0 %1930 }
 0x62d   : > { %v2101_v46 = vsel %vm11133_vm11, %v1931_v16, %v2059_v28  ;;  %v2541_v28 = vmul.f32 %v6205_v52, %v7899_v22 }
 0x62e   : > { %v2133_v57 = vsub.f32 %v7923_v62, %v2101_v46  ;;  %v2422_v38 = vpop.xlane.xlu1 %2421  ;;  %v2718_v62 = vpack.c.bf16 %v2652_v49, %v2650_v10 }
 0x62f   : > { %v2478_v0 = vsel %vm11133_vm11, %v2294_v47, %v2422_v38 }
 0x630   : > { %v2191_v45 = vmul.f32 1.442695, %v2133_v57  ;;  %6206 = vrcp.f32 %v2478_v0 }
 0x632   : > { %6208 = vpow2.f32 %v2191_v45 }
 0x633   : > { %6210 = vpow2.f32 %v2197_v3 }
 0x634   : > { %v1937_v39 = vpop.xlane.xlu0 %1936 }
 0x636   : > { %v6207_v34 = vpop.eup %6206  ;;  %v2425_v29 = vpop.xlane.xlu1 %2424 }
 0x637   : > { %v2542_v7 = vmul.f32 %v6207_v34, %v7957_v8 }
 0x638   : > { %v8142_v37 = vpop.eup %6208 }
 0x639   : > { %v2357_v9 = vsel %vm11133_vm11, 0.0, %v8142_v37  ;;  %v2229_v41 = vsel %vm11133_vm11, %v8142_v37, 0.0  ;;  %v2564_v54 = vpack.c.bf16 %v2542_v7, %v2541_v28  ;;  %v8153_v22 = vpop.eup %6210 }
 0x63a   : > { %v2441_v36 = vsel %vm11125_vm13, %v2357_v9, 0.0  ;;  %v2313_v21 = vsel %vm11125_vm13, %v2229_v41, 0.0  ;;  %v2232_v43 = vsel %vm11133_vm11, %v8153_v22, 0.0  ;;  %v2360_v46 = vsel %vm11133_vm11, 0.0, %v8153_v22 }
 0x63b   : > { %5992 = vmatmul.msk.bf16.gmra.mxu3 %vm11126_vm1, %v2718_v62  ;;  %2442 = vadd.xlane.f32.xlu1 %v2441_v36  ;;  %v2322_v48 = vsel %vm11125_vm13, %v2232_v43, 0.0  ;;  %v2450_v38 = vsel %vm11125_vm13, %v2360_v46, 0.0 }
 0x63c   : > { %2314 = vadd.xlane.f32.xlu0 %v2313_v21  ;;  %5982 = vmatmul.msk.bf16.gmra.mxu0 %vm11125_vm13, %v2564_v54  ;;  %v2065_v8 = vpop.xlane.xlu0 %2064 }
 0x63d   : > { %v2103_v24 = vsel %vm11133_vm11, %v1937_v39, %v2065_v8 }
 0x63e   : > { %v2135_v60 = vsub.f32 %v7976_v14, %v2103_v24  ;;  %v2300_v11 = vpop.xlane.xlu1 %2299 }
 0x640   : > { %v2195_v13 = vmul.f32 1.442695, %v2135_v60  ;;  %v2297_v6 = vpop.xlane.xlu2 %2296 }
 0x641   : > { %v2479_v40 = vsel %vm11133_vm11, %v2297_v6, %v2425_v29 }
 0x642   : > { %6212 = vpow2.f32 %v2195_v13 }
 0x643   : > { %2323 = vadd.xlane.f32.xlu1 %v2322_v48  ;;  %6214 = vrcp.f32 %v2479_v40 }
 0x644   : > { %2445 = vadd.xlane.f32.xlu0 %v2444_v4  ;;  %v2303_v14 = vpop.xlane.xlu0 %2302 }
 0x646   : > { %v2428_v44 = vpop.xlane.xlu1 %2427 }
 0x647   : > { %v2480_v12 = vsel %vm11133_vm11, %v2300_v11, %v2428_v44 }
 0x648   : > { %v8171_v17 = vpop.eup %6212  ;;  %6216 = vrcp.f32 %v2480_v12  ;;  %v1943_v51 = vpop.xlane.xlu2 %1942 }
 0x649   : > { %v2359_v5 = vsel %vm11133_vm11, 0.0, %v8171_v17  ;;  %v2231_v63 = vsel %vm11133_vm11, %v8171_v17, 0.0  ;;  %v6215_v47 = vpop.eup %6214 }
 0x64a   : > { %v2447_v15 = vsel %vm11125_vm13, %v2359_v5, 0.0  ;;  %v2319_v53 = vsel %vm11125_vm13, %v2231_v63, 0.0  ;;  %v2543_v10 = vmul.f32 %v6215_v47, %v7983_v61 }
 0x64b   : > { %2320 = vadd.xlane.f32.xlu2 %v2319_v53 }
 0x64c   : > { %2448 = vadd.xlane.f32.xlu0 %v2447_v15  ;;  %v2434_v50 = vpop.xlane.xlu0 %2433 }
 0x64e   : > { %v6217_v59 = vpop.eup %6216  ;;  %v1946_v30 = vpop.xlane.xlu1 %1945 }
 0x64f   : > { %v2544_v16 = vmul.f32 %v6217_v59, %v7998_v25 }
 0x650   : > { %v2306_v20 = vpop.xlane.xlu2 %2305 }
 0x651   : > { %v2565_v57 = vpack.c.bf16 %v2544_v16, %v2543_v10  ;;  %v2482_v0 = vsel %vm11133_vm11, %v2306_v20, %v2434_v50  ;;  %v11376_v16 = vlaneseq }
 0x652   : > { %6218 = vrcp.f32 %v2482_v0 }
 0x653   : > { %2451 = vadd.xlane.f32.xlu2 %v2450_v38  ;;  %5983 = vmatmul.msk.bf16.gmra.mxu0 %vm11125_vm13, %v2565_v57  ;;  %v8231_v46 = vshrl.u32 %v11376_v16, 7 }
 0x654   : > { %v2071_v45 = vpop.xlane.xlu0 %2070 }
 0x655   : > { %v2105_v61 = vsel %vm11133_vm11, %v1943_v51, %v2071_v45  ;;  %v8235_v20 = vadd.s32 32, %v8231_v46  ;;  %v8244_v0 = vadd.s32 240, %v8231_v46  ;;  %vm11139_vm3 = vcmp.lt.s32.totalorder %v8231_v46, 7 }
 0x656   : > { %v2137_v25 = vsub.f32 %v8017_v19, %v2105_v61  ;;  %v2431_v3 = vpop.xlane.xlu1 %2430  ;;  %v8253_v61 = vadd.s32 16, %v8231_v46  ;;  %vm11134_vm7 = vcmp.lt.s32.totalorder %v8231_v46, 1 }
 0x657   : > { %v2481_v52 = vsel %vm11133_vm11, %v2303_v14, %v2431_v3  ;;  %11379 = vst [vmem:[#allocation28_spill] sm:$0xff] %v8244_v0  ;;  %v8262_v3 = vld [vmem:[%s11096_s4 + $0xb] ss:$0 sm:$0xff] }
 0x658   : > { %v2199_v39 = vmul.f32 1.442695, %v2137_v25  ;;  %6220 = vrcp.f32 %v2481_v52  ;;  %v2074_v34 = vpop.xlane.xlu2 %2073  ;;  %v2655_v29 = vpop.f32.mrf.mxu0 }
 0x659   : > { %v2106_v49 = vsel %vm11133_vm11, %v1946_v30, %v2074_v34  ;;  %v6219_v7 = vpop.eup %6218  ;;  %v8267_v34 = vadd.s32 248, %v8231_v46 }
 0x65a   : > { %6222 = vpow2.f32 %v2199_v39  ;;  %v2138_v28 = vsub.f32 %v8036_v33, %v2106_v49  ;;  %v2546_v19 = vmul.f32 %v6219_v7, %v8033_v1  ;;  %v11129_v39 = vshra.s32 %v8244_v0, 4 }
 0x65b   : > { %11382 = vst [vmem:[#allocation29_spill] sm:$0xff] %v8267_v34  ;;  %v8270_v49 = vadd.s32 24, %v8231_v46 }
 0x65c   : > { %v2201_v62 = vmul.f32 1.442695, %v2138_v28  ;;  %v2312_v18 = vpop.xlane.xlu0 %2311  ;;  %vm8278_vm14 = vcmp.lt.s32.totalorder %v11129_v39, 15 }
 0x65e   : > { %v6221_v9 = vpop.eup %6220  ;;  %6224 = vpow2.f32 %v2201_v62  ;;  %v2309_v41 = vpop.xlane.xlu1 %2308 }
 0x65f   : > { %v2545_v54 = vmul.f32 %v6221_v9, %v8011_v35  ;;  %v11384_v9 = vmov 0 }
 0x660   : > { %v8200_v36 = vpop.eup %6222  ;;  %v2437_v21 = vpop.xlane.xlu2 %2436  ;;  %v11385_v9 = vsel %vm8278_vm14, 4294967295, %v11384_v9 }
 0x661   : > { %v2657_v8 = vpop.f32.mrf.mxu0  ;;  %v2361_v24 = vsel %vm11133_vm11, 0.0, %v8200_v36  ;;  %v2233_v33 = vsel %vm11133_vm11, %v8200_v36, 0.0  ;;  %v2566_v60 = vpack.c.bf16 %v2546_v19, %v2545_v54  ;;  %v2483_v35 = vsel %vm11133_vm11, %v2309_v41, %v2437_v21  ;;  %11386 = vst [vmem:[#allocation31_spill] sm:$0xff] %v11385_v9 }
 0x662   : > { %v2719_v11 = vpack.c.bf16 %v2657_v8, %v2655_v29  ;;  %v2453_v43 = vsel %vm11125_vm13, %v2361_v24, 0.0  ;;  %v2325_v1 = vsel %vm11125_vm13, %v2233_v33, 0.0  ;;  %6226 = vrcp.f32 %v2483_v35 }
 0x663   : > { %2454 = vadd.xlane.f32.xlu2 %v2453_v43  ;;  %2326 = vadd.xlane.f32.xlu1 %v2325_v1  ;;  %v2975_v29 = vshra.s32 %v8253_v61, 4  ;;  %v11136_v41 = vshra.s32 %v8270_v49, 4  ;;  %v11387_v19 = vmov 0  ;;  %v8299_v33 = vadd.s32 48, %v8231_v46 }
 0x664   : > { %v8212_v13 = vpop.eup %6224  ;;  %5993 = vmatmul.msk.bf16.gmra.mxu3 %vm11126_vm1, %v2719_v11  ;;  %5984 = vmatmul.msk.bf16.gmra.mxu0 %vm11125_vm13, %v2566_v60  ;;  %v11390_v60 = vmov 0  ;;  %v11393_v11 = vmov 0  ;;  %v8317_v35 = vadd.s32 8, %v8231_v46 }
 0x665   : > { %v2234_v6 = vsel %vm11133_vm11, %v8212_v13, 0.0  ;;  %v2362_v14 = vsel %vm11133_vm11, 0.0, %v8212_v13  ;;  %vm8287_vm15 = vcmp.ge.s32.totalorder %v2975_v29, 1  ;;  %vm8309_vm2 = vcmp.ge.s32.totalorder %v11136_v41, 1 }
 0x666   : > { %v2328_v48 = vsel %vm11125_vm13, %v2234_v6, 0.0  ;;  %v2440_v40 = vpop.xlane.xlu1 %2439  ;;  %v2456_v12 = vsel %vm11125_vm13, %v2362_v14, 0.0  ;;  %v11388_v19 = vsel %vm8287_vm15, 4294967295, %v11387_v19  ;;  %v11394_v11 = vsel %vm8309_vm2, 4294967295, %v11393_v11  ;;  %11397 = vst [vmem:[#allocation36_spill] sm:$0xff] %v8317_v35 }
 0x667   : > { %2329 = vadd.xlane.f32.xlu0 %v2328_v48  ;;  %v2484_v4 = vsel %vm11133_vm11, %v2312_v18, %v2440_v40  ;;  %11389 = vst [vmem:[#allocation32_spill] sm:$0xff] %v11388_v19  ;;  %v3011_v6 = vand.u32 15, %v8299_v33  ;;  %v3008_v48 = vand.u32 15, %v8270_v49  ;;  %vm8447_vm11 = vcmp.lt.s32.totalorder %v2975_v29, 15 }
 0x668   : > { %6228 = vrcp.f32 %v2484_v4  ;;  %v6227_v51 = vpop.eup %6226  ;;  %11395 = vst [vmem:[#allocation34_spill] sm:$0xff] %v11394_v11 }
 0x669   : > { %v2660_v44 = vpop.f32.mrf.mxu0  ;;  %v2547_v63 = vmul.f32 %v6227_v51, %v8075_v26  ;;  %v3009_v26 = vand.u32 15, %v8235_v20  ;;  %vm8339_vm4 = vcmp.ge.s32.totalorder %v3011_v6, 1  ;;  %vm8360_vm6 = vcmp.lt.s32.totalorder %v3008_v48, 15 }
 0x66a   : > { %vm3554_vm8 = vmand %vm8309_vm2, %vm8360_vm6 }
 0x66b   : > { %2457 = vadd.xlane.f32.xlu1 %v2456_v12  ;;  %vm8239_vm9 = vcmp.ge.s32.totalorder %v3009_v26, 1  ;;  %v11131_v12 = vshra.s32 %v8299_v33, 4 }
 0x66d   : > { %vm8352_vm5 = vcmp.ge.s32.totalorder %v11131_v12, 1 }
 0x66e   : > { %v6229_v5 = vpop.eup %6228 }
 0x66f   : > { %v2548_v15 = vmul.f32 %v6229_v5, %v8072_v42  ;;  %v11135_v42 = vshra.s32 %v8235_v20, 4 }
 0x671   : > { %v2662_v53 = vpop.f32.mrf.mxu0  ;;  %v2567_v47 = vpack.c.bf16 %v2548_v15, %v2547_v63  ;;  %vm8248_vm10 = vcmp.ge.s32.totalorder %v11135_v42, 1 }
 0x672   : > { %v2720_v50 = vpack.c.bf16 %v2662_v53, %v2660_v44 }
 0x674   : > { %5985 = vmatmul.msk.bf16.gmra.mxu0 %vm11125_vm13, %v2567_v47  ;;  %5994 = vmatmul.msk.bf16.gmra.mxu3 %vm11126_vm1, %v2720_v50  ;;  %v3006_v47 = vand.u32 15, %v8317_v35  ;;  %v8337_v50 = vadd.s32 40, %v8231_v46 }
 0x676   : > { %vm8387_vm13 = vcmp.lt.s32.totalorder %v3006_v47, 15 }
 0x679   : > { %v2665_v59 = vpop.f32.mrf.mxu0 }
 0x681   : > { %v2667_v30 = vpop.f32.mrf.mxu0 }
 0x682   : > { %v2721_v10 = vpack.c.bf16 %v2667_v30, %v2665_v59 }
 0x684   : > { %5995 = vmatmul.msk.bf16.gmra.mxu3 %vm11126_vm1, %v2721_v10 }
 0x689   : > { %v2670_v57 = vpop.f32.mrf.mxu0 }
 0x68e   : > { %v2794_v25 = vpop.f32.mrf.mxu3 }
 0x68f   : > { %v2874_v52 = vadd.f32 %v2794_v25, %v6482_v27  ;;  %v11128_v27 = vshra.s32 %v8267_v34, 4 }
 0x691   : > { %v2672_v28 = vpop.f32.mrf.mxu0  ;;  %v8274_v7 = vadd.f32 %v8262_v3, %v2874_v52  ;;  %vm8303_vm0 = vcmp.lt.s32.totalorder %v11128_v27, 15  ;;  %v8428_v27 = vadd.s32 56, %v8231_v46 }
 0x692   : > { %v2722_v62 = vpack.c.bf16 %v2672_v28, %v2670_v57  ;;  %v11391_v60 = vsel %vm8303_vm0, 4294967295, %v11390_v60 }
 0x693   : > { %11383 = vst [vmem:[#allocation30_spill] sm:$0xff] %v8274_v7  ;;  %v4285_v21 = vsel %vm8278_vm14, %v8274_v7, 0.0  ;;  %v3392_v24 = vsel %vm8287_vm15, %v8274_v7, 0.0  ;;  %v3839_v40 = vpack.c.bf16 %v8274_v7, %v8274_v7  ;;  %v11127_v51 = vrot.slane %v8274_v7, 1 }
 0x694   : > { %5996 = vmatmul.msk.bf16.gmra.mxu3 %vm11126_vm1, %v2722_v62  ;;  %11392 = vst [vmem:[#allocation33_spill] sm:$0xff] %v11391_v60  ;;  %v4317_v1 = vpack.c.bf16 %v4285_v21, %v4285_v21  ;;  %v3424_v18 = vpack.c.bf16 %v3392_v24, %v3392_v24  ;;  %v3007_v24 = vand.u32 15, %v8253_v61 }
 0x695   : > { %v8356_v28 = vunpack.c.l.b16 %v3839_v40  ;;  %v11132_v40 = vshra.s32 %v8337_v50, 4 }
 0x696   : > { %v2796_v54 = vpop.f32.mrf.mxu3  ;;  %v5261_v53 = vunpack.c.l.b16 %v4317_v1  ;;  %v4593_v16 = vunpack.c.l.b16 %v3424_v18  ;;  %vm8395_vm12 = vcmp.ge.s32.totalorder %v3007_v24, 1 }
 0x697   : > { %v2875_v8 = vadd.f32 %v2796_v54, %v6485_v31 }
 0x699   : > { %v8314_v31 = vadd.f32 %v8262_v3, %v2875_v8  ;;  %v2675_v43 = vpop.f32.mrf.mxu0  ;;  %v11403_v8 = vmov 0 }
 0x69a   : > { %v11404_v8 = vsel %vm8360_vm6, 4294967295, %v11403_v8 }
 0x69b   : > { %11396 = vst [vmem:[#allocation35_spill] sm:$0xff] %v8314_v31  ;;  %v3455_v4 = vrot.slane %v8314_v31, 1  ;;  %v4286_v14 = vsel %vm8303_vm0, %v8314_v31, 0.0  ;;  %v3393_v44 = vsel %vm8309_vm2, %v8314_v31, 0.0  ;;  %v3840_v15 = vpack.c.bf16 %v8314_v31, %v8314_v31 }
 0x69c   : > { %v4318_v5 = vpack.c.bf16 %v4286_v14, %v4286_v14  ;;  %v3425_v63 = vpack.c.bf16 %v3393_v44, %v3393_v44  ;;  %11405 = vst [vmem:[#allocation38_spill] sm:$0xff] %v11404_v8  ;;  %v11130_v14 = vrot.slane %v8314_v31, 7  ;;  %vm11457_vm0 = vcmask 261120  }
 0x69d   : > { %v8347_v57 = vsel %vm11139_vm3, %v11127_v51, %v3455_v4  ;;  %v8358_v62 = vunpack.c.l.b16 %v3840_v15  ;;  %v3010_v51 = vand.u32 15, %v8337_v50 }
 0x69e   : > { %v2799_v30 = vpop.f32.mrf.mxu3  ;;  %v5262_v10 = vunpack.c.l.b16 %v4318_v5  ;;  %v4594_v26 = vunpack.c.l.b16 %v3425_v63  ;;  %11400 = vst [vmem:[#allocation37_spill] sm:$0xff] %v8347_v57  ;;  %v3649_v6 = vsel %vm8287_vm15, %v8347_v57, 0.0  ;;  %v11407_v63 = vmov 0 }
 0x69f   : > { %v2876_v25 = vadd.f32 %v2799_v30, %v6518_v55  ;;  %v11408_v63 = vsel %vm8387_vm13, 4294967295, %v11407_v63  ;;  %v3967_v15 = vpack.c.bf16 %v8347_v57, %v8347_v57 }
 0x6a0   : > { %v5278_v54 = vpack.c.b16 %v5262_v10, %v5261_v53  ;;  %v4624_v21 = vpack.c.b16 %v4594_v26, %v4593_v16  ;;  %11409 = vst [vmem:[#allocation40_spill] sm:$0xff] %v11408_v63  ;;  %v11410_v53 = vmov 0 }
 0x6a1   : > { %v8370_v55 = vadd.f32 %v8262_v3, %v2876_v25  ;;  %v2677_v1 = vpop.f32.mrf.mxu0  ;;  %v11411_v53 = vsel %vm8395_vm12, 4294967295, %v11410_v53 }
 0x6a2   : > { %v2723_v48 = vpack.c.bf16 %v2677_v1, %v2675_v43  ;;  %5309 = vrot.lane.b32.xlu2 %v5278_v54, %s6255_s16  ;;  %4641 = vrot.lane.b32.xlu1 %v4624_v21, %s6258_s14  ;;  %v3681_v43 = vpack.c.bf16 %v3649_v6, %v3649_v6  ;;  %11412 = vst [vmem:[#allocation41_spill] sm:$0xff] %v11411_v53 }
 0x6a3   : > { %11406 = vst [vmem:[#allocation39_spill] sm:$0xff] %v8370_v55  ;;  %v3039_v44 = vrot.slane %v8370_v55, 7  ;;  %v3456_v5 = vrot.slane %v8370_v55, 1 }
 0x6a4   : > { %5997 = vmatmul.msk.bf16.gmra.mxu3 %vm11126_vm1, %v2723_v48  ;;  %vm8415_vm1 = vcmp.ge.s32.totalorder %v11132_v40, 1  ;;  %v4705_v6 = vunpack.c.l.b16 %v3681_v43  ;;  %v5007_v48 = vunpack.c.l.b16 %v3967_v15 }
 0x6a5   : > { %v8401_v30 = vsel %vm11139_vm3, %v3455_v4, %v3456_v5  ;;  %v8407_v47 = vsel %vm11134_vm7, %v11130_v14, %v3039_v44  ;;  %v3394_v4 = vsel %vm8248_vm10, %v8370_v55, 0.0 }
 0x6a6   : > { %11413 = vst [vmem:[#allocation42_spill] sm:$0xff] %v8401_v30  ;;  %v2801_v10 = vpop.f32.mrf.mxu3  ;;  %v3650_v16 = vsel %vm3554_vm8, %v8401_v30, 0.0  ;;  %v3936_v26 = vsel %vm8387_vm13, %v8401_v30, 0.0  ;;  %v3777_v1 = vsel %vm8395_vm12, %v8407_v47, 0.0  ;;  %v3426_v12 = vpack.c.bf16 %v3394_v4, %v3394_v4 }
 0x6a7   : > { %11414 = vst [vmem:[#allocation43_spill] sm:$0xff] %v8407_v47  ;;  %v2877_v54 = vadd.f32 %v2801_v10, %v6488_v32  ;;  %v3682_v21 = vpack.c.bf16 %v3650_v16, %v3650_v16  ;;  %v3968_v24 = vpack.c.bf16 %v3936_v26, %v3936_v26  ;;  %v3809_v32 = vpack.c.bf16 %v3777_v1, %v3777_v1 }
 0x6a8   : > { %v8434_v10 = vadd.s32 64, %v8231_v46  ;;  %vm8441_vm8 = vcmp.lt.s32.totalorder %v3010_v51, 15  ;;  %v11420_v4 = vmov 0  ;;  %vm11491_vm13 = vcmask 261120  }
 0x6a9   : > { %v8431_v39 = vadd.f32 %v8262_v3, %v2877_v54  ;;  %v4706_v14 = vunpack.c.l.b16 %v3682_v21  ;;  %v5008_v18 = vunpack.c.l.b16 %v3968_v24  ;;  %v11418_v54 = vmov 0 }
 0x6aa   : > { %v11419_v54 = vsel %vm8441_vm8, 4294967295, %v11418_v54  ;;  %v11421_v4 = vsel %vm8447_vm11, 4294967295, %v11420_v4 }
 0x6ab   : > { %11417 = vst [vmem:[#allocation44_spill] sm:$0xff] %v8431_v39  ;;  %v3040_v16 = vrot.slane %v8431_v39, 7  ;;  %v3457_v43 = vrot.slane %v8431_v39, 1  ;;  %v4736_v15 = vpack.c.b16 %v4706_v14, %v4705_v6  ;;  %v5039_v26 = vpack.c.b16 %v5008_v18, %v5007_v48 }
 0x6ac   : > { %v3395_v40 = vsel %vm8415_vm1, %v8431_v39, 0.0  ;;  %11422 = vst [vmem:[#allocation45_spill] sm:$0xff] %v11421_v4  ;;  %v4595_v14 = vunpack.c.l.b16 %v3426_v12  ;;  %v8478_v48 = vadd.s32 72, %v8231_v46 }
 0x6ad   : > { %4753 = vrot.lane.b32.xlu2 %v4736_v15, %s6257_s21  ;;  %5055 = vrot.lane.b32.xlu1 %v5039_v26, %s6258_s14  ;;  %v8456_v18 = vsel %vm11134_vm7, %v3039_v44, %v3040_v16  ;;  %v3427_v51 = vpack.c.bf16 %v3395_v40, %v3395_v40  ;;  %v8460_v24 = vsel %vm11139_vm3, %v3456_v5, %v3457_v43  ;;  %v3013_v44 = vand.u32 15, %v8434_v10  ;;  %vm11426_vm3 = vmand %vm8248_vm10, %vm8239_vm9 }
 0x6ae   : > { %11423 = vst [vmem:[#allocation46_spill] sm:$0xff] %v8456_v18  ;;  %v2804_v61 = vpop.f32.mrf.mxu3  ;;  %v2443_v29 = vpop.xlane.xlu1 %2442  ;;  %v3810_v1 = vpack.c.bf16 %v8456_v18, %v8456_v18  ;;  %v3651_v6 = vsel %vm8248_vm10, %v8460_v24, 0.0  ;;  %v4817_v15 = vunpack.c.l.b16 %v3809_v32  ;;  %v3267_v5 = vsel %vm8415_vm1, %v8456_v18, 0.0 }
 0x6af   : > { %11424 = vst [vmem:[#allocation47_spill] sm:$0xff] %v8460_v24  ;;  %v2878_v40 = vadd.f32 %v2804_v61, %v6521_v56  ;;  %v2315_v12 = vpop.xlane.xlu0 %2314  ;;  %v4596_v26 = vunpack.c.l.b16 %v3427_v51  ;;  %vm11425_vm7 = vcmp.lt.s32.totalorder %v7132_v58, 8  ;;  %v3969_v41 = vpack.c.bf16 %v8460_v24, %v8460_v24 }
 0x6b0   : > { %v2485_v42 = vsel %vm11425_vm7, %v2315_v12, %v2443_v29  ;;  %v4818_v21 = vunpack.c.l.b16 %v3810_v1  ;;  %v3683_v56 = vpack.c.bf16 %v3651_v6, %v3651_v6  ;;  %v3266_v32 = vsel %vm11426_vm3, %v8407_v47, 0.0 }
 0x6b1   : > { %v8481_v19 = vadd.f32 %v8262_v3, %v2878_v40  ;;  %6230 = vrcp.f32 %v2485_v42  ;;  %v11427_v61 = vshra.s32 %v8270_v49, 4  ;;  %v11428_v29 = vmov 0 }
 0x6b2   : > { %v4848_v51 = vpack.c.b16 %v4818_v21, %v4817_v15  ;;  %v11431_v1 = vshra.s32 %v8428_v27, 4  ;;  %v3299_v42 = vpack.c.bf16 %v3267_v5, %v3267_v5  ;;  %v4625_v12 = vpack.c.b16 %v4596_v26, %v4595_v14 }
 0x6b3   : > { %vm8491_vm7 = vcmp.lt.s32.totalorder %v11427_v61, 15  ;;  %v3041_v45 = vrot.slane %v8481_v19, 7  ;;  %v3458_v6 = vrot.slane %v8481_v19, 1  ;;  %v3012_v49 = vand.u32 15, %v8428_v27 }
 0x6b4   : > { %v11429_v29 = vsel %vm8491_vm7, 4294967295, %v11428_v29  ;;  %vm8497_vm15 = vcmp.ge.s32.totalorder %v11431_v1, 1  ;;  %4865 = vrot.lane.b32.xlu0 %v4848_v51, %s6255_s16  ;;  %v5009_v21 = vunpack.c.l.b16 %v3969_v41  ;;  %vm8514_vm2 = vcmp.ge.s32.totalorder %v3013_v44, 1 }
 0x6b5   : > { %11430 = vst [vmem:[#allocation48_spill] sm:$0xff] %v11429_v29  ;;  %v3298_v14 = vpack.c.bf16 %v3266_v32, %v3266_v32  ;;  %4643 = vrot.lane.b32.xlu1 %v4625_v12, %s6258_s14  ;;  %vm11436_vm10 = vcmp.lt.s32.totalorder %v8231_v46, 7  ;;  %v4707_v51 = vunpack.c.l.b16 %v3683_v56  ;;  %v4257_v41 = vsel %vm8447_vm11, %v8481_v19, 0.0  ;;  %v2318_v32 = vpop.xlane.xlu2 %2317 }
 0x6b6   : > { %v8521_v26 = vsel %vm11436_vm10, %v3457_v43, %v3458_v6  ;;  %vm11438_vm3 = vcmp.lt.s32.totalorder %v8231_v46, 1  ;;  %v11439_v44 = vshra.s32 %v8434_v10, 4  ;;  %v2806_v12 = vpop.f32.mrf.mxu3  ;;  %vm11442_vm10 = vmand %vm8415_vm1, %vm8441_vm8  ;;  %v4289_v9 = vpack.c.bf16 %v4257_v41, %v4257_v41 }
 0x6b7   : > { %11437 = vst [vmem:[#allocation49_spill] sm:$0xff] %v8521_v26  ;;  %v3097_v61 = vsel %vm11438_vm3, %v3040_v16, %v3041_v45  ;;  %v3652_v43 = vsel %vm11442_vm10, %v8521_v26, 0.0  ;;  %v3938_v56 = vsel %vm8360_vm6, %v8521_v26, 0.0  ;;  %v3396_v16 = vsel %vm8352_vm5, %v8481_v19, 0.0  ;;  %v6231_v15 = vpop.eup %6230  ;;  %v2446_v11 = vpop.xlane.xlu0 %2445  ;;  %vm11443_vm1 = vmand %vm8447_vm11, %vm8395_vm12 }
 0x6b8   : > { %vm8530_vm14 = vcmp.ge.s32.totalorder %v11439_v44, 1  ;;  %v8546_v44 = vunpack.c.l.b16 %v3299_v42  ;;  %v2879_v0 = vadd.f32 %v2806_v12, %v6531_v2  ;;  %v3684_v31 = vpack.c.bf16 %v3652_v43, %v3652_v43 }
 0x6b9   : > { %v3970_v25 = vpack.c.bf16 %v3938_v56, %v3938_v56  ;;  %v4129_v7 = vsel %vm11443_vm1, %v3097_v61, 0.0  ;;  %vm11444_vm3 = vcmp.lt.s32.totalorder %v7132_v58, 8  ;;  %v3779_v42 = vsel %vm8239_vm9, %v3097_v61, 0.0  ;;  %v2680_v43 = vpop.f32.mrf.mxu0 }
 0x6ba   : > { %v2486_v30 = vsel %vm11444_vm3, %v2318_v32, %v2446_v11  ;;  %vm8558_vm10 = vcmp.lt.s32.totalorder %v3012_v49, 15  ;;  %v8562_v2 = vunpack.c.l.b16 %v3298_v14  ;;  %v8565_v12 = vadd.f32 %v8262_v3, %v2879_v0  ;;  %vm11450_vm3 = vmand %vm8352_vm5, %vm8339_vm4 }
 0x6bb   : > { %6232 = vrcp.f32 %v2486_v30  ;;  %v4708_v56 = vunpack.c.l.b16 %v3684_v31  ;;  %v5010_v53 = vunpack.c.l.b16 %v3970_v25  ;;  %v2549_v24 = vmul.f32 %v6231_v15, %v8142_v37 }
 0x6bc   : > { %v4161_v11 = vpack.c.bf16 %v4129_v7, %v4129_v7  ;;  %v3428_v41 = vpack.c.bf16 %v3396_v16, %v3396_v16  ;;  %v11163_v49 = vrot.slane %v8565_v12, 7  ;;  %v3459_v60 = vrot.slane %v8565_v12, 1 }
 0x6bd   : > { %v4737_v14 = vpack.c.b16 %v4708_v56, %v4707_v51  ;;  %v5040_v26 = vpack.c.b16 %v5010_v53, %v5009_v21  ;;  %v11447_v0 = vshra.s32 %v8235_v20, 4  ;;  %v11448_v30 = vmov 0 }
 0x6be   : > { %v4258_v37 = vsel %vm8491_vm7, %v8565_v12, 0.0  ;;  %v3397_v7 = vsel %vm8497_vm15, %v8565_v12, 0.0  ;;  %v3811_v31 = vpack.c.bf16 %v3779_v42, %v3779_v42  ;;  %v8589_v53 = vsel %vm11450_vm3, %v3097_v61, 0.0  ;;  %v2809_v16 = vpop.f32.mrf.mxu3  ;;  %v2321_v25 = vpop.xlane.xlu2 %2320 }
 0x6bf   : > { %vm8574_vm1 = vcmp.lt.s32.totalorder %v11447_v0, 15  ;;  %4755 = vrot.lane.b32.xlu2 %v4737_v14, %s6257_s21  ;;  %5057 = vrot.lane.b32.xlu1 %v5040_v26, %s6258_s14  ;;  %v4290_v20 = vpack.c.bf16 %v4258_v37, %v4258_v37  ;;  %v5233_v21 = vunpack.c.l.b16 %v4289_v9  ;;  %vm11451_vm12 = vcmp.lt.s32.totalorder %v8231_v46, 1  ;;  %v2449_v0 = vpop.xlane.xlu0 %2448 }
 0x6c0   : > { %v11449_v30 = vsel %vm8574_vm1, 4294967295, %v11448_v30  ;;  %v3096_v15 = vsel %vm11451_vm12, %v3041_v45, %v11163_v49  ;;  %v3429_v51 = vpack.c.bf16 %v3397_v7, %v3397_v7  ;;  %vm11452_vm3 = vcmp.lt.s32.totalorder %v8231_v46, 7  ;;  %v11454_v45 = vld [vmem:[#allocation8_spill] sm:$0xff]  ;;  %vm3558_vm12 = vmand %vm8497_vm15, %vm8558_vm10 }
 0x6c1   : > { %v4130_v42 = vsel %vm8491_vm7, %v3096_v15, 0.0  ;;  %v3812_v56 = vpack.c.bf16 %v3096_v15, %v3096_v15  ;;  %v8601_v61 = vsel %vm11452_vm3, %v3458_v6, %v3459_v60  ;;  %v8605_v26 = vsel %vm8497_vm15, %v3096_v15, 0.0  ;;  %v6233_v9 = vpop.eup %6232  ;;  %v2682_v4 = vpop.f32.mrf.mxu0 }
 0x6c2   : > { %11453 = vst [vmem:[#allocation50_spill] sm:$0xff] %v8601_v61  ;;  %v2880_v14 = vadd.f32 %v2809_v16, %v11454_v45  ;;  %v5234_v37 = vunpack.c.l.b16 %v4290_v20  ;;  %v4162_v7 = vpack.c.bf16 %v4130_v42, %v4130_v42  ;;  %v4598_v32 = vunpack.c.l.b16 %v3429_v51 }
 0x6c3   : > { %v2550_v49 = vmul.f32 %v6233_v9, %v8121_v23  ;;  %v5121_v6 = vunpack.c.l.b16 %v4161_v11  ;;  %v4597_v63 = vunpack.c.l.b16 %v3428_v41  ;;  %v4820_v34 = vunpack.c.l.b16 %v3812_v56 }
 0x6c4   : > { %v8614_v15 = vadd.f32 %v8262_v3, %v2880_v14  ;;  %v5264_v29 = vpack.c.b16 %v5234_v37, %v5233_v21  ;;  %v5122_v8 = vunpack.c.l.b16 %v4162_v7  ;;  %v3653_v47 = vsel %vm8352_vm5, %v8601_v61, 0.0 }
 0x6c5   : > { %vm11455_vm3 = vcmp.lt.s32.totalorder %v7132_v58, 8  ;;  %v2724_v16 = vpack.c.bf16 %v2682_v4, %v2680_v43  ;;  %v2568_v51 = vpack.c.bf16 %v2550_v49, %v2549_v24  ;;  %v4819_v42 = vunpack.c.l.b16 %v3811_v31 }
 0x6c6   : > { %v2487_v20 = vsel %vm11455_vm3, %v2321_v25, %v2449_v0  ;;  %v3043_v23 = vrot.slane %v8614_v15, 7  ;;  %v3460_v11 = vrot.slane %v8614_v15, 1  ;;  %5281 = vrot.lane.b32.xlu0 %v5264_v29, %s6255_s16  ;;  %v5152_v41 = vpack.c.b16 %v5122_v8, %v5121_v6  ;;  %v2324_v8 = vpop.xlane.xlu1 %2323  ;;  %v2811_v40 = vpop.f32.mrf.mxu3  ;;  %v11468_v25 = vld [vmem:[#allocation7_spill] sm:$0xff] }
 0x6c7   : > { %v4626_v56 = vpack.c.b16 %v4598_v32, %v4597_v63  ;;  %vm11456_vm5 = vcmask 97280   ;;  %5998 = vmatmul.msk.bf16.gmra.mxu3 %vm11457_vm0, %v2724_v16  ;;  %v3685_v52 = vpack.c.bf16 %v3653_v47, %v3653_v47  ;;  %v3971_v4 = vpack.c.bf16 %v8601_v61, %v8601_v61  ;;  %v2452_v32 = vpop.xlane.xlu2 %2451 }
 0x6c8   : > { %5986 = vmatmul.msk.bf16.gmra.mxu0 %vm11456_vm5, %v2568_v51  ;;  %v11458_v24 = vshra.s32 %v8337_v50, 4  ;;  %v11459_v43 = vmov 0  ;;  %6234 = vrcp.f32 %v2487_v20  ;;  %5169 = vrot.lane.b32.xlu2 %v5152_v41, %s6257_s21  ;;  %v4849_v63 = vpack.c.b16 %v4820_v34, %v4819_v42 }
 0x6c9   : > { %4645 = vrot.lane.b32.xlu1 %v4626_v56, %s6258_s14  ;;  %vm11461_vm15 = vcmp.lt.s32.totalorder %v8231_v46, 7  ;;  %v11463_v29 = vshra.s32 %v8478_v48, 4  ;;  %v4259_v31 = vsel %vm8574_vm1, %v8614_v15, 0.0  ;;  %vm11467_vm5 = vcmp.lt.s32.totalorder %v8231_v46, 1 }
 0x6ca   : > { %vm8634_vm3 = vcmp.lt.s32.totalorder %v11458_v24, 15  ;;  %v8644_v47 = vsel %vm11461_vm15, %v3459_v60, %v3460_v11  ;;  %v11466_v60 = vrot.slane %v8565_v12, 7  ;;  %vm4035_vm15 = vmand %vm8574_vm1, %vm8239_vm9  ;;  %v2881_v9 = vadd.f32 %v2811_v40, %v11468_v25 }
 0x6cb   : > { %v11460_v43 = vsel %vm8634_vm3, 4294967295, %v11459_v43  ;;  %11462 = vst [vmem:[#allocation8_spill] sm:$0xff] %v8644_v47  ;;  %vm8648_vm0 = vcmp.ge.s32.totalorder %v11463_v29, 1  ;;  %v3654_v49 = vsel %vm3558_vm12, %v8644_v47, 0.0  ;;  %v3940_v34 = vsel %vm8441_vm8, %v8644_v47, 0.0  ;;  %vm11470_vm9 = vmmov %vm11467_vm5 }
 0x6cc   : > { %v3095_v21 = vsel %vm11467_vm5, %v11466_v60, %v3043_v23  ;;  %vm11469_vm12 = vcmp.lt.s32.totalorder %v7132_v58, 8  ;;  %v3686_v14 = vpack.c.bf16 %v3654_v49, %v3654_v49  ;;  %v3972_v0 = vpack.c.bf16 %v3940_v34, %v3940_v34 }
 0x6cd   : > { %v2488_v45 = vsel %vm11469_vm12, %v2324_v8, %v2452_v32  ;;  %v4709_v37 = vunpack.c.l.b16 %v3685_v52  ;;  %v5011_v7 = vunpack.c.l.b16 %v3971_v4  ;;  %v3398_v6 = vsel %vm8530_vm14, %v8614_v15, 0.0 }
 0x6ce   : > { %6236 = vrcp.f32 %v2488_v45  ;;  %v8674_v20 = vadd.f32 %v8262_v3, %v2881_v9  ;;  %v4710_v38 = vunpack.c.l.b16 %v3686_v14  ;;  %v5012_v16 = vunpack.c.l.b16 %v3972_v0  ;;  %v6235_v41 = vpop.eup %6234  ;;  %4867 = vrot.lane.b32.xlu0 %v4849_v63, %s6255_s16 }
 0x6cf   : > { %v4131_v51 = vsel %vm4035_vm15, %v3095_v21, 0.0  ;;  %v4291_v42 = vpack.c.bf16 %v4259_v31, %v4259_v31  ;;  %v3843_v52 = vpack.c.bf16 %v8481_v19, %v8481_v19  ;;  %v3430_v32 = vpack.c.bf16 %v3398_v6, %v3398_v6  ;;  %vm11472_vm15 = vmand %vm8530_vm14, %vm8514_vm2 }
 0x6d0   : > { %v3044_v56 = vrot.slane %v8674_v20, 7  ;;  %v4738_v24 = vpack.c.b16 %v4710_v38, %v4709_v37  ;;  %v5041_v8 = vpack.c.b16 %v5012_v16, %v5011_v7  ;;  %v4260_v4 = vsel %vm8634_vm3, %v8674_v20, 0.0  ;;  %v2685_v7 = vpop.f32.mrf.mxu0 }
 0x6d1   : > { %v4163_v29 = vpack.c.bf16 %v4131_v51, %v4131_v51  ;;  %v3399_v40 = vsel %vm8648_vm0, %v8674_v20, 0.0  ;;  %v4292_v63 = vpack.c.bf16 %v4260_v4, %v4260_v4  ;;  %v2551_v31 = vmul.f32 %v6235_v41, %v8171_v17 }
 0x6d2   : > { %4757 = vrot.lane.b32.xlu2 %v4738_v24, %s6257_s21  ;;  %5059 = vrot.lane.b32.xlu1 %v5041_v8, %s6258_s14  ;;  %v3094_v19 = vsel %vm11470_vm9, %v3043_v23, %v3044_v56  ;;  %v3431_v49 = vpack.c.bf16 %v3399_v40, %v3399_v40  ;;  %v5235_v60 = vunpack.c.l.b16 %v4291_v42  ;;  %v3300_v9 = vpack.c.bf16 %v8589_v53, %v8589_v53 }
 0x6d3   : > { %v4132_v25 = vsel %vm8634_vm3, %v3094_v19, 0.0  ;;  %v5236_v14 = vunpack.c.l.b16 %v4292_v63  ;;  %v5123_v6 = vunpack.c.l.b16 %v4163_v29  ;;  %v4599_v38 = vunpack.c.l.b16 %v3430_v32 }
 0x6d4   : > { %v6237_v34 = vpop.eup %6236  ;;  %v4164_v0 = vpack.c.bf16 %v4132_v25, %v4132_v25  ;;  %v4600_v37 = vunpack.c.l.b16 %v3431_v49  ;;  %v3781_v23 = vsel %vm8339_vm4, %v3095_v21, 0.0  ;;  %v3301_v17 = vpack.c.bf16 %v8605_v26, %v8605_v26 }
 0x6d5   : > { %v2552_v45 = vmul.f32 %v6237_v34, %v8153_v22  ;;  %v5265_v16 = vpack.c.b16 %v5236_v14, %v5235_v60  ;;  %v3814_v41 = vpack.c.bf16 %v3094_v19, %v3094_v19  ;;  %v3813_v24 = vpack.c.bf16 %v3781_v23, %v3781_v23 }
 0x6d6   : > { %v5124_v42 = vunpack.c.l.b16 %v4164_v0  ;;  %v4627_v22 = vpack.c.b16 %v4600_v37, %v4599_v38  ;;  %vm11471_vm5 = vcmask 97280   ;;  %v8704_v8 = vunpack.c.l.b16 %v3300_v9  ;;  %v2327_v49 = vpop.xlane.xlu1 %2326 }
 0x6d7   : > { %v2569_v51 = vpack.c.bf16 %v2552_v45, %v2551_v31  ;;  %5283 = vrot.lane.b32.xlu0 %v5265_v16, %s6255_s16  ;;  %v8706_v4 = vunpack.c.l.b16 %v3301_v17  ;;  %v3844_v29 = vpack.c.bf16 %v8565_v12, %v8565_v12  ;;  %v4822_v26 = vunpack.c.l.b16 %v3814_v41  ;;  %v2455_v45 = vpop.xlane.xlu2 %2454 }
 0x6d8   : > { %v5153_v53 = vpack.c.b16 %v5124_v42, %v5123_v6  ;;  %v8712_v40 = vunpack.c.l.b16 %v3843_v52  ;;  %v3270_v32 = vsel %vm11472_vm15, %v3095_v21, 0.0  ;;  %v3271_v63 = vsel %vm8648_vm0, %v3094_v19, 0.0  ;;  %v2687_v21 = vpop.f32.mrf.mxu0 }
 0x6d9   : > { %5987 = vmatmul.msk.bf16.gmra.mxu0 %vm11471_vm5, %v2569_v51  ;;  %v8723_v34 = vunpack.c.l.b16 %v3844_v29  ;;  %v3302_v31 = vpack.c.bf16 %v3270_v32, %v3270_v32  ;;  %v3303_v60 = vpack.c.bf16 %v3271_v63, %v3271_v63  ;;  %v4821_v25 = vunpack.c.l.b16 %v3813_v24  ;;  %vm11478_vm5 = vmmov %vm11469_vm12 }
 0x6da   : > { %5171 = vrot.lane.b32.xlu2 %v5153_v53, %s6257_s21  ;;  %4647 = vrot.lane.b32.xlu1 %v4627_v22, %s6258_s14  ;;  %v3845_v52 = vpack.c.bf16 %v8614_v15, %v8614_v15  ;;  %v3846_v9 = vpack.c.bf16 %v8674_v20, %v8674_v20  ;;  %v2725_v37 = vpack.c.bf16 %v2687_v21, %v2685_v7  ;;  %vm11477_vm9 = vcmask 261120   ;;  %v2330_v7 = vpop.xlane.xlu0 %2329  ;;  %v11484_v15 = vld [vmem:[#allocation10_spill] sm:$0xff] }
 0x6db   : > { %v8731_v14 = vunpack.c.l.b16 %v3302_v31  ;;  %v8733_v0 = vunpack.c.l.b16 %v3303_v60  ;;  %v4850_v6 = vpack.c.b16 %v4822_v26, %v4821_v25  ;;  %v2489_v16 = vsel %vm11469_vm12, %v2327_v49, %v2455_v45 }
 0x6dc   : > { %v8737_v23 = vunpack.c.l.b16 %v3845_v52  ;;  %v8739_v17 = vunpack.c.l.b16 %v3846_v9  ;;  %5999 = vmatmul.msk.bf16.gmra.mxu3 %vm11477_vm9, %v2725_v37  ;;  %6238 = vrcp.f32 %v2489_v16  ;;  %v8748_v41 = vadd.s32 80, %v8231_v46 }
 0x6dd   : > { %11473 = vst [vmem:[#allocation7_spill] sm:$0xff] %v8731_v14  ;;  %v3461_v24 = vrot.slane %v8674_v20, 1  ;;  %v3014_v49 = vand.u32 15, %v8478_v48  ;;  %vm11481_vm12 = vcmp.lt.s32.totalorder %v8231_v46, 7  ;;  %v11488_v1 = vshra.s32 %v8299_v33, 4 }
 0x6de   : > { %11474 = vst [vmem:[#allocation51_spill] sm:$0xff] %v8733_v0  ;;  %v2458_v42 = vpop.xlane.xlu1 %2457  ;;  %v3015_v22 = vand.u32 15, %v8748_v41  ;;  %v11178_v26 = vshra.s32 %v8748_v41, 4  ;;  %v11495_v20 = vshra.s32 %v8428_v27, 4 }
 0x6df   : > { %11475 = vst [vmem:[#allocation52_spill] sm:$0xff] %v8737_v23  ;;  %4869 = vrot.lane.b32.xlu0 %v4850_v6, %s6255_s16  ;;  %v2490_v53 = vsel %vm11478_vm5, %v2330_v7, %v2458_v42  ;;  %v8764_v58 = vsel %vm11481_vm12, %v3460_v11, %v3461_v24  ;;  %vm8782_vm12 = vcmp.lt.s32.totalorder %v3014_v49, 15  ;;  %vm11487_vm5 = vcmask 97280  }
 0x6e0   : > { %11476 = vst [vmem:[#allocation53_spill] sm:$0xff] %v8739_v17  ;;  %6240 = vrcp.f32 %v2490_v53  ;;  %vm8755_vm15 = vcmp.ge.s32.totalorder %v3015_v22, 1  ;;  %vm8768_vm9 = vcmp.ge.s32.totalorder %v11178_v26, 1  ;;  %v3655_v45 = vsel %vm8530_vm14, %v8764_v58, 0.0  ;;  %vm3560_vm11 = vmand %vm8648_vm0, %vm8782_vm12 }
 0x6e1   : > { %v2690_v29 = vpop.f32.mrf.mxu0  ;;  %vm8797_vm14 = vcmp.lt.s32.totalorder %v11488_v1, 15 }
 0x6e2   : > { %v6239_v32 = vpop.eup %6238  ;;  %vm4037_vm0 = vmand %vm8797_vm14, %vm8339_vm4 }
 0x6e3   : > { %v2553_v25 = vmul.f32 %v6239_v32, %v8200_v36  ;;  %v3973_v36 = vpack.c.bf16 %v8764_v58, %v8764_v58 }
 0x6e5   : > { %v5013_v32 = vunpack.c.l.b16 %v3973_v36 }
 0x6e6   : > { %v6241_v31 = vpop.eup %6240 }
 0x6e7   : > { %v2554_v52 = vmul.f32 %v6241_v31, %v8212_v13  ;;  %v2814_v9 = vpop.f32.mrf.mxu3  ;;  %v8789_v13 = vadd.s32 88, %v8231_v46 }
 0x6e8   : > { %v2882_v11 = vadd.f32 %v2814_v9, %v11484_v15 }
 0x6e9   : > { %v2692_v21 = vpop.f32.mrf.mxu0  ;;  %v2570_v37 = vpack.c.bf16 %v2554_v52, %v2553_v25  ;;  %v11177_v49 = vshra.s32 %v8789_v13, 4  ;;  %v3016_v25 = vand.u32 15, %v8789_v13  ;;  %v8818_v52 = vadd.s32 96, %v8231_v46 }
 0x6ea   : > { %v8792_v16 = vadd.f32 %v8262_v3, %v2882_v11  ;;  %v2726_v7 = vpack.c.bf16 %v2692_v21, %v2690_v29  ;;  %v3687_v29 = vpack.c.bf16 %v3655_v45, %v3655_v45  ;;  %v8835_v11 = vadd.s32 104, %v8231_v46  ;;  %v11494_v45 = vld [vmem:[#allocation9_spill] sm:$0xff] }
 0x6eb   : > { %5988 = vmatmul.msk.bf16.gmra.mxu0 %vm11487_vm5, %v2570_v37  ;;  %vm11492_vm5 = vcmp.lt.s32.totalorder %v8231_v46, 7  ;;  %vm8860_vm4 = vcmp.lt.s32.totalorder %v3016_v25, 15 }
 0x6ec   : > { %v3045_v53 = vrot.slane %v8792_v16, 7  ;;  %v3462_v22 = vrot.slane %v8792_v16, 1  ;;  %6000 = vmatmul.msk.bf16.gmra.mxu3 %vm11491_vm13, %v2726_v7  ;;  %v4261_v31 = vsel %vm8797_vm14, %v8792_v16, 0.0  ;;  %vm11493_vm13 = vcmp.lt.s32.totalorder %v8231_v46, 1 }
 0x6ed   : > { %v4711_v36 = vunpack.c.l.b16 %v3687_v29 }
 0x6ee   : > { %v8811_v33 = vsel %vm11492_vm5, %v3461_v24, %v3462_v22  ;;  %v8828_v24 = vsel %vm11493_vm13, %v3044_v56, %v3045_v53  ;;  %v4293_v56 = vpack.c.bf16 %v4261_v31, %v4261_v31  ;;  %vm8846_vm5 = vcmp.ge.s32.totalorder %v11177_v49, 1 }
 0x6ef   : > { %v2816_v9 = vpop.f32.mrf.mxu3  ;;  %v3656_v50 = vsel %vm3560_vm11, %v8811_v33, 0.0  ;;  %v3942_v15 = vsel %vm8558_vm10, %v8811_v33, 0.0  ;;  %vm8840_vm11 = vcmp.lt.s32.totalorder %v11495_v20, 15  ;;  %v3783_v31 = vsel %vm8514_vm2, %v8828_v24, 0.0 }
 0x6f0   : > { %v2883_v21 = vadd.f32 %v2816_v9, %v11494_v45  ;;  %v3688_v37 = vpack.c.bf16 %v3656_v50, %v3656_v50  ;;  %v3974_v7 = vpack.c.bf16 %v3942_v15, %v3942_v15  ;;  %v3400_v9 = vsel %vm8768_vm9, %v8792_v16, 0.0 }
 0x6f1   : > { %v2695_v1 = vpop.f32.mrf.mxu0  ;;  %v4133_v15 = vsel %vm4037_vm0, %v8828_v24, 0.0  ;;  %v3432_v26 = vpack.c.bf16 %v3400_v9, %v3400_v9  ;;  %v5237_v20 = vunpack.c.l.b16 %v4293_v56  ;;  %vm11502_vm0 = vcmp.lt.s32.totalorder %v8231_v46, 7  ;;  %v11503_v9 = vld [vmem:[#allocation2_spill] sm:$0xff] }
 0x6f2   : > { %v8854_v29 = vadd.f32 %v8262_v3, %v2883_v21  ;;  %v4712_v50 = vunpack.c.l.b16 %v3688_v37  ;;  %v5014_v27 = vunpack.c.l.b16 %v3974_v7  ;;  %v4165_v49 = vpack.c.bf16 %v4133_v15, %v4133_v15 }
 0x6f3   : > { %v3815_v15 = vpack.c.bf16 %v3783_v31, %v3783_v31  ;;  %v4601_v14 = vunpack.c.l.b16 %v3432_v26 }
 0x6f4   : > { %v3046_v19 = vrot.slane %v8854_v29, 7  ;;  %v3463_v21 = vrot.slane %v8854_v29, 1  ;;  %v4739_v37 = vpack.c.b16 %v4712_v50, %v4711_v36  ;;  %v5042_v7 = vpack.c.b16 %v5014_v27, %v5013_v32 }
 0x6f5   : > { %v4262_v12 = vsel %vm8840_vm11, %v8854_v29, 0.0  ;;  %v3401_v25 = vsel %vm8846_vm5, %v8854_v29, 0.0  ;;  %v5125_v56 = vunpack.c.l.b16 %v4165_v49  ;;  %v4823_v18 = vunpack.c.l.b16 %v3815_v15 }
 0x6f6   : > { %4759 = vrot.lane.b32.xlu2 %v4739_v37, %s6257_s21  ;;  %5061 = vrot.lane.b32.xlu1 %v5042_v7, %s6258_s14  ;;  %v4294_v38 = vpack.c.bf16 %v4262_v12, %v4262_v12  ;;  %v3092_v36 = vsel %vm11493_vm13, %v3045_v53, %v3046_v19  ;;  %v3433_v32 = vpack.c.bf16 %v3401_v25, %v3401_v25  ;;  %vm11505_vm13 = vcmask 261120  }
 0x6f7   : > { %v2819_v50 = vpop.f32.mrf.mxu3  ;;  %v4134_v27 = vsel %vm8840_vm11, %v3092_v36, 0.0  ;;  %v3816_v47 = vpack.c.bf16 %v3092_v36, %v3092_v36  ;;  %v3509_v61 = vsel %vm11502_vm0, %v3462_v22, %v3463_v21  ;;  %vm3562_vm0 = vmand %vm8846_vm5, %vm8860_vm4 }
 0x6f8   : > { %v2884_v23 = vadd.f32 %v2819_v50, %v11503_v9  ;;  %v5238_v37 = vunpack.c.l.b16 %v4294_v38  ;;  %v4166_v17 = vpack.c.bf16 %v4134_v27, %v4134_v27  ;;  %v4602_v7 = vunpack.c.l.b16 %v3433_v32 }
 0x6f9   : > { %v2697_v12 = vpop.f32.mrf.mxu0  ;;  %v4824_v0 = vunpack.c.l.b16 %v3816_v47  ;;  %v3657_v53 = vsel %vm8768_vm9, %v3509_v61, 0.0  ;;  %v3975_v22 = vpack.c.bf16 %v3509_v61, %v3509_v61  ;;  %v11516_v32 = vshra.s32 %v8835_v11, 4 }
 0x6fa   : > { %v8886_v25 = vadd.f32 %v8262_v3, %v2884_v23  ;;  %v2727_v31 = vpack.c.bf16 %v2697_v12, %v2695_v1  ;;  %v5266_v39 = vpack.c.b16 %v5238_v37, %v5237_v20  ;;  %v5126_v55 = vunpack.c.l.b16 %v4166_v17 }
 0x6fb   : > { %v4628_v26 = vpack.c.b16 %v4602_v7, %v4601_v14  ;;  %v3689_v23 = vpack.c.bf16 %v3657_v53, %v3657_v53  ;;  %v11506_v17 = vshra.s32 %v8434_v10, 4  ;;  %v11509_v1 = vshra.s32 %v8818_v52, 4 }
 0x6fc   : > { %11504 = vst [vmem:[#allocation10_spill] sm:$0xff] %v8886_v25  ;;  %v3047_v50 = vrot.slane %v8886_v25, 7  ;;  %v3464_v38 = vrot.slane %v8886_v25, 1  ;;  %5285 = vrot.lane.b32.xlu0 %v5266_v39, %s6255_s16  ;;  %6001 = vmatmul.msk.bf16.gmra.mxu3 %vm11505_vm13, %v2727_v31  ;;  %v5154_v47 = vpack.c.b16 %v5126_v55, %v5125_v56  ;;  %v4851_v55 = vpack.c.b16 %v4824_v0, %v4823_v18 }
 0x6fd   : > { %vm8898_vm7 = vcmp.lt.s32.totalorder %v11506_v17, 15  ;;  %vm8904_vm6 = vcmp.ge.s32.totalorder %v11509_v1, 1  ;;  %vm11512_vm13 = vcmp.lt.s32.totalorder %v8231_v46, 7  ;;  %v11513_v10 = vshra.s32 %v8478_v48, 4 }
 0x6fe   : > { %5173 = vrot.lane.b32.xlu2 %v5154_v47, %s6257_s21  ;;  %4649 = vrot.lane.b32.xlu1 %v4628_v26, %s6258_s14  ;;  %v8912_v14 = vsel %vm11512_vm13, %v3463_v21, %v3464_v38  ;;  %vm8922_vm3 = vcmp.ge.s32.totalorder %v11516_v32, 1  ;;  %v11517_v27 = vmov 0  ;;  %v5015_v0 = vunpack.c.l.b16 %v3975_v22  ;;  %vm4039_vm8 = vmand %vm8898_vm7, %vm8514_vm2  ;;  %v11521_v21 = vld [vmem:[#allocation13_spill] sm:$0xff] }
 0x6ff   : > { %vm8916_vm1 = vcmp.lt.s32.totalorder %v11513_v10, 15  ;;  %v11518_v27 = vsel %vm8922_vm3, 4294967295, %v11517_v27  ;;  %v2821_v15 = vpop.f32.mrf.mxu3  ;;  %v3658_v9 = vsel %vm3562_vm0, %v8912_v14, 0.0  ;;  %v3944_v18 = vsel %vm8782_vm12, %v8912_v14, 0.0  ;;  %vm11522_vm0 = vmand %vm8768_vm9, %vm8755_vm15 }
 0x700   : > { %vm11519_vm13 = vcmp.lt.s32.totalorder %v8231_v46, 1  ;;  %v2885_v37 = vadd.f32 %v2821_v15, %v11521_v21  ;;  %v3690_v7 = vpack.c.bf16 %v3658_v9, %v3658_v9  ;;  %v3976_v12 = vpack.c.bf16 %v3944_v18, %v3944_v18  ;;  %vm4328_vm9 = vmand %vm8916_vm1, %vm8782_vm12 }
 0x701   : > { %v8932_v48 = vsel %vm11519_vm13, %v3046_v19, %v3047_v50  ;;  %v4263_v56 = vsel %vm8898_vm7, %v8886_v25, 0.0  ;;  %v4713_v53 = vunpack.c.l.b16 %v3689_v23  ;;  %v3402_v31 = vsel %vm8904_vm6, %v8886_v25, 0.0  ;;  %vm11524_vm2 = vmmov %vm11519_vm13 }
 0x702   : > { %11520 = vst [vmem:[#allocation9_spill] sm:$0xff] %v8932_v48  ;;  %v8951_v5 = vsel %vm11522_vm0, %v8828_v24, 0.0  ;;  %v8955_v19 = vsel %vm8846_vm5, %v3092_v36, 0.0  ;;  %v8958_v22 = vadd.f32 %v8262_v3, %v2885_v37  ;;  %v4714_v47 = vunpack.c.l.b16 %v3690_v7  ;;  %vm11531_vm13 = vmmov %vm11524_vm2 }
 0x703   : > { %v5016_v26 = vunpack.c.l.b16 %v3976_v12  ;;  %v4135_v23 = vsel %vm4039_vm8, %v8932_v48, 0.0  ;;  %v4295_v17 = vpack.c.bf16 %v4263_v56, %v4263_v56  ;;  %v3018_v1 = vand.u32 15, %v8835_v11 }
 0x704   : > { %11523 = vst [vmem:[#allocation2_spill] sm:$0xff] %v8958_v22  ;;  %v8964_v60 = vsel %vm8797_vm14, %v3509_v61, 0.0  ;;  %v3048_v24 = vrot.slane %v8958_v22, 7  ;;  %v3465_v59 = vrot.slane %v8958_v22, 1  ;;  %4871 = vrot.lane.b32.xlu0 %v4851_v55, %s6255_s16  ;;  %v4740_v36 = vpack.c.b16 %v4714_v47, %v4713_v53 }
 0x705   : > { %v5043_v10 = vpack.c.b16 %v5016_v26, %v5015_v0  ;;  %v4264_v32 = vsel %vm8916_vm1, %v8958_v22, 0.0  ;;  %v4167_v15 = vpack.c.bf16 %v4135_v23, %v4135_v23  ;;  %v3403_v9 = vsel %vm8922_vm3, %v8958_v22, 0.0 }
 0x706   : > { %v3434_v42 = vpack.c.bf16 %v3402_v31, %v3402_v31  ;;  %4761 = vrot.lane.b32.xlu2 %v4740_v36, %s6257_s21  ;;  %v4296_v61 = vpack.c.bf16 %v4264_v32, %v4264_v32  ;;  %v8979_v55 = vsel %vm11524_vm2, %v3047_v50, %v3048_v24  ;;  %v3435_v18 = vpack.c.bf16 %v3403_v9, %v3403_v9  ;;  %v11526_v50 = vld [vmem:[#allocation14_spill] sm:$0xff] }
 0x707   : > { %5063 = vrot.lane.b32.xlu1 %v5043_v10, %s6258_s14  ;;  %v8982_v0 = vadd.s32 112, %v8231_v46  ;;  %v2824_v21 = vpop.f32.mrf.mxu3  ;;  %v5239_v37 = vunpack.c.l.b16 %v4295_v17  ;;  %v4136_v7 = vsel %vm8916_vm1, %v8979_v55, 0.0  ;;  %v3785_v12 = vsel %vm8755_vm15, %v8932_v48, 0.0 }
 0x708   : > { %vm11525_vm8 = vcmp.lt.s32.totalorder %v8231_v46, 7  ;;  %v2886_v53 = vadd.f32 %v2824_v21, %v11526_v50  ;;  %v5240_v31 = vunpack.c.l.b16 %v4296_v61  ;;  %v4168_v47 = vpack.c.bf16 %v4136_v7, %v4136_v7 }
 0x709   : > { %v3507_v56 = vsel %vm11525_vm8, %v3464_v38, %v3465_v59  ;;  %v4604_v26 = vunpack.c.l.b16 %v3435_v18  ;;  %v4603_v23 = vunpack.c.l.b16 %v3434_v42  ;;  %v3818_v17 = vpack.c.bf16 %v8979_v55, %v8979_v55 }
 0x70a   : > { %vm8999_vm14 = vcmp.lt.s32.totalorder %v3018_v1, 15  ;;  %v9004_v38 = vadd.s32 120, %v8231_v46  ;;  %v9007_v10 = vadd.f32 %v8262_v3, %v2886_v53  ;;  %v5267_v32 = vpack.c.b16 %v5240_v31, %v5239_v37 }
 0x70b   : > { %v5127_v9 = vunpack.c.l.b16 %v4167_v15  ;;  %v5128_v21 = vunpack.c.l.b16 %v4168_v47  ;;  %v3817_v61 = vpack.c.bf16 %v3785_v12, %v3785_v12  ;;  %v3017_v18 = vand.u32 15, %v8818_v52  ;;  %vm3564_vm5 = vmand %vm8922_vm3, %vm8999_vm14 }
 0x70c   : > { %11529 = vst [vmem:[#allocation13_spill] sm:$0xff] %v9007_v10  ;;  %v9012_v42 = vsel %vm8898_vm7, %v3507_v56, 0.0  ;;  %v3305_v1 = vpack.c.bf16 %v8955_v19, %v8955_v19  ;;  %v3049_v7 = vrot.slane %v9007_v10, 7  ;;  %v11200_v50 = vrot.slane %v9007_v10, 1  ;;  %5287 = vrot.lane.b32.xlu0 %v5267_v32, %s6255_s16  ;;  %vm11530_vm7 = vmmov %vm11525_vm8 }
 0x70d   : > { %v5155_v3 = vpack.c.b16 %v5128_v21, %v5127_v9  ;;  %v4629_v37 = vpack.c.b16 %v4604_v26, %v4603_v23  ;;  %v4826_v15 = vunpack.c.l.b16 %v3818_v17  ;;  %v11198_v49 = vshra.s32 %v8982_v0, 4  ;;  %v11533_v9 = vld [vmem:[#allocation11_spill] sm:$0xff] }
 0x70e   : > { %v3304_v12 = vpack.c.bf16 %v8951_v5, %v8951_v5  ;;  %v3506_v19 = vsel %vm11530_vm7, %v3465_v59, %v11200_v50  ;;  %v3977_v53 = vpack.c.bf16 %v3507_v56, %v3507_v56  ;;  %v9034_v31 = vsel %vm11531_vm13, %v3048_v24, %v3049_v7 }
 0x70f   : > { %5175 = vrot.lane.b32.xlu2 %v5155_v3, %s6257_s21  ;;  %4651 = vrot.lane.b32.xlu1 %v4629_v37, %s6258_s14  ;;  %v11197_v47 = vshra.s32 %v9004_v38, 4  ;;  %v2826_v26 = vpop.f32.mrf.mxu3  ;;  %v4825_v23 = vunpack.c.l.b16 %v3817_v61  ;;  %v3946_v5 = vsel %vm8860_vm4, %v3506_v19, 0.0  ;;  %v3660_v17 = vsel %vm3564_vm5, %v3506_v19, 0.0  ;;  %vm11547_vm5 = vmmov %vm11531_vm13 }
 0x710   : > { %v9039_v32 = vunpack.c.l.b16 %v3305_v1  ;;  %v2887_v21 = vadd.f32 %v2826_v26, %v11533_v9  ;;  %v3978_v3 = vpack.c.bf16 %v3946_v5, %v3946_v5  ;;  %v3659_v59 = vsel %vm8904_vm6, %v3507_v56, 0.0  ;;  %v9061_v56 = vld [vmem:[%s11096_s4 + $0xb] ss:$0 sm:$0xff] }
 0x711   : > { %vm9044_vm0 = vcmp.ge.s32.totalorder %v3017_v18, 1  ;;  %v4852_v24 = vpack.c.b16 %v4826_v15, %v4825_v23  ;;  %v4424_v1 = vsel %vm4328_vm9, %v3506_v19, 0.0  ;;  %v9056_v26 = vunpack.c.l.b16 %v3304_v12 }
 0x712   : > { %11532 = vst [vmem:[#allocation14_spill] sm:$0xff] %v9039_v32  ;;  %v3787_v61 = vsel %vm9044_vm0, %v9034_v31, 0.0  ;;  %v9064_v18 = vadd.f32 %v9061_v56, %v2887_v21  ;;  %v5017_v15 = vunpack.c.l.b16 %v3977_v53  ;;  %v5018_v23 = vunpack.c.l.b16 %v3978_v3 }
 0x713   : > { %11536 = vst [vmem:[#allocation11_spill] sm:$0xff] %v9056_v26  ;;  %v3692_v5 = vpack.c.bf16 %v3660_v17, %v3660_v17  ;;  %v3691_v9 = vpack.c.bf16 %v3659_v59, %v3659_v59  ;;  %vm9068_vm2 = vcmp.ge.s32.totalorder %v11198_v49, 1  ;;  %vm9074_vm1 = vcmp.ge.s32.totalorder %v11197_v47, 1 }
 0x714   : > { %v11199_v19 = vrot.slane %v9064_v18, 7  ;;  %4873 = vrot.lane.b32.xlu0 %v4852_v24, %s6255_s16  ;;  %v5044_v53 = vpack.c.b16 %v5018_v23, %v5017_v15  ;;  %v3819_v17 = vpack.c.bf16 %v3787_v61, %v3787_v61  ;;  %v11541_v21 = vshra.s32 %v8748_v41, 4 }
 0x715   : > { %v3467_v59 = vrot.slane %v9064_v18, 1  ;;  %v11544_v47 = vshra.s32 %v8789_v13, 4  ;;  %v4456_v24 = vpack.c.bf16 %v4424_v1, %v4424_v1  ;;  %v4716_v41 = vunpack.c.l.b16 %v3692_v5 }
 0x716   : > { %vm9084_vm12 = vcmp.lt.s32.totalorder %v11541_v21, 15  ;;  %v9104_v61 = vsel %vm11547_vm5, %v3049_v7, %v11199_v19  ;;  %v3405_v13 = vsel %vm9074_vm1, %v9064_v18, 0.0  ;;  %v4715_v23 = vunpack.c.l.b16 %v3691_v9  ;;  %v11549_v21 = vld [vmem:[#allocation12_spill] sm:$0xff] }
 0x717   : > { %vm9091_vm8 = vcmp.lt.s32.totalorder %v11544_v47, 15  ;;  %vm4041_vm9 = vmand %vm9084_vm12, %vm8755_vm15  ;;  %5065 = vrot.lane.b32.xlu1 %v5044_v53, %s6258_s14  ;;  %v3020_v47 = vand.u32 15, %v9004_v38  ;;  %v2829_v15 = vpop.f32.mrf.mxu3  ;;  %v3820_v1 = vpack.c.bf16 %v9104_v61, %v9104_v61  ;;  %v3404_v5 = vsel %vm9068_vm2, %v9007_v10, 0.0  ;;  %v9121_v53 = vpop.permute.xlu1 %4641 }
 0x718   : > { %vm4330_vm7 = vmand %vm9091_vm8, %vm8860_vm4  ;;  %v4455_v7 = vpack.c.bf16 %v9012_v42, %v9012_v42  ;;  %11548 = vst [vmem:[#allocation54_spill] sm:$0xff] %v9121_v53  ;;  %v2888_v12 = vadd.f32 %v2829_v15, %v11549_v21  ;;  %v4827_v9 = vunpack.c.l.b16 %v3819_v17  ;;  %v4137_v19 = vsel %vm4041_vm9, %v9034_v31, 0.0  ;;  %v9139_v17 = vpop.permute.xlu2 %5309 }
 0x719   : > { %v4138_v50 = vsel %vm9091_vm8, %v9104_v61, 0.0  ;;  %v4828_v25 = vunpack.c.l.b16 %v3820_v1  ;;  %v3437_v22 = vpack.c.bf16 %v3405_v13, %v3405_v13  ;;  %v11550_v42 = vrot.slane %v9007_v10, 1  ;;  %11552 = vst [vmem:[#allocation12_spill] sm:$0xff] %v9139_v17  ;;  %vm4326_vm15 = vmand %vm8840_vm11, %vm8558_vm10 }
 0x71a   : > { %vm11551_vm13 = vcmp.lt.s32.totalorder %v8231_v46, 7  ;;  %v9137_v15 = vunpack.c.l.b16 %v4456_v24  ;;  %v9142_v21 = vadd.f32 %v9061_v56, %v2888_v12  ;;  %v4741_v63 = vpack.c.b16 %v4716_v41, %v4715_v23 }
 0x71b   : > { %v3505_v53 = vsel %vm11551_vm13, %v11550_v42, %v3467_v59  ;;  %v3436_v26 = vpack.c.bf16 %v3404_v5, %v3404_v5  ;;  %v3019_v32 = vand.u32 15, %v8982_v0  ;;  %v4853_v13 = vpack.c.b16 %v4828_v25, %v4827_v9  ;;  %vm11559_vm10 = vmmov %vm11551_vm13 }
 0x71c   : > { %11553 = vst [vmem:[#allocation55_spill] sm:$0xff] %v9142_v21  ;;  %v4169_v1 = vpack.c.bf16 %v4137_v19, %v4137_v19  ;;  %v4170_v48 = vpack.c.bf16 %v4138_v50, %v4138_v50  ;;  %v9149_v42 = vunpack.c.l.b16 %v4455_v7  ;;  %v11206_v24 = vrot.slane %v9142_v21, 1  ;;  %4763 = vrot.lane.b32.xlu0 %v4741_v63, %s6257_s21 }
 0x71d   : > { %v3979_v12 = vpack.c.bf16 %v3505_v53, %v3505_v53  ;;  %v11554_v41 = vshra.s32 %v8818_v52, 4  ;;  %vm9159_vm5 = vcmp.lt.s32.totalorder %v3020_v47, 15  ;;  %4875 = vrot.lane.b32.xlu2 %v4853_v13, %s6255_s16  ;;  %v4606_v51 = vunpack.c.l.b16 %v3437_v22 }
 0x71e   : > { %v4266_v25 = vsel %vm9091_vm8, %v9064_v18, 0.0  ;;  %v9170_v52 = vsel %vm4326_vm15, %v8912_v14, 0.0  ;;  %v4605_v19 = vunpack.c.l.b16 %v3436_v26  ;;  %v3504_v47 = vsel %vm11559_vm10, %v3467_v59, %v11206_v24  ;;  %v11563_v59 = vld [vmem:[#allocation15_spill] sm:$0xff] }
 0x71f   : > { %vm9155_vm9 = vcmp.lt.s32.totalorder %v11554_v41, 15  ;;  %v4265_v22 = vsel %vm9084_vm12, %v9007_v10, 0.0  ;;  %v11560_v5 = vshra.s32 %v8835_v11, 4  ;;  %v2831_v9 = vpop.f32.mrf.mxu3  ;;  %v5129_v63 = vunpack.c.l.b16 %v4169_v1  ;;  %v5056_v50 = vpop.permute.xlu1 %5055 }
 0x720   : > { %v5130_v14 = vunpack.c.l.b16 %v4170_v48  ;;  %v3948_v26 = vsel %vm8999_vm14, %v3504_v47, 0.0  ;;  %v4425_v13 = vsel %vm9084_vm12, %v3505_v53, 0.0  ;;  %v2889_v41 = vadd.f32 %v2831_v9, %v11563_v59  ;;  %v9202_v9 = vpop.permute.xlu2 %4753  ;;  %vm3566_vm12 = vmand %vm9074_vm1, %vm9159_vm5 }
 0x721   : > { %vm9181_vm11 = vcmp.lt.s32.totalorder %v11560_v5, 15  ;;  %v3980_v24 = vpack.c.bf16 %v3948_v26, %v3948_v26  ;;  %v5019_v17 = vunpack.c.l.b16 %v3979_v12  ;;  %v4298_v10 = vpack.c.bf16 %v4266_v25, %v4266_v25  ;;  %11567 = vst [vmem:[#allocation56_spill] sm:$0xff] %v9202_v9 }
 0x722   : > { %v3051_v11 = vrot.slane %v9142_v21, 7  ;;  %v11564_v5 = vpack.c.b16 %v8358_v62, %v8356_v28  ;;  %vm11565_vm13 = vcmask 261120   ;;  %v4630_v48 = vpack.c.b16 %v4606_v51, %v4605_v19 }
 0x723   : > { %v4426_v3 = vsel %vm4330_vm7, %v3504_v47, 0.0  ;;  %v9205_v12 = vadd.f32 %v9061_v56, %v2889_v41  ;;  %v5020_v25 = vunpack.c.l.b16 %v3980_v24  ;;  %v4267_v28 = vsel %vm9155_vm9, %v9142_v21, 0.0  ;;  %vm11578_vm7 = vmmov %vm11565_vm13 }
 0x724   : > { %v9195_v1 = vsel %vm11565_vm13, %v11564_v5, %v5056_v50  ;;  %v4457_v62 = vpack.c.bf16 %v4425_v13, %v4425_v13  ;;  %v5156_v50 = vpack.c.b16 %v5130_v14, %v5129_v63  ;;  %vm9214_vm15 = vcmp.ge.s32.totalorder %v3019_v32, 1  ;;  %4653 = vrot.lane.b32.xlu0 %v4630_v48, %s6258_s14  ;;  %vm4043_vm13 = vmand %vm9155_vm9, %vm9044_vm0 }
 0x725   : > { %11566 = vst [vmem:[#allocation15_spill] sm:$0xff] %v9195_v1  ;;  %v4458_v49 = vpack.c.bf16 %v4426_v3, %v4426_v3  ;;  %v3052_v51 = vrot.slane %v9205_v12, 7  ;;  %v5045_v24 = vpack.c.b16 %v5020_v25, %v5019_v17  ;;  %v4297_v19 = vpack.c.bf16 %v4265_v22, %v4265_v22 }
 0x726   : > { %11568 = vst [vmem:[#allocation57_spill] sm:$0xff] %v9205_v12  ;;  %v4268_v63 = vsel %vm9181_vm11, %v9205_v12, 0.0  ;;  %5177 = vrot.lane.b32.xlu2 %v5156_v50, %s6257_s21  ;;  %v4299_v14 = vpack.c.bf16 %v4267_v28, %v4267_v28  ;;  %v11571_v32 = vrot.slane %v9064_v18, 7  ;;  %vm11572_vm4 = vcmp.lt.s32.totalorder %v8231_v46, 1  ;;  %v11576_v28 = vld [vmem:[#allocation16_spill] sm:$0xff] }
 0x727   : > { %v4300_v26 = vpack.c.bf16 %v4268_v63, %v4268_v63  ;;  %v9230_v59 = vunpack.c.l.b16 %v4458_v49  ;;  %5067 = vrot.lane.b32.xlu1 %v5045_v24, %s6258_s14  ;;  %v5242_v17 = vunpack.c.l.b16 %v4298_v10  ;;  %v3661_v22 = vsel %vm9068_vm2, %v3505_v53, 0.0  ;;  %v2834_v48 = vpop.f32.mrf.mxu3  ;;  %vm11574_vm8 = vmmov %vm11572_vm4  ;;  %v4644_v49 = vpop.permute.xlu1 %4643 }
 0x728   : > { %v9228_v13 = vsel %vm11572_vm4, %v11571_v32, %v3051_v11  ;;  %v3662_v41 = vsel %vm3566_vm12, %v3504_v47, 0.0  ;;  %v9240_v5 = vunpack.c.l.b16 %v4457_v62  ;;  %v9244_v25 = vsel %vm11574_vm8, %v3051_v11, %v3052_v51 }
 0x729   : > { %11573 = vst [vmem:[#allocation58_spill] sm:$0xff] %v9228_v13  ;;  %v5244_v3 = vunpack.c.l.b16 %v4300_v26  ;;  %v4453_v10 = vpack.c.bf16 %v8964_v60, %v8964_v60  ;;  %v4454_v53 = vpack.c.bf16 %v9170_v52, %v9170_v52  ;;  %v2890_v50 = vadd.f32 %v2834_v48, %v11576_v28  ;;  %v9262_v52 = vpop.permute.xlu2 %4755 }
 0x72a   : > { %11575 = vst [vmem:[#allocation59_spill] sm:$0xff] %v9244_v25  ;;  %v5241_v24 = vunpack.c.l.b16 %v4297_v19  ;;  %v3789_v47 = vsel %vm9214_vm15, %v9228_v13, 0.0  ;;  %v11577_v11 = vpack.c.b16 %v8546_v44, %v8562_v2  ;;  %v5243_v60 = vunpack.c.l.b16 %v4299_v14 }
 0x72b   : > { %v3694_v26 = vpack.c.bf16 %v3662_v41, %v3662_v41  ;;  %v9265_v32 = vadd.f32 %v9061_v56, %v2890_v50  ;;  %v3693_v48 = vpack.c.bf16 %v3661_v22, %v3661_v22  ;;  %v3822_v28 = vpack.c.bf16 %v9244_v25, %v9244_v25 }
 0x72c   : > { %v9260_v63 = vsel %vm11578_vm7, %v11577_v11, %v4644_v49  ;;  %v5268_v19 = vpack.c.b16 %v5242_v17, %v5241_v24  ;;  %v5269_v1 = vpack.c.b16 %v5244_v3, %v5243_v60  ;;  %v3821_v62 = vpack.c.bf16 %v3789_v47, %v3789_v47  ;;  %v11590_v60 = vld [vmem:[#allocation19_spill] sm:$0xff] }
 0x72d   : > { %11579 = vst [vmem:[#allocation16_spill] sm:$0xff] %v9260_v63  ;;  %v9269_v9 = vunpack.c.l.b16 %v4453_v10  ;;  %v9271_v44 = vunpack.c.l.b16 %v4454_v53  ;;  %v3053_v2 = vrot.slane %v9265_v32, 7  ;;  %v11581_v14 = vshra.s32 %v8982_v0, 4 }
 0x72e   : > { %11580 = vst [vmem:[#allocation60_spill] sm:$0xff] %v9265_v32  ;;  %5289 = vrot.lane.b32.xlu0 %v5268_v19, %s6255_s16  ;;  %5291 = vrot.lane.b32.xlu2 %v5269_v1, %s6255_s16  ;;  %v4718_v17 = vunpack.c.l.b16 %v3694_v26  ;;  %v3847_v3 = vpack.c.bf16 %v8792_v16, %v8792_v16  ;;  %v3848_v0 = vpack.c.bf16 %v8854_v29, %v8854_v29  ;;  %vm11584_vm12 = vnez %v11419_v54  ;;  %v11634_v1 = vld [vmem:[#allocation51_spill] sm:$0xff] }
 0x72f   : > { %vm9277_vm10 = vcmp.lt.s32.totalorder %v11581_v14, 15  ;;  %vm11585_vm4 = vnez %v11460_v43  ;;  %v4717_v10 = vunpack.c.l.b16 %v3693_v48  ;;  %v4830_v53 = vunpack.c.l.b16 %v3822_v28  ;;  %v2836_v29 = vpop.f32.mrf.mxu3 }
 0x730   : > { %vm4324_vm8 = vmand %vm11585_vm4, %vm11584_vm12  ;;  %v11586_v50 = vshra.s32 %v9004_v38, 4  ;;  %vm11589_vm3 = vnez %v11449_v30  ;;  %v4829_v24 = vunpack.c.l.b16 %v3821_v62  ;;  %v4139_v47 = vsel %vm4043_vm13, %v9228_v13, 0.0 }
 0x731   : > { %v4419_v16 = vsel %vm11589_vm3, %v8764_v58, 0.0  ;;  %v4140_v11 = vsel %vm9181_vm11, %v9244_v25, 0.0  ;;  %v2891_v38 = vadd.f32 %v2836_v29, %v11590_v60  ;;  %v9311_v26 = vpop.permute.xlu1 %5057  ;;  %v4269_v19 = vsel %vm9277_vm10, %v9265_v32, 0.0  ;;  %vm4045_vm13 = vmand %vm9277_vm10, %vm9214_vm15  ;;  %v9341_v49 = vpop.permute.xlu2 %5169 }
 0x732   : > { %vm9298_vm7 = vcmp.lt.s32.totalorder %v11586_v50, 15  ;;  %vm11591_vm3 = vcmp.lt.s32.totalorder %v8231_v46, 1  ;;  %v4420_v58 = vsel %vm4324_vm8, %v8811_v33, 0.0  ;;  %v3469_v62 = vrot.slane %v9205_v12, 1  ;;  %11594 = vst [vmem:[#allocation62_spill] sm:$0xff] %v9341_v49 }
 0x733   : > { %v9318_v30 = vsel %vm11591_vm3, %v3052_v51, %v3053_v2  ;;  %v4742_v48 = vpack.c.b16 %v4718_v17, %v4717_v10  ;;  %v9331_v28 = vunpack.c.l.b16 %v3847_v3  ;;  %v9333_v14 = vunpack.c.l.b16 %v3848_v0  ;;  %vm11598_vm4 = vmmov %vm11591_vm3 }
 0x734   : > { %11592 = vst [vmem:[#allocation19_spill] sm:$0xff] %v9318_v30  ;;  %v9336_v51 = vadd.f32 %v9061_v56, %v2891_v38  ;;  %v4854_v50 = vpack.c.b16 %v4830_v53, %v4829_v24  ;;  %v4172_v29 = vpack.c.bf16 %v4140_v11, %v4140_v11  ;;  %v4451_v60 = vpack.c.bf16 %v4419_v16, %v4419_v16 }
 0x735   : > { %v4301_v22 = vpack.c.bf16 %v4269_v19, %v4269_v19  ;;  %v4141_v43 = vsel %vm4045_vm13, %v9318_v30, 0.0  ;;  %v4452_v33 = vpack.c.bf16 %v4420_v58, %v4420_v58  ;;  %v4171_v0 = vpack.c.bf16 %v4139_v47, %v4139_v47 }
 0x736   : > { %11593 = vst [vmem:[#allocation61_spill] sm:$0xff] %v9336_v51  ;;  %v11209_v17 = vrot.slane %v9336_v51, 7  ;;  %4765 = vrot.lane.b32.xlu0 %v4742_v48, %s6257_s21  ;;  %v4270_v3 = vsel %vm9298_vm7, %v9336_v51, 0.0  ;;  %v11595_v10 = vrot.slane %v9265_v32, 1  ;;  %vm11596_vm12 = vcmp.lt.s32.totalorder %v8231_v46, 7  ;;  %4877 = vrot.lane.b32.xlu2 %v4854_v50, %s6255_s16 }
 0x737   : > { %v4302_v16 = vpack.c.bf16 %v4270_v3, %v4270_v3  ;;  %v9355_v24 = vunpack.c.l.b16 %v4452_v33  ;;  %v5132_v11 = vunpack.c.l.b16 %v4172_v29  ;;  %v4173_v19 = vpack.c.bf16 %v4141_v43, %v4141_v43  ;;  %vm11603_vm3 = vmmov %vm11596_vm12 }
 0x738   : > { %v9352_v53 = vsel %vm11596_vm12, %v3469_v62, %v11595_v10  ;;  %v9361_v38 = vsel %vm11598_vm4, %v3053_v2, %v11209_v17  ;;  %v9363_v47 = vunpack.c.l.b16 %v4451_v60  ;;  %v5245_v58 = vunpack.c.l.b16 %v4301_v22 }
 0x739   : > { %11597 = vst [vmem:[#allocation63_spill] sm:$0xff] %v9352_v53  ;;  %v5246_v48 = vunpack.c.l.b16 %v4302_v16  ;;  %v4142_v10 = vsel %vm9298_vm7, %v9361_v38, 0.0  ;;  %v3950_v50 = vsel %vm9159_vm5, %v9352_v53, 0.0  ;;  %v5131_v33 = vunpack.c.l.b16 %v4171_v0 }
 0x73a   : > { %11599 = vst [vmem:[#allocation64_spill] sm:$0xff] %v9361_v38  ;;  %v4174_v3 = vpack.c.bf16 %v4142_v10, %v4142_v10  ;;  %v11600_v60 = vpack.c.b16 %v8706_v4, %v8704_v8  ;;  %vm11601_vm8 = vcmask 261120   ;;  %v11602_v16 = vrot.slane %v9142_v21, 1 }
 0x73b   : > { %v4646_v29 = vpop.permute.xlu1 %4645  ;;  %v5270_v43 = vpack.c.b16 %v5246_v48, %v5245_v58  ;;  %v5157_v54 = vpack.c.b16 %v5132_v11, %v5131_v33  ;;  %v5133_v25 = vunpack.c.l.b16 %v4173_v19  ;;  %v3982_v10 = vpack.c.bf16 %v3950_v50, %v3950_v50  ;;  %v9391_v48 = vpop.permute.xlu2 %4757  ;;  %vm11609_vm12 = vmmov %vm11601_vm8 }
 0x73c   : > { %v9377_v22 = vsel %vm11601_vm8, %v11600_v60, %v4646_v29  ;;  %v9383_v17 = vsel %vm11603_vm3, %v11602_v16, %v3469_v62  ;;  %v5134_v0 = vunpack.c.l.b16 %v4174_v3  ;;  %v11211_v4 = vshra.s32 %v8231_v46, 4  ;;  %v9394_v11 = vpop.permute.xlu0 %4865  ;;  %v11613_v16 = vld [vmem:[#allocation46_spill] sm:$0xff]  ;;  %v11710_v3 = vld [vmem:[#allocation47_spill] sm:$0xff] }
 0x73d   : > { %11604 = vst [vmem:[#allocation65_spill] sm:$0xff] %v9383_v17  ;;  %5293 = vrot.lane.b32.xlu1 %v5270_v43, %s6255_s16  ;;  %v3981_v8 = vpack.c.bf16 %v9383_v17, %v9383_v17  ;;  %v11212_v58 = vshra.s32 %v8317_v35, 4  ;;  %v5022_v62 = vunpack.c.l.b16 %v3982_v10  ;;  %v3471_v60 = vrot.slane %v9336_v51, 1 }
 0x73e   : > { %5179 = vrot.lane.b32.xlu0 %v5157_v54, %s6257_s21  ;;  %v5158_v2 = vpack.c.b16 %v5134_v0, %v5133_v25  ;;  %11605 = vst [vmem:[#allocation66_spill] sm:$0xff] %v9394_v11  ;;  %vm9398_vm13 = vcmp.lt.s32.totalorder %v11211_v4, 15  ;;  %v11608_v54 = vpack.c.b16 %v8723_v34, %v8712_v40  ;;  %v3005_v43 = vand.u32 15, %v8231_v46  ;;  %v11614_v40 = vld [vmem:[#allocation39_spill] sm:$0xff]  ;;  %v11670_v11 = vld [vmem:[#allocation8_spill] sm:$0xff] }
 0x73f   : > { %v5021_v50 = vunpack.c.l.b16 %v3981_v8  ;;  %vm9410_vm4 = vcmp.lt.s32.totalorder %v11212_v58, 15  ;;  %v4255_v34 = vsel %vm9398_vm13, %v11614_v40, 0.0  ;;  %v11615_v8 = vld [vmem:[#allocation44_spill] sm:$0xff]  ;;  %v11619_v4 = vrot.slane %v9265_v32, 1 }
 0x740   : > { %5181 = vrot.lane.b32.xlu2 %v5158_v2, %s6257_s21  ;;  %v4128_v0 = vsel %vm9410_vm4, %v11613_v16, 0.0  ;;  %vm9426_vm8 = vcmp.ge.s32.totalorder %v3005_v43, 1  ;;  %v4427_v57 = vsel %vm9155_vm9, %v9383_v17, 0.0 }
 0x741   : > { %v5046_v2 = vpack.c.b16 %v5022_v62, %v5021_v50  ;;  %v4160_v10 = vpack.c.bf16 %v4128_v0, %v4128_v0  ;;  %v11616_v62 = vmov 0  ;;  %v4287_v50 = vpack.c.bf16 %v4255_v34, %v4255_v34  ;;  %vm4031_vm3 = vmand %vm9398_vm13, %vm9426_vm8  ;;  %v11622_v0 = vld [vmem:[#allocation43_spill] sm:$0xff] }
 0x742   : > { %v11617_v62 = vsel %vm9426_vm8, 4294967295, %v11616_v62  ;;  %v4127_v58 = vsel %vm4031_vm3, %v11622_v0, 0.0  ;;  %v11625_v34 = vld [vmem:[#allocation3_spill] sm:$0xff]  ;;  %vm4332_vm3 = vmand %vm9181_vm11, %vm8999_vm14  ;;  %vm11632_vm14 = vcmp.lt.s32.totalorder %v8231_v46, 7  ;;  %vm11243_vm11 = vcmask 523264  }
 0x743   : > { %11618 = vst [vmem:[#allocation46_spill] sm:$0xff] %v11617_v62  ;;  %v9441_v43 = vpop.permute.xlu2 %5171  ;;  %v4159_v38 = vpack.c.bf16 %v4127_v58, %v4127_v58  ;;  %v9446_v30 = vunpack.c.l.b16 %v4160_v10  ;;  %v9450_v35 = vunpack.c.l.b16 %v4287_v50  ;;  %vm4334_vm8 = vmand %vm9298_vm7, %vm9159_vm5 }
 0x744   : > { %v5060_v19 = vpop.permute.xlu1 %5059  ;;  %11623 = vst [vmem:[#allocation44_spill] sm:$0xff] %v9441_v43  ;;  %v9443_v13 = vpop.permute.xlu0 %5281 }
 0x745   : > { %v9406_v29 = vsel %vm11609_vm12, %v11608_v54, %v5060_v19  ;;  %v2700_v33 = vpop.f32.mrf.mxu0  ;;  %v4256_v19 = vsel %vm9410_vm4, %v11615_v8, 0.0  ;;  %vm11620_vm12 = vcmp.lt.s32.totalorder %v8231_v46, 7  ;;  %11624 = vst [vmem:[#allocation43_spill] sm:$0xff] %v9443_v13  ;;  %v9459_v0 = vunpack.c.l.b16 %v4159_v38  ;;  %v11671_v13 = vld [vmem:[#allocation18_spill] sm:$0xff] }
 0x746   : > { %11610 = vst [vmem:[#allocation67_spill] sm:$0xff] %v9406_v29  ;;  %5069 = vrot.lane.b32.xlu0 %v5046_v2, %s6258_s14  ;;  %v4288_v54 = vpack.c.bf16 %v4256_v19, %v4256_v19  ;;  %v9438_v2 = vsel %vm11620_vm12, %v11619_v4, %v3471_v60  ;;  %vm11631_vm12 = vcmask 261120   ;;  %v4428_v38 = vsel %vm4332_vm3, %v9352_v53, 0.0 }
 0x747   : > { %11621 = vst [vmem:[#allocation39_spill] sm:$0xff] %v9438_v2  ;;  %v4429_v58 = vsel %vm9277_vm10, %v9438_v2, 0.0  ;;  %vm11637_vm5 = vmmov %vm11631_vm12  ;;  %v4460_v10 = vpack.c.bf16 %v4428_v38, %v4428_v38  ;;  %vm11249_vm10 = vcmask 269312  }
 0x748   : > { %11626 = vst [vmem:[#allocation3_spill] sm:$0xff] %v9446_v30  ;;  %v9448_v51 = vunpack.c.l.b16 %v4288_v54  ;;  %v11635_v54 = vld [vmem:[#allocation7_spill] sm:$0xff]  ;;  %vm11639_vm9 = vmmov %vm11637_vm5  ;;  %v11668_v30 = vld [vmem:[#allocation45_spill] sm:$0xff] }
 0x749   : > { %11628 = vst [vmem:[#allocation69_spill] sm:$0xff] %v9450_v35  ;;  %v5356_v17 = vunpack.c.l.b16 %v4460_v10  ;;  %vm11641_vm7 = vmmov %vm11637_vm5 }
 0x74a   : > { %v2839_v16 = vpop.f32.mrf.mxu3  ;;  %11627 = vst [vmem:[#allocation68_spill] sm:$0xff] %v9448_v51  ;;  %vm11645_vm3 = vmmov %vm11637_vm5  ;;  %v11661_v51 = vld [vmem:[#allocation38_spill] sm:$0xff] }
 0x74b   : > { %v2892_v19 = vadd.f32 %v2839_v16, %v11625_v34  ;;  %11630 = vst [vmem:[#allocation71_spill] sm:$0xff] %v9459_v0  ;;  %v11636_v16 = vpack.c.b16 %v11634_v1, %v11635_v54 }
 0x74c   : > { %v4648_v7 = vpop.permute.xlu1 %4647 }
 0x74d   : > { %v2702_v62 = vpop.f32.mrf.mxu0  ;;  %v9453_v32 = vadd.f32 %v9061_v56, %v2892_v19  ;;  %v5405_v34 = vsel %vm11637_vm5, %v11636_v16, %v4648_v7 }
 0x74e   : > { %v2728_v4 = vpack.c.bf16 %v2702_v62, %v2700_v33  ;;  %v4461_v33 = vpack.c.bf16 %v4429_v58, %v4429_v58  ;;  %v9492_v58 = vpop.permute.xlu0 %4867 }
 0x74f   : > { %11629 = vst [vmem:[#allocation70_spill] sm:$0xff] %v9453_v32  ;;  %v11227_v50 = vrot.slane %v9453_v32, 1 }
 0x750   : > { %6002 = vmatmul.msk.bf16.gmra.mxu3 %vm11631_vm12, %v2728_v4  ;;  %v4760_v19 = vpop.permute.xlu2 %4759  ;;  %11638 = vst [vmem:[#allocation51_spill] sm:$0xff] %v9492_v58 }
 0x751   : > { %v9479_v41 = vsel %vm11632_vm14, %v3471_v60, %v11227_v50  ;;  %v9490_v36 = vsel %vm11243_vm11, %v5405_v34, %v4760_v19  ;;  %v5357_v50 = vunpack.c.l.b16 %v4461_v33  ;;  %v9508_v19 = vadd.s32 184, %v8231_v46 }
 0x752   : > { %11633 = vst [vmem:[#allocation72_spill] sm:$0xff] %v9479_v41  ;;  %v4430_v62 = vsel %vm4334_vm8, %v9479_v41, 0.0  ;;  %v4459_v41 = vpack.c.bf16 %v4427_v57, %v4427_v57  ;;  %v9494_v2 = vpop.f32.mrf.mxu3  ;;  %vm11642_vm8 = vmmov %vm11637_vm5 }
 0x753   : > { %v4462_v4 = vpack.c.bf16 %v4430_v62, %v4430_v62  ;;  %vm11657_vm5 = vmmov %vm11645_vm3 }
 0x754   : > { %v5355_v7 = vunpack.c.l.b16 %v4459_v41 }
 0x755   : > { %v5358_v53 = vunpack.c.l.b16 %v4462_v4 }
 0x756   : > { %v2705_v60 = vpop.f32.mrf.mxu0  ;;  %v5381_v38 = vpack.c.b16 %v5356_v17, %v5355_v7  ;;  %v9498_v34 = vpop.permute.xlu0 %5283  ;;  %v11646_v7 = vmov 0 }
 0x757   : > { %v5382_v23 = vpack.c.b16 %v5358_v53, %v5357_v50  ;;  %11640 = vst [vmem:[#allocation7_spill] sm:$0xff] %v9498_v34  ;;  %v9503_v53 = vadd.s32 176, %v8231_v46  ;;  %v11643_v50 = vld [vmem:[#allocation4_spill] sm:$0xff] }
 0x758   : > { %v5663_v33 = vsel %vm11642_vm8, %v5381_v38, 1065369472 }
 0x759   : > { %v5665_v1 = vsel %vm11639_vm9, %v5382_v23, 1065369472  ;;  %v5705_v41 = vsel %vm11249_vm10, %v5663_v33, 0  ;;  %v11235_v17 = vshra.s32 %v9503_v53, 4  ;;  %vm11660_vm9 = vmmov %vm11645_vm3 }
 0x75a   : > { %v5707_v62 = vsel %vm11249_vm10, %v5665_v1, 0  ;;  %v11234_v1 = vshra.s32 %v9508_v19, 4 }
 0x75b   : > { %5751 = vmatpush.bf16.xpose.msrb.mxu0 %v5707_v62  ;;  %vm9521_vm12 = vcmp.ge.s32.totalorder %v11235_v17, 1  ;;  %v11659_v17 = vpack.c.b16 %v9137_v15, %v9149_v42 }
 0x75c   : > { %v11647_v7 = vsel %vm9521_vm12, 4294967295, %v11646_v7  ;;  %vm9534_vm14 = vcmp.ge.s32.totalorder %v11234_v1, 1 }
 0x75d   : > { %11648 = vst [vmem:[#allocation4_spill] sm:$0xff] %v11647_v7  ;;  %v11699_v7 = vld [vmem:[#allocation21_spill] sm:$0xff] }
 0x75e   : > { %v2707_v54 = vpop.f32.mrf.mxu0  ;;  %v9525_v62 = vpop.permute.xlu0 %4869 }
 0x75f   : > { %v2729_v16 = vpack.c.bf16 %v2707_v54, %v2705_v60  ;;  %v2844_v10 = vpop.f32.mrf.mxu3  ;;  %v11644_v60 = vpack.c.b16 %v9230_v59, %v9240_v5  ;;  %v11649_v54 = vld [vmem:[#allocation17_spill] sm:$0xff] }
 0x760   : > { %v2894_v57 = vadd.f32 %v2844_v10, %v11643_v50  ;;  %v11650_v10 = vmov 0 }
 0x761   : > { %6003 = vmatmul.msk.bf16.gmra.mxu3 %vm11641_vm7, %v2729_v16  ;;  %v5661_v23 = vsel %vm11645_vm3, %v11644_v60, 1065369472  ;;  %v11651_v10 = vsel %vm9534_vm14, 4294967295, %v11650_v10  ;;  %vm11662_vm7 = vnez %v11661_v51  ;;  %v11667_v51 = vld [vmem:[#allocation50_spill] sm:$0xff] }
 0x762   : > { %v9512_v4 = vadd.f32 %v9061_v56, %v2894_v57  ;;  %v5703_v33 = vsel %vm11249_vm10, %v5661_v23, 0  ;;  %11652 = vst [vmem:[#allocation17_spill] sm:$0xff] %v11651_v10  ;;  %v11654_v57 = vld [vmem:[#allocation53_spill] sm:$0xff] }
 0x763   : > { %5752 = vmatpush.bf16.xpose.msrb.mxu0 %v5705_v41  ;;  %v11655_v41 = vld [vmem:[#allocation52_spill] sm:$0xff] }
 0x764   : > { %v3412_v59 = vsel %vm9521_vm12, %v9512_v4, 0.0  ;;  %v11656_v60 = vpack.c.b16 %v11654_v57, %v11655_v41  ;;  %v11663_v57 = vld [vmem:[#allocation48_spill] sm:$0xff]  ;;  %v9563_v41 = vadd.s32 192, %v8231_v46 }
 0x765   : > { %vm11664_vm8 = vnez %v11663_v57 }
 0x766   : > { %vm4322_vm3 = vmand %vm11664_vm8, %vm11662_vm7  ;;  %vm11681_vm8 = vcmask 261120  }
 0x767   : > { %v2846_v38 = vpop.f32.mrf.mxu3  ;;  %v4418_v32 = vsel %vm4322_vm3, %v11670_v11, 0.0  ;;  %vm11682_vm3 = vmmov %vm11681_vm8 }
 0x768   : > { %v2895_v16 = vadd.f32 %v2846_v38, %v11649_v54  ;;  %v5062_v5 = vpop.permute.xlu1 %5061  ;;  %v2710_v38 = vpop.f32.mrf.mxu0  ;;  %v3444_v54 = vpack.c.bf16 %v3412_v59, %v3412_v59  ;;  %v3028_v59 = vand.u32 15, %v9508_v19 }
 0x769   : > { %v9545_v23 = vsel %vm11657_vm5, %v11656_v60, %v5062_v5  ;;  %v9559_v5 = vpop.permute.xlu2 %5173  ;;  %v11242_v60 = vrot.slane %v9512_v4, 1  ;;  %vm11669_vm5 = vnez %v11668_v30  ;;  %v9586_v30 = vadd.s32 200, %v8231_v46 }
 0x76a   : > { %v9539_v50 = vadd.f32 %v9061_v56, %v2895_v16  ;;  %11658 = vst [vmem:[#allocation53_spill] sm:$0xff] %v9545_v23  ;;  %v5659_v16 = vsel %vm11660_vm9, %v11659_v17, 1065369472  ;;  %v4613_v15 = vunpack.c.l.b16 %v3444_v54  ;;  %v4417_v57 = vsel %vm11669_vm5, %v11667_v51, 0.0 }
 0x76b   : > { %5753 = vmatpush.bf16.xpose.msrb.mxu0 %v5703_v33  ;;  %11665 = vst [vmem:[#allocation52_spill] sm:$0xff] %v9559_v5  ;;  %vm11672_vm9 = vcmp.lt.s32.totalorder %v8231_v46, 7  ;;  %vm9581_vm7 = vcmp.lt.s32.totalorder %v3028_v59, 15  ;;  %v4450_v51 = vpack.c.bf16 %v4418_v32, %v4418_v32  ;;  %v11715_v5 = vld [vmem:[#allocation42_spill] sm:$0xff] }
 0x76c   : > { %11653 = vst [vmem:[#allocation73_spill] sm:$0xff] %v9539_v50  ;;  %v3413_v33 = vsel %vm9534_vm14, %v9539_v50, 0.0  ;;  %v3475_v1 = vrot.slane %v9539_v50, 1  ;;  %vm3574_vm5 = vmand %vm9534_vm14, %vm9581_vm7  ;;  %vm11694_vm14 = vcmp.lt.s32.totalorder %v8231_v46, 7 }
 0x76d   : > { %v3445_v35 = vpack.c.bf16 %v3413_v33, %v3413_v33  ;;  %v5701_v33 = vsel %vm11249_vm10, %v5659_v16, 0  ;;  %v11675_v16 = vmov 0  ;;  %11678 = vst [vmem:[#allocation45_spill] sm:$0xff] %v9586_v30 }
 0x76e   : > { %v9566_v0 = vpop.permute.xlu0 %5285  ;;  %v9578_v43 = vsel %vm11672_vm9, %v11242_v60, %v3475_v1  ;;  %v11676_v16 = vsel %vm9581_vm7, 4294967295, %v11675_v16  ;;  %vm11684_vm9 = vmmov %vm11682_vm3 }
 0x76f   : > { %11666 = vst [vmem:[#allocation38_spill] sm:$0xff] %v9566_v0  ;;  %v4614_v42 = vunpack.c.l.b16 %v3445_v35  ;;  %v2849_v17 = vpop.f32.mrf.mxu3  ;;  %v11674_v35 = vld [vmem:[#allocation29_spill] sm:$0xff] }
 0x770   : > { %v2896_v34 = vadd.f32 %v2849_v17, %v11671_v13  ;;  %11673 = vst [vmem:[#allocation48_spill] sm:$0xff] %v9578_v43  ;;  %v3036_v54 = vand.u32 15, %v11674_v35  ;;  %v2712_v49 = vpop.f32.mrf.mxu0  ;;  %v11680_v17 = vpack.c.b16 %v9271_v44, %v9269_v9  ;;  %v11683_v9 = vpack.c.b16 %v9355_v24, %v9363_v47 }
 0x771   : > { %v4634_v29 = vpack.c.b16 %v4614_v42, %v4613_v15  ;;  %11677 = vst [vmem:[#allocation50_spill] sm:$0xff] %v11676_v16  ;;  %v2730_v15 = vpack.c.bf16 %v2712_v49, %v2710_v38  ;;  %v4449_v42 = vpack.c.bf16 %v4417_v57, %v4417_v57  ;;  %v11685_v49 = vmov 0 }
 0x772   : > { %v9590_v11 = vadd.f32 %v9061_v56, %v2896_v34  ;;  %v5657_v59 = vsel %vm11681_vm8, %v11680_v17, 1065369472  ;;  %v5655_v44 = vsel %vm11684_vm9, %v11683_v9, 1065369472  ;;  %vm9611_vm8 = vcmp.lt.s32.totalorder %v3036_v54, 15 }
 0x773   : > { %5754 = vmatpush.bf16.xpose.msrb.mxu0 %v5701_v33  ;;  %4661 = vrot.lane.b32.xlu0 %v4634_v29, %s6258_s14  ;;  %v3669_v33 = vsel %vm9521_vm12, %v9578_v43, 0.0  ;;  %v11686_v49 = vsel %vm9611_vm8, 4294967295, %v11685_v49  ;;  %v11688_v34 = vshra.s32 %v9563_v41, 4  ;;  %v11689_v38 = vmov 0 }
 0x774   : > { %11679 = vst [vmem:[#allocation8_spill] sm:$0xff] %v9590_v11  ;;  %v3059_v60 = vrot.slane %v9590_v11, 7  ;;  %v3476_v13 = vrot.slane %v9590_v11, 1  ;;  %6004 = vmatmul.msk.bf16.gmra.mxu3 %vm11682_vm3, %v2730_v15  ;;  %v3027_v57 = vand.u32 15, %v9503_v53  ;;  %v11692_v15 = vld [vmem:[#allocation40_spill] sm:$0xff]  ;;  %v5699_v47 = vsel %vm11249_vm10, %v5657_v59, 0 }
 0x775   : > { %11687 = vst [vmem:[#allocation18_spill] sm:$0xff] %v11686_v49  ;;  %vm9619_vm3 = vcmp.ge.s32.totalorder %v11688_v34, 1  ;;  %vm11693_vm11 = vnez %v11692_v15  ;;  %v3701_v17 = vpack.c.bf16 %v3669_v33, %v3669_v33  ;;  %v5345_v9 = vunpack.c.l.b16 %v4449_v42  ;;  %v9635_v34 = vpop.permute.xlu2 %4761  ;;  %v11700_v33 = vld [vmem:[#allocation49_spill] sm:$0xff] }
 0x776   : > { %v11690_v38 = vsel %vm9619_vm3, 4294967295, %v11689_v38  ;;  %v9628_v24 = vpop.permute.xlu0 %4871  ;;  %v9633_v54 = vsel %vm11694_vm14, %v3475_v1, %v3476_v13  ;;  %v5697_v43 = vsel %vm11249_vm10, %v5655_v44, 0  ;;  %v11696_v35 = vrot.slane %v9539_v50, 7  ;;  %vm11701_vm14 = vmand %vm9410_vm4, %vm11693_vm11 }
 0x777   : > { %11691 = vst [vmem:[#allocation74_spill] sm:$0xff] %v11690_v38  ;;  %v2851_v29 = vpop.f32.mrf.mxu3  ;;  %v3670_v32 = vsel %vm3574_vm5, %v9633_v54, 0.0  ;;  %vm11697_vm9 = vcmp.lt.s32.totalorder %v8231_v46, 1  ;;  %v5346_v59 = vunpack.c.l.b16 %v4450_v51  ;;  %v3414_v42 = vsel %vm9619_vm3, %v9590_v11, 0.0 }
 0x778   : > { %11695 = vst [vmem:[#allocation75_spill] sm:$0xff] %v9633_v54  ;;  %v9643_v10 = vsel %vm11697_vm9, %v11696_v35, %v3059_v60  ;;  %v2897_v0 = vadd.f32 %v2851_v29, %v11699_v7  ;;  %v3702_v1 = vpack.c.bf16 %v3670_v32, %v3670_v32  ;;  %v4416_v44 = vsel %vm11701_vm14, %v11700_v33, 0.0  ;;  %v11702_v35 = vld [vmem:[#allocation33_spill] sm:$0xff]  ;;  %v11712_v33 = vld [vmem:[#allocation31_spill] sm:$0xff] }
 0x779   : > { %11698 = vst [vmem:[#allocation76_spill] sm:$0xff] %v9643_v10  ;;  %vm11703_vm5 = vnez %v11702_v35  ;;  %v11704_v7 = vshra.s32 %v9586_v30, 4  ;;  %v11705_v51 = vmov 0  ;;  %vm9665_vm12 = vcmp.ge.s32.totalorder %v3027_v57, 1  ;;  %v11792_v35 = vld [vmem:[#allocation51_spill] sm:$0xff] }
 0x77a   : > { %vm4350_vm9 = vmand %vm11703_vm5, %vm9611_vm8  ;;  %v4415_v29 = vsel %vm9398_vm13, %v11710_v3, 0.0  ;;  %vm11713_vm4 = vnez %v11712_v33  ;;  %v9676_v11 = vadd.f32 %v9061_v56, %v2897_v0  ;;  %v4725_v54 = vunpack.c.l.b16 %v3701_v17  ;;  %v11815_v32 = vld [vmem:[#allocation7_spill] sm:$0xff] }
 0x77b   : > { %5755 = vmatpush.bf16.xpose.msrb.mxu0 %v5699_v47  ;;  %vm9661_vm10 = vcmp.ge.s32.totalorder %v11704_v7, 1  ;;  %v11711_v47 = vld [vmem:[#allocation37_spill] sm:$0xff]  ;;  %v4726_v7 = vunpack.c.l.b16 %v3702_v1  ;;  %v3797_v57 = vsel %vm9665_vm12, %v9643_v10, 0.0  ;;  %v3446_v49 = vpack.c.bf16 %v3414_v42, %v3414_v42 }
 0x77c   : > { %v11706_v51 = vsel %vm9661_vm10, 4294967295, %v11705_v51  ;;  %v4445_v15 = vsel %vm11713_vm4, %v11711_v47, 0.0  ;;  %11714 = vst [vmem:[#allocation49_spill] sm:$0xff] %v9676_v11  ;;  %v5376_v50 = vpack.c.b16 %v5346_v59, %v5345_v9  ;;  %v4448_v23 = vpack.c.bf16 %v4416_v44, %v4416_v44 }
 0x77d   : > { %11707 = vst [vmem:[#allocation21_spill] sm:$0xff] %v11706_v51  ;;  %v4446_v58 = vsel %vm4350_vm9, %v11715_v5, 0.0  ;;  %v3060_v25 = vrot.slane %v9676_v11, 7  ;;  %v3477_v3 = vrot.slane %v9676_v11, 1  ;;  %v4746_v33 = vpack.c.b16 %v4726_v7, %v4725_v54 }
 0x77e   : > { %v3415_v0 = vsel %vm9661_vm10, %v9676_v11, 0.0  ;;  %v3829_v1 = vpack.c.bf16 %v3797_v57, %v3797_v57  ;;  %v3030_v47 = vand.u32 15, %v9586_v30  ;;  %v4447_v63 = vpack.c.bf16 %v4415_v29, %v4415_v29  ;;  %v9688_v10 = vpop.permute.xlu0 %5287  ;;  %v9709_v11 = vpop.permute.xlu2 %5175 }
 0x77f   : > { %v3447_v17 = vpack.c.bf16 %v3415_v0, %v3415_v0  ;;  %4773 = vrot.lane.b32.xlu1 %v4746_v33, %s6257_s21  ;;  %vm11716_vm13 = vcmp.lt.s32.totalorder %v8231_v46, 1  ;;  %v4477_v9 = vpack.c.bf16 %v4445_v15, %v4445_v15  ;;  %v4478_v59 = vpack.c.bf16 %v4446_v58, %v4446_v58  ;;  %v2854_v42 = vpop.f32.mrf.mxu3  ;;  %v11721_v33 = vld [vmem:[#allocation22_spill] sm:$0xff] }
 0x780   : > { %v9693_v5 = vsel %vm11716_vm13, %v3059_v60, %v3060_v25  ;;  %v9696_v54 = vadd.s32 208, %v8231_v46  ;;  %v4615_v44 = vunpack.c.l.b16 %v3446_v49  ;;  %vm11719_vm14 = vcmp.lt.s32.totalorder %v8231_v46, 7 }
 0x781   : > { %11717 = vst [vmem:[#allocation33_spill] sm:$0xff] %v9693_v5  ;;  %v4616_v7 = vunpack.c.l.b16 %v3447_v17  ;;  %v3830_v57 = vpack.c.bf16 %v9693_v5, %v9693_v5  ;;  %v9702_v29 = vsel %vm11719_vm14, %v3476_v13, %v3477_v3  ;;  %v2898_v0 = vadd.f32 %v2854_v42, %v11721_v33 }
 0x782   : > { %11718 = vst [vmem:[#allocation47_spill] sm:$0xff] %v9696_v54  ;;  %vm11722_vm9 = vcmask 261120   ;;  %v5344_v15 = vunpack.c.l.b16 %v4448_v23  ;;  %v9707_v58 = vadd.s32 216, %v8231_v46  ;;  %v4837_v17 = vunpack.c.l.b16 %v3829_v1 }
 0x783   : > { %11720 = vst [vmem:[#allocation37_spill] sm:$0xff] %v9702_v29  ;;  %5756 = vmatpush.bf16.xpose.msrb.mxu0 %v5697_v43  ;;  %v5653_v60 = vsel %vm11722_vm9, %v5376_v50, 1065369472  ;;  %v4635_v49 = vpack.c.b16 %v4616_v7, %v4615_v44  ;;  %v4838_v30 = vunpack.c.l.b16 %v3830_v57  ;;  %vm9711_vm13 = vcmp.lt.s32.totalorder %v3030_v47, 15 }
 0x784   : > { %v11723_v5 = vmov 0  ;;  %v9716_v13 = vadd.f32 %v9061_v56, %v2898_v0  ;;  %v3671_v43 = vsel %vm9619_vm3, %v9702_v29, 0.0  ;;  %v5374_v50 = vunpack.c.l.b16 %v4478_v59  ;;  %vm3576_vm14 = vmand %vm9661_vm10, %vm9711_vm13 }
 0x785   : > { %v11724_v5 = vsel %vm9711_vm13, 4294967295, %v11723_v5  ;;  %v11271_v23 = vshra.s32 %v9696_v54, 4  ;;  %4663 = vrot.lane.b32.xlu0 %v4635_v49, %s6258_s14  ;;  %v4858_v42 = vpack.c.b16 %v4838_v30, %v4837_v17  ;;  %v5343_v44 = vunpack.c.l.b16 %v4447_v63 }
 0x786   : > { %11725 = vst [vmem:[#allocation42_spill] sm:$0xff] %v11724_v5  ;;  %v3061_v1 = vrot.slane %v9716_v13, 7  ;;  %v11272_v47 = vrot.slane %v9716_v13, 1  ;;  %v5373_v7 = vunpack.c.l.b16 %v4477_v9  ;;  %v11275_v57 = vshra.s32 %v9707_v58, 4  ;;  %v9734_v0 = vpop.permute.xlu0 %4873 }
 0x787   : > { %11726 = vst [vmem:[#allocation22_spill] sm:$0xff] %v9716_v13  ;;  %4885 = vrot.lane.b32.xlu2 %v4858_v42, %s6255_s16  ;;  %vm11727_vm9 = vcmask 269312   ;;  %v3989_v30 = vpack.c.bf16 %v9702_v29, %v9702_v29  ;;  %v3703_v63 = vpack.c.bf16 %v3671_v43, %v3671_v43  ;;  %v5375_v33 = vpack.c.b16 %v5344_v15, %v5343_v44  ;;  %v2856_v15 = vpop.f32.mrf.mxu3 }
 0x788   : > { %v5695_v59 = vsel %vm11727_vm9, %v5653_v60, 0  ;;  %vm11728_vm11 = vcmp.lt.s32.totalorder %v8231_v46, 7  ;;  %v5390_v9 = vpack.c.b16 %v5374_v50, %v5373_v7  ;;  %v11730_v17 = vshra.s32 %v9503_v53, 4  ;;  %v11743_v7 = vld [vmem:[#allocation25_spill] sm:$0xff] }
 0x789   : > { %v9740_v49 = vsel %vm11728_vm11, %v3477_v3, %v11272_v47  ;;  %v11731_v42 = vmov 0  ;;  %vm9750_vm9 = vcmp.ge.s32.totalorder %v11271_v23, 1  ;;  %v11734_v60 = vmov 0 }
 0x78a   : > { %11729 = vst [vmem:[#allocation77_spill] sm:$0xff] %v9740_v49  ;;  %vm9744_vm4 = vcmp.lt.s32.totalorder %v11730_v17, 15  ;;  %v11735_v60 = vsel %vm9750_vm9, 4294967295, %v11734_v60  ;;  %v3958_v43 = vsel %vm9581_vm7, %v9740_v49, 0.0  ;;  %v3672_v3 = vsel %vm3576_vm14, %v9740_v49, 0.0 }
 0x78b   : > { %v11732_v42 = vsel %vm9744_vm4, 4294967295, %v11731_v42  ;;  %11736 = vst [vmem:[#allocation79_spill] sm:$0xff] %v11735_v60  ;;  %v11737_v50 = vshra.s32 %v9508_v19, 4  ;;  %v11738_v53 = vmov 0  ;;  %vm11741_vm8 = vcmp.lt.s32.totalorder %v8231_v46, 1  ;;  %vm4053_vm10 = vmand %vm9744_vm4, %vm9665_vm12  ;;  %5757 = vmatpush.bf16.xpose.msrb.mxu0 %v5695_v59 }
 0x78c   : > { %11733 = vst [vmem:[#allocation78_spill] sm:$0xff] %v11732_v42  ;;  %v9766_v44 = vsel %vm11741_vm8, %v3060_v25, %v3061_v1  ;;  %v2899_v17 = vadd.f32 %v2856_v15, %v11743_v7  ;;  %v3990_v23 = vpack.c.bf16 %v3958_v43, %v3958_v43  ;;  %v3704_v47 = vpack.c.bf16 %v3672_v3, %v3672_v3  ;;  %v9787_v15 = vpop.permute.xlu1 %4649 }
 0x78d   : > { %vm9760_vm11 = vcmp.lt.s32.totalorder %v11737_v50, 15  ;;  %11742 = vst [vmem:[#allocation81_spill] sm:$0xff] %v9766_v44  ;;  %vm9775_vm14 = vcmp.ge.s32.totalorder %v11275_v57, 1  ;;  %v11744_v19 = vmov 0  ;;  %v9779_v50 = vpop.permute.xlu2 %4875  ;;  %v5029_v25 = vunpack.c.l.b16 %v3989_v30 }
 0x78e   : > { %v11739_v53 = vsel %vm9760_vm11, 4294967295, %v11738_v53  ;;  %v11745_v19 = vsel %vm9775_vm14, 4294967295, %v11744_v19  ;;  %v4727_v29 = vunpack.c.l.b16 %v3703_v63  ;;  %v4277_v49 = vsel %vm9744_vm4, %v9716_v13, 0.0 }
 0x78f   : > { %11740 = vst [vmem:[#allocation80_spill] sm:$0xff] %v11739_v53  ;;  %v3416_v59 = vsel %vm9750_vm9, %v9716_v13, 0.0  ;;  %v9790_v43 = vadd.f32 %v9061_v56, %v2899_v17  ;;  %v5030_v3 = vunpack.c.l.b16 %v3990_v23  ;;  %v4728_v7 = vunpack.c.l.b16 %v3704_v47 }
 0x790   : > { %11746 = vst [vmem:[#allocation25_spill] sm:$0xff] %v11745_v19  ;;  %v4149_v57 = vsel %vm4053_vm10, %v9766_v44, 0.0  ;;  %vm11748_vm8 = vcmask 261120   ;;  %v3029_v42 = vand.u32 15, %v9563_v41  ;;  %v4309_v54 = vpack.c.bf16 %v4277_v49, %v4277_v49  ;;  %v11906_v19 = vld [vmem:[#allocation27_spill] sm:$0xff] }
 0x791   : > { %11747 = vst [vmem:[#allocation82_spill] sm:$0xff] %v9790_v43  ;;  %v5651_v30 = vsel %vm11748_vm8, %v5375_v33, 1065369472  ;;  %vm11749_vm7 = vmmov %vm11748_vm8  ;;  %v11284_v16 = vrot.slane %v9790_v43, 7  ;;  %v5050_v51 = vpack.c.b16 %v5030_v3, %v5029_v25  ;;  %v4747_v38 = vpack.c.b16 %v4728_v7, %v4727_v29  ;;  %v9803_v33 = vpop.permute.xlu0 %4763 }
 0x792   : > { %v5681_v63 = vsel %vm11749_vm7, %v5390_v9, 1065369472  ;;  %v4278_v56 = vsel %vm9760_vm11, %v9790_v43, 0.0  ;;  %v3417_v23 = vsel %vm9775_vm14, %v9790_v43, 0.0  ;;  %v3448_v47 = vpack.c.bf16 %v3416_v59, %v3416_v59 }
 0x793   : > { %v4181_v17 = vpack.c.bf16 %v4149_v57, %v4149_v57  ;;  %5077 = vrot.lane.b32.xlu0 %v5050_v51, %s6258_s14  ;;  %4775 = vrot.lane.b32.xlu1 %v4747_v38, %s6257_s21  ;;  %v4310_v9 = vpack.c.bf16 %v4278_v56, %v4278_v56  ;;  %v3449_v25 = vpack.c.bf16 %v3417_v23, %v3417_v23  ;;  %vm11750_vm10 = vcmp.lt.s32.totalorder %v8231_v46, 1 }
 0x794   : > { %v9811_v29 = vsel %vm11750_vm10, %v3061_v1, %v11284_v16  ;;  %vm11752_vm7 = vcmask 269312   ;;  %vm9818_vm4 = vcmp.ge.s32.totalorder %v3029_v42, 1  ;;  %v5253_v38 = vunpack.c.l.b16 %v4309_v54  ;;  %v5064_v5 = vpop.permute.xlu1 %5063  ;;  %vm3180_vm10 = vmand %vm9068_vm2, %vm9214_vm15 }
 0x795   : > { %11751 = vst [vmem:[#allocation83_spill] sm:$0xff] %v9811_v29  ;;  %v5693_v49 = vsel %vm11752_vm7, %v5651_v30, 0  ;;  %vm11753_vm8 = vmmov %vm11752_vm7  ;;  %v4150_v57 = vsel %vm9760_vm11, %v9811_v29, 0.0  ;;  %v5254_v59 = vunpack.c.l.b16 %v4310_v9  ;;  %v4618_v7 = vunpack.c.l.b16 %v3449_v25  ;;  %v9827_v53 = vpop.permute.xlu2 %5177 }
 0x796   : > { %v5723_v3 = vsel %vm11753_vm8, %v5681_v63, 0  ;;  %5758 = vmatpush.bf16.xpose.msrb.mxu0 %v5693_v49  ;;  %v4182_v56 = vpack.c.bf16 %v4150_v57, %v4150_v57  ;;  %v4617_v1 = vunpack.c.l.b16 %v3448_v47  ;;  %v3799_v30 = vsel %vm9818_vm4, %v9766_v44, 0.0  ;;  %vm3178_vm2 = vmand %vm8904_vm6, %vm9044_vm0 }
 0x797   : > { %v5274_v63 = vpack.c.b16 %v5254_v59, %v5253_v38  ;;  %v5141_v23 = vunpack.c.l.b16 %v4181_v17  ;;  %v3832_v42 = vpack.c.bf16 %v9811_v29, %v9811_v29  ;;  %v3831_v25 = vpack.c.bf16 %v3799_v30, %v3799_v30 }
 0x798   : > { %v5142_v16 = vunpack.c.l.b16 %v4182_v56  ;;  %v4636_v54 = vpack.c.b16 %v4618_v7, %v4617_v1  ;;  %vm11293_vm7 = vcmask 785408   ;;  %v3276_v38 = vsel %vm3180_vm10, %v9034_v31, 0.0  ;;  %v11757_v7 = vld [vmem:[#allocation9_spill] sm:$0xff] }
 0x799   : > { %5301 = vrot.lane.b32.xlu2 %v5274_v63, %s6255_s16  ;;  %v4654_v49 = vpop.permute.xlu0 %4653  ;;  %v4840_v47 = vunpack.c.l.b16 %v3832_v42  ;;  %v4839_v17 = vunpack.c.l.b16 %v3831_v25  ;;  %v3308_v20 = vpack.c.bf16 %v3276_v38, %v3276_v38  ;;  %v3274_v31 = vsel %vm3178_vm2, %v11757_v7, 0.0  ;;  %v11766_v7 = vld [vmem:[#allocation11_spill] sm:$0xff] }
 0x79a   : > { %v5162_v9 = vpack.c.b16 %v5142_v16, %v5141_v23  ;;  %v9842_v16 = vsel %vm11293_vm7, %v9490_v36, %v9628_v24  ;;  %vm11758_vm15 = vcmask 523264   ;;  %v3306_v30 = vpack.c.bf16 %v3274_v31, %v3274_v31 }
 0x79b   : > { %4665 = vrot.lane.b32.xlu0 %v4636_v54, %s6258_s14  ;;  %v4859_v57 = vpack.c.b16 %v4840_v47, %v4839_v17  ;;  %v4525_v1 = vunpack.c.l.b16 %v3308_v20  ;;  %v5447_v37 = vsel %vm11758_vm15, %v9377_v22, %v9391_v48  ;;  %vm11759_vm6 = vcmask 261120   ;;  %vm11760_vm0 = vmmov %vm11758_vm15 }
 0x79c   : > { %5189 = vrot.lane.b32.xlu1 %v5162_v9, %s6257_s21  ;;  %v4652_v6 = vpop.permute.xlu1 %4651  ;;  %v5483_v39 = vsel %vm11293_vm7, %v5447_v37, %v9525_v62  ;;  %v4523_v9 = vunpack.c.l.b16 %v3306_v30  ;;  %vm11761_vm8 = vmmov %vm11759_vm6  ;;  %v3854_v62 = vpack.c.bf16 %v9205_v12, %v9205_v12 }
 0x79d   : > { %v5292_v45 = vpop.permute.xlu2 %5291  ;;  %vm11762_vm10 = vmmov %vm11760_vm0 }
 0x79e   : > { %5790 = vmatpush.bf16.xpose.msra.mxu0 %v5723_v3  ;;  %v3277_v3 = vsel %vm9074_vm1, %v9104_v61, 0.0  ;;  %vm11756_vm1 = vnez %v11518_v27  ;;  %vm11764_vm2 = vmmov %vm11759_vm6 }
 0x79f   : > { %v3309_v59 = vpack.c.bf16 %v3277_v3, %v3277_v3  ;;  %v3275_v36 = vsel %vm11756_vm1, %v8979_v55, 0.0  ;;  %vm11768_vm1 = vmmov %vm11764_vm2 }
 0x7a0   : > { %v3307_v56 = vpack.c.bf16 %v3275_v36, %v3275_v36  ;;  %vm11769_vm15 = vmmov %vm11760_vm0 }
 0x7a1   : > { %4887 = vrot.lane.b32.xlu2 %v4859_v57, %s6255_s16  ;;  %v9850_v61 = vpop.permute.xlu0 %5289  ;;  %v4526_v24 = vunpack.c.l.b16 %v3309_v59  ;;  %v11763_v59 = vpack.c.b16 %v9333_v14, %v9331_v28 }
 0x7a2   : > { %v4524_v23 = vunpack.c.l.b16 %v3307_v56 }
 0x7a3   : > { %v4550_v63 = vpack.c.b16 %v4526_v24, %v4525_v1  ;;  %v5535_v20 = vsel %vm11764_vm2, %v11763_v59, %v5064_v5  ;;  %v11765_v24 = vld [vmem:[#allocation14_spill] sm:$0xff]  ;;  %v11770_v1 = vld [vmem:[#allocation13_spill] sm:$0xff]  ;;  %vm11776_vm2 = vmmov %vm11760_vm0 }
 0x7a4   : > { %v5066_v25 = vpop.permute.xlu1 %5065  ;;  %v4549_v17 = vpack.c.b16 %v4524_v23, %v4523_v9  ;;  %v11767_v31 = vpack.c.b16 %v11765_v24, %v11766_v7  ;;  %v3851_v28 = vpack.c.bf16 %v11770_v1, %v11770_v1  ;;  %v11780_v24 = vrot.slane %v9716_v13, 1  ;;  %v11782_v7 = vld [vmem:[#allocation35_spill] sm:$0xff] }
 0x7a5   : > { %v5414_v42 = vsel %vm11759_vm6, %v4550_v63, %v4654_v49  ;;  %v4878_v27 = vpop.permute.xlu2 %4877  ;;  %v3853_v49 = vpack.c.bf16 %v9142_v21, %v9142_v21  ;;  %vm11771_vm6 = vmmov %vm11768_vm1  ;;  %v9945_v1 = vadd.s32 224, %v8231_v46 }
 0x7a6   : > { %v5411_v22 = vsel %vm11761_vm8, %v4549_v17, %v4652_v6  ;;  %v4942_v6 = vunpack.c.l.b16 %v3854_v62  ;;  %v5408_v56 = vsel %vm11768_vm1, %v11767_v31, %v9787_v15  ;;  %vm11772_vm8 = vmmov %vm11760_vm0 }
 0x7a7   : > { %v5453_v48 = vsel %vm11762_vm10, %v5411_v22, %v9803_v33  ;;  %v3852_v33 = vpack.c.bf16 %v9064_v18, %v9064_v18  ;;  %v4941_v36 = vunpack.c.l.b16 %v3853_v49  ;;  %v5451_v23 = vsel %vm11760_vm0, %v5408_v56, %v9635_v34  ;;  %vm11775_vm10 = vmmov %vm11768_vm1 }
 0x7a8   : > { %v5492_v38 = vsel %vm11293_vm7, %v5453_v48, %v9779_v50  ;;  %v5578_v50 = vsel %vm11769_vm15, %v5535_v20, %v9709_v11  ;;  %v5489_v11 = vsel %vm11293_vm7, %v5451_v23, %v9734_v0  ;;  %v3841_v20 = vpack.c.bf16 %v11614_v40, %v11614_v40  ;;  %vm11777_vm15 = vmmov %vm11760_vm0  ;;  %v11789_v23 = vld [vmem:[#allocation34_spill] sm:$0xff] }
 0x7a9   : > { %v4766_v54 = vpop.permute.xlu0 %4765  ;;  %v4966_v14 = vpack.c.b16 %v4942_v6, %v4941_v36  ;;  %v5614_v5 = vsel %vm11293_vm7, %v5578_v50, %v9688_v10  ;;  %v4940_v18 = vunpack.c.l.b16 %v3852_v33  ;;  %v11773_v10 = vld [vmem:[#allocation2_spill] sm:$0xff]  ;;  %v11779_v36 = vld [vmem:[#allocation20_spill] sm:$0xff] }
 0x7aa   : > { %v5455_v55 = vsel %vm11760_vm0, %v5414_v42, %v4766_v54  ;;  %v4939_v54 = vunpack.c.l.b16 %v3851_v28  ;;  %v11778_v6 = vld [vmem:[#allocation30_spill] sm:$0xff]  ;;  %vm11784_vm0 = vcmp.lt.s32.totalorder %v8231_v46, 1 }
 0x7ab   : > { %v5495_v47 = vsel %vm11293_vm7, %v5455_v55, %v4878_v27  ;;  %v3850_v55 = vpack.c.bf16 %v11773_v10, %v11773_v10  ;;  %v11289_v33 = vrot.slane %v11778_v6, 7 }
 0x7ac   : > { %5725 = vmatpush.bf16.xpose.msra.mxu1 %v5495_v47  ;;  %v5068_v57 = vpop.permute.xlu1 %5067  ;;  %v4965_v9 = vpack.c.b16 %v4940_v18, %v4939_v54  ;;  %v11774_v47 = vld [vmem:[#allocation10_spill] sm:$0xff]  ;;  %v11787_v18 = vld [vmem:[#allocation16_spill] sm:$0xff] }
 0x7ad   : > { %v5182_v30 = vpop.permute.xlu2 %5181  ;;  %v3849_v17 = vpack.c.bf16 %v11774_v47, %v11774_v47  ;;  %v4938_v48 = vunpack.c.l.b16 %v3850_v55 }
 0x7ae   : > { %v5541_v34 = vsel %vm11775_vm10, %v4965_v9, %v5068_v57  ;;  %v3479_v57 = vrot.slane %v9790_v43, 1  ;;  %vm11788_vm10 = vmmov %vm11776_vm2 }
 0x7af   : > { %v4937_v62 = vunpack.c.l.b16 %v3849_v17  ;;  %v11796_v17 = vld [vmem:[#allocation52_spill] sm:$0xff] }
 0x7b1   : > { %v5180_v3 = vpop.permute.xlu0 %5179  ;;  %v4964_v49 = vpack.c.b16 %v4938_v48, %v4937_v62  ;;  %v11291_v48 = vshra.s32 %v9945_v1, 4  ;;  %v11799_v62 = vld [vmem:[#allocation38_spill] sm:$0xff] }
 0x7b2   : > { %v5582_v22 = vsel %vm11776_vm2, %v5541_v34, %v5180_v3  ;;  %vm11790_vm2 = vnez %v11789_v23  ;;  %v11797_v34 = vld [vmem:[#allocation53_spill] sm:$0xff] }
 0x7b3   : > { %v5620_v0 = vsel %vm11293_vm7, %v5582_v22, %v5292_v45  ;;  %v5538_v59 = vsel %vm11768_vm1, %v4964_v49, %v5066_v25  ;;  %v4929_v25 = vunpack.c.l.b16 %v3841_v20  ;;  %v11800_v49 = vld [vmem:[#allocation73_spill] sm:$0xff] }
 0x7b4   : > { %5726 = vmatpush.bf16.xpose.msra.mxu1 %v5492_v38  ;;  %v5294_v42 = vpop.permute.xlu1 %5293  ;;  %v3842_v38 = vpack.c.bf16 %v11615_v8, %v11615_v8  ;;  %v5580_v3 = vsel %vm11777_vm15, %v5538_v59, %v9827_v53  ;;  %v2893_v8 = vadd.f32 %v9494_v2, %v11779_v36  ;;  %v11783_v53 = vrot.slane %v11782_v7, 7  ;;  %v9936_v2 = vld [vmem:[%s11096_s4 + $0xb] ss:$0 sm:$0xff]  ;;  %v11808_v7 = vld [vmem:[#allocation44_spill] sm:$0xff] }
 0x7b5   : > { %v5617_v45 = vsel %vm11293_vm7, %v5580_v3, %v9850_v61  ;;  %v3032_v61 = vand.u32 15, %v9707_v58 }
 0x7b6   : > { %v9939_v56 = vadd.f32 %v9936_v2, %v2893_v8 }
 0x7b8   : > { %v11288_v9 = vrot.slane %v9939_v56, 7 }
 0x7b9   : > { %v5070_v37 = vpop.permute.xlu0 %5069 }
 0x7ba   : > { %v5544_v63 = vsel %vm11771_vm6, %v4966_v14, %v5070_v37  ;;  %vm11781_vm6 = vcmp.lt.s32.totalorder %v8231_v46, 7  ;;  %v3057_v37 = vrot.slane %v9512_v4, 7 }
 0x7bb   : > { %v5584_v15 = vsel %vm11772_vm8, %v5544_v63, %v5182_v30  ;;  %v9922_v40 = vsel %vm11781_vm6, %v11780_v24, %v3479_v57  ;;  %vm11786_vm8 = vmmov %vm11768_vm1  ;;  %v5445_v63 = vsel %vm11788_vm10, %v11787_v18, %v9262_v52  ;;  %v9973_v52 = vadd.s32 232, %v8231_v46  ;;  %v11816_v18 = vld [vmem:[#allocation17_spill] sm:$0xff] }
 0x7bc   : > { %5727 = vmatpush.bf16.xpose.msra.mxu1 %v5489_v11  ;;  %v5623_v27 = vsel %vm11293_vm7, %v5584_v15, %v5294_v42  ;;  %v3673_v50 = vsel %vm9750_vm9, %v9922_v40, 0.0  ;;  %v11791_v15 = vld [vmem:[#allocation5_spill] sm:$0xff]  ;;  %v5480_v54 = vsel %vm11293_vm7, %v5445_v63, %v11792_v35  ;;  %vm11798_vm1 = vmmov %vm11788_vm10 }
 0x7bd   : > { %5738 = vmatpush.bf16.xpose.msrb.mxu2 %v5623_v27  ;;  %v3705_v10 = vpack.c.bf16 %v3673_v50, %v3673_v50  ;;  %v5576_v22 = vsel %vm11798_vm1, %v11797_v34, %v11796_v17  ;;  %vm11802_vm6 = vmmov %vm11784_vm0  ;;  %v11918_v27 = vld [vmem:[#allocation41_spill] sm:$0xff] }
 0x7bf   : > { %v4729_v24 = vunpack.c.l.b16 %v3705_v10  ;;  %v11825_v10 = vld [vmem:[#allocation26_spill] sm:$0xff] }
 0x7c4   : > { %5728 = vmatpush.bf16.xpose.msra.mxu1 %v9842_v16  ;;  %v4930_v16 = vunpack.c.l.b16 %v3842_v38  ;;  %v11801_v38 = vrot.slane %v11800_v49, 7 }
 0x7c5   : > { %5739 = vmatpush.bf16.xpose.msrb.mxu2 %v5620_v0  ;;  %v5611_v0 = vsel %vm11293_vm7, %v5576_v22, %v11799_v62 }
 0x7c6   : > { %v4960_v31 = vpack.c.b16 %v4930_v16, %v4929_v25  ;;  %v9995_v59 = vsel %vm11802_vm6, %v3057_v37, %v11801_v38  ;;  %v11806_v25 = vld [vmem:[#allocation4_spill] sm:$0xff]  ;;  %v11826_v38 = vld [vmem:[#allocation45_spill] sm:$0xff] }
 0x7c7   : > { %vm11807_vm10 = vnez %v11806_v25 }
 0x7c8   : > { %v5526_v14 = vsel %vm11786_vm8, %v4960_v31, %v9311_v26  ;;  %v3991_v26 = vpack.c.bf16 %v9922_v40, %v9922_v40  ;;  %vm11805_vm8 = vmmov %vm11802_vm6  ;;  %v11811_v31 = vshra.s32 %v9563_v41, 4  ;;  %v11818_v41 = vmov 0 }
 0x7c9   : > { %v10009_v8 = vsel %vm11805_vm8, %v11288_v9, %v3057_v37  ;;  %vm10036_vm8 = vcmp.ge.s32.totalorder %v11291_v48, 1 }
 0x7ca   : > { %v5031_v36 = vunpack.c.l.b16 %v3991_v26  ;;  %vm10020_vm6 = vcmp.lt.s32.totalorder %v11811_v31, 15  ;;  %v11819_v41 = vsel %vm10036_vm8, 4294967295, %v11818_v41 }
 0x7cb   : > { %11820 = vst [vmem:[#allocation11_spill] sm:$0xff] %v11819_v41 }
 0x7cc   : > { %5729 = vmatpush.bf16.xpose.msra.mxu1 %v5483_v39  ;;  %v9930_v39 = vsel %vm11784_vm0, %v11289_v33, %v11783_v53  ;;  %vm11804_vm0 = vmmov %vm11798_vm1  ;;  %v11809_v53 = vld [vmem:[#allocation67_spill] sm:$0xff] }
 0x7cd   : > { %5740 = vmatpush.bf16.xpose.msrb.mxu2 %v5617_v45  ;;  %11785 = vst [vmem:[#allocation9_spill] sm:$0xff] %v9930_v39  ;;  %v9950_v28 = vsel %vm11703_vm5, %v9930_v39, 0.0  ;;  %v9961_v42 = vsel %vm11790_vm2, %v9930_v39, 0.0  ;;  %vm9968_vm5 = vcmp.lt.s32.totalorder %v3032_v61, 15  ;;  %vm3188_vm2 = vmand %vm11807_vm10, %vm9665_vm12  ;;  %vm11817_vm12 = vnez %v11816_v18 }
 0x7ce   : > { %vm3578_vm15 = vmand %vm9775_vm14, %vm9968_vm5  ;;  %v3285_v63 = vsel %vm11817_vm12, %v9995_v59, 0.0  ;;  %v3284_v35 = vsel %vm3188_vm2, %v10009_v8, 0.0  ;;  %vm11823_vm10 = vcmp.lt.s32.totalorder %v8231_v46, 1 }
 0x7cf   : > { %vm11810_vm1 = vmmov %vm11804_vm0 }
 0x7d0   : > { %v5574_v61 = vsel %vm11810_vm1, %v11809_v53, %v11808_v7  ;;  %vm4055_vm1 = vmand %vm10020_vm6, %vm9818_vm4  ;;  %v11830_v7 = vmov 0 }
 0x7d3   : > { %v2859_v30 = vpop.f32.mrf.mxu3 }
 0x7d4   : > { %v2900_v11 = vadd.f32 %v2859_v30, %v11791_v15  ;;  %5730 = vmatpush.bf16.xpose.msra.mxu1 %v5480_v54  ;;  %v5608_v30 = vsel %vm11293_vm7, %v5574_v61, %v11815_v32  ;;  %v11822_v54 = vrot.slane %v9790_v43, 7  ;;  %v11833_v61 = vld [vmem:[#allocation47_spill] sm:$0xff] }
 0x7d5   : > { %5741 = vmatpush.bf16.xpose.msrb.mxu2 %v5614_v5  ;;  %v11803_v5 = vld [vmem:[#allocation62_spill] sm:$0xff]  ;;  %v3031_v31 = vand.u32 15, %v11833_v61 }
 0x7d6   : > { %v9979_v47 = vadd.f32 %v9936_v2, %v2900_v11  ;;  %v9999_v20 = vsel %vm11804_vm0, %v5526_v14, %v11803_v5  ;;  %v11290_v14 = vshra.s32 %v9973_v52, 4  ;;  %vm11814_vm0 = vcmp.lt.s32.totalorder %v8231_v46, 7 }
 0x7d7   : > { %v11827_v5 = vshra.s32 %v11826_v38, 4  ;;  %v3034_v38 = vand.u32 15, %v9973_v52  ;;  %vm10099_vm12 = vcmp.ge.s32.totalorder %v3031_v31, 1 }
 0x7d8   : > { %11795 = vst [vmem:[#allocation14_spill] sm:$0xff] %v9979_v47  ;;  %v3063_v16 = vrot.slane %v9979_v47, 7  ;;  %v3480_v45 = vrot.slane %v9979_v47, 1  ;;  %v4279_v62 = vsel %vm10020_vm6, %v9979_v47, 0.0  ;;  %vm10072_vm2 = vcmp.ge.s32.totalorder %v11290_v14, 1 }
 0x7d9   : > { %v11831_v7 = vsel %vm10072_vm2, 4294967295, %v11830_v7  ;;  %v3418_v53 = vsel %vm10036_vm8, %v9979_v47, 0.0 }
 0x7da   : > { %v10027_v37 = vsel %vm11814_vm0, %v3479_v57, %v3480_v45  ;;  %v10054_v26 = vsel %vm11823_vm10, %v11822_v54, %v3063_v16  ;;  %11832 = vst [vmem:[#allocation2_spill] sm:$0xff] %v11831_v7  ;;  %v3316_v54 = vpack.c.bf16 %v3284_v35, %v3284_v35  ;;  %vm11835_vm0 = vmmov %vm11823_vm10  ;;  %vm11840_vm10 = vcmp.lt.s32.totalorder %v8231_v46, 7 }
 0x7db   : > { %v2861_v23 = vpop.f32.mrf.mxu3  ;;  %v3960_v11 = vsel %vm9711_vm13, %v10027_v37, 0.0  ;;  %v3674_v57 = vsel %vm3578_vm15, %v10027_v37, 0.0  ;;  %11824 = vst [vmem:[#allocation13_spill] sm:$0xff] %v10054_v26  ;;  %vm10066_vm15 = vcmp.lt.s32.totalorder %v11827_v5, 15 }
 0x7dc   : > { %v2901_v17 = vadd.f32 %v2861_v23, %v11825_v10  ;;  %v3992_v34 = vpack.c.bf16 %v3960_v11, %v3960_v11  ;;  %v3706_v22 = vpack.c.bf16 %v3674_v57, %v3674_v57  ;;  %v4151_v11 = vsel %vm4055_vm1, %v10054_v26, 0.0 }
 0x7dd   : > { %5742 = vmatpush.bf16.xpose.msrb.mxu2 %v5611_v0  ;;  %v4311_v57 = vpack.c.bf16 %v4279_v62, %v4279_v62  ;;  %v3317_v10 = vpack.c.bf16 %v3285_v63, %v3285_v63  ;;  %vm10116_vm1 = vcmp.lt.s32.totalorder %v3034_v38, 15 }
 0x7de   : > { %v10081_v32 = vadd.f32 %v9936_v2, %v2901_v17  ;;  %v5032_v18 = vunpack.c.l.b16 %v3992_v34  ;;  %v4730_v23 = vunpack.c.l.b16 %v3706_v22  ;;  %v3450_v34 = vpack.c.bf16 %v3418_v53, %v3418_v53 }
 0x7df   : > { %v4183_v22 = vpack.c.bf16 %v4151_v11, %v4151_v11 }
 0x7e0   : > { %11834 = vst [vmem:[#allocation10_spill] sm:$0xff] %v10081_v32  ;;  %v3064_v5 = vrot.slane %v10081_v32, 7  ;;  %v3481_v9 = vrot.slane %v10081_v32, 1  ;;  %v5051_v33 = vpack.c.b16 %v5032_v18, %v5031_v36  ;;  %v4748_v14 = vpack.c.b16 %v4730_v23, %v4729_v24 }
 0x7e1   : > { %v4280_v17 = vsel %vm10066_vm15, %v10081_v32, 0.0  ;;  %v3419_v0 = vsel %vm10072_vm2, %v10081_v32, 0.0  ;;  %v11837_v24 = vmov 0  ;;  %v5255_v18 = vunpack.c.l.b16 %v4311_v57 }
 0x7e2   : > { %5079 = vrot.lane.b32.xlu0 %v5051_v33, %s6258_s14  ;;  %4777 = vrot.lane.b32.xlu1 %v4748_v14, %s6257_s21  ;;  %v4312_v63 = vpack.c.bf16 %v4280_v17, %v4280_v17  ;;  %v3451_v35 = vpack.c.bf16 %v3419_v0, %v3419_v0  ;;  %v10097_v36 = vsel %vm11835_vm0, %v3063_v16, %v3064_v5  ;;  %v11838_v24 = vsel %vm10099_vm12, 4294967295, %v11837_v24  ;;  %v11841_v16 = vld [vmem:[#allocation6_spill] sm:$0xff]  ;;  %vm3580_vm0 = vmand %vm10072_vm2, %vm10116_vm1 }
 0x7e3   : > { %11836 = vst [vmem:[#allocation30_spill] sm:$0xff] %v10097_v36  ;;  %v4152_v53 = vsel %vm10066_vm15, %v10097_v36, 0.0  ;;  %v3801_v33 = vsel %vm10099_vm12, %v10054_v26, 0.0  ;;  %v10111_v14 = vsel %vm11840_vm10, %v3480_v45, %v3481_v9  ;;  %v4619_v0 = vunpack.c.l.b16 %v3450_v34 }
 0x7e4   : > { %11839 = vst [vmem:[#allocation20_spill] sm:$0xff] %v11838_v24  ;;  %v2864_v62 = vpop.f32.mrf.mxu3  ;;  %v5256_v31 = vunpack.c.l.b16 %v4312_v63  ;;  %v4620_v11 = vunpack.c.l.b16 %v3451_v35  ;;  %v4184_v17 = vpack.c.bf16 %v4152_v53, %v4152_v53  ;;  %v5143_v48 = vunpack.c.l.b16 %v4183_v22  ;;  %v11845_v22 = vld [vmem:[#allocation43_spill] sm:$0xff] }
 0x7e5   : > { %v2902_v23 = vadd.f32 %v2864_v62, %v11841_v16  ;;  %v3834_v57 = vpack.c.bf16 %v10097_v36, %v10097_v36  ;;  %5743 = vmatpush.bf16.xpose.msrb.mxu2 %v5608_v30  ;;  %v3675_v63 = vsel %vm10036_vm8, %v10111_v14, 0.0  ;;  %v4533_v35 = vunpack.c.l.b16 %v3316_v54 }
 0x7e6   : > { %v5275_v45 = vpack.c.b16 %v5256_v31, %v5255_v18  ;;  %v5144_v13 = vunpack.c.l.b16 %v4184_v17  ;;  %v4534_v34 = vunpack.c.l.b16 %v3317_v10  ;;  %v5605_v62 = vsel %vm11293_vm7, %v9999_v20, %v11845_v22 }
 0x7e7   : > { %v10121_v55 = vadd.f32 %v9936_v2, %v2902_v23  ;;  %v3833_v38 = vpack.c.bf16 %v3801_v33, %v3801_v33  ;;  %v4637_v30 = vpack.c.b16 %v4620_v11, %v4619_v0  ;;  %v4842_v54 = vunpack.c.l.b16 %v3834_v57  ;;  %v11858_v0 = vld [vmem:[#allocation29_spill] sm:$0xff] }
 0x7e8   : > { %5303 = vrot.lane.b32.xlu2 %v5275_v45, %s6255_s16  ;;  %v5163_v18 = vpack.c.b16 %v5144_v13, %v5143_v48  ;;  %v3993_v10 = vpack.c.bf16 %v10111_v14, %v10111_v14  ;;  %v3707_v23 = vpack.c.bf16 %v3675_v63, %v3675_v63  ;;  %v11846_v20 = vshra.s32 %v11833_v61, 4  ;;  %v11853_v61 = vld [vmem:[#allocation28_spill] sm:$0xff] }
 0x7e9   : > { %11844 = vst [vmem:[#allocation35_spill] sm:$0xff] %v10121_v55  ;;  %v3065_v53 = vrot.slane %v10121_v55, 7  ;;  %v11299_v16 = vrot.slane %v10121_v55, 1  ;;  %vm11849_vm7 = vcmp.lt.s32.totalorder %v8231_v46, 7  ;;  %v11850_v48 = vshra.s32 %v9707_v58, 4 }
 0x7ea   : > { %vm10140_vm10 = vcmp.lt.s32.totalorder %v11846_v20, 15  ;;  %4667 = vrot.lane.b32.xlu0 %v4637_v30, %s6258_s14  ;;  %5191 = vrot.lane.b32.xlu1 %v5163_v18, %s6257_s21  ;;  %v11854_v11 = vshra.s32 %v11853_v61, 4  ;;  %v11855_v17 = vmov 0  ;;  %v11859_v57 = vshra.s32 %v11858_v0, 4  ;;  %v11865_v18 = vld [vmem:[#allocation23_spill] sm:$0xff] }
 0x7eb   : > { %v10150_v13 = vsel %vm11849_vm7, %v3481_v9, %v11299_v16  ;;  %vm10154_vm2 = vcmp.lt.s32.totalorder %v11850_v48, 15  ;;  %v11860_v45 = vmov 0  ;;  %v4841_v63 = vunpack.c.l.b16 %v3833_v38  ;;  %vm4057_vm14 = vmand %vm10140_vm10, %vm10099_vm12 }
 0x7ec   : > { %vm10160_vm8 = vcmp.ge.s32.totalorder %v11854_v11, 1  ;;  %vm10166_vm9 = vcmp.ge.s32.totalorder %v11859_v57, 1  ;;  %v2866_v9 = vpop.f32.mrf.mxu3  ;;  %v3962_v58 = vsel %vm9968_vm5, %v10150_v13, 0.0  ;;  %v3676_v22 = vsel %vm3580_vm0, %v10150_v13, 0.0 }
 0x7ed   : > { %v11856_v17 = vsel %vm10160_vm8, 4294967295, %v11855_v17  ;;  %v11861_v45 = vsel %vm10166_vm9, 4294967295, %v11860_v45  ;;  %vm11863_vm7 = vcmp.lt.s32.totalorder %v8231_v46, 1  ;;  %v2903_v20 = vadd.f32 %v2866_v9, %v11865_v18  ;;  %5744 = vmatpush.bf16.xpose.msrb.mxu2 %v5605_v62 }
 0x7ee   : > { %11857 = vst [vmem:[#allocation16_spill] sm:$0xff] %v11856_v17  ;;  %v10176_v30 = vsel %vm11863_vm7, %v3064_v5, %v3065_v53  ;;  %v3994_v48 = vpack.c.bf16 %v3962_v58, %v3962_v58  ;;  %v3708_v11 = vpack.c.bf16 %v3676_v22, %v3676_v22  ;;  %v4281_v38 = vsel %vm10140_vm10, %v10121_v55, 0.0 }
 0x7ef   : > { %11862 = vst [vmem:[#allocation34_spill] sm:$0xff] %v11861_v45  ;;  %v4860_v0 = vpack.c.b16 %v4842_v54, %v4841_v63  ;;  %v5033_v57 = vunpack.c.l.b16 %v3993_v10  ;;  %v4731_v16 = vunpack.c.l.b16 %v3707_v23  ;;  %v3420_v5 = vsel %vm10160_vm8, %v10121_v55, 0.0  ;;  %v4662_v10 = vpop.permute.xlu0 %4661 }
 0x7f0   : > { %11864 = vst [vmem:[#allocation5_spill] sm:$0xff] %v10176_v30  ;;  %v10190_v43 = vadd.f32 %v9936_v2, %v2903_v20  ;;  %v5034_v47 = vunpack.c.l.b16 %v3994_v48  ;;  %v4732_v32 = vunpack.c.l.b16 %v3708_v11  ;;  %v4153_v9 = vsel %vm4057_vm14, %v10176_v30, 0.0  ;;  %vm3190_vm14 = vmand %vm9619_vm3, %vm9818_vm4 }
 0x7f1   : > { %v4554_v58 = vpack.c.b16 %v4534_v34, %v4533_v35  ;;  %v4313_v22 = vpack.c.bf16 %v4281_v38, %v4281_v38  ;;  %v3033_v18 = vand.u32 15, %v9945_v1  ;;  %v10195_v54 = vadd.s32 160, %v8231_v46  ;;  %4889 = vrot.lane.b32.xlu2 %v4860_v0, %s6255_s16 }
 0x7f2   : > { %v11307_v23 = vrot.slane %v10190_v43, 7  ;;  %v5052_v63 = vpack.c.b16 %v5034_v47, %v5033_v57  ;;  %v4749_v20 = vpack.c.b16 %v4732_v32, %v4731_v16  ;;  %v10200_v62 = vadd.s32 168, %v8231_v46  ;;  %v11867_v32 = vld [vmem:[#allocation33_spill] sm:$0xff] }
 0x7f3   : > { %v4282_v35 = vsel %vm10154_vm2, %v10190_v43, 0.0  ;;  %v3421_v34 = vsel %vm10166_vm9, %v10190_v43, 0.0  ;;  %v3452_v48 = vpack.c.bf16 %v3420_v5, %v3420_v5  ;;  %v4185_v11 = vpack.c.bf16 %v4153_v9, %v4153_v9  ;;  %v11868_v16 = vld [vmem:[#allocation21_spill] sm:$0xff] }
 0x7f4   : > { %5081 = vrot.lane.b32.xlu0 %v5052_v63, %s6258_s14  ;;  %4779 = vrot.lane.b32.xlu1 %v4749_v20, %s6257_s21  ;;  %v4314_v38 = vpack.c.bf16 %v4282_v35, %v4282_v35  ;;  %vm11869_vm0 = vnez %v11868_v16  ;;  %v3453_v57 = vpack.c.bf16 %v3421_v34, %v3421_v34  ;;  %v10221_v5 = vsel %vm11863_vm7, %v3065_v53, %v11307_v23  ;;  %v4774_v34 = vpop.permute.xlu1 %4773  ;;  %v11876_v23 = vld [vmem:[#allocation76_spill] sm:$0xff] }
 0x7f5   : > { %v3287_v0 = vsel %vm11869_vm0, %v11867_v32, 0.0  ;;  %11870 = vst [vmem:[#allocation51_spill] sm:$0xff] %v10221_v5  ;;  %vm11871_vm12 = vcmask 261120   ;;  %v5257_v63 = vunpack.c.l.b16 %v4313_v22  ;;  %v4154_v51 = vsel %vm10154_vm2, %v10221_v5, 0.0 }
 0x7f6   : > { %v5426_v9 = vsel %vm11871_vm12, %v4554_v58, %v4662_v10  ;;  %vm10227_vm11 = vcmp.ge.s32.totalorder %v3033_v18, 1  ;;  %v3483_v35 = vrot.slane %v10190_v43, 1  ;;  %v5258_v47 = vunpack.c.l.b16 %v4314_v38 }
 0x7f7   : > { %v4622_v16 = vunpack.c.l.b16 %v3453_v57  ;;  %v4186_v26 = vpack.c.bf16 %v4154_v51, %v4154_v51  ;;  %vm11874_vm3 = vcmask 523264   ;;  %v3286_v58 = vsel %vm3190_vm14, %v11876_v23, 0.0 }
 0x7f8   : > { %v10233_v53 = vsel %vm11874_vm3, %v5426_v9, %v4774_v34  ;;  %v4621_v22 = vunpack.c.l.b16 %v3452_v48  ;;  %v3803_v10 = vsel %vm10227_vm11, %v10176_v30, 0.0  ;;  %v5276_v18 = vpack.c.b16 %v5258_v47, %v5257_v63  ;;  %v4664_v30 = vpop.permute.xlu0 %4663 }
 0x7f9   : > { %11875 = vst [vmem:[#allocation52_spill] sm:$0xff] %v10233_v53  ;;  %v5145_v7 = vunpack.c.l.b16 %v4185_v11  ;;  %v5146_v36 = vunpack.c.l.b16 %v4186_v26  ;;  %v3836_v41 = vpack.c.bf16 %v10221_v5, %v10221_v5  ;;  %v3319_v44 = vpack.c.bf16 %v3287_v0, %v3287_v0 }
 0x7fa   : > { %v11312_v38 = vshra.s32 %v10195_v54, 4  ;;  %v10243_v57 = vadd.s32 144, %v8231_v46  ;;  %5305 = vrot.lane.b32.xlu2 %v5276_v18, %s6255_s16  ;;  %v4638_v9 = vpack.c.b16 %v4622_v16, %v4621_v22  ;;  %v3835_v51 = vpack.c.bf16 %v3803_v10, %v3803_v10 }
 0x7fb   : > { %v5164_v48 = vpack.c.b16 %v5146_v36, %v5145_v7  ;;  %v11877_v34 = vrot.slane %v10121_v55, 1  ;;  %vm11878_vm4 = vcmp.lt.s32.totalorder %v8231_v46, 7  ;;  %v3318_v26 = vpack.c.bf16 %v3286_v58, %v3286_v58  ;;  %v2869_v58 = vpop.f32.mrf.mxu3 }
 0x7fc   : > { %4669 = vrot.lane.b32.xlu0 %v4638_v9, %s6258_s14  ;;  %v4844_v0 = vunpack.c.l.b16 %v3836_v41  ;;  %v11879_v63 = vpack.c.bf16 %v9950_v28, %v9950_v28  ;;  %v11880_v7 = vpack.c.bf16 %v9961_v42, %v9961_v42  ;;  %v3026_v41 = vand.u32 15, %v10200_v62  ;;  %v11881_v9 = vld [vmem:[#allocation24_spill] sm:$0xff] }
 0x7fd   : > { %v3489_v11 = vsel %vm11878_vm4, %v11877_v34, %v3483_v35  ;;  %5193 = vrot.lane.b32.xlu1 %v5164_v48, %s6257_s21  ;;  %v4536_v28 = vunpack.c.l.b16 %v3319_v44  ;;  %v2904_v48 = vadd.f32 %v2869_v58, %v11881_v9  ;;  %v4843_v34 = vunpack.c.l.b16 %v3835_v51 }
 0x7fe   : > { %v10255_v47 = vunpack.c.l.b16 %v11879_v63  ;;  %v10260_v36 = vunpack.c.l.b16 %v11880_v7  ;;  %v3677_v10 = vsel %vm10160_vm8, %v3489_v11, 0.0  ;;  %vm10271_vm12 = vcmp.ge.s32.totalorder %v11312_v38, 1 }
 0x7ff   : > { %v11882_v42 = vmov 0  ;;  %v4535_v63 = vunpack.c.l.b16 %v3318_v26  ;;  %v3995_v7 = vpack.c.bf16 %v3489_v11, %v3489_v11  ;;  %v10276_v22 = vadd.s32 152, %v8231_v46 }
 0x800   : > { %v11883_v42 = vsel %vm10271_vm12, 4294967295, %v11882_v42  ;;  %v10280_v53 = vadd.f32 %v9936_v2, %v2904_v48  ;;  %v4861_v44 = vpack.c.b16 %v4844_v0, %v4843_v34  ;;  %v3709_v18 = vpack.c.bf16 %v3677_v10, %v3677_v10  ;;  %v11893_v0 = vld [vmem:[#allocation70_spill] sm:$0xff] }
 0x801   : > { %11884 = vst [vmem:[#allocation53_spill] sm:$0xff] %v11883_v42  ;;  %v11885_v51 = vshra.s32 %v10200_v62, 4  ;;  %v11886_v58 = vmov 0  ;;  %v11888_v9 = vshra.s32 %v9945_v1, 4  ;;  %vm10294_vm7 = vcmp.lt.s32.totalorder %v3026_v41, 15  ;;  %v11896_v41 = vld [vmem:[#allocation75_spill] sm:$0xff] }
 0x802   : > { %v11891_v38 = vmov 0  ;;  %v3025_v48 = vand.u32 15, %v10195_v54  ;;  %v10302_v10 = vsel %vm10271_vm12, %v11893_v0, 0.0  ;;  %v4555_v34 = vpack.c.b16 %v4536_v28, %v4535_v63  ;;  %4891 = vrot.lane.b32.xlu2 %v4861_v44, %s6255_s16 }
 0x803   : > { %vm10284_vm14 = vcmp.ge.s32.totalorder %v11885_v51, 1  ;;  %vm10290_vm0 = vcmp.lt.s32.totalorder %v11888_v9, 15  ;;  %v11892_v38 = vsel %vm10294_vm7, 4294967295, %v11891_v38  ;;  %v3484_v1 = vrot.slane %v10280_v53, 1  ;;  %v11894_v9 = vld [vmem:[#allocation18_spill] sm:$0xff]  ;;  %v2871_v55 = vpop.f32.mrf.mxu3 }
 0x804   : > { %v11887_v58 = vsel %vm10284_vm14, 4294967295, %v11886_v58  ;;  %vm11895_vm3 = vnez %v11894_v9  ;;  %v3956_v16 = vsel %vm10294_vm7, %v11896_v41, 0.0  ;;  %v5035_v5 = vunpack.c.l.b16 %v3995_v7  ;;  %vm11915_vm7 = vmand %vm10154_vm2, %vm9968_vm5  ;;  %v12051_v9 = vld [vmem:[#allocation11_spill] sm:$0xff] }
 0x805   : > { %vm3582_vm4 = vmand %vm10166_vm9, %vm11895_vm3  ;;  %v11897_v17 = vshra.s32 %v9973_v52, 4  ;;  %v3035_v63 = vand.u32 15, %v11853_v61  ;;  %v10324_v44 = vsel %vm10284_vm14, %v9939_v56, 0.0  ;;  %vm11900_vm9 = vcmp.lt.s32.totalorder %v8231_v46, 7  ;;  %v11901_v52 = vld [vmem:[#allocation48_spill] sm:$0xff]  ;;  %v4776_v39 = vpop.permute.xlu1 %4775 }
 0x806   : > { %v3488_v51 = vsel %vm11900_vm9, %v3483_v35, %v3484_v1  ;;  %v4733_v45 = vunpack.c.l.b16 %v3709_v18  ;;  %v4283_v7 = vsel %vm10290_vm0, %v10280_v53, 0.0  ;;  %v11902_v12 = vrot.slane %v10280_v53, 7 }
 0x807   : > { %vm10316_vm8 = vcmp.lt.s32.totalorder %v11897_v17, 15  ;;  %v3987_v17 = vpack.c.bf16 %v11901_v52, %v11901_v52  ;;  %v3964_v61 = vsel %vm10116_vm1, %v3488_v51, 0.0  ;;  %v3678_v21 = vsel %vm3582_vm4, %v3488_v51, 0.0 }
 0x808   : > { %v11903_v60 = vrot.slane %v10190_v43, 7  ;;  %vm11904_vm12 = vcmp.lt.s32.totalorder %v8231_v46, 1  ;;  %v3988_v18 = vpack.c.bf16 %v3956_v16, %v3956_v16  ;;  %vm11905_vm9 = vcmask 261120  }
 0x809   : > { %v5429_v24 = vsel %vm11905_vm9, %v4555_v34, %v4664_v30  ;;  %v2905_v29 = vadd.f32 %v2871_v55, %v11906_v19  ;;  %v3996_v52 = vpack.c.bf16 %v3964_v61, %v3964_v61  ;;  %v3710_v41 = vpack.c.bf16 %v3678_v21, %v3678_v21  ;;  %vm4344_vm9 = vmand %vm10066_vm15, %vm9711_vm13 }
 0x80a   : > { %v10341_v35 = vsel %vm11904_vm12, %v11903_v60, %v11902_v12  ;;  %vm11907_vm14 = vcmask 523264   ;;  %v4315_v42 = vpack.c.bf16 %v4283_v7, %v4283_v7  ;;  %vm10348_vm4 = vcmp.ge.s32.totalorder %v3035_v63, 1  ;;  %v11910_v63 = vld [vmem:[#allocation31_spill] sm:$0xff] }
 0x80b   : > { %v10346_v49 = vsel %vm11907_vm14, %v5429_v24, %v4776_v39  ;;  %v11908_v0 = vmov 0  ;;  %v10354_v12 = vsel %vm10140_vm10, %v3489_v11, 0.0  ;;  %v10357_v60 = vadd.f32 %v9936_v2, %v2905_v29 }
 0x80c   : > { %v11909_v0 = vsel %vm10348_vm4, 4294967295, %v11908_v0  ;;  %v5036_v30 = vunpack.c.l.b16 %v3996_v52  ;;  %v4734_v19 = vunpack.c.l.b16 %v3710_v41  ;;  %v10362_v21 = vsel %vm10348_vm4, %v10341_v35, 0.0 }
 0x80d   : > { %v10364_v39 = vunpack.c.l.b16 %v3987_v17  ;;  %v10366_v55 = vunpack.c.l.b16 %v3988_v18  ;;  %v3442_v29 = vpack.c.bf16 %v10302_v10, %v10302_v10  ;;  %v3443_v2 = vpack.c.bf16 %v10324_v44, %v10324_v44  ;;  %v11969_v10 = vld [vmem:[#allocation3_spill] sm:$0xff] }
 0x80e   : > { %v3068_v24 = vrot.slane %v10357_v60, 7  ;;  %v3485_v33 = vrot.slane %v10357_v60, 1  ;;  %v5053_v11 = vpack.c.b16 %v5036_v30, %v5035_v5  ;;  %v4750_v16 = vpack.c.b16 %v4734_v19, %v4733_v45  ;;  %v11970_v44 = vld [vmem:[#allocation71_spill] sm:$0xff] }
 0x80f   : > { %v4284_v34 = vsel %vm10316_vm8, %v10357_v60, 0.0  ;;  %v5259_v41 = vunpack.c.l.b16 %v4315_v42  ;;  %vm11911_vm14 = vnez %v11910_v63  ;;  %v3837_v7 = vpack.c.bf16 %v10362_v21, %v10362_v21 }
 0x810   : > { %v4473_v45 = vpack.c.bf16 %v10354_v12, %v10354_v12  ;;  %5083 = vrot.lane.b32.xlu0 %v5053_v11, %s6258_s14  ;;  %4781 = vrot.lane.b32.xlu1 %v4750_v16, %s6257_s21  ;;  %v4316_v5 = vpack.c.bf16 %v4284_v34, %v4284_v34  ;;  %vm11912_vm12 = vcmp.lt.s32.totalorder %v8231_v46, 7  ;;  %v11913_v42 = vrot.slane %v11778_v6, 1 }
 0x811   : > { %v10397_v52 = vsel %vm11912_vm12, %v3484_v1, %v3485_v33  ;;  %vm11914_vm10 = vmmov %vm11912_vm12  ;;  %v4442_v61 = vsel %vm11915_vm7, %v3488_v51, 0.0  ;;  %v11916_v12 = vrot.slane %v11778_v6, 7  ;;  %vm11919_vm5 = vnez %v11918_v27  ;;  %v11920_v51 = vld [vmem:[#allocation32_spill] sm:$0xff] }
 0x812   : > { %v10403_v17 = vsel %vm11914_vm10, %v3485_v33, %v11913_v42  ;;  %v3997_v18 = vpack.c.bf16 %v10397_v52, %v10397_v52  ;;  %vm11917_vm10 = vcmp.lt.s32.totalorder %v8231_v46, 1  ;;  %v4443_v31 = vsel %vm10290_vm0, %v10397_v52, 0.0  ;;  %vm11928_vm7 = vmand %vm10316_vm8, %vm10116_vm1 }
 0x813   : > { %v3966_v1 = vsel %vm11895_vm3, %v10403_v17, 0.0  ;;  %v10423_v30 = vsel %vm11917_vm10, %v3068_v24, %v11916_v12  ;;  %vm11921_vm2 = vnez %v11920_v51  ;;  %vm10432_vm12 = vcmp.ge.s32.totalorder %v3025_v48, 1  ;;  %vm11927_vm10 = vmand %vm11911_vm14, %vm10348_vm4 }
 0x814   : > { %v11924_v19 = vshra.s32 %v10195_v54, 4  ;;  %v5260_v21 = vunpack.c.l.b16 %v4316_v5  ;;  %v3998_v33 = vpack.c.bf16 %v3966_v1, %v3966_v1  ;;  %v4157_v11 = vsel %vm11927_vm10, %v10423_v30, 0.0  ;;  %vm11929_vm14 = vmand %vm10290_vm0, %vm10227_vm11 }
 0x815   : > { %v4444_v54 = vsel %vm11928_vm7, %v10403_v17, 0.0  ;;  %v5037_v48 = vunpack.c.l.b16 %v3997_v18  ;;  %v4189_v16 = vpack.c.bf16 %v4157_v11, %v4157_v11  ;;  %v4155_v34 = vsel %vm11929_vm14, %v10341_v35, 0.0  ;;  %vm11930_vm13 = vmand %vm11921_vm2, %vm11919_vm5 }
 0x816   : > { %vm10438_vm3 = vcmp.lt.s32.totalorder %v11924_v19, 15  ;;  %v4474_v63 = vpack.c.bf16 %v4442_v61, %v4442_v61  ;;  %v5277_v5 = vpack.c.b16 %v5260_v21, %v5259_v41  ;;  %v5038_v42 = vunpack.c.l.b16 %v3998_v33 }
 0x817   : > { %v4475_v3 = vpack.c.bf16 %v4443_v31, %v4443_v31  ;;  %v4476_v1 = vpack.c.bf16 %v4444_v54, %v4444_v54  ;;  %v5149_v12 = vunpack.c.l.b16 %v4189_v16  ;;  %v3264_v15 = vsel %vm11930_vm13, %v10423_v30, 0.0 }
 0x818   : > { %v11931_v25 = vrot.slane %v10280_v53, 7  ;;  %vm11932_vm15 = vcmp.lt.s32.totalorder %v8231_v46, 1  ;;  %v4440_v61 = vsel %vm4344_vm9, %v10150_v13, 0.0  ;;  %5307 = vrot.lane.b32.xlu2 %v5277_v5, %s6255_s16  ;;  %v5054_v41 = vpack.c.b16 %v5038_v42, %v5037_v48  ;;  %v11987_v5 = vld [vmem:[#allocation37_spill] sm:$0xff] }
 0x819   : > { %v5371_v18 = vunpack.c.l.b16 %v4475_v3  ;;  %v5372_v31 = vunpack.c.l.b16 %v4476_v1  ;;  %v3296_v19 = vpack.c.bf16 %v3264_v15, %v3264_v15  ;;  %v5166_v51 = vpack.c.b16 %v10255_v47, %v5149_v12  ;;  %v11938_v12 = vld [vmem:[#allocation54_spill] sm:$0xff] }
 0x81a   : > { %v10474_v26 = vsel %vm11932_vm15, %v11931_v25, %v3068_v24  ;;  %v4439_v24 = vsel %vm10020_vm6, %v10111_v14, 0.0  ;;  %5085 = vrot.lane.b32.xlu0 %v5054_v41, %s6258_s14  ;;  %v5370_v54 = vunpack.c.l.b16 %v4474_v63  ;;  %v4187_v48 = vpack.c.bf16 %v4155_v34, %v4155_v34  ;;  %vm4051_vm6 = vmand %vm10438_vm3, %vm10432_vm12 }
 0x81b   : > { %v3838_v27 = vpack.c.bf16 %v10474_v26, %v10474_v26  ;;  %v4156_v21 = vsel %vm10316_vm8, %v10474_v26, 0.0  ;;  %v5389_v13 = vpack.c.b16 %v5372_v31, %v5371_v18  ;;  %v4513_v33 = vunpack.c.l.b16 %v3296_v19  ;;  %5197 = vrot.lane.b32.xlu1 %v5166_v51, %s6257_s21  ;;  %v11943_v51 = vld [vmem:[#allocation50_spill] sm:$0xff] }
 0x81c   : > { %v4188_v11 = vpack.c.bf16 %v4156_v21, %v4156_v21  ;;  %v11933_v16 = vshra.s32 %v10200_v62, 4  ;;  %v4472_v28 = vpack.c.bf16 %v4440_v61, %v4440_v61  ;;  %vm11936_vm8 = vcmask 261120   ;;  %v11941_v61 = vld [vmem:[#allocation56_spill] sm:$0xff] }
 0x81d   : > { %v4846_v47 = vunpack.c.l.b16 %v3838_v27  ;;  %v5679_v50 = vsel %vm11936_vm8, %v5389_v13, 1065369472  ;;  %v4544_v14 = vpack.c.b16 %v10260_v36, %v4513_v33  ;;  %v4845_v42 = vunpack.c.l.b16 %v3837_v7  ;;  %vm11939_vm9 = vmmov %vm11936_vm8  ;;  %v11947_v27 = vld [vmem:[#allocation66_spill] sm:$0xff]  ;;  %v11949_v33 = vld [vmem:[#allocation8_spill] sm:$0xff] }
 0x81e   : > { %vm10491_vm1 = vcmp.lt.s32.totalorder %v11933_v16, 15  ;;  %v5369_v3 = vunpack.c.l.b16 %v4473_v45  ;;  %vm11937_vm0 = vcmask 269312   ;;  %v5148_v63 = vunpack.c.l.b16 %v4188_v11  ;;  %v11940_v45 = vld [vmem:[#allocation49_spill] sm:$0xff]  ;;  %vm11950_vm13 = vmmov %vm11936_vm8 }
 0x81f   : > { %v5721_v34 = vsel %vm11937_vm0, %v5679_v50, 0  ;;  %v4148_v62 = vsel %vm10491_vm1, %v11867_v32, 0.0  ;;  %v4471_v1 = vpack.c.bf16 %v4439_v24, %v4439_v24  ;;  %v5396_v15 = vsel %vm11939_vm9, %v4544_v14, %v11938_v12  ;;  %v11945_v32 = vld [vmem:[#allocation80_spill] sm:$0xff] }
 0x820   : > { %5791 = vmatpush.bf16.xpose.msra.mxu0 %v5721_v34  ;;  %v4862_v36 = vpack.c.b16 %v4846_v47, %v4845_v42  ;;  %v5388_v7 = vpack.c.b16 %v5370_v54, %v5369_v3  ;;  %v4276_v25 = vsel %vm10491_vm1, %v11940_v45, 0.0  ;;  %vm11942_vm5 = vcmask 523264   ;;  %v11951_v50 = vld [vmem:[#allocation36_spill] sm:$0xff] }
 0x821   : > { %v5443_v41 = vsel %vm11942_vm5, %v5396_v15, %v11941_v61  ;;  %v5147_v18 = vunpack.c.l.b16 %v4187_v48  ;;  %v4147_v31 = vsel %vm4051_vm6, %v11876_v23, 0.0  ;;  %v5368_v19 = vunpack.c.l.b16 %v4472_v28  ;;  %v11961_v15 = vld [vmem:[#allocation78_spill] sm:$0xff]  ;;  %vm11964_vm5 = vmmov %vm11950_vm13 }
 0x822   : > { %vm11944_vm2 = vnez %v11943_v51  ;;  %vm11946_vm7 = vnez %v11945_v32  ;;  %vm11948_vm14 = vcmask 785408   ;;  %4893 = vrot.lane.b32.xlu2 %v4862_v36, %s6255_s16  ;;  %v5049_v24 = vpack.c.b16 %v10366_v55, %v10364_v39 }
 0x823   : > { %vm4342_vm10 = vmand %vm11946_vm7, %vm11944_vm2  ;;  %v5477_v21 = vsel %vm11948_vm14, %v5443_v41, %v11947_v27  ;;  %v4180_v13 = vpack.c.bf16 %v4148_v62, %v4148_v62  ;;  %v4275_v11 = vsel %vm10438_vm3, %v11949_v33, 0.0  ;;  %v5165_v23 = vpack.c.b16 %v5148_v63, %v5147_v18 }
 0x824   : > { %5731 = vmatpush.bf16.xpose.msra.mxu1 %v5477_v21  ;;  %v5367_v54 = vunpack.c.l.b16 %v4471_v1  ;;  %v4308_v47 = vpack.c.bf16 %v4276_v25, %v4276_v25  ;;  %v3795_v48 = vsel %vm10432_vm12, %v10009_v8, 0.0  ;;  %5075 = vrot.lane.b32.xlu0 %v5049_v24, %s6258_s14  ;;  %v5677_v16 = vsel %vm11950_vm13, %v5388_v7, 1065369472  ;;  %v12042_v1 = vld [vmem:[#allocation57_spill] sm:$0xff] }
 0x825   : > { %v4179_v28 = vpack.c.bf16 %v4147_v31, %v4147_v31  ;;  %v11952_v39 = vshra.s32 %v11951_v50, 4  ;;  %v11953_v55 = vmov 0  ;;  %v4438_v14 = vsel %vm4342_vm10, %v10027_v37, 0.0  ;;  %5195 = vrot.lane.b32.xlu1 %v5165_v23, %s6257_s21 }
 0x826   : > { %v5387_v42 = vpack.c.b16 %v5368_v19, %v5367_v54  ;;  %v4307_v3 = vpack.c.bf16 %v4275_v11, %v4275_v11  ;;  %v11955_v34 = vshra.s32 %v8231_v46, 4  ;;  %v11956_v63 = vmov 0 }
 0x827   : > { %vm10532_vm15 = vcmp.ge.s32.totalorder %v11952_v39, 1  ;;  %v11958_v62 = vand.u32 15, %v10243_v57  ;;  %v5140_v12 = vunpack.c.l.b16 %v4180_v13  ;;  %vm11962_vm0 = vnez %v11961_v15  ;;  %v11983_v15 = vld [vmem:[#allocation70_spill] sm:$0xff] }
 0x828   : > { %v11954_v55 = vsel %vm10532_vm15, 4294967295, %v11953_v55  ;;  %vm10540_vm8 = vcmp.ge.s32.totalorder %v11955_v34, 1  ;;  %v4437_v37 = vsel %vm11962_vm0, %v9922_v40, 0.0  ;;  %v3827_v36 = vpack.c.bf16 %v3795_v48, %v3795_v48 }
 0x829   : > { %v11957_v63 = vsel %vm10540_vm8, 4294967295, %v11956_v63  ;;  %vm10546_vm6 = vcmp.ge.s32.totalorder %v11958_v62, 1  ;;  %v2992_v7 = vshra.s32 %v10276_v22, 4  ;;  %vm11963_vm9 = vcmask 269312  }
 0x82a   : > { %v5719_v25 = vsel %vm11963_vm9, %v5677_v16, 0  ;;  %v5252_v61 = vunpack.c.l.b16 %v4308_v47  ;;  %v3391_v41 = vsel %vm10532_vm15, %v10357_v60, 0.0  ;;  %v4470_v18 = vpack.c.bf16 %v4438_v14, %v4438_v14  ;;  %v11976_v14 = vld [vmem:[#allocation68_spill] sm:$0xff] }
 0x82b   : > { %5792 = vmatpush.bf16.xpose.msra.mxu0 %v5719_v25  ;;  %v5139_v31 = vunpack.c.l.b16 %v4179_v28  ;;  %v4611_v19 = vunpack.c.l.b16 %v3442_v29  ;;  %v4612_v40 = vunpack.c.l.b16 %v3443_v2  ;;  %v3390_v51 = vsel %vm10540_vm8, %v10280_v53, 0.0  ;;  %v11985_v25 = vld [vmem:[#allocation77_spill] sm:$0xff] }
 0x82c   : > { %v5675_v32 = vsel %vm11964_vm5, %v5387_v42, 1065369472  ;;  %v5251_v27 = vunpack.c.l.b16 %v4307_v3  ;;  %v4469_v21 = vpack.c.bf16 %v4437_v37, %v4437_v37  ;;  %v11965_v24 = vshra.s32 %v10243_v57, 4  ;;  %v11977_v42 = vld [vmem:[#allocation69_spill] sm:$0xff] }
 0x82d   : > { %vm11968_vm7 = vnez %v11892_v38  ;;  %v11971_v29 = vpack.c.b16 %v11969_v10, %v11970_v44  ;;  %v5161_v2 = vpack.c.b16 %v5140_v12, %v5139_v31  ;;  %v3423_v11 = vpack.c.bf16 %v3391_v41, %v3391_v41  ;;  %v11988_v44 = vld [vmem:[#allocation53_spill] sm:$0xff] }
 0x82e   : > { %vm10570_vm2 = vcmp.lt.s32.totalorder %v11965_v24, 15  ;;  %v3828_v23 = vpack.c.bf16 %v9995_v59, %v9995_v59  ;;  %v10584_v54 = vunpack.c.l.b16 %v3827_v36  ;;  %v5273_v47 = vpack.c.b16 %v5252_v61, %v5251_v27  ;;  %vm11986_vm4 = vmand %vm10491_vm1, %vm11968_vm7 }
 0x82f   : > { %5167 = vrot.lane.b32.xlu2 %v11971_v29, %s6257_s21  ;;  %vm4049_vm14 = vmand %vm10570_vm2, %vm10546_vm6  ;;  %v3422_v48 = vpack.c.bf16 %v3390_v51, %v3390_v51  ;;  %v5366_v16 = vunpack.c.l.b16 %v4470_v18  ;;  %v11972_v28 = vrot.slane %v9512_v4, 1  ;;  %v11973_v50 = vrot.slane %v9939_v56, 1  ;;  %5187 = vrot.lane.b32.xlu1 %v5161_v2, %s6257_s21 }
 0x830   : > { %vm11974_vm13 = vcmp.lt.s32.totalorder %v8231_v46, 7  ;;  %vm11975_vm0 = vnez %v11887_v58  ;;  %v11978_v3 = vpack.c.b16 %v11976_v14, %v11977_v42  ;;  %vm11979_vm5 = vcmask 269312  }
 0x831   : > { %v10596_v39 = vsel %vm11974_vm13, %v11973_v50, %v11972_v28  ;;  %vm3572_vm9 = vmand %vm11975_vm0, %vm11968_vm7  ;;  %v5717_v34 = vsel %vm11979_vm5, %v5675_v32, 0  ;;  %vm10607_vm10 = vcmp.lt.s32.totalorder %v2992_v7, 15  ;;  %v11982_v12 = vmov %v11973_v50 }
 0x832   : > { %5279 = vrot.lane.b32.xlu0 %v11978_v3, %s6255_s16  ;;  %v11984_v37 = vrot.slane %v11983_v15, 1  ;;  %v4436_v61 = vsel %vm11986_vm4, %v11985_v25, 0.0  ;;  %v5365_v41 = vunpack.c.l.b16 %v4469_v21  ;;  %v4145_v18 = vsel %vm4049_vm14, %v10009_v8, 0.0 }
 0x833   : > { %v4146_v31 = vsel %vm10607_vm10, %v9995_v59, 0.0  ;;  %v3024_v51 = vand.u32 15, %v10276_v22  ;;  %v4592_v32 = vunpack.c.l.b16 %v3423_v11  ;;  %v4836_v27 = vunpack.c.l.b16 %v3828_v23  ;;  %5793 = vmatpush.bf16.xpose.msra.mxu0 %v5717_v34  ;;  %v11992_v11 = vld [vmem:[#allocation73_spill] sm:$0xff] }
 0x834   : > { %v10617_v36 = vsel %vm11974_vm13, %v11984_v37, %v11982_v12  ;;  %v3668_v24 = vsel %vm3572_vm9, %v10596_v39, 0.0  ;;  %v4435_v38 = vsel %vm10438_vm3, %v11987_v5, 0.0  ;;  %v5386_v10 = vpack.c.b16 %v5366_v16, %v5365_v41  ;;  %v11999_v12 = vld [vmem:[#allocation75_spill] sm:$0xff]  ;;  %v12043_v16 = vld [vmem:[#allocation58_spill] sm:$0xff] }
 0x835   : > { %vm11989_vm4 = vnez %v11988_v44  ;;  %v4468_v8 = vpack.c.bf16 %v4436_v61, %v4436_v61  ;;  %vm10638_vm1 = vcmp.lt.s32.totalorder %v3024_v51, 15  ;;  %v4591_v59 = vunpack.c.l.b16 %v3422_v48  ;;  %v12000_v41 = vld [vmem:[#allocation39_spill] sm:$0xff]  ;;  %v12053_v44 = vld [vmem:[#allocation30_spill] sm:$0xff] }
 0x836   : > { %v3667_v21 = vsel %vm11989_vm4, %v10617_v36, 0.0  ;;  %v4177_v22 = vpack.c.bf16 %v4145_v18, %v4145_v18  ;;  %v4178_v2 = vpack.c.bf16 %v4146_v31, %v4146_v31  ;;  %v4274_v23 = vsel %vm10607_vm10, %v11992_v11, 0.0  ;;  %vm4338_vm7 = vmand %vm10607_vm10, %vm10638_vm1  ;;  %v12001_v31 = vld [vmem:[#allocation72_spill] sm:$0xff] }
 0x837   : > { %v3700_v6 = vpack.c.bf16 %v3668_v24, %v3668_v24  ;;  %v4467_v28 = vpack.c.bf16 %v4435_v38, %v4435_v38  ;;  %vm10645_vm3 = vcmp.ge.s32.totalorder %v2992_v7, 1  ;;  %5299 = vrot.lane.b32.xlu2 %v5273_v47, %s6255_s16  ;;  %v4633_v48 = vpack.c.b16 %v4612_v40, %v4611_v19  ;;  %v12002_v24 = vld [vmem:[#allocation48_spill] sm:$0xff] }
 0x838   : > { %v4623_v50 = vpack.c.b16 %v4592_v32, %v4591_v59  ;;  %v4857_v14 = vpack.c.b16 %v4836_v27, %v10584_v54  ;;  %v3699_v42 = vpack.c.bf16 %v3667_v21, %v3667_v21  ;;  %vm3570_vm14 = vmand %vm10645_vm3, %vm10638_vm1  ;;  %vm11995_vm9 = vcmask 261120  }
 0x839   : > { %v5673_v7 = vsel %vm11995_vm9, %v5386_v10, 1065369472  ;;  %v5364_v3 = vunpack.c.l.b16 %v4468_v8  ;;  %v4273_v34 = vsel %vm10570_vm2, %v9512_v4, 0.0  ;;  %v4306_v62 = vpack.c.bf16 %v4274_v23, %v4274_v23 }
 0x83a   : > { %4659 = vrot.lane.b32.xlu0 %v4633_v48, %s6258_s14  ;;  %v5137_v19 = vunpack.c.l.b16 %v4177_v22  ;;  %v5138_v40 = vunpack.c.l.b16 %v4178_v2  ;;  %v11996_v54 = vshra.s32 %v10243_v57, 4  ;;  %v4434_v37 = vsel %vm4338_vm7, %v11999_v12, 0.0  ;;  %4639 = vrot.lane.b32.xlu1 %v4623_v50, %s6258_s14  ;;  %vm12005_vm7 = vmmov %vm11995_vm9 }
 0x83b   : > { %v4724_v25 = vunpack.c.l.b16 %v3700_v6  ;;  %v5363_v61 = vunpack.c.l.b16 %v4467_v28  ;;  %v3666_v51 = vsel %vm3570_vm14, %v12001_v31, 0.0  ;;  %v5715_v32 = vsel %vm11979_vm5, %v5673_v7, 0  ;;  %v12003_v7 = vld [vmem:[#allocation40_spill] sm:$0xff] }
 0x83c   : > { %vm10666_vm10 = vcmp.ge.s32.totalorder %v11996_v54, 1  ;;  %v4723_v27 = vunpack.c.l.b16 %v3699_v42  ;;  %v4305_v57 = vpack.c.bf16 %v4273_v34, %v4273_v34  ;;  %v4433_v5 = vsel %vm10570_vm2, %v12002_v24, 0.0  ;;  %5794 = vmatpush.bf16.xpose.msra.mxu0 %v5715_v32  ;;  %v12033_v24 = vld [vmem:[#allocation19_spill] sm:$0xff] }
 0x83d   : > { %v3665_v18 = vsel %vm10666_vm10, %v12000_v41, 0.0  ;;  %v5385_v38 = vpack.c.b16 %v5364_v3, %v5363_v61  ;;  %v5250_v10 = vunpack.c.l.b16 %v4306_v62  ;;  %v3954_v21 = vsel %vm10638_vm1, %v10596_v39, 0.0 }
 0x83e   : > { %v4466_v8 = vpack.c.bf16 %v4434_v37, %v4434_v37  ;;  %v3697_v59 = vpack.c.bf16 %v3665_v18, %v3665_v18  ;;  %v3698_v22 = vpack.c.bf16 %v3666_v51, %v3666_v51  ;;  %v10684_v2 = vadd.s32 128, %v8231_v46  ;;  %v12037_v18 = vld [vmem:[#allocation63_spill] sm:$0xff] }
 0x83f   : > { %v10687_v23 = vadd.s32 136, %v8231_v46  ;;  %v3055_v6 = vrot.slane %v11983_v15, 7  ;;  %v5160_v13 = vpack.c.b16 %v5138_v40, %v5137_v19  ;;  %v4745_v28 = vpack.c.b16 %v4724_v25, %v4723_v27  ;;  %4883 = vrot.lane.b32.xlu2 %v4857_v14, %s6255_s16  ;;  %v12010_v27 = vld [vmem:[#allocation46_spill] sm:$0xff] }
 0x840   : > { %v4465_v48 = vpack.c.bf16 %v4433_v5, %v4433_v5  ;;  %v5249_v29 = vunpack.c.l.b16 %v4305_v57  ;;  %v3985_v50 = vpack.c.bf16 %v10617_v36, %v10617_v36  ;;  %v3986_v42 = vpack.c.bf16 %v3954_v21, %v3954_v21 }
 0x841   : > { %vm12004_vm13 = vnez %v12003_v7  ;;  %v3647_v3 = vsel %vm10540_vm8, %v10397_v52, 0.0  ;;  %v5671_v34 = vsel %vm12005_vm7, %v5385_v38, 1065369472  ;;  %v5362_v62 = vunpack.c.l.b16 %v4466_v8  ;;  %v12014_v8 = vld [vmem:[#allocation61_spill] sm:$0xff]  ;;  %v12018_v7 = vld [vmem:[#allocation60_spill] sm:$0xff] }
 0x842   : > { %vm3552_vm1 = vmand %vm10532_vm15, %vm12004_vm13  ;;  %v2990_v19 = vshra.s32 %v10687_v23, 4  ;;  %v3022_v14 = vand.u32 15, %v10687_v23  ;;  %5185 = vrot.lane.b32.xlu0 %v5160_v13, %s6257_s21  ;;  %v5272_v40 = vpack.c.b16 %v5250_v10, %v5249_v29  ;;  %v4721_v54 = vunpack.c.l.b16 %v3697_v59  ;;  %4771 = vrot.lane.b32.xlu1 %v4745_v28, %s6257_s21  ;;  %v10741_v13 = vpop.permute.xlu2 %4885  ;;  %v12015_v29 = vld [vmem:[#allocation9_spill] sm:$0xff] }
 0x843   : > { %v4722_v12 = vunpack.c.l.b16 %v3698_v22  ;;  %v2989_v37 = vshra.s32 %v10684_v2, 4  ;;  %v5361_v25 = vunpack.c.l.b16 %v4465_v48  ;;  %v3648_v61 = vsel %vm3552_vm1, %v10403_v17, 0.0 }
 0x844   : > { %vm10711_vm14 = vcmp.lt.s32.totalorder %v3022_v14, 15  ;;  %vm10717_vm9 = vcmp.lt.s32.totalorder %v2990_v19, 15  ;;  %v5713_v51 = vsel %vm11979_vm5, %v5671_v34, 0  ;;  %v5026_v32 = vunpack.c.l.b16 %v3986_v42 }
 0x845   : > { %vm12011_vm13 = vnez %v12010_v27  ;;  %vm10725_vm7 = vcmp.lt.s32.totalorder %v2989_v37, 15  ;;  %vm4336_vm1 = vmand %vm10717_vm9, %vm10711_vm14  ;;  %v5384_v17 = vpack.c.b16 %v5362_v62, %v5361_v25  ;;  %v3021_v10 = vand.u32 15, %v10684_v2  ;;  %5795 = vmatpush.bf16.xpose.msra.mxu0 %v5713_v51 }
 0x846   : > { %v3775_v57 = vsel %vm12011_vm13, %v10423_v30, 0.0  ;;  %v4431_v5 = vsel %vm10725_vm7, %v10617_v36, 0.0  ;;  %v4432_v38 = vsel %vm4336_vm1, %v10596_v39, 0.0  ;;  %v3679_v30 = vpack.c.bf16 %v3647_v3, %v3647_v3 }
 0x847   : > { %v3680_v21 = vpack.c.bf16 %v3648_v61, %v3648_v61  ;;  %v3409_v59 = vsel %vm10645_vm3, %v12014_v8, 0.0  ;;  %v4464_v22 = vpack.c.bf16 %v4432_v38, %v4432_v38  ;;  %v4744_v28 = vpack.c.b16 %v4722_v12, %v4721_v54  ;;  %5297 = vrot.lane.b32.xlu2 %v5272_v40, %s6255_s16 }
 0x848   : > { %v5025_v48 = vunpack.c.l.b16 %v3985_v50  ;;  %v3808_v42 = vpack.c.bf16 %v12015_v29, %v12015_v29  ;;  %v12016_v36 = vrot.slane %v12014_v8, 7  ;;  %vm12017_vm5 = vcmp.lt.s32.totalorder %v8231_v46, 1 }
 0x849   : > { %v3807_v2 = vpack.c.bf16 %v3775_v57, %v3775_v57  ;;  %v3408_v3 = vsel %vm10666_vm10, %v12018_v7, 0.0  ;;  %v4463_v34 = vpack.c.bf16 %v4431_v5, %v4431_v5  ;;  %v12019_v62 = vrot.slane %v9939_v56, 7  ;;  %vm12020_vm1 = vmmov %vm12017_vm5 }
 0x84a   : > { %v10749_v39 = vsel %vm12017_vm5, %v12016_v36, %v3055_v6  ;;  %v5048_v14 = vpack.c.b16 %v5026_v32, %v5025_v48  ;;  %vm12021_vm2 = vcmask 261120   ;;  %v3441_v12 = vpack.c.bf16 %v3409_v59, %v3409_v59  ;;  %4769 = vrot.lane.b32.xlu0 %v4744_v28, %s6257_s21  ;;  %v10793_v29 = vpop.permute.xlu2 %5301 }
 0x84b   : > { %v10759_v50 = vsel %vm12020_vm1, %v3055_v6, %v12019_v62  ;;  %v5669_v54 = vsel %vm12021_vm2, %v5384_v17, 1065369472  ;;  %vm10762_vm5 = vcmp.ge.s32.totalorder %v3021_v10, 1  ;;  %v4703_v40 = vunpack.c.l.b16 %v3679_v30 }
 0x84c   : > { %v4704_v61 = vunpack.c.l.b16 %v3680_v21  ;;  %v5360_v51 = vunpack.c.l.b16 %v4464_v22  ;;  %v3793_v57 = vsel %vm10546_vm6, %v10749_v39, 0.0  ;;  %vm4047_vm1 = vmand %vm10725_vm7, %vm10762_vm5  ;;  %5073 = vrot.lane.b32.xlu1 %v5048_v14, %s6258_s14  ;;  %v3440_v46 = vpack.c.bf16 %v3408_v3, %v3408_v3 }
 0x84d   : > { %v3826_v6 = vpack.c.bf16 %v10759_v50, %v10759_v50  ;;  %vm10777_vm2 = vcmp.ge.s32.totalorder %v2989_v37, 1  ;;  %vm12026_vm15 = vcmask 269312   ;;  %v4815_v5 = vunpack.c.l.b16 %v3807_v2 }
 0x84e   : > { %v5711_v17 = vsel %vm12026_vm15, %v5669_v54, 0  ;;  %v5359_v38 = vunpack.c.l.b16 %v4463_v34  ;;  %v4144_v10 = vsel %vm10717_vm9, %v10759_v50, 0.0  ;;  %v4610_v30 = vunpack.c.l.b16 %v3441_v12 }
 0x84f   : > { %v3825_v21 = vpack.c.bf16 %v3793_v57, %v3793_v57  ;;  %v4143_v37 = vsel %vm4047_vm1, %v10749_v39, 0.0  ;;  %v3952_v59 = vsel %vm10711_vm14, %v12001_v31, 0.0  ;;  %5796 = vmatpush.bf16.xpose.msra.mxu0 %v5711_v17  ;;  %v4735_v22 = vpack.c.b16 %v4704_v61, %v4703_v40  ;;  %v12030_v40 = vld [vmem:[#allocation25_spill] sm:$0xff]  ;;  %v10820_v17 = vpop.permute.xlu0 %5077 }
 0x850   : > { %v4816_v28 = vunpack.c.l.b16 %v3808_v42  ;;  %v5383_v48 = vpack.c.b16 %v5360_v51, %v5359_v38  ;;  %v4609_v36 = vunpack.c.l.b16 %v3440_v46  ;;  %v4834_v2 = vunpack.c.l.b16 %v3826_v6  ;;  %v12029_v42 = vld [vmem:[#allocation83_spill] sm:$0xff] }
 0x851   : > { %v4176_v3 = vpack.c.bf16 %v4144_v10, %v4144_v10  ;;  %v3983_v34 = vpack.c.bf16 %v12000_v41, %v12000_v41  ;;  %4751 = vrot.lane.b32.xlu2 %v4735_v22, %s6257_s21  ;;  %v4175_v14 = vpack.c.bf16 %v4143_v37, %v4143_v37  ;;  %v3984_v54 = vpack.c.bf16 %v3952_v59, %v3952_v59  ;;  %v12035_v10 = vld [vmem:[#allocation64_spill] sm:$0xff] }
 0x852   : > { %v4847_v62 = vpack.c.b16 %v4816_v28, %v4815_v5  ;;  %v4632_v12 = vpack.c.b16 %v4610_v30, %v4609_v36  ;;  %v4833_v57 = vunpack.c.l.b16 %v3825_v21  ;;  %vm10800_vm15 = vcmp.ge.s32.totalorder %v2990_v19, 1  ;;  %v12038_v28 = vld [vmem:[#allocation20_spill] sm:$0xff] }
 0x853   : > { %vm12031_vm1 = vnez %v12030_v40  ;;  %vm12032_vm8 = vcmask 261120   ;;  %v4271_v51 = vsel %vm10725_vm7, %v11983_v15, 0.0  ;;  %vm3568_vm13 = vmand %vm10800_vm15, %vm10711_vm14  ;;  %v5136_v19 = vunpack.c.l.b16 %v4176_v3 }
 0x854   : > { %v3289_v61 = vsel %vm12031_vm1, %v12029_v42, 0.0  ;;  %4863 = vrot.lane.b32.xlu0 %v4847_v62, %s6255_s16  ;;  %v5667_v41 = vsel %vm12032_vm8, %v5383_v48, 1065369472  ;;  %4657 = vrot.lane.b32.xlu1 %v4632_v12, %s6258_s14  ;;  %v4856_v23 = vpack.c.b16 %v4834_v2, %v4833_v57  ;;  %v5023_v46 = vunpack.c.l.b16 %v3983_v34  ;;  %vm12034_vm8 = vmand %vm10666_vm10, %vm10546_vm6  ;;  %v12040_v48 = vld [vmem:[#allocation79_spill] sm:$0xff]  ;;  %v12045_v62 = vld [vmem:[#allocation65_spill] sm:$0xff] }
 0x855   : > { %v4272_v6 = vsel %vm10717_vm9, %v9939_v56, 0.0  ;;  %v5135_v5 = vunpack.c.l.b16 %v4175_v14  ;;  %v5024_v38 = vunpack.c.l.b16 %v3984_v54  ;;  %v3280_v52 = vsel %vm12034_vm8, %v12033_v24, 0.0  ;;  %vm12044_vm6 = vmand %vm10777_vm2, %vm10762_vm5  ;;  %v12046_v54 = vld [vmem:[#allocation55_spill] sm:$0xff] }
 0x856   : > { %v3281_v30 = vsel %vm10645_vm3, %v12035_v10, 0.0  ;;  %vm12036_vm14 = vcmask 269312   ;;  %v4303_v37 = vpack.c.bf16 %v4271_v51, %v4271_v51  ;;  %v3664_v59 = vsel %vm3568_vm13, %v12037_v18, 0.0  ;;  %v12047_v57 = vld [vmem:[#allocation59_spill] sm:$0xff]  ;;  %vm3186_vm3 = vmand %vm11989_vm4, %vm10432_vm12 }
 0x857   : > { %v5709_v21 = vsel %vm12036_vm14, %v5667_v41, 0  ;;  %v3312_v22 = vpack.c.bf16 %v3280_v52, %v3280_v52  ;;  %vm12039_vm9 = vnez %v12038_v28  ;;  %vm12041_vm7 = vnez %v12040_v48 }
 0x858   : > { %vm3192_vm1 = vmand %vm12041_vm7, %vm12039_vm9  ;;  %5797 = vmatpush.bf16.xpose.msra.mxu0 %v5709_v21  ;;  %v4304_v47 = vpack.c.bf16 %v4272_v6, %v4272_v6  ;;  %v3407_v36 = vsel %vm10800_vm15, %v12042_v1, 0.0  ;;  %v3313_v2 = vpack.c.bf16 %v3281_v30, %v3281_v30  ;;  %v3278_v3 = vsel %vm12044_vm6, %v12043_v16, 0.0  ;;  %v10860_v6 = vpop.permute.xlu2 %4887  ;;  %v4666_v16 = vpop.permute.xlu0 %4665 }
 0x859   : > { %v5159_v34 = vpack.c.b16 %v5136_v19, %v5135_v5  ;;  %v3663_v14 = vsel %vm10777_vm2, %v12045_v62, 0.0  ;;  %v3406_v12 = vsel %vm10777_vm2, %v12046_v54, 0.0  ;;  %v3279_v42 = vsel %vm10800_vm15, %v12047_v57, 0.0  ;;  %4881 = vrot.lane.b32.xlu2 %v4856_v23, %s6255_s16  ;;  %v12048_v5 = vld [vmem:[#allocation81_spill] sm:$0xff] }
 0x85a   : > { %v3696_v40 = vpack.c.bf16 %v3664_v59, %v3664_v59  ;;  %v10856_v41 = vunpack.c.l.b16 %v3312_v22  ;;  %v10858_v51 = vunpack.c.l.b16 %v3313_v2  ;;  %v3310_v19 = vpack.c.bf16 %v3278_v3, %v3278_v3  ;;  %v10876_v2 = vpop.permute.xlu1 %5189 }
 0x85b   : > { %v3288_v32 = vsel %vm3192_vm1, %v12048_v5, 0.0  ;;  %v5047_v52 = vpack.c.b16 %v5024_v38, %v5023_v46  ;;  %v3439_v31 = vpack.c.bf16 %v3407_v36, %v3407_v36  ;;  %v3311_v30 = vpack.c.bf16 %v3279_v42, %v3279_v42 }
 0x85c   : > { %v3321_v21 = vpack.c.bf16 %v3289_v61, %v3289_v61  ;;  %5183 = vrot.lane.b32.xlu0 %v5159_v34, %s6257_s21  ;;  %v5248_v23 = vunpack.c.l.b16 %v4304_v47  ;;  %v3695_v18 = vpack.c.bf16 %v3663_v14, %v3663_v14  ;;  %v3438_v22 = vpack.c.bf16 %v3406_v12, %v3406_v12 }
 0x85d   : > { %5071 = vrot.lane.b32.xlu1 %v5047_v52, %s6258_s14  ;;  %v10872_v1 = vunpack.c.l.b16 %v3310_v19  ;;  %v10874_v48 = vunpack.c.l.b16 %v3311_v30  ;;  %v3320_v28 = vpack.c.bf16 %v3288_v32, %v3288_v32  ;;  %v5247_v46 = vunpack.c.l.b16 %v4303_v37 }
 0x85e   : > { %v4720_v38 = vunpack.c.l.b16 %v3696_v40  ;;  %v4608_v61 = vunpack.c.l.b16 %v3439_v31  ;;  %v3791_v47 = vsel %vm10762_vm5, %v12033_v24, 0.0  ;;  %v4538_v3 = vunpack.c.l.b16 %v3321_v21  ;;  %v12054_v21 = vld [vmem:[#allocation2_spill] sm:$0xff] }
 0x85f   : > { %v5271_v34 = vpack.c.b16 %v5248_v23, %v5247_v46  ;;  %v4719_v62 = vunpack.c.l.b16 %v3695_v18  ;;  %v3824_v14 = vpack.c.bf16 %v12035_v10, %v12035_v10  ;;  %v4607_v54 = vunpack.c.l.b16 %v3438_v22 }
 0x860   : > { %v4537_v12 = vunpack.c.l.b16 %v3320_v28  ;;  %v3823_v57 = vpack.c.bf16 %v3791_v47, %v3791_v47  ;;  %v10886_v42 = vpop.permute.xlu2 %5303  ;;  %vm12049_vm10 = vcmask 261120   ;;  %vm12050_vm13 = vcmask 523264   ;;  %v10899_v31 = vpop.permute.xlu0 %5079 }
 0x861   : > { %5295 = vrot.lane.b32.xlu2 %v5271_v34, %s6255_s16  ;;  %v4743_v37 = vpack.c.b16 %v4720_v38, %v4719_v62  ;;  %v4631_v25 = vpack.c.b16 %v4608_v61, %v4607_v54  ;;  %v4832_v40 = vunpack.c.l.b16 %v3824_v14  ;;  %v3282_v52 = vsel %vm3186_vm3, %v10749_v39, 0.0  ;;  %v12056_v39 = vld [vmem:[#allocation13_spill] sm:$0xff]  ;;  %vm12059_vm4 = vmmov %vm12049_vm10 }
 0x862   : > { %v4556_v24 = vpack.c.b16 %v4538_v3, %v4537_v12  ;;  %v4778_v19 = vpop.permute.xlu1 %4777  ;;  %v4831_v5 = vunpack.c.l.b16 %v3823_v57  ;;  %vm12052_vm5 = vnez %v12051_v9  ;;  %vm12055_vm12 = vnez %v12054_v21  ;;  %vm12069_vm7 = vmmov %vm12059_vm4 }
 0x863   : > { %vm3194_vm2 = vmand %vm12052_vm5, %vm10227_vm11  ;;  %v3291_v23 = vsel %vm12055_vm12, %v12053_v44, 0.0  ;;  %v3283_v18 = vsel %vm11975_vm0, %v10759_v50, 0.0  ;;  %v3314_v22 = vpack.c.bf16 %v3282_v52, %v3282_v52  ;;  %v3870_v21 = vpack.c.bf16 %v10357_v60, %v10357_v60 }
 0x864   : > { %4767 = vrot.lane.b32.xlu0 %v4743_v37, %s6257_s21  ;;  %v5432_v10 = vsel %vm12049_vm10, %v4556_v24, %v4666_v16  ;;  %v4855_v30 = vpack.c.b16 %v4832_v40, %v4831_v5  ;;  %v3290_v28 = vsel %vm3194_vm2, %v12056_v39, 0.0  ;;  %v3315_v46 = vpack.c.bf16 %v3283_v18, %v3283_v18  ;;  %vm12057_vm11 = vmmov %vm12049_vm10 }
 0x865   : > { %4655 = vrot.lane.b32.xlu1 %v4631_v25, %s6258_s14  ;;  %v10896_v32 = vsel %vm12050_vm13, %v5432_v10, %v4778_v19  ;;  %v3323_v38 = vpack.c.bf16 %v3291_v23, %v3291_v23  ;;  %v3322_v47 = vpack.c.bf16 %v3290_v28, %v3290_v28  ;;  %v10919_v3 = vunpack.c.l.b16 %v3314_v22  ;;  %vm12058_vm0 = vmmov %vm12050_vm13 }
 0x866   : > { %v10915_v20 = vunpack.c.l.b16 %v3315_v46  ;;  %v3869_v23 = vpack.c.bf16 %v10280_v53, %v10280_v53  ;;  %v4958_v18 = vunpack.c.l.b16 %v3870_v21  ;;  %vm12061_vm15 = vmmov %vm12058_vm0  ;;  %vm12064_vm14 = vcmask 785408  }
 0x867   : > { %v4540_v34 = vunpack.c.l.b16 %v3323_v38  ;;  %v4539_v58 = vunpack.c.l.b16 %v3322_v47  ;;  %v3868_v47 = vpack.c.bf16 %v10190_v43, %v10190_v43  ;;  %vm12063_vm8 = vmmov %vm12058_vm0  ;;  %v12065_v43 = vld [vmem:[#allocation12_spill] sm:$0xff]  ;;  %vm12077_vm5 = vnez %v12010_v27 }
 0x868   : > { %v10913_v61 = vpop.permute.xlu2 %4889  ;;  %v4553_v62 = vpack.c.b16 %v10915_v20, %v10919_v3  ;;  %v4668_v50 = vpop.permute.xlu0 %4667  ;;  %v4957_v39 = vunpack.c.l.b16 %v3869_v23  ;;  %vm12066_vm9 = vmmov %vm12064_vm14  ;;  %vm12078_vm2 = vnez %v11957_v63  ;;  %v12121_v3 = vpack.c.b16 %v10874_v48, %v10872_v1 }
 0x869   : > { %4879 = vrot.lane.b32.xlu2 %v4855_v30, %s6255_s16  ;;  %v4557_v14 = vpack.c.b16 %v4540_v34, %v4539_v58  ;;  %v12060_v58 = vld [vmem:[#allocation35_spill] sm:$0xff]  ;;  %vm12070_vm1 = vmmov %vm12058_vm0 }
 0x86a   : > { %v10917_v16 = vpop.permute.xlu1 %5191  ;;  %v4974_v38 = vpack.c.b16 %v4958_v18, %v4957_v39  ;;  %vm12071_vm6 = vmmov %vm12066_vm9 }
 0x86b   : > { %v5435_v54 = vsel %vm12057_vm11, %v4557_v14, %v4668_v50  ;;  %v3867_v50 = vpack.c.bf16 %v12060_v58, %v12060_v58  ;;  %v12062_v14 = vld [vmem:[#allocation15_spill] sm:$0xff]  ;;  %v12068_v58 = vld [vmem:[#allocation14_spill] sm:$0xff]  ;;  %vm12072_vm3 = vmmov %vm12071_vm6  ;;  %vm12079_vm11 = vnez %v11909_v0 }
 0x86c   : > { %vm12075_vm10 = vmmov %vm12059_vm4 }
 0x86d   : > { %v4955_v39 = vunpack.c.l.b16 %v3867_v50  ;;  %vm12076_vm13 = vmmov %vm12058_vm0 }
 0x86e   : > { %vm3166_vm12 = vmand %vm12078_vm2, %vm12077_vm5 }
 0x86f   : > { %v3262_v63 = vsel %vm3166_vm12, %v10341_v35, 0.0 }
 0x870   : > { %v5306_v37 = vpop.permute.xlu2 %5305  ;;  %v5082_v25 = vpop.permute.xlu0 %5081 }
 0x872   : > { %v4780_v12 = vpop.permute.xlu1 %4779 }
 0x873   : > { %v5469_v57 = vsel %vm12058_vm0, %v5435_v54, %v4780_v12  ;;  %v4956_v54 = vunpack.c.l.b16 %v3868_v47 }
 0x878   : > { %v4892_v24 = vpop.permute.xlu2 %4891  ;;  %v10925_v40 = vpop.permute.xlu0 %4669 }
 0x87a   : > { %v5194_v10 = vpop.permute.xlu1 %5193 }
 0x880   : > { %v5308_v19 = vpop.permute.xlu2 %5307 }
 0x882   : > { %v5084_v5 = vpop.permute.xlu0 %5083  ;;  %v10927_v52 = vpop.permute.xlu1 %4781 }
 0x888   : > { %v10929_v30 = vpop.permute.xlu2 %4893 }
 0x88c   : > { %v5086_v9 = vpop.permute.xlu0 %5085 }
 0x88d   : > { %v5198_v44 = vpop.permute.xlu1 %5197  ;;  %v5568_v34 = vsel %vm12059_vm4, %v4974_v38, %v5086_v9  ;;  %v12067_v38 = vld [vmem:[#allocation10_spill] sm:$0xff] }
 0x88e   : > { %v5600_v60 = vsel %vm12061_vm15, %v5568_v34, %v5198_v44  ;;  %v3866_v44 = vpack.c.bf16 %v12067_v38, %v12067_v38  ;;  %v4973_v34 = vpack.c.b16 %v4956_v54, %v4955_v39  ;;  %v12073_v54 = vld [vmem:[#allocation82_spill] sm:$0xff]  ;;  %vm12082_vm15 = vnez %v11954_v55 }
 0x88f   : > { %v5647_v9 = vsel %vm12066_vm9, %v5600_v60, %v12065_v43  ;;  %v10962_v60 = vsel %vm12072_vm3, %v5469_v57, %v4892_v24  ;;  %v3864_v39 = vpack.c.bf16 %v12073_v54, %v12073_v54  ;;  %v12080_v24 = vld [vmem:[#allocation16_spill] sm:$0xff]  ;;  %v3861_v54 = vpack.c.bf16 %v11949_v33, %v11949_v33  ;;  %vm12088_vm9 = vmmov %vm12069_vm7 }
 0x890   : > { %v5168_v22 = vpop.permute.xlu2 %5167  ;;  %v5565_v47 = vsel %vm12069_vm7, %v4973_v34, %v5084_v5  ;;  %v4954_v36 = vunpack.c.l.b16 %v3866_v44  ;;  %v12074_v5 = vld [vmem:[#allocation22_spill] sm:$0xff]  ;;  %vm12081_vm0 = vnez %v12080_v24  ;;  %vm12089_vm7 = vmmov %vm12070_vm1 }
 0x891   : > { %v5570_v53 = vsel %vm12063_vm8, %v12062_v14, %v5168_v22  ;;  %v3865_v22 = vpack.c.bf16 %v12068_v58, %v12068_v58  ;;  %v4952_v57 = vunpack.c.l.b16 %v3864_v39  ;;  %vm3196_vm4 = vmand %vm12081_vm0, %vm12079_vm11  ;;  %v12084_v44 = vld [vmem:[#allocation34_spill] sm:$0xff]  ;;  %v12087_v58 = vld [vmem:[#allocation5_spill] sm:$0xff] }
 0x892   : > { %vm12085_vm8 = vnez %v12084_v44  ;;  %v3292_v0 = vsel %vm3196_vm4, %v12087_v58, 0.0  ;;  %vm12095_vm5 = vmmov %vm12089_vm7 }
 0x893   : > { %vm12096_vm2 = vmmov %vm12095_vm5 }
 0x896   : > { %v10935_v28 = vpop.permute.xlu0 %5075 }
 0x897   : > { %v5196_v46 = vpop.permute.xlu1 %5195 }
 0x898   : > { %v10945_v21 = vpop.permute.xlu2 %5299  ;;  %v5598_v14 = vsel %vm12070_vm1, %v5565_v47, %v5196_v46  ;;  %v3863_v46 = vpack.c.bf16 %v12074_v5, %v12074_v5  ;;  %vm12090_vm1 = vmmov %vm12072_vm3 }
 0x899   : > { %vm12097_vm12 = vmmov %vm12090_vm1 }
 0x89a   : > { %v4951_v27 = vunpack.c.l.b16 %v3863_v46  ;;  %vm12098_vm11 = vmmov %vm12090_vm1 }
 0x89b   : > { %vm12099_vm0 = vmmov %vm12090_vm1 }
 0x89c   : > { %v4971_v55 = vpack.c.b16 %v4952_v57, %v4951_v27 }
 0x89e   : > { %v5559_v35 = vsel %vm12088_vm9, %v4971_v55, %v10899_v31  ;;  %v3860_v31 = vpack.c.bf16 %v11992_v11, %v11992_v11  ;;  %v3857_v55 = vpack.c.bf16 %v11983_v15, %v11983_v15 }
 0x89f   : > { %v5594_v39 = vsel %vm12089_vm7, %v5559_v35, %v10917_v16  ;;  %v3856_v35 = vpack.c.bf16 %v12014_v8, %v12014_v8 }
 0x8a0   : > { %v5638_v24 = vsel %vm12090_vm1, %v5594_v39, %v10886_v42  ;;  %v4948_v11 = vunpack.c.l.b16 %v3860_v31  ;;  %vm12106_vm1 = vmmov %vm12099_vm0  ;;  %v12117_v31 = vpack.c.b16 %v10858_v51, %v10856_v41 }
 0x8a1   : > { %v10947_v23 = vpop.permute.xlu1 %5187 }
 0x8a4   : > { %v5280_v12 = vpop.permute.xlu0 %5279 }
 0x8a5   : > { %v5602_v18 = vsel %vm12064_vm14, %v5570_v53, %v5280_v12  ;;  %v4953_v53 = vunpack.c.l.b16 %v3865_v22  ;;  %v5644_v12 = vsel %vm12071_vm6, %v5598_v14, %v5308_v19  ;;  %vm12086_vm14 = vmmov %vm12072_vm3 }
 0x8a6   : > { %5745 = vmatpush.bf16.xpose.msrb.mxu2 %v5602_v18  ;;  %v10964_v18 = vpop.permute.xlu2 %4883  ;;  %vm12091_vm6 = vmmov %vm12088_vm9  ;;  %vm12104_vm9 = vcmask 269312  }
 0x8a7   : > { %v4972_v43 = vpack.c.b16 %v4954_v36, %v4953_v53  ;;  %v3263_v36 = vsel %vm12082_vm15, %v10474_v26, 0.0  ;;  %v3862_v26 = vpack.c.bf16 %v11940_v45, %v11940_v45  ;;  %vm12092_vm3 = vmmov %vm12091_vm6 }
 0x8a8   : > { %v3295_v22 = vpack.c.bf16 %v3263_v36, %v3263_v36  ;;  %vm12100_vm4 = vmmov %vm12092_vm3 }
 0x8a9   : > { %v4950_v5 = vunpack.c.l.b16 %v3862_v26  ;;  %vm12101_vm15 = vmmov %vm12096_vm2 }
 0x8ac   : > { %v10958_v59 = vpop.permute.xlu0 %4659  ;;  %v4640_v50 = vpop.permute.xlu1 %4639 }
 0x8ae   : > { %5777 = vmatpush.bf16.xpose.msra.mxu2 %v5647_v9  ;;  %v5562_v9 = vsel %vm12075_vm10, %v4972_v43, %v5082_v25  ;;  %v12083_v25 = vld [vmem:[#allocation51_spill] sm:$0xff]  ;;  %v10995_v53 = vpop.permute.xlu2 %5297  ;;  %v4512_v43 = vunpack.c.l.b16 %v3295_v22  ;;  %vm12093_vm10 = vmmov %vm12092_vm3 }
 0x8af   : > { %v5596_v38 = vsel %vm12076_vm13, %v5562_v9, %v5194_v10  ;;  %v3293_v10 = vsel %vm12085_vm8, %v12083_v25, 0.0  ;;  %vm12094_vm13 = vmmov %vm12089_vm7 }
 0x8b0   : > { %v5641_v34 = vsel %vm12086_vm14, %v5596_v38, %v5306_v37  ;;  %v3325_v14 = vpack.c.bf16 %v3293_v10, %v3293_v10  ;;  %v3324_v37 = vpack.c.bf16 %v3292_v0, %v3292_v0  ;;  %v4949_v38 = vunpack.c.l.b16 %v3861_v54  ;;  %vm12102_vm8 = vmmov %vm12099_vm0 }
 0x8b1   : > { %vm12103_vm14 = vmmov %vm12092_vm3 }
 0x8b2   : > { %v4542_v46 = vunpack.c.l.b16 %v3325_v14  ;;  %v4541_v57 = vunpack.c.l.b16 %v3324_v37  ;;  %v4970_v33 = vpack.c.b16 %v4950_v5, %v4949_v38  ;;  %v4944_v5 = vunpack.c.l.b16 %v3856_v35  ;;  %vm12105_vm7 = vmmov %vm12096_vm2 }
 0x8b3   : > { %v5513_v38 = vsel %vm12106_vm1, %v10896_v32, %v10913_v61  ;;  %v12112_v32 = vld [vmem:[#allocation52_spill] sm:$0xff] }
 0x8b4   : > { %v10983_v19 = vpop.permute.xlu0 %5185  ;;  %v10991_v47 = vpop.permute.xlu1 %4771  ;;  %v4558_v25 = vpack.c.b16 %v4542_v46, %v4541_v57  ;;  %v5556_v10 = vsel %vm12092_vm3, %v4970_v33, %v10820_v17 }
 0x8b5   : > { %v5592_v42 = vsel %vm12094_vm13, %v5556_v10, %v10876_v2  ;;  %vm12109_vm13 = vmmov %vm12099_vm0 }
 0x8b6   : > { %5778 = vmatpush.bf16.xpose.msra.mxu2 %v5644_v12  ;;  %v3294_v12 = vpack.c.bf16 %v3262_v63, %v3262_v63  ;;  %v5438_v27 = vsel %vm12093_vm10, %v4558_v25, %v10925_v40  ;;  %v3859_v63 = vpack.c.bf16 %v9512_v4, %v9512_v4  ;;  %v4752_v58 = vpop.permute.xlu2 %4751  ;;  %v3858_v40 = vpack.c.bf16 %v9939_v56, %v9939_v56  ;;  %vm12108_vm10 = vmmov %vm12096_vm2 }
 0x8b7   : > { %v5635_v2 = vsel %vm12099_vm0, %v5592_v42, %v10793_v29  ;;  %v4945_v29 = vunpack.c.l.b16 %v3857_v55 }
 0x8b8   : > { %v4511_v45 = vunpack.c.l.b16 %v3294_v12  ;;  %v4947_v17 = vunpack.c.l.b16 %v3859_v63  ;;  %v4946_v14 = vunpack.c.l.b16 %v3858_v40 }
 0x8ba   : > { %v4543_v36 = vpack.c.b16 %v4512_v43, %v4511_v45  ;;  %v4969_v26 = vpack.c.b16 %v4948_v11, %v4947_v17  ;;  %v4968_v54 = vpack.c.b16 %v4946_v14, %v4945_v29  ;;  %v3855_v43 = vpack.c.bf16 %v12018_v7, %v12018_v7 }
 0x8bc   : > { %v11003_v9 = vpop.permute.xlu0 %4769  ;;  %v5393_v16 = vsel %vm12091_vm6, %v4543_v36, %v4640_v50  ;;  %v5553_v56 = vsel %vm12100_vm4, %v4969_v26, %v10935_v28  ;;  %v4943_v46 = vunpack.c.l.b16 %v3855_v43  ;;  %vm12107_vm6 = vmmov %vm12099_vm0 }
 0x8bd   : > { %v5441_v50 = vsel %vm12096_vm2, %v5393_v16, %v4752_v58  ;;  %vm12111_vm2 = vmmov %vm12104_vm9 }
 0x8be   : > { %5779 = vmatpush.bf16.xpose.msra.mxu2 %v5641_v34  ;;  %v5074_v44 = vpop.permute.xlu1 %5073  ;;  %v5471_v34 = vsel %vm12095_vm5, %v5438_v27, %v10927_v52  ;;  %v5682_v52 = vld [vmem:[%s11095_s3] sm:$0x3f]  ;;  %v4882_v8 = vpop.permute.xlu2 %4881  ;;  %v4967_v45 = vpack.c.b16 %v4944_v5, %v4943_v46  ;;  %vm12110_vm5 = vmmov %vm12099_vm0 }
 0x8bf   : > { %v5519_v4 = vsel %vm12098_vm11, %v5471_v34, %v10929_v30  ;;  %5684 = vst [vmem:[#allocation1] ss:$4 sm:$0xff] %v5682_v52  ;;  %v5590_v30 = vsel %vm12101_vm15, %v5553_v56, %v10947_v23  ;;  %v5550_v28 = vsel %vm12103_vm14, %v4968_v54, %v5074_v44  ;;  %vm12114_vm11 = vmmov %vm12092_vm3 }
 0x8c0   : > { %v5632_v37 = vsel %vm12102_vm8, %v5590_v30, %v10945_v21  ;;  %v5588_v21 = vsel %vm12105_vm7, %v5550_v28, %v10983_v19  ;;  %v5510_v19 = vsel %vm12109_vm13, %v10346_v49, %v10860_v6  ;;  %vm12116_vm4 = vmmov %vm12106_vm1 }
 0x8c1   : > { %v5629_v7 = vsel %vm12107_vm6, %v5588_v21, %v10995_v53  ;;  %v5423_v53 = vsel %vm12114_vm11, %v4553_v62, %v10958_v59  ;;  %vm12118_vm15 = vmmov %vm12092_vm3  ;;  %vm5806_vm6 = vcmask 1043456  }
 0x8c2   : > { %vm12120_vm14 = vmmov %vm12106_vm1 }
 0x8c6   : > { %5780 = vmatpush.bf16.xpose.msra.mxu2 %v5638_v24  ;;  %v4864_v0 = vpop.permute.xlu0 %4863  ;;  %v4658_v12 = vpop.permute.xlu1 %4657  ;;  %v5686_v15 = vld.sshfl [vmem:[#allocation1 + $0x8] sm:$0xff pattern:$0x73625140]  ;;  %v5685_v39 = vld.sshfl [vmem:[#allocation1] sm:$0xff pattern:$0x73625140] }
 0x8c7   : > { %v5474_v22 = vsel %vm12097_vm12, %v5441_v50, %v4864_v0  ;;  %5746 = vmatmul.bf16.vlgmr.msrb.gmra.mxu2 %v5686_v15  ;;  %v5687_v23 = vld.sshfl [vmem:[#allocation1 + $0x10] sm:$0xff pattern:$0x73625140]  ;;  %v5296_v33 = vpop.permute.xlu2 %5295  ;;  %vm12113_vm12 = vmmov %vm12099_vm0 }
 0x8c8   : > { %5732 = vmatpush.bf16.xpose.msra.mxu1 %v5474_v22  ;;  %6005 = vmatmul.msk.bf16.vlgmr.msrb.gmra.mxu0 %vm12104_vm9, %v5687_v23  ;;  %v5507_v61 = vsel %vm12113_vm12, %v12112_v32, %v10741_v13  ;;  %vm12115_vm0 = vmmov %vm12105_vm7  ;;  %v5420_v13 = vsel %vm12118_vm15, %v12117_v31, %v4658_v12 }
 0x8c9   : > { %v5461_v49 = vsel %vm12115_vm0, %v5423_v53, %v10991_v47  ;;  %vm12119_vm8 = vmmov %vm12115_vm0 }
 0x8ca   : > { %v5504_v6 = vsel %vm12116_vm4, %v5461_v49, %v10964_v18  ;;  %v5459_v16 = vsel %vm12119_vm8, %v5420_v13, %v11003_v9  ;;  %vm12122_vm9 = vmmov %vm12092_vm3 }
 0x8cb   : > { %v5501_v20 = vsel %vm12120_vm14, %v5459_v16, %v4882_v8  ;;  %vm12123_vm7 = vmmov %vm12115_vm0 }
 0x8ce   : > { %5781 = vmatpush.bf16.xpose.msra.mxu2 %v5635_v2  ;;  %v5184_v57 = vpop.permute.xlu0 %5183 }
 0x8cf   : > { %5733 = vmatmul.bf16.vlgmr.msra.gmra.mxu1 %v5685_v39  ;;  %v4880_v47 = vpop.permute.xlu2 %4879 }
 0x8d0   : > { %5764 = vmatpush.bf16.xpose.msrb.mxu1 %v5519_v4 }
 0x8d6   : > { %5782 = vmatpush.bf16.xpose.msra.mxu2 %v5632_v37  ;;  %v4768_v59 = vpop.permute.xlu0 %4767 }
 0x8d8   : > { %5765 = vmatpush.bf16.xpose.msrb.mxu1 %v10962_v60  ;;  %v5072_v60 = vpop.permute.xlu1 %5071  ;;  %6006 = vmatmul.msk.bf16.vlgmr.msra.gmra.mxu0 %vm12111_vm2, %v5687_v23 }
 0x8d9   : > { %v5547_v24 = vsel %vm12092_vm3, %v4967_v45, %v5072_v60 }
 0x8da   : > { %v5586_v36 = vsel %vm12108_vm10, %v5547_v24, %v5184_v57 }
 0x8db   : > { %v5626_v25 = vsel %vm12110_vm5, %v5586_v36, %v5296_v33 }
 0x8de   : > { %5783 = vmatpush.bf16.xpose.msra.mxu2 %v5629_v7 }
 0x8e0   : > { %5766 = vmatpush.bf16.xpose.msrb.mxu1 %v5513_v38  ;;  %v4656_v44 = vpop.permute.xlu1 %4655 }
 0x8e1   : > { %v5417_v62 = vsel %vm12122_vm9, %v12121_v3, %v4656_v44 }
 0x8e2   : > { %v5457_v18 = vsel %vm12123_vm7, %v5417_v62, %v4768_v59 }
 0x8e3   : > { %v5498_v41 = vsel %vm12106_vm1, %v5457_v18, %v4880_v47 }
 0x8e6   : > { %5784 = vmatpush.bf16.xpose.msra.mxu2 %v5626_v25 }
 0x8e8   : > { %5767 = vmatpush.bf16.xpose.msrb.mxu1 %v5510_v19 }
 0x8ed   : > { %5785 = vmatmul.bf16.vlgmr.msra.gmra.mxu2 %v5686_v15 }
 0x8f0   : > { %5768 = vmatpush.bf16.xpose.msrb.mxu1 %v5507_v61 }
 0x8f8   : > { %5769 = vmatpush.bf16.xpose.msrb.mxu1 %v5504_v6 }
 0x900   : > { %5770 = vmatpush.bf16.xpose.msrb.mxu1 %v5501_v20 }
 0x908   : > { %5771 = vmatpush.bf16.xpose.msrb.mxu1 %v5498_v41 }
 0x90f   : > { %5772 = vmatmul.bf16.vlgmr.msrb.gmra.mxu1 %v5685_v39 }
 0x945   : > { %v5760_v9 = vpop.f32.mrf.mxu0 }
 0x94a   : > { %v5747_v10 = vpop.f32.mrf.mxu2 }
 0x94c   : > { %v5734_v51 = vpop.f32.mrf.mxu1 }
 0x94d   : > { %v5762_v63 = vpop.f32.mrf.mxu0  ;;  %v5748_v0 = vadd.f32 %v5747_v10, %v5734_v51 }
 0x94f   : > { %v5761_v17 = vadd.f32 %v5760_v9, %v5748_v0 }
 0x952   : > { %v5749_v42 = vpop.f32.mrf.mxu2 }
 0x954   : > { %v5736_v27 = vpop.f32.mrf.mxu1 }
 0x955   : > { %v5799_v34 = vpop.f32.mrf.mxu0 }
 0x95d   : > { %v5801_v58 = vpop.f32.mrf.mxu0 }
 0x970   : > { %v5786_v11 = vpop.f32.mrf.mxu2 }
 0x978   : > { %v5788_v1 = vpop.f32.mrf.mxu2 }
 0x98c   : > { %v5773_v48 = vpop.f32.mrf.mxu1 }
 0x98d   : > { %v5787_v50 = vadd.f32 %v5786_v11, %v5773_v48 }
 0x98f   : > { %v5800_v22 = vadd.f32 %v5799_v34, %v5787_v50 }
 0x991   : > { %v5805_v40 = vrot.slane %v5800_v22, 4 }
 0x993   : > { %v5807_v4 = vsel %vm5806_vm6, %v5761_v17, %v5805_v40 }
 0x994   : > { %5809 = vst [vmem:[%s244_s28] sm:$0xff] %v5807_v4  ;;  %v5775_v2 = vpop.f32.mrf.mxu1 }
 0x995 PF: > { %s15_s18 = sadd.s32 1, %s6253_s18  }
 0x996   : > { %p12_p4 = scmp.ge.s32.totalorder %s15_s18, 4  }
 0x998   :  { %14 = sbr.rel (!%p12_p4) target bundleno = 1 (0x1), region = 73 }

</bundles_post_ra>
